<compile_context>
chip_gen: v7x
topology: tpu7x:2x2x1
jax: 0.10.0
libtpu: 0.0.40
codegen_flags: <defaults>
</compile_context>

<pallas_src>
import functools

import jax
import jax.numpy as jnp
from jax import lax
from jax.experimental import pallas as pl
from jax.experimental.pallas import tpu as pltpu

VMEM = pl.BlockSpec(memory_space=pltpu.MemorySpace.VMEM)

_KMAX_DIL = 13                 # max dilated-branch kernel size
_KMAX_PLAIN = 11               # max plain-encoder kernel size
_DILATIONS = (1, 2, 4)
_BN_EPS = 1e-5
_COLS_PAD = 128                # lane-dense width of the packed im2col input
_OUT_PAD = 128                 # lane-dense width of the padded final output
_PPG_CENTER = _KMAX_PLAIN // 2  # column index of x[t] inside the ppg im2col


def _dilated_tap_offsets(L):
    """Per dilated layer: list of (tap index in the 13-wide frame, time offset).
    Taps whose |offset| >= L only ever see zero padding and are skipped."""
    out = []
    for d in _DILATIONS:
        taps = []
        for j in range(_KMAX_DIL):
            off = (j - _KMAX_DIL // 2) * d
            if abs(off) < L:
                taps.append((j, off))
        out.append(taps)
    return out


# ----------------------------------------------------------------------------
# Single fused forward kernel.
# ----------------------------------------------------------------------------
def _fused_forward_kernel(
        cols_ref, emb_ref,
        botw_ref, botb_ref,
        tapw0_ref, tapw1_ref, tapw2_ref,
        convb_ref, bng_ref, bnb_ref,
        encw_ref, encb_ref,
        wp1_ref, bp1_ref, wp2_ref, bp2_ref,
        scale_ref,
        w0_ref, b0_ref, whh0_ref,
        w1_ref, b1_ref, whh1_ref,
        fc1w_ref, fc1b_ref, fc2w_ref, fc2b_ref,
        de1w_ref, de1b_ref, de2w_ref, de2b_ref,
        o_ref, *, B, L, H, C, tap_offsets):
    f32 = jnp.float32
    bf16 = jnp.bfloat16
    LB = L * B

    cols = cols_ref[...]                                   # (LB, 128) f32

    # ------------- dilated encoder (6 merged branches, C=192 channels) -------------
    # bottleneck 1x1 conv on the raw ppg signal (= center column of the ppg im2col).
    x_center = cols[:, _PPG_CENTER:_PPG_CENTER + 1]        # (LB, 1)
    h = x_center * botw_ref[...] + botb_ref[...]           # (LB, C) f32, VPU

    tapw_refs = (tapw0_ref, tapw1_ref, tapw2_ref)
    for li, offsets in enumerate(tap_offsets):
        # per-layer im2col: statically shifted (zero padded) copies of h,
        # concatenated on lanes -> ONE (LB, ntaps*C) @ (ntaps*C, C) MXU matmul.
        maxpad = max([abs(off) for (_, off) in offsets] + [0]) * B
        if maxpad > 0:
            zpad = jnp.zeros((maxpad, C), f32)
            hp = jnp.concatenate([zpad, h, zpad], axis=0)  # (LB + 2*maxpad, C)
        else:
            hp = h
        shifted = [hp[maxpad + off * B: maxpad + off * B + LB, :]
                   for (_, off) in offsets]
        im2col = jnp.concatenate(shifted, axis=1).astype(bf16)   # (LB, ntaps*C)
        acc = jnp.dot(im2col, tapw_refs[li][...],
                      preferred_element_type=f32)                # (LB, C) f32
        # fused epilogue: relu + residual + BatchNorm1d with batch statistics
        z = jnp.maximum(acc + convb_ref[li], 0.0) + h
        mean = jnp.mean(z, axis=0, keepdims=True)                # sublane reduce (XLU)
        cent = z - mean
        var = jnp.mean(cent * cent, axis=0, keepdims=True)
        h = bng_ref[li] * cent * lax.rsqrt(var + _BN_EPS) + bnb_ref[li]
    enc1 = h                                               # ppg_encoder1 output

    # ------------- plain signal encoders (ppg + noise merged on Cout) -------------
    enc23 = (jnp.dot(cols.astype(bf16), encw_ref[...],
                     preferred_element_type=f32) + encb_ref[...])  # (LB, 2C)

    # ------------- diffusion embedding MLP (input pre-tiled to LB rows) -------------
    e = (jnp.dot(emb_ref[...].astype(bf16), wp1_ref[...],
                 preferred_element_type=f32) + bp1_ref[...])
    e = e * (1.0 / (1.0 + jnp.exp(-e)))                    # silu
    e = (jnp.dot(e.astype(bf16), wp2_ref[...],
                 preferred_element_type=f32) + bp2_ref[...])
    e = e * (1.0 / (1.0 + jnp.exp(-e)))                    # (LB, C)

    # ------------- combine [f1 | f2] and hoisted RNN layer-0 input projection -------------
    add_term = jnp.concatenate([e + scale_ref[...] * enc1, e], axis=1)   # (LB, 2C)
    f_cat = enc23 + add_term                               # == concat([f1, f2], dim=1)
    p0 = (jnp.dot(f_cat.astype(bf16), w0_ref[...],
                  preferred_element_type=f32) + b0_ref[...])             # (LB, 2H)

    # ------------- bidirectional 2-layer tanh RNN -------------
    def rev_time(x):
        # reverse time-major row blocks: row (l*B + b) -> ((L-1-l)*B + b)
        return jnp.concatenate(
            [x[(L - 1 - l) * B:(L - l) * B, :] for l in range(L)], axis=0)

    def bi_layer(p, whh):
        # p: (LB, 2H) hoisted input projections ([fwd lanes | bwd lanes]).
        # Merged fwd/bwd recurrence: state (B, 2H), whh = blkdiag(whh_f, whh_b).
        p_in = jnp.concatenate([p[:, :H], rev_time(p[:, H:])], axis=1)
        hc = jnp.zeros((B, 2 * H), f32)
        states = [None] * L
        for t in range(L):
            x_t = p_in[t * B:(t + 1) * B, :]
            hc = jnp.tanh(x_t + jnp.dot(hc.astype(bf16), whh,
                                        preferred_element_type=f32))
            states[t] = hc
        out_f = jnp.concatenate([states[t][:, :H] for t in range(L)], axis=0)
        out_b = jnp.concatenate([states[L - 1 - l][:, H:] for l in range(L)], axis=0)
        return jnp.concatenate([out_f, out_b], axis=1)      # (LB, 2H), time-major

    out0 = bi_layer(p0, whh0_ref[...])
    p1 = (jnp.dot(out0.astype(bf16), w1_ref[...],
                  preferred_element_type=f32) + b1_ref[...])   # hoisted layer-1 proj
    rnn_out = bi_layer(p1, whh1_ref[...])                      # (LB, 2H)

    # ------------- MLP tail: fc1 -> relu -> fc2 -> relu -> de.fc1 -> relu -> de.fc2 -------------
    y = jnp.maximum(jnp.dot(rnn_out.astype(bf16), fc1w_ref[...],
                            preferred_element_type=f32) + fc1b_ref[...], 0.0)
    y = jnp.dot(y.astype(bf16), fc2w_ref[...],
                preferred_element_type=f32) + fc2b_ref[...]
    y = jnp.maximum(y, 0.0)                   # F.relu around diff_model output
    y = jnp.maximum(jnp.dot(y.astype(bf16), de1w_ref[...],
                            preferred_element_type=f32) + de1b_ref[...], 0.0)
    # de.fc2 padded to 128 output lanes (col 0 is the real output) -> unmasked store.
    o_ref[...] = (jnp.dot(y.astype(bf16), de2w_ref[...],
                          preferred_element_type=f32) + de2b_ref[...])


# ----------------------------------------------------------------------------
# Wrapper glue (tiny XLA ops only).
# ----------------------------------------------------------------------------
def _im2col_k11(x):
    """x: (B, 1, L) -> (L*B, 11) im2col columns, time-major rows (row = l*B + b)."""
    B, _, L = x.shape
    pad = _KMAX_PLAIN // 2
    xp = jnp.pad(x[:, 0, :], ((0, 0), (pad, pad)))
    cols = jnp.stack([xp[:, k:k + L] for k in range(_KMAX_PLAIN)], axis=-1)  # (B,L,11)
    return cols.transpose(1, 0, 2).reshape(L * B, _KMAX_PLAIN)


def diffusion_basemodel_forward(packed, ppg, noise, step):
    B, _, L = ppg.shape
    LB = L * B
    H = packed["rnn0_whh"].shape[0] // 2
    C = packed["scale"].shape[1]
    tap_offsets = tuple(tuple(t) for t in _dilated_tap_offsets(L))

    # XLA glue: embedding-table gather (+ time broadcast), im2col of the two
    # 1-channel inputs, lane padding.  Everything else is one pallas_call.
    emb_lb = jnp.tile(packed["demb_table"][step], (L, 1))               # (LB, 128)
    cols = jnp.concatenate([_im2col_k11(ppg), _im2col_k11(noise)], axis=1)
    cols = jnp.pad(cols, ((0, 0), (0, _COLS_PAD - cols.shape[1])))      # (LB, 128)

    kern = functools.partial(_fused_forward_kernel, B=B, L=L, H=H, C=C,
                             tap_offsets=tap_offsets)
    out = pl.pallas_call(
        kern,
        out_shape=jax.ShapeDtypeStruct((LB, _OUT_PAD), jnp.float32),
        in_specs=[VMEM] * 31,
        out_specs=VMEM,
    )(cols, emb_lb,
      packed["dil_bottle_w"], packed["dil_bottle_b"],
      packed["dil_tap_w0"], packed["dil_tap_w1"], packed["dil_tap_w2"],
      packed["dil_conv_b"], packed["dil_bn_g"], packed["dil_bn_b"],
      packed["enc_w"], packed["enc_b"],
      packed["demb_w1"], packed["demb_b1"], packed["demb_w2"], packed["demb_b2"],
      packed["scale"],
      packed["rnn0_wih"], packed["rnn0_b"], packed["rnn0_whh"],
      packed["rnn1_wih"], packed["rnn1_b"], packed["rnn1_whh"],
      packed["fc1_w"], packed["fc1_b"], packed["fc2_w"], packed["fc2_b"],
      packed["de1_w"], packed["de1_b"], packed["de2_w"], packed["de2_b"])

    return out[:, 0].reshape(L, B, 1).transpose(1, 0, 2)                # (B, L, 1)


# ----------------------------------------------------------------------------
# One-time parameter packing (run outside jit).
# ----------------------------------------------------------------------------
def pack_params(params, B, L):
    f32 = jnp.float32
    bf16 = jnp.bfloat16
    packed = {}

    # ---- plain signal encoders: all kernel sizes padded to 11, ppg/noise merged
    #      block-diagonally on a 128-row (lane-dense) K axis ----
    def plain_block(convs):
        ws, bs = [], []
        for p in convs:
            w = p["w"]                                      # (32, 1, ks)
            ks = w.shape[2]
            pad = (_KMAX_PLAIN - ks) // 2
            wpad = jnp.pad(w, ((0, 0), (0, 0), (pad, pad)))  # (32, 1, 11)
            ws.append(wpad[:, 0, :].T)                      # (11, 32)
            bs.append(p["b"])
        return jnp.concatenate(ws, axis=1), jnp.concatenate(bs)

    wp, bp = plain_block(params["ppg_enc2"])                # (11, 192), (192,)
    wn, bn = plain_block(params["noise_enc"])
    C = wp.shape[1]
    encw = jnp.zeros((_COLS_PAD, 2 * C), f32)
    encw = encw.at[:_KMAX_PLAIN, :C].set(wp)
    encw = encw.at[_KMAX_PLAIN:2 * _KMAX_PLAIN, C:].set(wn)
    packed["enc_w"] = encw.astype(bf16)
    packed["enc_b"] = jnp.concatenate([bp, bn]).reshape(1, 2 * C).astype(f32)

    # ---- dilated encoder ----
    branches = params["ppg_enc1"]
    G = len(branches)
    assert C == 32 * G
    for p in branches:
        assert p["layer0_w"].shape[2] <= _KMAX_DIL
    packed["dil_bottle_w"] = jnp.concatenate(
        [p["bottle_w"][:, 0, 0] for p in branches]).reshape(1, C).astype(f32)
    packed["dil_bottle_b"] = jnp.concatenate(
        [p["bottle_b"] for p in branches]).reshape(1, C).astype(f32)

    for li, taps in enumerate(_dilated_tap_offsets(L)):
        ntaps = len(taps)
        w_layer = jnp.zeros((ntaps * C, C), f32)
        for t_idx, (j, _off) in enumerate(taps):
            for g, p in enumerate(branches):
                w = p[f"layer{li}_w"]                       # (32, 32, ks_g)
                ks = w.shape[2]
                k = j - (_KMAX_DIL // 2 - ks // 2)
                if 0 <= k < ks:
                    r0 = t_idx * C + g * 32
                    w_layer = w_layer.at[r0:r0 + 32,
                                         g * 32:(g + 1) * 32].set(w[:, :, k].T)
        packed[f"dil_tap_w{li}"] = w_layer.astype(bf16)     # (ntaps*C, C)
    packed["dil_conv_b"] = jnp.stack(
        [jnp.concatenate([p[f"layer{li}_b"] for p in branches]).reshape(1, C)
         for li in range(3)]).astype(f32)                   # (3, 1, C)
    packed["dil_bn_g"] = jnp.stack(
        [jnp.concatenate([p[f"bn{li}_g"] for p in branches]).reshape(1, C)
         for li in range(3)]).astype(f32)
    packed["dil_bn_b"] = jnp.stack(
        [jnp.concatenate([p[f"bn{li}_b"] for p in branches]).reshape(1, C)
         for li in range(3)]).astype(f32)

    # ---- diffusion embedding ----
    packed["demb_table"] = params["demb"]["table"].astype(f32)
    packed["demb_w1"] = params["demb"]["p1_w"].astype(bf16)
    packed["demb_b1"] = params["demb"]["p1_b"].reshape(1, -1).astype(f32)
    packed["demb_w2"] = params["demb"]["p2_w"].astype(bf16)
    packed["demb_b2"] = params["demb"]["p2_b"].reshape(1, -1).astype(f32)

    # ---- combine ----
    packed["scale"] = params["weight"].reshape(1, -1).astype(f32)       # (1, C)

    # ---- RNN (2 layers, bidirectional); input projections hoisted, fwd/bwd merged ----
    def blkdiag(a, b):
        z = jnp.zeros((a.shape[0] + b.shape[0], a.shape[1] + b.shape[1]), f32)
        z = z.at[:a.shape[0], :a.shape[1]].set(a)
        z = z.at[a.shape[0]:, a.shape[1]:].set(b)
        return z

    rnn = params["diff_model"]["rnn_layers"]
    assert len(rnn) == 2, "fused RNN kernel expects num_layers == 2"
    l0, l1 = rnn
    H = l0["whh_f"].shape[0]
    w0 = jnp.concatenate([l0["wih_f"], l0["wih_b"]], axis=1)            # (2C, 2H)
    assert w0.shape[0] == 2 * C
    packed["rnn0_wih"] = w0.astype(bf16)
    packed["rnn0_b"] = jnp.concatenate(
        [l0["b_f"], l0["b_b"]]).reshape(1, 2 * H).astype(f32)
    packed["rnn0_whh"] = blkdiag(l0["whh_f"], l0["whh_b"]).astype(bf16)  # (2H, 2H)
    packed["rnn1_wih"] = jnp.concatenate(
        [l1["wih_f"], l1["wih_b"]], axis=1).astype(bf16)                 # (2H, 2H)
    packed["rnn1_b"] = jnp.concatenate(
        [l1["b_f"], l1["b_b"]]).reshape(1, 2 * H).astype(f32)
    packed["rnn1_whh"] = blkdiag(l1["whh_f"], l1["whh_b"]).astype(bf16)

    # ---- MLP tail (decoder output padded to 128 lanes, col 0 real) ----
    dm = params["diff_model"]
    packed["fc1_w"] = dm["fc1_w"].astype(bf16)
    packed["fc1_b"] = dm["fc1_b"].reshape(1, -1).astype(f32)
    packed["fc2_w"] = dm["fc2_w"].astype(bf16)
    packed["fc2_b"] = dm["fc2_b"].reshape(1, -1).astype(f32)
    packed["de1_w"] = params["de"]["fc1_w"].astype(bf16)
    packed["de1_b"] = params["de"]["fc1_b"].reshape(1, -1).astype(f32)
    de2w = jnp.zeros((params["de"]["fc2_w"].shape[0], _OUT_PAD), f32)
    de2w = de2w.at[:, :1].set(params["de"]["fc2_w"])
    packed["de2_w"] = de2w.astype(bf16)
    de2b = jnp.zeros((1, _OUT_PAD), f32)
    de2b = de2b.at[0, 0].set(params["de"]["fc2_b"][0])
    packed["de2_b"] = de2b
    return packed


# ----------------------------------------------------------------------------
# Deterministic parameter initialization (synthetic; shapes match the module)
# ----------------------------------------------------------------------------
def init_params(key, *, input_dim, hidden_dim, num_layers, output_dim):
    keys = jax.random.split(key, 512)
    kidx = [0]

    def nxt():
        k = keys[kidx[0]]
        kidx[0] += 1
        return k

    def linear(in_f, out_f):
        s = 1.0 / (in_f ** 0.5)
        w = jax.random.uniform(nxt(), (in_f, out_f), jnp.float32, -s, s)
        b = jax.random.uniform(nxt(), (out_f,), jnp.float32, -s, s)
        return w, b

    def conv(cout, cin, ks):
        fan_in = cin * ks
        w = jax.random.normal(nxt(), (cout, cin, ks), jnp.float32) * ((2.0 / fan_in) ** 0.5)
        sb = 1.0 / (fan_in ** 0.5)
        b = jax.random.uniform(nxt(), (cout,), jnp.float32, -sb, sb)
        return w, b

    def signal_encoder_params(kernel_sizes):
        out = []
        for ks in kernel_sizes:
            w, b = conv(32, 1, ks)
            out.append({"w": w, "b": b})
        return out

    def dilated_params(ks):
        p = {}
        p["bottle_w"], p["bottle_b"] = conv(32, 1, 1)
        for i in range(3):
            p[f"layer{i}_w"], p[f"layer{i}_b"] = conv(32, 32, ks)
            p[f"bn{i}_g"] = jnp.ones((32,), jnp.float32)
            p[f"bn{i}_b"] = jnp.zeros((32,), jnp.float32)
        return p

    # DiffusionEmbedding buffer: sin/cos table (50, 128)
    steps = jnp.arange(50, dtype=jnp.float32)[:, None]
    dim = 64
    freqs = (10.0 ** (jnp.arange(dim, dtype=jnp.float32) / (dim - 1) * 4.0))[None, :]
    table = steps * freqs
    table = jnp.concatenate([jnp.sin(table), jnp.cos(table)], axis=1)

    demb = {"table": table}
    demb["p1_w"], demb["p1_b"] = linear(128, 192)
    demb["p2_w"], demb["p2_b"] = linear(192, 192)

    rnn_layers = []
    for l in range(num_layers):
        din = input_dim if l == 0 else 2 * hidden_dim
        s = 1.0 / (hidden_dim ** 0.5)
        layer = {}
        for d in ("f", "b"):
            layer[f"wih_{d}"] = jax.random.uniform(nxt(), (din, hidden_dim), jnp.float32, -s, s)
            layer[f"whh_{d}"] = jax.random.uniform(nxt(), (hidden_dim, hidden_dim), jnp.float32, -s, s)
            layer[f"b_{d}"] = jax.random.uniform(nxt(), (hidden_dim,), jnp.float32, -s, s)
        rnn_layers.append(layer)

    diff_model = {"rnn_layers": rnn_layers}
    diff_model["fc1_w"], diff_model["fc1_b"] = linear(2 * hidden_dim, hidden_dim)
    diff_model["fc2_w"], diff_model["fc2_b"] = linear(hidden_dim, output_dim)

    de = {}
    de["fc1_w"], de["fc1_b"] = linear(output_dim, 512)
    de["fc2_w"], de["fc2_b"] = linear(512, 1)

    return {
        "weight": jnp.ones((1, 192, 1), jnp.float32),
        "demb": demb,
        "ppg_enc2": signal_encoder_params([1, 3, 5, 7, 9, 11]),
        "noise_enc": signal_encoder_params([1, 3, 5, 7, 9, 11]),
        "ppg_enc1": [dilated_params(ks) for ks in [3, 5, 7, 9, 11, 13]],
        "diff_model": diff_model,
        "de": de,
    }


# ----------------------------------------------------------------------------
if __name__ == "__main__":
    key = jax.random.PRNGKey(0)
    B, L = 2, 16
    # input_dim must equal 384 (= 2 * 192 concatenated encoder channels).
    input_dim, hidden_dim, num_layers, output_dim = 384, 32, 2, 8

    pkey, dkey = jax.random.split(key)
    params = init_params(pkey, input_dim=input_dim, hidden_dim=hidden_dim,
                         num_layers=num_layers, output_dim=output_dim)
    packed = pack_params(params, B, L)

    k1, k2, k3 = jax.random.split(dkey, 3)
    ppg = jax.random.normal(k1, (B, 1, L), jnp.float32)
    noise = jax.random.normal(k2, (B, 1, L), jnp.float32)
    step = jax.random.randint(k3, (B,), 0, 50)

    fwd = jax.jit(diffusion_basemodel_forward)
    out = fwd(packed, ppg, noise, step)
    jax.block_until_ready(out)
    assert out.shape == (B, L, 1), out.shape
    assert bool(jnp.all(jnp.isfinite(out)))
    print("KERNEL_OK")
</pallas_src>

<mosaic_0001>
module attributes {stable_mosaic.version = 11 : i64} {
  func.func @_fused_forward_kernel(%arg0: memref<32x128xf32, #tpu.memory_space<vmem>>, %arg1: memref<32x128xf32, #tpu.memory_space<vmem>>, %arg2: memref<1x192xf32, #tpu.memory_space<vmem>>, %arg3: memref<1x192xf32, #tpu.memory_space<vmem>>, %arg4: memref<2496x192xbf16, #tpu.memory_space<vmem>>, %arg5: memref<2496x192xbf16, #tpu.memory_space<vmem>>, %arg6: memref<1344x192xbf16, #tpu.memory_space<vmem>>, %arg7: memref<3x1x192xf32, #tpu.memory_space<vmem>>, %arg8: memref<3x1x192xf32, #tpu.memory_space<vmem>>, %arg9: memref<3x1x192xf32, #tpu.memory_space<vmem>>, %arg10: memref<128x384xbf16, #tpu.memory_space<vmem>>, %arg11: memref<1x384xf32, #tpu.memory_space<vmem>>, %arg12: memref<128x192xbf16, #tpu.memory_space<vmem>>, %arg13: memref<1x192xf32, #tpu.memory_space<vmem>>, %arg14: memref<192x192xbf16, #tpu.memory_space<vmem>>, %arg15: memref<1x192xf32, #tpu.memory_space<vmem>>, %arg16: memref<1x192xf32, #tpu.memory_space<vmem>>, %arg17: memref<384x64xbf16, #tpu.memory_space<vmem>>, %arg18: memref<1x64xf32, #tpu.memory_space<vmem>>, %arg19: memref<64x64xbf16, #tpu.memory_space<vmem>>, %arg20: memref<64x64xbf16, #tpu.memory_space<vmem>>, %arg21: memref<1x64xf32, #tpu.memory_space<vmem>>, %arg22: memref<64x64xbf16, #tpu.memory_space<vmem>>, %arg23: memref<64x32xbf16, #tpu.memory_space<vmem>>, %arg24: memref<1x32xf32, #tpu.memory_space<vmem>>, %arg25: memref<32x8xbf16, #tpu.memory_space<vmem>>, %arg26: memref<1x8xf32, #tpu.memory_space<vmem>>, %arg27: memref<8x512xbf16, #tpu.memory_space<vmem>>, %arg28: memref<1x512xf32, #tpu.memory_space<vmem>>, %arg29: memref<512x128xbf16, #tpu.memory_space<vmem>>, %arg30: memref<1x128xf32, #tpu.memory_space<vmem>>, %arg31: memref<32x128xf32, #tpu.memory_space<vmem>>) attributes {dimension_semantics = [], scalar_prefetch = 0 : i64, scratch_operands = 0 : i64, tpu.core_type = #tpu.core_type<tc>} {
    %c0 = arith.constant 0 : index
    %c0_0 = arith.constant 0 : index
    %0 = vector.load %arg0[%c0, %c0_0] : memref<32x128xf32, #tpu.memory_space<vmem>>, vector<32x128xf32>
    %1 = vector.extract_strided_slice %0 {offsets = [0, 5], sizes = [32, 1], strides = [1, 1]} : vector<32x128xf32> to vector<32x1xf32>
    %c0_1 = arith.constant 0 : index
    %c0_2 = arith.constant 0 : index
    %2 = vector.load %arg2[%c0_1, %c0_2] : memref<1x192xf32, #tpu.memory_space<vmem>>, vector<1x192xf32>
    %3 = vector.broadcast %1 : vector<32x1xf32> to vector<32x192xf32>
    %4 = vector.broadcast %2 : vector<1x192xf32> to vector<32x192xf32>
    %5 = arith.mulf %3, %4 : vector<32x192xf32>
    %c0_3 = arith.constant 0 : index
    %c0_4 = arith.constant 0 : index
    %6 = vector.load %arg3[%c0_3, %c0_4] : memref<1x192xf32, #tpu.memory_space<vmem>>, vector<1x192xf32>
    %7 = vector.broadcast %6 : vector<1x192xf32> to vector<32x192xf32>
    %8 = arith.addf %5, %7 : vector<32x192xf32>
    %cst = arith.constant 0.000000e+00 : f32
    %9 = vector.broadcast %cst : f32 to vector<12x192xf32>
    %10 = tpu.concatenate %9, %8, %9 in 0 : vector<12x192xf32>, vector<32x192xf32>, vector<12x192xf32> -> vector<56x192xf32>
    %11 = vector.extract_strided_slice %10 {offsets = [0, 0], sizes = [32, 192], strides = [1, 1]} : vector<56x192xf32> to vector<32x192xf32>
    %12 = vector.extract_strided_slice %10 {offsets = [2, 0], sizes = [32, 192], strides = [1, 1]} : vector<56x192xf32> to vector<32x192xf32>
    %13 = vector.extract_strided_slice %10 {offsets = [4, 0], sizes = [32, 192], strides = [1, 1]} : vector<56x192xf32> to vector<32x192xf32>
    %14 = vector.extract_strided_slice %10 {offsets = [6, 0], sizes = [32, 192], strides = [1, 1]} : vector<56x192xf32> to vector<32x192xf32>
    %15 = vector.extract_strided_slice %10 {offsets = [8, 0], sizes = [32, 192], strides = [1, 1]} : vector<56x192xf32> to vector<32x192xf32>
    %16 = vector.extract_strided_slice %10 {offsets = [10, 0], sizes = [32, 192], strides = [1, 1]} : vector<56x192xf32> to vector<32x192xf32>
    %17 = vector.extract_strided_slice %10 {offsets = [12, 0], sizes = [32, 192], strides = [1, 1]} : vector<56x192xf32> to vector<32x192xf32>
    %18 = vector.extract_strided_slice %10 {offsets = [14, 0], sizes = [32, 192], strides = [1, 1]} : vector<56x192xf32> to vector<32x192xf32>
    %19 = vector.extract_strided_slice %10 {offsets = [16, 0], sizes = [32, 192], strides = [1, 1]} : vector<56x192xf32> to vector<32x192xf32>
    %20 = vector.extract_strided_slice %10 {offsets = [18, 0], sizes = [32, 192], strides = [1, 1]} : vector<56x192xf32> to vector<32x192xf32>
    %21 = vector.extract_strided_slice %10 {offsets = [20, 0], sizes = [32, 192], strides = [1, 1]} : vector<56x192xf32> to vector<32x192xf32>
    %22 = vector.extract_strided_slice %10 {offsets = [22, 0], sizes = [32, 192], strides = [1, 1]} : vector<56x192xf32> to vector<32x192xf32>
    %23 = vector.extract_strided_slice %10 {offsets = [24, 0], sizes = [32, 192], strides = [1, 1]} : vector<56x192xf32> to vector<32x192xf32>
    %24 = tpu.concatenate %11, %12, %13, %14, %15, %16, %17, %18, %19, %20, %21, %22, %23 in 1 : vector<32x192xf32>, vector<32x192xf32>, vector<32x192xf32>, vector<32x192xf32>, vector<32x192xf32>, vector<32x192xf32>, vector<32x192xf32>, vector<32x192xf32>, vector<32x192xf32>, vector<32x192xf32>, vector<32x192xf32>, vector<32x192xf32>, vector<32x192xf32> -> vector<32x2496xf32>
    %25 = arith.truncf %24 : vector<32x2496xf32> to vector<32x2496xbf16>
    %c0_5 = arith.constant 0 : index
    %c0_6 = arith.constant 0 : index
    %26 = vector.load %arg4[%c0_5, %c0_6] : memref<2496x192xbf16, #tpu.memory_space<vmem>>, vector<2496x192xbf16>
    %cst_7 = arith.constant dense<0.000000e+00> : vector<32x192xf32>
    %27 = tpu.matmul %25, %26, %cst_7 {dimension_numbers = #tpu.dot_dimension_numbers<[1], [0], [0], [1], [0, 0, 1, 1], [], []>} : vector<32x2496xbf16>, vector<2496x192xbf16>, vector<32x192xf32> -> vector<32x192xf32>
    %c0_8 = arith.constant 0 : index
    %c0_9 = arith.constant 0 : index
    %c0_10 = arith.constant 0 : index
    %28 = vector.load %arg7[%c0_8, %c0_9, %c0_10] : memref<3x1x192xf32, #tpu.memory_space<vmem>>, vector<1x1x192xf32>
    %29 = vector.shape_cast %28 : vector<1x1x192xf32> to vector<1x192xf32>
    %30 = vector.broadcast %29 : vector<1x192xf32> to vector<32x192xf32>
    %31 = arith.addf %27, %30 : vector<32x192xf32>
    %cst_11 = arith.constant 0.000000e+00 : f32
    %32 = vector.broadcast %cst_11 : f32 to vector<32x192xf32>
    %33 = arith.maximumf %31, %32 : vector<32x192xf32>
    %34 = arith.addf %33, %8 : vector<32x192xf32>
    %cst_12 = arith.constant dense<0.000000e+00> : vector<192xf32>
    %35 = vector.multi_reduction <add>, %34, %cst_12 [0] : vector<32x192xf32> to vector<192xf32>
    %36 = vector.shape_cast %35 : vector<192xf32> to vector<1x192xf32>
    %cst_13 = arith.constant 3.200000e+01 : f32
    %37 = vector.broadcast %cst_13 : f32 to vector<1x192xf32>
    %38 = arith.divf %36, %37 : vector<1x192xf32>
    %39 = vector.broadcast %38 : vector<1x192xf32> to vector<32x192xf32>
    %40 = arith.subf %34, %39 : vector<32x192xf32>
    %41 = arith.mulf %40, %40 : vector<32x192xf32>
    %cst_14 = arith.constant dense<0.000000e+00> : vector<192xf32>
    %42 = vector.multi_reduction <add>, %41, %cst_14 [0] : vector<32x192xf32> to vector<192xf32>
    %43 = vector.shape_cast %42 : vector<192xf32> to vector<1x192xf32>
    %cst_15 = arith.constant 3.200000e+01 : f32
    %44 = vector.broadcast %cst_15 : f32 to vector<1x192xf32>
    %45 = arith.divf %43, %44 : vector<1x192xf32>
    %c0_16 = arith.constant 0 : index
    %c0_17 = arith.constant 0 : index
    %c0_18 = arith.constant 0 : index
    %46 = vector.load %arg8[%c0_16, %c0_17, %c0_18] : memref<3x1x192xf32, #tpu.memory_space<vmem>>, vector<1x1x192xf32>
    %47 = vector.shape_cast %46 : vector<1x1x192xf32> to vector<1x192xf32>
    %48 = vector.broadcast %47 : vector<1x192xf32> to vector<32x192xf32>
    %49 = arith.mulf %48, %40 : vector<32x192xf32>
    %cst_19 = arith.constant 9.99999974E-6 : f32
    %50 = vector.broadcast %cst_19 : f32 to vector<1x192xf32>
    %51 = arith.addf %45, %50 : vector<1x192xf32>
    %52 = math.rsqrt %51 : vector<1x192xf32>
    %53 = vector.broadcast %52 : vector<1x192xf32> to vector<32x192xf32>
    %54 = arith.mulf %49, %53 : vector<32x192xf32>
    %c0_20 = arith.constant 0 : index
    %c0_21 = arith.constant 0 : index
    %c0_22 = arith.constant 0 : index
    %55 = vector.load %arg9[%c0_20, %c0_21, %c0_22] : memref<3x1x192xf32, #tpu.memory_space<vmem>>, vector<1x1x192xf32>
    %56 = vector.shape_cast %55 : vector<1x1x192xf32> to vector<1x192xf32>
    %57 = vector.broadcast %56 : vector<1x192xf32> to vector<32x192xf32>
    %58 = arith.addf %54, %57 : vector<32x192xf32>
    %cst_23 = arith.constant 0.000000e+00 : f32
    %59 = vector.broadcast %cst_23 : f32 to vector<24x192xf32>
    %60 = tpu.concatenate %59, %58, %59 in 0 : vector<24x192xf32>, vector<32x192xf32>, vector<24x192xf32> -> vector<80x192xf32>
    %61 = vector.extract_strided_slice %60 {offsets = [0, 0], sizes = [32, 192], strides = [1, 1]} : vector<80x192xf32> to vector<32x192xf32>
    %62 = vector.extract_strided_slice %60 {offsets = [4, 0], sizes = [32, 192], strides = [1, 1]} : vector<80x192xf32> to vector<32x192xf32>
    %63 = vector.extract_strided_slice %60 {offsets = [8, 0], sizes = [32, 192], strides = [1, 1]} : vector<80x192xf32> to vector<32x192xf32>
    %64 = vector.extract_strided_slice %60 {offsets = [12, 0], sizes = [32, 192], strides = [1, 1]} : vector<80x192xf32> to vector<32x192xf32>
    %65 = vector.extract_strided_slice %60 {offsets = [16, 0], sizes = [32, 192], strides = [1, 1]} : vector<80x192xf32> to vector<32x192xf32>
    %66 = vector.extract_strided_slice %60 {offsets = [20, 0], sizes = [32, 192], strides = [1, 1]} : vector<80x192xf32> to vector<32x192xf32>
    %67 = vector.extract_strided_slice %60 {offsets = [24, 0], sizes = [32, 192], strides = [1, 1]} : vector<80x192xf32> to vector<32x192xf32>
    %68 = vector.extract_strided_slice %60 {offsets = [28, 0], sizes = [32, 192], strides = [1, 1]} : vector<80x192xf32> to vector<32x192xf32>
    %69 = vector.extract_strided_slice %60 {offsets = [32, 0], sizes = [32, 192], strides = [1, 1]} : vector<80x192xf32> to vector<32x192xf32>
    %70 = vector.extract_strided_slice %60 {offsets = [36, 0], sizes = [32, 192], strides = [1, 1]} : vector<80x192xf32> to vector<32x192xf32>
    %71 = vector.extract_strided_slice %60 {offsets = [40, 0], sizes = [32, 192], strides = [1, 1]} : vector<80x192xf32> to vector<32x192xf32>
    %72 = vector.extract_strided_slice %60 {offsets = [44, 0], sizes = [32, 192], strides = [1, 1]} : vector<80x192xf32> to vector<32x192xf32>
    %73 = vector.extract_strided_slice %60 {offsets = [48, 0], sizes = [32, 192], strides = [1, 1]} : vector<80x192xf32> to vector<32x192xf32>
    %74 = tpu.concatenate %61, %62, %63, %64, %65, %66, %67, %68, %69, %70, %71, %72, %73 in 1 : vector<32x192xf32>, vector<32x192xf32>, vector<32x192xf32>, vector<32x192xf32>, vector<32x192xf32>, vector<32x192xf32>, vector<32x192xf32>, vector<32x192xf32>, vector<32x192xf32>, vector<32x192xf32>, vector<32x192xf32>, vector<32x192xf32>, vector<32x192xf32> -> vector<32x2496xf32>
    %75 = arith.truncf %74 : vector<32x2496xf32> to vector<32x2496xbf16>
    %c0_24 = arith.constant 0 : index
    %c0_25 = arith.constant 0 : index
    %76 = vector.load %arg5[%c0_24, %c0_25] : memref<2496x192xbf16, #tpu.memory_space<vmem>>, vector<2496x192xbf16>
    %cst_26 = arith.constant dense<0.000000e+00> : vector<32x192xf32>
    %77 = tpu.matmul %75, %76, %cst_26 {dimension_numbers = #tpu.dot_dimension_numbers<[1], [0], [0], [1], [0, 0, 1, 1], [], []>} : vector<32x2496xbf16>, vector<2496x192xbf16>, vector<32x192xf32> -> vector<32x192xf32>
    %c1 = arith.constant 1 : index
    %c0_27 = arith.constant 0 : index
    %c0_28 = arith.constant 0 : index
    %78 = vector.load %arg7[%c1, %c0_27, %c0_28] : memref<3x1x192xf32, #tpu.memory_space<vmem>>, vector<1x1x192xf32>
    %79 = vector.shape_cast %78 : vector<1x1x192xf32> to vector<1x192xf32>
    %80 = vector.broadcast %79 : vector<1x192xf32> to vector<32x192xf32>
    %81 = arith.addf %77, %80 : vector<32x192xf32>
    %cst_29 = arith.constant 0.000000e+00 : f32
    %82 = vector.broadcast %cst_29 : f32 to vector<32x192xf32>
    %83 = arith.maximumf %81, %82 : vector<32x192xf32>
    %84 = arith.addf %83, %58 : vector<32x192xf32>
    %cst_30 = arith.constant dense<0.000000e+00> : vector<192xf32>
    %85 = vector.multi_reduction <add>, %84, %cst_30 [0] : vector<32x192xf32> to vector<192xf32>
    %86 = vector.shape_cast %85 : vector<192xf32> to vector<1x192xf32>
    %cst_31 = arith.constant 3.200000e+01 : f32
    %87 = vector.broadcast %cst_31 : f32 to vector<1x192xf32>
    %88 = arith.divf %86, %87 : vector<1x192xf32>
    %89 = vector.broadcast %88 : vector<1x192xf32> to vector<32x192xf32>
    %90 = arith.subf %84, %89 : vector<32x192xf32>
    %91 = arith.mulf %90, %90 : vector<32x192xf32>
    %cst_32 = arith.constant dense<0.000000e+00> : vector<192xf32>
    %92 = vector.multi_reduction <add>, %91, %cst_32 [0] : vector<32x192xf32> to vector<192xf32>
    %93 = vector.shape_cast %92 : vector<192xf32> to vector<1x192xf32>
    %cst_33 = arith.constant 3.200000e+01 : f32
    %94 = vector.broadcast %cst_33 : f32 to vector<1x192xf32>
    %95 = arith.divf %93, %94 : vector<1x192xf32>
    %c1_34 = arith.constant 1 : index
    %c0_35 = arith.constant 0 : index
    %c0_36 = arith.constant 0 : index
    %96 = vector.load %arg8[%c1_34, %c0_35, %c0_36] : memref<3x1x192xf32, #tpu.memory_space<vmem>>, vector<1x1x192xf32>
    %97 = vector.shape_cast %96 : vector<1x1x192xf32> to vector<1x192xf32>
    %98 = vector.broadcast %97 : vector<1x192xf32> to vector<32x192xf32>
    %99 = arith.mulf %98, %90 : vector<32x192xf32>
    %cst_37 = arith.constant 9.99999974E-6 : f32
    %100 = vector.broadcast %cst_37 : f32 to vector<1x192xf32>
    %101 = arith.addf %95, %100 : vector<1x192xf32>
    %102 = math.rsqrt %101 : vector<1x192xf32>
    %103 = vector.broadcast %102 : vector<1x192xf32> to vector<32x192xf32>
    %104 = arith.mulf %99, %103 : vector<32x192xf32>
    %c1_38 = arith.constant 1 : index
    %c0_39 = arith.constant 0 : index
    %c0_40 = arith.constant 0 : index
    %105 = vector.load %arg9[%c1_38, %c0_39, %c0_40] : memref<3x1x192xf32, #tpu.memory_space<vmem>>, vector<1x1x192xf32>
    %106 = vector.shape_cast %105 : vector<1x1x192xf32> to vector<1x192xf32>
    %107 = vector.broadcast %106 : vector<1x192xf32> to vector<32x192xf32>
    %108 = arith.addf %104, %107 : vector<32x192xf32>
    %cst_41 = arith.constant 0.000000e+00 : f32
    %109 = vector.broadcast %cst_41 : f32 to vector<24x192xf32>
    %110 = tpu.concatenate %109, %108, %109 in 0 : vector<24x192xf32>, vector<32x192xf32>, vector<24x192xf32> -> vector<80x192xf32>
    %111 = vector.extract_strided_slice %110 {offsets = [0, 0], sizes = [32, 192], strides = [1, 1]} : vector<80x192xf32> to vector<32x192xf32>
    %112 = vector.extract_strided_slice %110 {offsets = [8, 0], sizes = [32, 192], strides = [1, 1]} : vector<80x192xf32> to vector<32x192xf32>
    %113 = vector.extract_strided_slice %110 {offsets = [16, 0], sizes = [32, 192], strides = [1, 1]} : vector<80x192xf32> to vector<32x192xf32>
    %114 = vector.extract_strided_slice %110 {offsets = [24, 0], sizes = [32, 192], strides = [1, 1]} : vector<80x192xf32> to vector<32x192xf32>
    %115 = vector.extract_strided_slice %110 {offsets = [32, 0], sizes = [32, 192], strides = [1, 1]} : vector<80x192xf32> to vector<32x192xf32>
    %116 = vector.extract_strided_slice %110 {offsets = [40, 0], sizes = [32, 192], strides = [1, 1]} : vector<80x192xf32> to vector<32x192xf32>
    %117 = vector.extract_strided_slice %110 {offsets = [48, 0], sizes = [32, 192], strides = [1, 1]} : vector<80x192xf32> to vector<32x192xf32>
    %118 = tpu.concatenate %111, %112, %113, %114, %115, %116, %117 in 1 : vector<32x192xf32>, vector<32x192xf32>, vector<32x192xf32>, vector<32x192xf32>, vector<32x192xf32>, vector<32x192xf32>, vector<32x192xf32> -> vector<32x1344xf32>
    %119 = arith.truncf %118 : vector<32x1344xf32> to vector<32x1344xbf16>
    %c0_42 = arith.constant 0 : index
    %c0_43 = arith.constant 0 : index
    %120 = vector.load %arg6[%c0_42, %c0_43] : memref<1344x192xbf16, #tpu.memory_space<vmem>>, vector<1344x192xbf16>
    %cst_44 = arith.constant dense<0.000000e+00> : vector<32x192xf32>
    %121 = tpu.matmul %119, %120, %cst_44 {dimension_numbers = #tpu.dot_dimension_numbers<[1], [0], [0], [1], [0, 0, 1, 1], [], []>} : vector<32x1344xbf16>, vector<1344x192xbf16>, vector<32x192xf32> -> vector<32x192xf32>
    %c2 = arith.constant 2 : index
    %c0_45 = arith.constant 0 : index
    %c0_46 = arith.constant 0 : index
    %122 = vector.load %arg7[%c2, %c0_45, %c0_46] : memref<3x1x192xf32, #tpu.memory_space<vmem>>, vector<1x1x192xf32>
    %123 = vector.shape_cast %122 : vector<1x1x192xf32> to vector<1x192xf32>
    %124 = vector.broadcast %123 : vector<1x192xf32> to vector<32x192xf32>
    %125 = arith.addf %121, %124 : vector<32x192xf32>
    %cst_47 = arith.constant 0.000000e+00 : f32
    %126 = vector.broadcast %cst_47 : f32 to vector<32x192xf32>
    %127 = arith.maximumf %125, %126 : vector<32x192xf32>
    %128 = arith.addf %127, %108 : vector<32x192xf32>
    %cst_48 = arith.constant dense<0.000000e+00> : vector<192xf32>
    %129 = vector.multi_reduction <add>, %128, %cst_48 [0] : vector<32x192xf32> to vector<192xf32>
    %130 = vector.shape_cast %129 : vector<192xf32> to vector<1x192xf32>
    %cst_49 = arith.constant 3.200000e+01 : f32
    %131 = vector.broadcast %cst_49 : f32 to vector<1x192xf32>
    %132 = arith.divf %130, %131 : vector<1x192xf32>
    %133 = vector.broadcast %132 : vector<1x192xf32> to vector<32x192xf32>
    %134 = arith.subf %128, %133 : vector<32x192xf32>
    %135 = arith.mulf %134, %134 : vector<32x192xf32>
    %cst_50 = arith.constant dense<0.000000e+00> : vector<192xf32>
    %136 = vector.multi_reduction <add>, %135, %cst_50 [0] : vector<32x192xf32> to vector<192xf32>
    %137 = vector.shape_cast %136 : vector<192xf32> to vector<1x192xf32>
    %cst_51 = arith.constant 3.200000e+01 : f32
    %138 = vector.broadcast %cst_51 : f32 to vector<1x192xf32>
    %139 = arith.divf %137, %138 : vector<1x192xf32>
    %c2_52 = arith.constant 2 : index
    %c0_53 = arith.constant 0 : index
    %c0_54 = arith.constant 0 : index
    %140 = vector.load %arg8[%c2_52, %c0_53, %c0_54] : memref<3x1x192xf32, #tpu.memory_space<vmem>>, vector<1x1x192xf32>
    %141 = vector.shape_cast %140 : vector<1x1x192xf32> to vector<1x192xf32>
    %142 = vector.broadcast %141 : vector<1x192xf32> to vector<32x192xf32>
    %143 = arith.mulf %142, %134 : vector<32x192xf32>
    %cst_55 = arith.constant 9.99999974E-6 : f32
    %144 = vector.broadcast %cst_55 : f32 to vector<1x192xf32>
    %145 = arith.addf %139, %144 : vector<1x192xf32>
    %146 = math.rsqrt %145 : vector<1x192xf32>
    %147 = vector.broadcast %146 : vector<1x192xf32> to vector<32x192xf32>
    %148 = arith.mulf %143, %147 : vector<32x192xf32>
    %c2_56 = arith.constant 2 : index
    %c0_57 = arith.constant 0 : index
    %c0_58 = arith.constant 0 : index
    %149 = vector.load %arg9[%c2_56, %c0_57, %c0_58] : memref<3x1x192xf32, #tpu.memory_space<vmem>>, vector<1x1x192xf32>
    %150 = vector.shape_cast %149 : vector<1x1x192xf32> to vector<1x192xf32>
    %151 = vector.broadcast %150 : vector<1x192xf32> to vector<32x192xf32>
    %152 = arith.addf %148, %151 : vector<32x192xf32>
    %153 = arith.truncf %0 : vector<32x128xf32> to vector<32x128xbf16>
    %c0_59 = arith.constant 0 : index
    %c0_60 = arith.constant 0 : index
    %154 = vector.load %arg10[%c0_59, %c0_60] : memref<128x384xbf16, #tpu.memory_space<vmem>>, vector<128x384xbf16>
    %cst_61 = arith.constant dense<0.000000e+00> : vector<32x384xf32>
    %155 = tpu.matmul %153, %154, %cst_61 {dimension_numbers = #tpu.dot_dimension_numbers<[1], [0], [0], [1], [0, 0, 1, 1], [], []>} : vector<32x128xbf16>, vector<128x384xbf16>, vector<32x384xf32> -> vector<32x384xf32>
    %c0_62 = arith.constant 0 : index
    %c0_63 = arith.constant 0 : index
    %156 = vector.load %arg11[%c0_62, %c0_63] : memref<1x384xf32, #tpu.memory_space<vmem>>, vector<1x384xf32>
    %157 = vector.broadcast %156 : vector<1x384xf32> to vector<32x384xf32>
    %158 = arith.addf %155, %157 : vector<32x384xf32>
    %c0_64 = arith.constant 0 : index
    %c0_65 = arith.constant 0 : index
    %159 = vector.load %arg1[%c0_64, %c0_65] : memref<32x128xf32, #tpu.memory_space<vmem>>, vector<32x128xf32>
    %160 = arith.truncf %159 : vector<32x128xf32> to vector<32x128xbf16>
    %c0_66 = arith.constant 0 : index
    %c0_67 = arith.constant 0 : index
    %161 = vector.load %arg12[%c0_66, %c0_67] : memref<128x192xbf16, #tpu.memory_space<vmem>>, vector<128x192xbf16>
    %cst_68 = arith.constant dense<0.000000e+00> : vector<32x192xf32>
    %162 = tpu.matmul %160, %161, %cst_68 {dimension_numbers = #tpu.dot_dimension_numbers<[1], [0], [0], [1], [0, 0, 1, 1], [], []>} : vector<32x128xbf16>, vector<128x192xbf16>, vector<32x192xf32> -> vector<32x192xf32>
    %c0_69 = arith.constant 0 : index
    %c0_70 = arith.constant 0 : index
    %163 = vector.load %arg13[%c0_69, %c0_70] : memref<1x192xf32, #tpu.memory_space<vmem>>, vector<1x192xf32>
    %164 = vector.broadcast %163 : vector<1x192xf32> to vector<32x192xf32>
    %165 = arith.addf %162, %164 : vector<32x192xf32>
    %cst_71 = arith.constant 0.000000e+00 : f32
    %166 = vector.broadcast %cst_71 : f32 to vector<32x192xf32>
    %167 = arith.subf %166, %165 : vector<32x192xf32>
    %168 = math.exp %167 : vector<32x192xf32>
    %cst_72 = arith.constant 1.000000e+00 : f32
    %169 = vector.broadcast %cst_72 : f32 to vector<32x192xf32>
    %170 = arith.addf %169, %168 : vector<32x192xf32>
    %cst_73 = arith.constant 1.000000e+00 : f32
    %171 = vector.broadcast %cst_73 : f32 to vector<32x192xf32>
    %172 = arith.divf %171, %170 : vector<32x192xf32>
    %173 = arith.mulf %165, %172 : vector<32x192xf32>
    %174 = arith.truncf %173 : vector<32x192xf32> to vector<32x192xbf16>
    %c0_74 = arith.constant 0 : index
    %c0_75 = arith.constant 0 : index
    %175 = vector.load %arg14[%c0_74, %c0_75] : memref<192x192xbf16, #tpu.memory_space<vmem>>, vector<192x192xbf16>
    %cst_76 = arith.constant dense<0.000000e+00> : vector<32x192xf32>
    %176 = tpu.matmul %174, %175, %cst_76 {dimension_numbers = #tpu.dot_dimension_numbers<[1], [0], [0], [1], [0, 0, 1, 1], [], []>} : vector<32x192xbf16>, vector<192x192xbf16>, vector<32x192xf32> -> vector<32x192xf32>
    %c0_77 = arith.constant 0 : index
    %c0_78 = arith.constant 0 : index
    %177 = vector.load %arg15[%c0_77, %c0_78] : memref<1x192xf32, #tpu.memory_space<vmem>>, vector<1x192xf32>
    %178 = vector.broadcast %177 : vector<1x192xf32> to vector<32x192xf32>
    %179 = arith.addf %176, %178 : vector<32x192xf32>
    %cst_79 = arith.constant 0.000000e+00 : f32
    %180 = vector.broadcast %cst_79 : f32 to vector<32x192xf32>
    %181 = arith.subf %180, %179 : vector<32x192xf32>
    %182 = math.exp %181 : vector<32x192xf32>
    %cst_80 = arith.constant 1.000000e+00 : f32
    %183 = vector.broadcast %cst_80 : f32 to vector<32x192xf32>
    %184 = arith.addf %183, %182 : vector<32x192xf32>
    %cst_81 = arith.constant 1.000000e+00 : f32
    %185 = vector.broadcast %cst_81 : f32 to vector<32x192xf32>
    %186 = arith.divf %185, %184 : vector<32x192xf32>
    %187 = arith.mulf %179, %186 : vector<32x192xf32>
    %c0_82 = arith.constant 0 : index
    %c0_83 = arith.constant 0 : index
    %188 = vector.load %arg16[%c0_82, %c0_83] : memref<1x192xf32, #tpu.memory_space<vmem>>, vector<1x192xf32>
    %189 = vector.broadcast %188 : vector<1x192xf32> to vector<32x192xf32>
    %190 = arith.mulf %189, %152 : vector<32x192xf32>
    %191 = arith.addf %187, %190 : vector<32x192xf32>
    %192 = tpu.concatenate %191, %187 in 1 : vector<32x192xf32>, vector<32x192xf32> -> vector<32x384xf32>
    %193 = arith.addf %158, %192 : vector<32x384xf32>
    %194 = arith.truncf %193 : vector<32x384xf32> to vector<32x384xbf16>
    %c0_84 = arith.constant 0 : index
    %c0_85 = arith.constant 0 : index
    %195 = vector.load %arg17[%c0_84, %c0_85] : memref<384x64xbf16, #tpu.memory_space<vmem>>, vector<384x64xbf16>
    %cst_86 = arith.constant dense<0.000000e+00> : vector<32x64xf32>
    %196 = tpu.matmul %194, %195, %cst_86 {dimension_numbers = #tpu.dot_dimension_numbers<[1], [0], [0], [1], [0, 0, 1, 1], [], []>} : vector<32x384xbf16>, vector<384x64xbf16>, vector<32x64xf32> -> vector<32x64xf32>
    %c0_87 = arith.constant 0 : index
    %c0_88 = arith.constant 0 : index
    %197 = vector.load %arg18[%c0_87, %c0_88] : memref<1x64xf32, #tpu.memory_space<vmem>>, vector<1x64xf32>
    %198 = vector.broadcast %197 : vector<1x64xf32> to vector<32x64xf32>
    %199 = arith.addf %196, %198 : vector<32x64xf32>
    %c0_89 = arith.constant 0 : index
    %c0_90 = arith.constant 0 : index
    %200 = vector.load %arg19[%c0_89, %c0_90] : memref<64x64xbf16, #tpu.memory_space<vmem>>, vector<64x64xbf16>
    %201 = vector.extract_strided_slice %199 {offsets = [0, 0], sizes = [32, 32], strides = [1, 1]} : vector<32x64xf32> to vector<32x32xf32>
    %202 = vector.extract_strided_slice %199 {offsets = [0, 32], sizes = [32, 32], strides = [1, 1]} : vector<32x64xf32> to vector<32x32xf32>
    %203 = vector.extract_strided_slice %202 {offsets = [30, 0], sizes = [2, 32], strides = [1, 1]} : vector<32x32xf32> to vector<2x32xf32>
    %204 = vector.extract_strided_slice %202 {offsets = [28, 0], sizes = [2, 32], strides = [1, 1]} : vector<32x32xf32> to vector<2x32xf32>
    %205 = vector.extract_strided_slice %202 {offsets = [26, 0], sizes = [2, 32], strides = [1, 1]} : vector<32x32xf32> to vector<2x32xf32>
    %206 = vector.extract_strided_slice %202 {offsets = [24, 0], sizes = [2, 32], strides = [1, 1]} : vector<32x32xf32> to vector<2x32xf32>
    %207 = vector.extract_strided_slice %202 {offsets = [22, 0], sizes = [2, 32], strides = [1, 1]} : vector<32x32xf32> to vector<2x32xf32>
    %208 = vector.extract_strided_slice %202 {offsets = [20, 0], sizes = [2, 32], strides = [1, 1]} : vector<32x32xf32> to vector<2x32xf32>
    %209 = vector.extract_strided_slice %202 {offsets = [18, 0], sizes = [2, 32], strides = [1, 1]} : vector<32x32xf32> to vector<2x32xf32>
    %210 = vector.extract_strided_slice %202 {offsets = [16, 0], sizes = [2, 32], strides = [1, 1]} : vector<32x32xf32> to vector<2x32xf32>
    %211 = vector.extract_strided_slice %202 {offsets = [14, 0], sizes = [2, 32], strides = [1, 1]} : vector<32x32xf32> to vector<2x32xf32>
    %212 = vector.extract_strided_slice %202 {offsets = [12, 0], sizes = [2, 32], strides = [1, 1]} : vector<32x32xf32> to vector<2x32xf32>
    %213 = vector.extract_strided_slice %202 {offsets = [10, 0], sizes = [2, 32], strides = [1, 1]} : vector<32x32xf32> to vector<2x32xf32>
    %214 = vector.extract_strided_slice %202 {offsets = [8, 0], sizes = [2, 32], strides = [1, 1]} : vector<32x32xf32> to vector<2x32xf32>
    %215 = vector.extract_strided_slice %202 {offsets = [6, 0], sizes = [2, 32], strides = [1, 1]} : vector<32x32xf32> to vector<2x32xf32>
    %216 = vector.extract_strided_slice %202 {offsets = [4, 0], sizes = [2, 32], strides = [1, 1]} : vector<32x32xf32> to vector<2x32xf32>
    %217 = vector.extract_strided_slice %202 {offsets = [2, 0], sizes = [2, 32], strides = [1, 1]} : vector<32x32xf32> to vector<2x32xf32>
    %218 = vector.extract_strided_slice %202 {offsets = [0, 0], sizes = [2, 32], strides = [1, 1]} : vector<32x32xf32> to vector<2x32xf32>
    %219 = tpu.concatenate %203, %204, %205, %206, %207, %208, %209, %210, %211, %212, %213, %214, %215, %216, %217, %218 in 0 : vector<2x32xf32>, vector<2x32xf32>, vector<2x32xf32>, vector<2x32xf32>, vector<2x32xf32>, vector<2x32xf32>, vector<2x32xf32>, vector<2x32xf32>, vector<2x32xf32>, vector<2x32xf32>, vector<2x32xf32>, vector<2x32xf32>, vector<2x32xf32>, vector<2x32xf32>, vector<2x32xf32>, vector<2x32xf32> -> vector<32x32xf32>
    %220 = tpu.concatenate %201, %219 in 1 : vector<32x32xf32>, vector<32x32xf32> -> vector<32x64xf32>
    %cst_91 = arith.constant 0.000000e+00 : f32
    %221 = vector.broadcast %cst_91 : f32 to vector<2x64xf32>
    %222 = vector.extract_strided_slice %220 {offsets = [0, 0], sizes = [2, 64], strides = [1, 1]} : vector<32x64xf32> to vector<2x64xf32>
    %223 = arith.truncf %221 : vector<2x64xf32> to vector<2x64xbf16>
    %cst_92 = arith.constant dense<0.000000e+00> : vector<2x64xf32>
    %224 = tpu.matmul %223, %200, %cst_92 {dimension_numbers = #tpu.dot_dimension_numbers<[1], [0], [0], [1], [0, 0, 1, 1], [], []>} : vector<2x64xbf16>, vector<64x64xbf16>, vector<2x64xf32> -> vector<2x64xf32>
    %225 = arith.addf %222, %224 : vector<2x64xf32>
    %226 = math.tanh %225 : vector<2x64xf32>
    %227 = vector.extract_strided_slice %220 {offsets = [2, 0], sizes = [2, 64], strides = [1, 1]} : vector<32x64xf32> to vector<2x64xf32>
    %228 = arith.truncf %226 : vector<2x64xf32> to vector<2x64xbf16>
    %cst_93 = arith.constant dense<0.000000e+00> : vector<2x64xf32>
    %229 = tpu.matmul %228, %200, %cst_93 {dimension_numbers = #tpu.dot_dimension_numbers<[1], [0], [0], [1], [0, 0, 1, 1], [], []>} : vector<2x64xbf16>, vector<64x64xbf16>, vector<2x64xf32> -> vector<2x64xf32>
    %230 = arith.addf %227, %229 : vector<2x64xf32>
    %231 = math.tanh %230 : vector<2x64xf32>
    %232 = vector.extract_strided_slice %220 {offsets = [4, 0], sizes = [2, 64], strides = [1, 1]} : vector<32x64xf32> to vector<2x64xf32>
    %233 = arith.truncf %231 : vector<2x64xf32> to vector<2x64xbf16>
    %cst_94 = arith.constant dense<0.000000e+00> : vector<2x64xf32>
    %234 = tpu.matmul %233, %200, %cst_94 {dimension_numbers = #tpu.dot_dimension_numbers<[1], [0], [0], [1], [0, 0, 1, 1], [], []>} : vector<2x64xbf16>, vector<64x64xbf16>, vector<2x64xf32> -> vector<2x64xf32>
    %235 = arith.addf %232, %234 : vector<2x64xf32>
    %236 = math.tanh %235 : vector<2x64xf32>
    %237 = vector.extract_strided_slice %220 {offsets = [6, 0], sizes = [2, 64], strides = [1, 1]} : vector<32x64xf32> to vector<2x64xf32>
    %238 = arith.truncf %236 : vector<2x64xf32> to vector<2x64xbf16>
    %cst_95 = arith.constant dense<0.000000e+00> : vector<2x64xf32>
    %239 = tpu.matmul %238, %200, %cst_95 {dimension_numbers = #tpu.dot_dimension_numbers<[1], [0], [0], [1], [0, 0, 1, 1], [], []>} : vector<2x64xbf16>, vector<64x64xbf16>, vector<2x64xf32> -> vector<2x64xf32>
    %240 = arith.addf %237, %239 : vector<2x64xf32>
    %241 = math.tanh %240 : vector<2x64xf32>
    %242 = vector.extract_strided_slice %220 {offsets = [8, 0], sizes = [2, 64], strides = [1, 1]} : vector<32x64xf32> to vector<2x64xf32>
    %243 = arith.truncf %241 : vector<2x64xf32> to vector<2x64xbf16>
    %cst_96 = arith.constant dense<0.000000e+00> : vector<2x64xf32>
    %244 = tpu.matmul %243, %200, %cst_96 {dimension_numbers = #tpu.dot_dimension_numbers<[1], [0], [0], [1], [0, 0, 1, 1], [], []>} : vector<2x64xbf16>, vector<64x64xbf16>, vector<2x64xf32> -> vector<2x64xf32>
    %245 = arith.addf %242, %244 : vector<2x64xf32>
    %246 = math.tanh %245 : vector<2x64xf32>
    %247 = vector.extract_strided_slice %220 {offsets = [10, 0], sizes = [2, 64], strides = [1, 1]} : vector<32x64xf32> to vector<2x64xf32>
    %248 = arith.truncf %246 : vector<2x64xf32> to vector<2x64xbf16>
    %cst_97 = arith.constant dense<0.000000e+00> : vector<2x64xf32>
    %249 = tpu.matmul %248, %200, %cst_97 {dimension_numbers = #tpu.dot_dimension_numbers<[1], [0], [0], [1], [0, 0, 1, 1], [], []>} : vector<2x64xbf16>, vector<64x64xbf16>, vector<2x64xf32> -> vector<2x64xf32>
    %250 = arith.addf %247, %249 : vector<2x64xf32>
    %251 = math.tanh %250 : vector<2x64xf32>
    %252 = vector.extract_strided_slice %220 {offsets = [12, 0], sizes = [2, 64], strides = [1, 1]} : vector<32x64xf32> to vector<2x64xf32>
    %253 = arith.truncf %251 : vector<2x64xf32> to vector<2x64xbf16>
    %cst_98 = arith.constant dense<0.000000e+00> : vector<2x64xf32>
    %254 = tpu.matmul %253, %200, %cst_98 {dimension_numbers = #tpu.dot_dimension_numbers<[1], [0], [0], [1], [0, 0, 1, 1], [], []>} : vector<2x64xbf16>, vector<64x64xbf16>, vector<2x64xf32> -> vector<2x64xf32>
    %255 = arith.addf %252, %254 : vector<2x64xf32>
    %256 = math.tanh %255 : vector<2x64xf32>
    %257 = vector.extract_strided_slice %220 {offsets = [14, 0], sizes = [2, 64], strides = [1, 1]} : vector<32x64xf32> to vector<2x64xf32>
    %258 = arith.truncf %256 : vector<2x64xf32> to vector<2x64xbf16>
    %cst_99 = arith.constant dense<0.000000e+00> : vector<2x64xf32>
    %259 = tpu.matmul %258, %200, %cst_99 {dimension_numbers = #tpu.dot_dimension_numbers<[1], [0], [0], [1], [0, 0, 1, 1], [], []>} : vector<2x64xbf16>, vector<64x64xbf16>, vector<2x64xf32> -> vector<2x64xf32>
    %260 = arith.addf %257, %259 : vector<2x64xf32>
    %261 = math.tanh %260 : vector<2x64xf32>
    %262 = vector.extract_strided_slice %220 {offsets = [16, 0], sizes = [2, 64], strides = [1, 1]} : vector<32x64xf32> to vector<2x64xf32>
    %263 = arith.truncf %261 : vector<2x64xf32> to vector<2x64xbf16>
    %cst_100 = arith.constant dense<0.000000e+00> : vector<2x64xf32>
    %264 = tpu.matmul %263, %200, %cst_100 {dimension_numbers = #tpu.dot_dimension_numbers<[1], [0], [0], [1], [0, 0, 1, 1], [], []>} : vector<2x64xbf16>, vector<64x64xbf16>, vector<2x64xf32> -> vector<2x64xf32>
    %265 = arith.addf %262, %264 : vector<2x64xf32>
    %266 = math.tanh %265 : vector<2x64xf32>
    %267 = vector.extract_strided_slice %220 {offsets = [18, 0], sizes = [2, 64], strides = [1, 1]} : vector<32x64xf32> to vector<2x64xf32>
    %268 = arith.truncf %266 : vector<2x64xf32> to vector<2x64xbf16>
    %cst_101 = arith.constant dense<0.000000e+00> : vector<2x64xf32>
    %269 = tpu.matmul %268, %200, %cst_101 {dimension_numbers = #tpu.dot_dimension_numbers<[1], [0], [0], [1], [0, 0, 1, 1], [], []>} : vector<2x64xbf16>, vector<64x64xbf16>, vector<2x64xf32> -> vector<2x64xf32>
    %270 = arith.addf %267, %269 : vector<2x64xf32>
    %271 = math.tanh %270 : vector<2x64xf32>
    %272 = vector.extract_strided_slice %220 {offsets = [20, 0], sizes = [2, 64], strides = [1, 1]} : vector<32x64xf32> to vector<2x64xf32>
    %273 = arith.truncf %271 : vector<2x64xf32> to vector<2x64xbf16>
    %cst_102 = arith.constant dense<0.000000e+00> : vector<2x64xf32>
    %274 = tpu.matmul %273, %200, %cst_102 {dimension_numbers = #tpu.dot_dimension_numbers<[1], [0], [0], [1], [0, 0, 1, 1], [], []>} : vector<2x64xbf16>, vector<64x64xbf16>, vector<2x64xf32> -> vector<2x64xf32>
    %275 = arith.addf %272, %274 : vector<2x64xf32>
    %276 = math.tanh %275 : vector<2x64xf32>
    %277 = vector.extract_strided_slice %220 {offsets = [22, 0], sizes = [2, 64], strides = [1, 1]} : vector<32x64xf32> to vector<2x64xf32>
    %278 = arith.truncf %276 : vector<2x64xf32> to vector<2x64xbf16>
    %cst_103 = arith.constant dense<0.000000e+00> : vector<2x64xf32>
    %279 = tpu.matmul %278, %200, %cst_103 {dimension_numbers = #tpu.dot_dimension_numbers<[1], [0], [0], [1], [0, 0, 1, 1], [], []>} : vector<2x64xbf16>, vector<64x64xbf16>, vector<2x64xf32> -> vector<2x64xf32>
    %280 = arith.addf %277, %279 : vector<2x64xf32>
    %281 = math.tanh %280 : vector<2x64xf32>
    %282 = vector.extract_strided_slice %220 {offsets = [24, 0], sizes = [2, 64], strides = [1, 1]} : vector<32x64xf32> to vector<2x64xf32>
    %283 = arith.truncf %281 : vector<2x64xf32> to vector<2x64xbf16>
    %cst_104 = arith.constant dense<0.000000e+00> : vector<2x64xf32>
    %284 = tpu.matmul %283, %200, %cst_104 {dimension_numbers = #tpu.dot_dimension_numbers<[1], [0], [0], [1], [0, 0, 1, 1], [], []>} : vector<2x64xbf16>, vector<64x64xbf16>, vector<2x64xf32> -> vector<2x64xf32>
    %285 = arith.addf %282, %284 : vector<2x64xf32>
    %286 = math.tanh %285 : vector<2x64xf32>
    %287 = vector.extract_strided_slice %220 {offsets = [26, 0], sizes = [2, 64], strides = [1, 1]} : vector<32x64xf32> to vector<2x64xf32>
    %288 = arith.truncf %286 : vector<2x64xf32> to vector<2x64xbf16>
    %cst_105 = arith.constant dense<0.000000e+00> : vector<2x64xf32>
    %289 = tpu.matmul %288, %200, %cst_105 {dimension_numbers = #tpu.dot_dimension_numbers<[1], [0], [0], [1], [0, 0, 1, 1], [], []>} : vector<2x64xbf16>, vector<64x64xbf16>, vector<2x64xf32> -> vector<2x64xf32>
    %290 = arith.addf %287, %289 : vector<2x64xf32>
    %291 = math.tanh %290 : vector<2x64xf32>
    %292 = vector.extract_strided_slice %220 {offsets = [28, 0], sizes = [2, 64], strides = [1, 1]} : vector<32x64xf32> to vector<2x64xf32>
    %293 = arith.truncf %291 : vector<2x64xf32> to vector<2x64xbf16>
    %cst_106 = arith.constant dense<0.000000e+00> : vector<2x64xf32>
    %294 = tpu.matmul %293, %200, %cst_106 {dimension_numbers = #tpu.dot_dimension_numbers<[1], [0], [0], [1], [0, 0, 1, 1], [], []>} : vector<2x64xbf16>, vector<64x64xbf16>, vector<2x64xf32> -> vector<2x64xf32>
    %295 = arith.addf %292, %294 : vector<2x64xf32>
    %296 = math.tanh %295 : vector<2x64xf32>
    %297 = vector.extract_strided_slice %220 {offsets = [30, 0], sizes = [2, 64], strides = [1, 1]} : vector<32x64xf32> to vector<2x64xf32>
    %298 = arith.truncf %296 : vector<2x64xf32> to vector<2x64xbf16>
    %cst_107 = arith.constant dense<0.000000e+00> : vector<2x64xf32>
    %299 = tpu.matmul %298, %200, %cst_107 {dimension_numbers = #tpu.dot_dimension_numbers<[1], [0], [0], [1], [0, 0, 1, 1], [], []>} : vector<2x64xbf16>, vector<64x64xbf16>, vector<2x64xf32> -> vector<2x64xf32>
    %300 = arith.addf %297, %299 : vector<2x64xf32>
    %301 = math.tanh %300 : vector<2x64xf32>
    %302 = vector.extract_strided_slice %226 {offsets = [0, 0], sizes = [2, 32], strides = [1, 1]} : vector<2x64xf32> to vector<2x32xf32>
    %303 = vector.extract_strided_slice %231 {offsets = [0, 0], sizes = [2, 32], strides = [1, 1]} : vector<2x64xf32> to vector<2x32xf32>
    %304 = vector.extract_strided_slice %236 {offsets = [0, 0], sizes = [2, 32], strides = [1, 1]} : vector<2x64xf32> to vector<2x32xf32>
    %305 = vector.extract_strided_slice %241 {offsets = [0, 0], sizes = [2, 32], strides = [1, 1]} : vector<2x64xf32> to vector<2x32xf32>
    %306 = vector.extract_strided_slice %246 {offsets = [0, 0], sizes = [2, 32], strides = [1, 1]} : vector<2x64xf32> to vector<2x32xf32>
    %307 = vector.extract_strided_slice %251 {offsets = [0, 0], sizes = [2, 32], strides = [1, 1]} : vector<2x64xf32> to vector<2x32xf32>
    %308 = vector.extract_strided_slice %256 {offsets = [0, 0], sizes = [2, 32], strides = [1, 1]} : vector<2x64xf32> to vector<2x32xf32>
    %309 = vector.extract_strided_slice %261 {offsets = [0, 0], sizes = [2, 32], strides = [1, 1]} : vector<2x64xf32> to vector<2x32xf32>
    %310 = vector.extract_strided_slice %266 {offsets = [0, 0], sizes = [2, 32], strides = [1, 1]} : vector<2x64xf32> to vector<2x32xf32>
    %311 = vector.extract_strided_slice %271 {offsets = [0, 0], sizes = [2, 32], strides = [1, 1]} : vector<2x64xf32> to vector<2x32xf32>
    %312 = vector.extract_strided_slice %276 {offsets = [0, 0], sizes = [2, 32], strides = [1, 1]} : vector<2x64xf32> to vector<2x32xf32>
    %313 = vector.extract_strided_slice %281 {offsets = [0, 0], sizes = [2, 32], strides = [1, 1]} : vector<2x64xf32> to vector<2x32xf32>
    %314 = vector.extract_strided_slice %286 {offsets = [0, 0], sizes = [2, 32], strides = [1, 1]} : vector<2x64xf32> to vector<2x32xf32>
    %315 = vector.extract_strided_slice %291 {offsets = [0, 0], sizes = [2, 32], strides = [1, 1]} : vector<2x64xf32> to vector<2x32xf32>
    %316 = vector.extract_strided_slice %296 {offsets = [0, 0], sizes = [2, 32], strides = [1, 1]} : vector<2x64xf32> to vector<2x32xf32>
    %317 = vector.extract_strided_slice %301 {offsets = [0, 0], sizes = [2, 32], strides = [1, 1]} : vector<2x64xf32> to vector<2x32xf32>
    %318 = tpu.concatenate %302, %303, %304, %305, %306, %307, %308, %309, %310, %311, %312, %313, %314, %315, %316, %317 in 0 : vector<2x32xf32>, vector<2x32xf32>, vector<2x32xf32>, vector<2x32xf32>, vector<2x32xf32>, vector<2x32xf32>, vector<2x32xf32>, vector<2x32xf32>, vector<2x32xf32>, vector<2x32xf32>, vector<2x32xf32>, vector<2x32xf32>, vector<2x32xf32>, vector<2x32xf32>, vector<2x32xf32>, vector<2x32xf32> -> vector<32x32xf32>
    %319 = vector.extract_strided_slice %301 {offsets = [0, 32], sizes = [2, 32], strides = [1, 1]} : vector<2x64xf32> to vector<2x32xf32>
    %320 = vector.extract_strided_slice %296 {offsets = [0, 32], sizes = [2, 32], strides = [1, 1]} : vector<2x64xf32> to vector<2x32xf32>
    %321 = vector.extract_strided_slice %291 {offsets = [0, 32], sizes = [2, 32], strides = [1, 1]} : vector<2x64xf32> to vector<2x32xf32>
    %322 = vector.extract_strided_slice %286 {offsets = [0, 32], sizes = [2, 32], strides = [1, 1]} : vector<2x64xf32> to vector<2x32xf32>
    %323 = vector.extract_strided_slice %281 {offsets = [0, 32], sizes = [2, 32], strides = [1, 1]} : vector<2x64xf32> to vector<2x32xf32>
    %324 = vector.extract_strided_slice %276 {offsets = [0, 32], sizes = [2, 32], strides = [1, 1]} : vector<2x64xf32> to vector<2x32xf32>
    %325 = vector.extract_strided_slice %271 {offsets = [0, 32], sizes = [2, 32], strides = [1, 1]} : vector<2x64xf32> to vector<2x32xf32>
    %326 = vector.extract_strided_slice %266 {offsets = [0, 32], sizes = [2, 32], strides = [1, 1]} : vector<2x64xf32> to vector<2x32xf32>
    %327 = vector.extract_strided_slice %261 {offsets = [0, 32], sizes = [2, 32], strides = [1, 1]} : vector<2x64xf32> to vector<2x32xf32>
    %328 = vector.extract_strided_slice %256 {offsets = [0, 32], sizes = [2, 32], strides = [1, 1]} : vector<2x64xf32> to vector<2x32xf32>
    %329 = vector.extract_strided_slice %251 {offsets = [0, 32], sizes = [2, 32], strides = [1, 1]} : vector<2x64xf32> to vector<2x32xf32>
    %330 = vector.extract_strided_slice %246 {offsets = [0, 32], sizes = [2, 32], strides = [1, 1]} : vector<2x64xf32> to vector<2x32xf32>
    %331 = vector.extract_strided_slice %241 {offsets = [0, 32], sizes = [2, 32], strides = [1, 1]} : vector<2x64xf32> to vector<2x32xf32>
    %332 = vector.extract_strided_slice %236 {offsets = [0, 32], sizes = [2, 32], strides = [1, 1]} : vector<2x64xf32> to vector<2x32xf32>
    %333 = vector.extract_strided_slice %231 {offsets = [0, 32], sizes = [2, 32], strides = [1, 1]} : vector<2x64xf32> to vector<2x32xf32>
    %334 = vector.extract_strided_slice %226 {offsets = [0, 32], sizes = [2, 32], strides = [1, 1]} : vector<2x64xf32> to vector<2x32xf32>
    %335 = tpu.concatenate %319, %320, %321, %322, %323, %324, %325, %326, %327, %328, %329, %330, %331, %332, %333, %334 in 0 : vector<2x32xf32>, vector<2x32xf32>, vector<2x32xf32>, vector<2x32xf32>, vector<2x32xf32>, vector<2x32xf32>, vector<2x32xf32>, vector<2x32xf32>, vector<2x32xf32>, vector<2x32xf32>, vector<2x32xf32>, vector<2x32xf32>, vector<2x32xf32>, vector<2x32xf32>, vector<2x32xf32>, vector<2x32xf32> -> vector<32x32xf32>
    %336 = tpu.concatenate %318, %335 in 1 : vector<32x32xf32>, vector<32x32xf32> -> vector<32x64xf32>
    %337 = arith.truncf %336 : vector<32x64xf32> to vector<32x64xbf16>
    %c0_108 = arith.constant 0 : index
    %c0_109 = arith.constant 0 : index
    %338 = vector.load %arg20[%c0_108, %c0_109] : memref<64x64xbf16, #tpu.memory_space<vmem>>, vector<64x64xbf16>
    %cst_110 = arith.constant dense<0.000000e+00> : vector<32x64xf32>
    %339 = tpu.matmul %337, %338, %cst_110 {dimension_numbers = #tpu.dot_dimension_numbers<[1], [0], [0], [1], [0, 0, 1, 1], [], []>} : vector<32x64xbf16>, vector<64x64xbf16>, vector<32x64xf32> -> vector<32x64xf32>
    %c0_111 = arith.constant 0 : index
    %c0_112 = arith.constant 0 : index
    %340 = vector.load %arg21[%c0_111, %c0_112] : memref<1x64xf32, #tpu.memory_space<vmem>>, vector<1x64xf32>
    %341 = vector.broadcast %340 : vector<1x64xf32> to vector<32x64xf32>
    %342 = arith.addf %339, %341 : vector<32x64xf32>
    %c0_113 = arith.constant 0 : index
    %c0_114 = arith.constant 0 : index
    %343 = vector.load %arg22[%c0_113, %c0_114] : memref<64x64xbf16, #tpu.memory_space<vmem>>, vector<64x64xbf16>
    %344 = vector.extract_strided_slice %342 {offsets = [0, 0], sizes = [32, 32], strides = [1, 1]} : vector<32x64xf32> to vector<32x32xf32>
    %345 = vector.extract_strided_slice %342 {offsets = [0, 32], sizes = [32, 32], strides = [1, 1]} : vector<32x64xf32> to vector<32x32xf32>
    %346 = vector.extract_strided_slice %345 {offsets = [30, 0], sizes = [2, 32], strides = [1, 1]} : vector<32x32xf32> to vector<2x32xf32>
    %347 = vector.extract_strided_slice %345 {offsets = [28, 0], sizes = [2, 32], strides = [1, 1]} : vector<32x32xf32> to vector<2x32xf32>
    %348 = vector.extract_strided_slice %345 {offsets = [26, 0], sizes = [2, 32], strides = [1, 1]} : vector<32x32xf32> to vector<2x32xf32>
    %349 = vector.extract_strided_slice %345 {offsets = [24, 0], sizes = [2, 32], strides = [1, 1]} : vector<32x32xf32> to vector<2x32xf32>
    %350 = vector.extract_strided_slice %345 {offsets = [22, 0], sizes = [2, 32], strides = [1, 1]} : vector<32x32xf32> to vector<2x32xf32>
    %351 = vector.extract_strided_slice %345 {offsets = [20, 0], sizes = [2, 32], strides = [1, 1]} : vector<32x32xf32> to vector<2x32xf32>
    %352 = vector.extract_strided_slice %345 {offsets = [18, 0], sizes = [2, 32], strides = [1, 1]} : vector<32x32xf32> to vector<2x32xf32>
    %353 = vector.extract_strided_slice %345 {offsets = [16, 0], sizes = [2, 32], strides = [1, 1]} : vector<32x32xf32> to vector<2x32xf32>
    %354 = vector.extract_strided_slice %345 {offsets = [14, 0], sizes = [2, 32], strides = [1, 1]} : vector<32x32xf32> to vector<2x32xf32>
    %355 = vector.extract_strided_slice %345 {offsets = [12, 0], sizes = [2, 32], strides = [1, 1]} : vector<32x32xf32> to vector<2x32xf32>
    %356 = vector.extract_strided_slice %345 {offsets = [10, 0], sizes = [2, 32], strides = [1, 1]} : vector<32x32xf32> to vector<2x32xf32>
    %357 = vector.extract_strided_slice %345 {offsets = [8, 0], sizes = [2, 32], strides = [1, 1]} : vector<32x32xf32> to vector<2x32xf32>
    %358 = vector.extract_strided_slice %345 {offsets = [6, 0], sizes = [2, 32], strides = [1, 1]} : vector<32x32xf32> to vector<2x32xf32>
    %359 = vector.extract_strided_slice %345 {offsets = [4, 0], sizes = [2, 32], strides = [1, 1]} : vector<32x32xf32> to vector<2x32xf32>
    %360 = vector.extract_strided_slice %345 {offsets = [2, 0], sizes = [2, 32], strides = [1, 1]} : vector<32x32xf32> to vector<2x32xf32>
    %361 = vector.extract_strided_slice %345 {offsets = [0, 0], sizes = [2, 32], strides = [1, 1]} : vector<32x32xf32> to vector<2x32xf32>
    %362 = tpu.concatenate %346, %347, %348, %349, %350, %351, %352, %353, %354, %355, %356, %357, %358, %359, %360, %361 in 0 : vector<2x32xf32>, vector<2x32xf32>, vector<2x32xf32>, vector<2x32xf32>, vector<2x32xf32>, vector<2x32xf32>, vector<2x32xf32>, vector<2x32xf32>, vector<2x32xf32>, vector<2x32xf32>, vector<2x32xf32>, vector<2x32xf32>, vector<2x32xf32>, vector<2x32xf32>, vector<2x32xf32>, vector<2x32xf32> -> vector<32x32xf32>
    %363 = tpu.concatenate %344, %362 in 1 : vector<32x32xf32>, vector<32x32xf32> -> vector<32x64xf32>
    %cst_115 = arith.constant 0.000000e+00 : f32
    %364 = vector.broadcast %cst_115 : f32 to vector<2x64xf32>
    %365 = vector.extract_strided_slice %363 {offsets = [0, 0], sizes = [2, 64], strides = [1, 1]} : vector<32x64xf32> to vector<2x64xf32>
    %366 = arith.truncf %364 : vector<2x64xf32> to vector<2x64xbf16>
    %cst_116 = arith.constant dense<0.000000e+00> : vector<2x64xf32>
    %367 = tpu.matmul %366, %343, %cst_116 {dimension_numbers = #tpu.dot_dimension_numbers<[1], [0], [0], [1], [0, 0, 1, 1], [], []>} : vector<2x64xbf16>, vector<64x64xbf16>, vector<2x64xf32> -> vector<2x64xf32>
    %368 = arith.addf %365, %367 : vector<2x64xf32>
    %369 = math.tanh %368 : vector<2x64xf32>
    %370 = vector.extract_strided_slice %363 {offsets = [2, 0], sizes = [2, 64], strides = [1, 1]} : vector<32x64xf32> to vector<2x64xf32>
    %371 = arith.truncf %369 : vector<2x64xf32> to vector<2x64xbf16>
    %cst_117 = arith.constant dense<0.000000e+00> : vector<2x64xf32>
    %372 = tpu.matmul %371, %343, %cst_117 {dimension_numbers = #tpu.dot_dimension_numbers<[1], [0], [0], [1], [0, 0, 1, 1], [], []>} : vector<2x64xbf16>, vector<64x64xbf16>, vector<2x64xf32> -> vector<2x64xf32>
    %373 = arith.addf %370, %372 : vector<2x64xf32>
    %374 = math.tanh %373 : vector<2x64xf32>
    %375 = vector.extract_strided_slice %363 {offsets = [4, 0], sizes = [2, 64], strides = [1, 1]} : vector<32x64xf32> to vector<2x64xf32>
    %376 = arith.truncf %374 : vector<2x64xf32> to vector<2x64xbf16>
    %cst_118 = arith.constant dense<0.000000e+00> : vector<2x64xf32>
    %377 = tpu.matmul %376, %343, %cst_118 {dimension_numbers = #tpu.dot_dimension_numbers<[1], [0], [0], [1], [0, 0, 1, 1], [], []>} : vector<2x64xbf16>, vector<64x64xbf16>, vector<2x64xf32> -> vector<2x64xf32>
    %378 = arith.addf %375, %377 : vector<2x64xf32>
    %379 = math.tanh %378 : vector<2x64xf32>
    %380 = vector.extract_strided_slice %363 {offsets = [6, 0], sizes = [2, 64], strides = [1, 1]} : vector<32x64xf32> to vector<2x64xf32>
    %381 = arith.truncf %379 : vector<2x64xf32> to vector<2x64xbf16>
    %cst_119 = arith.constant dense<0.000000e+00> : vector<2x64xf32>
    %382 = tpu.matmul %381, %343, %cst_119 {dimension_numbers = #tpu.dot_dimension_numbers<[1], [0], [0], [1], [0, 0, 1, 1], [], []>} : vector<2x64xbf16>, vector<64x64xbf16>, vector<2x64xf32> -> vector<2x64xf32>
    %383 = arith.addf %380, %382 : vector<2x64xf32>
    %384 = math.tanh %383 : vector<2x64xf32>
    %385 = vector.extract_strided_slice %363 {offsets = [8, 0], sizes = [2, 64], strides = [1, 1]} : vector<32x64xf32> to vector<2x64xf32>
    %386 = arith.truncf %384 : vector<2x64xf32> to vector<2x64xbf16>
    %cst_120 = arith.constant dense<0.000000e+00> : vector<2x64xf32>
    %387 = tpu.matmul %386, %343, %cst_120 {dimension_numbers = #tpu.dot_dimension_numbers<[1], [0], [0], [1], [0, 0, 1, 1], [], []>} : vector<2x64xbf16>, vector<64x64xbf16>, vector<2x64xf32> -> vector<2x64xf32>
    %388 = arith.addf %385, %387 : vector<2x64xf32>
    %389 = math.tanh %388 : vector<2x64xf32>
    %390 = vector.extract_strided_slice %363 {offsets = [10, 0], sizes = [2, 64], strides = [1, 1]} : vector<32x64xf32> to vector<2x64xf32>
    %391 = arith.truncf %389 : vector<2x64xf32> to vector<2x64xbf16>
    %cst_121 = arith.constant dense<0.000000e+00> : vector<2x64xf32>
    %392 = tpu.matmul %391, %343, %cst_121 {dimension_numbers = #tpu.dot_dimension_numbers<[1], [0], [0], [1], [0, 0, 1, 1], [], []>} : vector<2x64xbf16>, vector<64x64xbf16>, vector<2x64xf32> -> vector<2x64xf32>
    %393 = arith.addf %390, %392 : vector<2x64xf32>
    %394 = math.tanh %393 : vector<2x64xf32>
    %395 = vector.extract_strided_slice %363 {offsets = [12, 0], sizes = [2, 64], strides = [1, 1]} : vector<32x64xf32> to vector<2x64xf32>
    %396 = arith.truncf %394 : vector<2x64xf32> to vector<2x64xbf16>
    %cst_122 = arith.constant dense<0.000000e+00> : vector<2x64xf32>
    %397 = tpu.matmul %396, %343, %cst_122 {dimension_numbers = #tpu.dot_dimension_numbers<[1], [0], [0], [1], [0, 0, 1, 1], [], []>} : vector<2x64xbf16>, vector<64x64xbf16>, vector<2x64xf32> -> vector<2x64xf32>
    %398 = arith.addf %395, %397 : vector<2x64xf32>
    %399 = math.tanh %398 : vector<2x64xf32>
    %400 = vector.extract_strided_slice %363 {offsets = [14, 0], sizes = [2, 64], strides = [1, 1]} : vector<32x64xf32> to vector<2x64xf32>
    %401 = arith.truncf %399 : vector<2x64xf32> to vector<2x64xbf16>
    %cst_123 = arith.constant dense<0.000000e+00> : vector<2x64xf32>
    %402 = tpu.matmul %401, %343, %cst_123 {dimension_numbers = #tpu.dot_dimension_numbers<[1], [0], [0], [1], [0, 0, 1, 1], [], []>} : vector<2x64xbf16>, vector<64x64xbf16>, vector<2x64xf32> -> vector<2x64xf32>
    %403 = arith.addf %400, %402 : vector<2x64xf32>
    %404 = math.tanh %403 : vector<2x64xf32>
    %405 = vector.extract_strided_slice %363 {offsets = [16, 0], sizes = [2, 64], strides = [1, 1]} : vector<32x64xf32> to vector<2x64xf32>
    %406 = arith.truncf %404 : vector<2x64xf32> to vector<2x64xbf16>
    %cst_124 = arith.constant dense<0.000000e+00> : vector<2x64xf32>
    %407 = tpu.matmul %406, %343, %cst_124 {dimension_numbers = #tpu.dot_dimension_numbers<[1], [0], [0], [1], [0, 0, 1, 1], [], []>} : vector<2x64xbf16>, vector<64x64xbf16>, vector<2x64xf32> -> vector<2x64xf32>
    %408 = arith.addf %405, %407 : vector<2x64xf32>
    %409 = math.tanh %408 : vector<2x64xf32>
    %410 = vector.extract_strided_slice %363 {offsets = [18, 0], sizes = [2, 64], strides = [1, 1]} : vector<32x64xf32> to vector<2x64xf32>
    %411 = arith.truncf %409 : vector<2x64xf32> to vector<2x64xbf16>
    %cst_125 = arith.constant dense<0.000000e+00> : vector<2x64xf32>
    %412 = tpu.matmul %411, %343, %cst_125 {dimension_numbers = #tpu.dot_dimension_numbers<[1], [0], [0], [1], [0, 0, 1, 1], [], []>} : vector<2x64xbf16>, vector<64x64xbf16>, vector<2x64xf32> -> vector<2x64xf32>
    %413 = arith.addf %410, %412 : vector<2x64xf32>
    %414 = math.tanh %413 : vector<2x64xf32>
    %415 = vector.extract_strided_slice %363 {offsets = [20, 0], sizes = [2, 64], strides = [1, 1]} : vector<32x64xf32> to vector<2x64xf32>
    %416 = arith.truncf %414 : vector<2x64xf32> to vector<2x64xbf16>
    %cst_126 = arith.constant dense<0.000000e+00> : vector<2x64xf32>
    %417 = tpu.matmul %416, %343, %cst_126 {dimension_numbers = #tpu.dot_dimension_numbers<[1], [0], [0], [1], [0, 0, 1, 1], [], []>} : vector<2x64xbf16>, vector<64x64xbf16>, vector<2x64xf32> -> vector<2x64xf32>
    %418 = arith.addf %415, %417 : vector<2x64xf32>
    %419 = math.tanh %418 : vector<2x64xf32>
    %420 = vector.extract_strided_slice %363 {offsets = [22, 0], sizes = [2, 64], strides = [1, 1]} : vector<32x64xf32> to vector<2x64xf32>
    %421 = arith.truncf %419 : vector<2x64xf32> to vector<2x64xbf16>
    %cst_127 = arith.constant dense<0.000000e+00> : vector<2x64xf32>
    %422 = tpu.matmul %421, %343, %cst_127 {dimension_numbers = #tpu.dot_dimension_numbers<[1], [0], [0], [1], [0, 0, 1, 1], [], []>} : vector<2x64xbf16>, vector<64x64xbf16>, vector<2x64xf32> -> vector<2x64xf32>
    %423 = arith.addf %420, %422 : vector<2x64xf32>
    %424 = math.tanh %423 : vector<2x64xf32>
    %425 = vector.extract_strided_slice %363 {offsets = [24, 0], sizes = [2, 64], strides = [1, 1]} : vector<32x64xf32> to vector<2x64xf32>
    %426 = arith.truncf %424 : vector<2x64xf32> to vector<2x64xbf16>
    %cst_128 = arith.constant dense<0.000000e+00> : vector<2x64xf32>
    %427 = tpu.matmul %426, %343, %cst_128 {dimension_numbers = #tpu.dot_dimension_numbers<[1], [0], [0], [1], [0, 0, 1, 1], [], []>} : vector<2x64xbf16>, vector<64x64xbf16>, vector<2x64xf32> -> vector<2x64xf32>
    %428 = arith.addf %425, %427 : vector<2x64xf32>
    %429 = math.tanh %428 : vector<2x64xf32>
    %430 = vector.extract_strided_slice %363 {offsets = [26, 0], sizes = [2, 64], strides = [1, 1]} : vector<32x64xf32> to vector<2x64xf32>
    %431 = arith.truncf %429 : vector<2x64xf32> to vector<2x64xbf16>
    %cst_129 = arith.constant dense<0.000000e+00> : vector<2x64xf32>
    %432 = tpu.matmul %431, %343, %cst_129 {dimension_numbers = #tpu.dot_dimension_numbers<[1], [0], [0], [1], [0, 0, 1, 1], [], []>} : vector<2x64xbf16>, vector<64x64xbf16>, vector<2x64xf32> -> vector<2x64xf32>
    %433 = arith.addf %430, %432 : vector<2x64xf32>
    %434 = math.tanh %433 : vector<2x64xf32>
    %435 = vector.extract_strided_slice %363 {offsets = [28, 0], sizes = [2, 64], strides = [1, 1]} : vector<32x64xf32> to vector<2x64xf32>
    %436 = arith.truncf %434 : vector<2x64xf32> to vector<2x64xbf16>
    %cst_130 = arith.constant dense<0.000000e+00> : vector<2x64xf32>
    %437 = tpu.matmul %436, %343, %cst_130 {dimension_numbers = #tpu.dot_dimension_numbers<[1], [0], [0], [1], [0, 0, 1, 1], [], []>} : vector<2x64xbf16>, vector<64x64xbf16>, vector<2x64xf32> -> vector<2x64xf32>
    %438 = arith.addf %435, %437 : vector<2x64xf32>
    %439 = math.tanh %438 : vector<2x64xf32>
    %440 = vector.extract_strided_slice %363 {offsets = [30, 0], sizes = [2, 64], strides = [1, 1]} : vector<32x64xf32> to vector<2x64xf32>
    %441 = arith.truncf %439 : vector<2x64xf32> to vector<2x64xbf16>
    %cst_131 = arith.constant dense<0.000000e+00> : vector<2x64xf32>
    %442 = tpu.matmul %441, %343, %cst_131 {dimension_numbers = #tpu.dot_dimension_numbers<[1], [0], [0], [1], [0, 0, 1, 1], [], []>} : vector<2x64xbf16>, vector<64x64xbf16>, vector<2x64xf32> -> vector<2x64xf32>
    %443 = arith.addf %440, %442 : vector<2x64xf32>
    %444 = math.tanh %443 : vector<2x64xf32>
    %445 = vector.extract_strided_slice %369 {offsets = [0, 0], sizes = [2, 32], strides = [1, 1]} : vector<2x64xf32> to vector<2x32xf32>
    %446 = vector.extract_strided_slice %374 {offsets = [0, 0], sizes = [2, 32], strides = [1, 1]} : vector<2x64xf32> to vector<2x32xf32>
    %447 = vector.extract_strided_slice %379 {offsets = [0, 0], sizes = [2, 32], strides = [1, 1]} : vector<2x64xf32> to vector<2x32xf32>
    %448 = vector.extract_strided_slice %384 {offsets = [0, 0], sizes = [2, 32], strides = [1, 1]} : vector<2x64xf32> to vector<2x32xf32>
    %449 = vector.extract_strided_slice %389 {offsets = [0, 0], sizes = [2, 32], strides = [1, 1]} : vector<2x64xf32> to vector<2x32xf32>
    %450 = vector.extract_strided_slice %394 {offsets = [0, 0], sizes = [2, 32], strides = [1, 1]} : vector<2x64xf32> to vector<2x32xf32>
    %451 = vector.extract_strided_slice %399 {offsets = [0, 0], sizes = [2, 32], strides = [1, 1]} : vector<2x64xf32> to vector<2x32xf32>
    %452 = vector.extract_strided_slice %404 {offsets = [0, 0], sizes = [2, 32], strides = [1, 1]} : vector<2x64xf32> to vector<2x32xf32>
    %453 = vector.extract_strided_slice %409 {offsets = [0, 0], sizes = [2, 32], strides = [1, 1]} : vector<2x64xf32> to vector<2x32xf32>
    %454 = vector.extract_strided_slice %414 {offsets = [0, 0], sizes = [2, 32], strides = [1, 1]} : vector<2x64xf32> to vector<2x32xf32>
    %455 = vector.extract_strided_slice %419 {offsets = [0, 0], sizes = [2, 32], strides = [1, 1]} : vector<2x64xf32> to vector<2x32xf32>
    %456 = vector.extract_strided_slice %424 {offsets = [0, 0], sizes = [2, 32], strides = [1, 1]} : vector<2x64xf32> to vector<2x32xf32>
    %457 = vector.extract_strided_slice %429 {offsets = [0, 0], sizes = [2, 32], strides = [1, 1]} : vector<2x64xf32> to vector<2x32xf32>
    %458 = vector.extract_strided_slice %434 {offsets = [0, 0], sizes = [2, 32], strides = [1, 1]} : vector<2x64xf32> to vector<2x32xf32>
    %459 = vector.extract_strided_slice %439 {offsets = [0, 0], sizes = [2, 32], strides = [1, 1]} : vector<2x64xf32> to vector<2x32xf32>
    %460 = vector.extract_strided_slice %444 {offsets = [0, 0], sizes = [2, 32], strides = [1, 1]} : vector<2x64xf32> to vector<2x32xf32>
    %461 = tpu.concatenate %445, %446, %447, %448, %449, %450, %451, %452, %453, %454, %455, %456, %457, %458, %459, %460 in 0 : vector<2x32xf32>, vector<2x32xf32>, vector<2x32xf32>, vector<2x32xf32>, vector<2x32xf32>, vector<2x32xf32>, vector<2x32xf32>, vector<2x32xf32>, vector<2x32xf32>, vector<2x32xf32>, vector<2x32xf32>, vector<2x32xf32>, vector<2x32xf32>, vector<2x32xf32>, vector<2x32xf32>, vector<2x32xf32> -> vector<32x32xf32>
    %462 = vector.extract_strided_slice %444 {offsets = [0, 32], sizes = [2, 32], strides = [1, 1]} : vector<2x64xf32> to vector<2x32xf32>
    %463 = vector.extract_strided_slice %439 {offsets = [0, 32], sizes = [2, 32], strides = [1, 1]} : vector<2x64xf32> to vector<2x32xf32>
    %464 = vector.extract_strided_slice %434 {offsets = [0, 32], sizes = [2, 32], strides = [1, 1]} : vector<2x64xf32> to vector<2x32xf32>
    %465 = vector.extract_strided_slice %429 {offsets = [0, 32], sizes = [2, 32], strides = [1, 1]} : vector<2x64xf32> to vector<2x32xf32>
    %466 = vector.extract_strided_slice %424 {offsets = [0, 32], sizes = [2, 32], strides = [1, 1]} : vector<2x64xf32> to vector<2x32xf32>
    %467 = vector.extract_strided_slice %419 {offsets = [0, 32], sizes = [2, 32], strides = [1, 1]} : vector<2x64xf32> to vector<2x32xf32>
    %468 = vector.extract_strided_slice %414 {offsets = [0, 32], sizes = [2, 32], strides = [1, 1]} : vector<2x64xf32> to vector<2x32xf32>
    %469 = vector.extract_strided_slice %409 {offsets = [0, 32], sizes = [2, 32], strides = [1, 1]} : vector<2x64xf32> to vector<2x32xf32>
    %470 = vector.extract_strided_slice %404 {offsets = [0, 32], sizes = [2, 32], strides = [1, 1]} : vector<2x64xf32> to vector<2x32xf32>
    %471 = vector.extract_strided_slice %399 {offsets = [0, 32], sizes = [2, 32], strides = [1, 1]} : vector<2x64xf32> to vector<2x32xf32>
    %472 = vector.extract_strided_slice %394 {offsets = [0, 32], sizes = [2, 32], strides = [1, 1]} : vector<2x64xf32> to vector<2x32xf32>
    %473 = vector.extract_strided_slice %389 {offsets = [0, 32], sizes = [2, 32], strides = [1, 1]} : vector<2x64xf32> to vector<2x32xf32>
    %474 = vector.extract_strided_slice %384 {offsets = [0, 32], sizes = [2, 32], strides = [1, 1]} : vector<2x64xf32> to vector<2x32xf32>
    %475 = vector.extract_strided_slice %379 {offsets = [0, 32], sizes = [2, 32], strides = [1, 1]} : vector<2x64xf32> to vector<2x32xf32>
    %476 = vector.extract_strided_slice %374 {offsets = [0, 32], sizes = [2, 32], strides = [1, 1]} : vector<2x64xf32> to vector<2x32xf32>
    %477 = vector.extract_strided_slice %369 {offsets = [0, 32], sizes = [2, 32], strides = [1, 1]} : vector<2x64xf32> to vector<2x32xf32>
    %478 = tpu.concatenate %462, %463, %464, %465, %466, %467, %468, %469, %470, %471, %472, %473, %474, %475, %476, %477 in 0 : vector<2x32xf32>, vector<2x32xf32>, vector<2x32xf32>, vector<2x32xf32>, vector<2x32xf32>, vector<2x32xf32>, vector<2x32xf32>, vector<2x32xf32>, vector<2x32xf32>, vector<2x32xf32>, vector<2x32xf32>, vector<2x32xf32>, vector<2x32xf32>, vector<2x32xf32>, vector<2x32xf32>, vector<2x32xf32> -> vector<32x32xf32>
    %479 = tpu.concatenate %461, %478 in 1 : vector<32x32xf32>, vector<32x32xf32> -> vector<32x64xf32>
    %480 = arith.truncf %479 : vector<32x64xf32> to vector<32x64xbf16>
    %c0_132 = arith.constant 0 : index
    %c0_133 = arith.constant 0 : index
    %481 = vector.load %arg23[%c0_132, %c0_133] : memref<64x32xbf16, #tpu.memory_space<vmem>>, vector<64x32xbf16>
    %cst_134 = arith.constant dense<0.000000e+00> : vector<32x32xf32>
    %482 = tpu.matmul %480, %481, %cst_134 {dimension_numbers = #tpu.dot_dimension_numbers<[1], [0], [0], [1], [0, 0, 1, 1], [], []>} : vector<32x64xbf16>, vector<64x32xbf16>, vector<32x32xf32> -> vector<32x32xf32>
    %c0_135 = arith.constant 0 : index
    %c0_136 = arith.constant 0 : index
    %483 = vector.load %arg24[%c0_135, %c0_136] : memref<1x32xf32, #tpu.memory_space<vmem>>, vector<1x32xf32>
    %484 = vector.broadcast %483 : vector<1x32xf32> to vector<32x32xf32>
    %485 = arith.addf %482, %484 : vector<32x32xf32>
    %cst_137 = arith.constant 0.000000e+00 : f32
    %486 = vector.broadcast %cst_137 : f32 to vector<32x32xf32>
    %487 = arith.maximumf %485, %486 : vector<32x32xf32>
    %488 = arith.truncf %487 : vector<32x32xf32> to vector<32x32xbf16>
    %c0_138 = arith.constant 0 : index
    %c0_139 = arith.constant 0 : index
    %489 = vector.load %arg25[%c0_138, %c0_139] : memref<32x8xbf16, #tpu.memory_space<vmem>>, vector<32x8xbf16>
    %cst_140 = arith.constant dense<0.000000e+00> : vector<32x8xf32>
    %490 = tpu.matmul %488, %489, %cst_140 {dimension_numbers = #tpu.dot_dimension_numbers<[1], [0], [0], [1], [0, 0, 1, 1], [], []>} : vector<32x32xbf16>, vector<32x8xbf16>, vector<32x8xf32> -> vector<32x8xf32>
    %c0_141 = arith.constant 0 : index
    %c0_142 = arith.constant 0 : index
    %491 = vector.load %arg26[%c0_141, %c0_142] : memref<1x8xf32, #tpu.memory_space<vmem>>, vector<1x8xf32>
    %492 = vector.broadcast %491 : vector<1x8xf32> to vector<32x8xf32>
    %493 = arith.addf %490, %492 : vector<32x8xf32>
    %cst_143 = arith.constant 0.000000e+00 : f32
    %494 = vector.broadcast %cst_143 : f32 to vector<32x8xf32>
    %495 = arith.maximumf %493, %494 : vector<32x8xf32>
    %496 = arith.truncf %495 : vector<32x8xf32> to vector<32x8xbf16>
    %c0_144 = arith.constant 0 : index
    %c0_145 = arith.constant 0 : index
    %497 = vector.load %arg27[%c0_144, %c0_145] : memref<8x512xbf16, #tpu.memory_space<vmem>>, vector<8x512xbf16>
    %cst_146 = arith.constant dense<0.000000e+00> : vector<32x512xf32>
    %498 = tpu.matmul %496, %497, %cst_146 {dimension_numbers = #tpu.dot_dimension_numbers<[1], [0], [0], [1], [0, 0, 1, 1], [], []>} : vector<32x8xbf16>, vector<8x512xbf16>, vector<32x512xf32> -> vector<32x512xf32>
    %c0_147 = arith.constant 0 : index
    %c0_148 = arith.constant 0 : index
    %499 = vector.load %arg28[%c0_147, %c0_148] : memref<1x512xf32, #tpu.memory_space<vmem>>, vector<1x512xf32>
    %500 = vector.broadcast %499 : vector<1x512xf32> to vector<32x512xf32>
    %501 = arith.addf %498, %500 : vector<32x512xf32>
    %cst_149 = arith.constant 0.000000e+00 : f32
    %502 = vector.broadcast %cst_149 : f32 to vector<32x512xf32>
    %503 = arith.maximumf %501, %502 : vector<32x512xf32>
    %504 = arith.truncf %503 : vector<32x512xf32> to vector<32x512xbf16>
    %c0_150 = arith.constant 0 : index
    %c0_151 = arith.constant 0 : index
    %505 = vector.load %arg29[%c0_150, %c0_151] : memref<512x128xbf16, #tpu.memory_space<vmem>>, vector<512x128xbf16>
    %cst_152 = arith.constant dense<0.000000e+00> : vector<32x128xf32>
    %506 = tpu.matmul %504, %505, %cst_152 {dimension_numbers = #tpu.dot_dimension_numbers<[1], [0], [0], [1], [0, 0, 1, 1], [], []>} : vector<32x512xbf16>, vector<512x128xbf16>, vector<32x128xf32> -> vector<32x128xf32>
    %c0_153 = arith.constant 0 : index
    %c0_154 = arith.constant 0 : index
    %507 = vector.load %arg30[%c0_153, %c0_154] : memref<1x128xf32, #tpu.memory_space<vmem>>, vector<1x128xf32>
    %508 = vector.broadcast %507 : vector<1x128xf32> to vector<32x128xf32>
    %509 = arith.addf %506, %508 : vector<32x128xf32>
    %c0_155 = arith.constant 0 : index
    %c0_156 = arith.constant 0 : index
    %510 = vector.load %arg31[%c0_155, %c0_156] : memref<32x128xf32, #tpu.memory_space<vmem>>, vector<32x128xf32>
    tpu.vector_store %arg31[%c0_155, %c0_156], %509 {strides = array<i32>} : memref<32x128xf32, #tpu.memory_space<vmem>>, vector<32x128xf32>,
    return
  }
}

</mosaic_0001>

<bundles_post_ra>
// kernel: squeeze.5
= control target key start
LH: loop header
LB: loop body
LE: loop exit
PB: predicated region body
PF: predicated region fallthrough
CT: control target
= control target key end

     0   :  { %s130_s8 = smov 122   ;;  %s131_s9 = smov 124   ;;  %vm7_vm0 = vcmask 15360   ;;  %s221_s0 = inlined_call_operand.vmem [shape: f32[32], index: 0, kind: input, shape index: {}]   ;;  %s222_s1 = inlined_call_operand.vmem [shape: f32[16,2,1], index: 1, kind: output, shape index: {}]  }
   0x1   :  { %v4_v0 = vld [vmem:[%s221_s0] sm:$0x1]  ;;  %s129_s0 = smov 126   ;;  %s132_s10 = smov 120  }
   0x2   :  { %5 = vst [vmem:[#allocation0] sm:$0x1] %v4_v0  ;;  %s133_s11 = smov 118   ;;  %s134_s12 = smov 116  }
   0x3   :  { %s135_s13 = smov 114   ;;  %s136_s14 = smov 112  }
   0x4   :  { %s137_s17 = smov 110   ;;  %s138_s18 = smov 108  }
   0x5   :  { %s139_s19 = smov 106   ;;  %s140_s20 = smov 104  }
   0x6   :  { %s141_s21 = smov 102   ;;  %s142_s22 = smov 100  }
   0x7   :  { %s143_s23 = smov 98  }
   0x9   :  { %v9_v1 = vld [vmem:[#allocation0] sm:$0x1]  }
   0xa   :  { %v21_v2 = vld [vmem:[#allocation0] sm:$0x1]   ;;  %10 = vrot.lane.b32.xlu0 %v9_v1, %s129_s0 }
   0xb   :  { %22 = vrot.lane.b32.xlu1 %v21_v2, %s130_s8  ;;  %v15_v3 = vld [vmem:[#allocation0] sm:$0x1]  }
   0xc   :  { %v27_v4 = vld [vmem:[#allocation0] sm:$0x1]  }
   0xd   :  { %v33_v5 = vld [vmem:[#allocation0] sm:$0x1]  }
   0xe   :  { %16 = vrot.lane.b32.xlu0 %v15_v3, %s131_s9  ;;  %v39_v6 = vld [vmem:[#allocation0] sm:$0x1]  }
   0xf   :  { %28 = vrot.lane.b32.xlu1 %v27_v4, %s132_s10  ;;  %v45_v7 = vld [vmem:[#allocation0] sm:$0x1]  }
  0x10   :  { %v51_v8 = vld [vmem:[#allocation0] sm:$0x1]  }
  0x11   :  { %v57_v9 = vld [vmem:[#allocation0] sm:$0x1]  }
  0x12   :  { %34 = vrot.lane.b32.xlu0 %v33_v5, %s133_s11  ;;  %v63_v10 = vld [vmem:[#allocation0] sm:$0x1]  }
  0x13   :  { %40 = vrot.lane.b32.xlu1 %v39_v6, %s134_s12  ;;  %v6_v11 = vld [vmem:[#allocation0] sm:$0x1]  }
  0x14   :  { %8 = vst.msk [vmem:[%s222_s1] sm:$0x1] %vm7_vm0, %v6_v11   ;;  %v69_v12 = vld [vmem:[#allocation0] sm:$0x1]  }
  0x15   :  { %v75_v13 = vld [vmem:[#allocation0] sm:$0x1]  }
  0x16   :  { %46 = vrot.lane.b32.xlu0 %v45_v7, %s135_s13  ;;  %v81_v14 = vld [vmem:[#allocation0] sm:$0x1]  }
  0x17   :  { %52 = vrot.lane.b32.xlu1 %v51_v8, %s136_s14  ;;  %v87_v15 = vld [vmem:[#allocation0] sm:$0x1]  }
  0x18   :  { %v93_v16 = vld [vmem:[#allocation0] sm:$0x1]  }
  0x1a   :  { %58 = vrot.lane.b32.xlu0 %v57_v9, %s137_s17 }
  0x1b   :  { %64 = vrot.lane.b32.xlu1 %v63_v10, %s138_s18 }
  0x1e   :  { %70 = vrot.lane.b32.xlu0 %v69_v12, %s139_s19 }
  0x1f   :  { %76 = vrot.lane.b32.xlu1 %v75_v13, %s140_s20 }
  0x22   :  { %82 = vrot.lane.b32.xlu0 %v81_v14, %s141_s21 }
  0x23   :  { %88 = vrot.lane.b32.xlu1 %v87_v15, %s142_s22 }
  0x26   :  { %94 = vrot.lane.b32.xlu0 %v93_v16, %s143_s23 }
  0x7c   :  { %v11_v17 = vpop.permute.xlu0 %10  }
  0x7d   :  { %v23_v18 = vpop.permute.xlu1 %22   ;;  %99 = vst.msk [vmem:[%s222_s1 + $0x1] sm:$0x1] %vm7_vm0, %v11_v17  }
  0x7e   :  { %101 = vst.msk [vmem:[%s222_s1 + $0x3] sm:$0x1] %vm7_vm0, %v23_v18  }
  0x80   :  { %v17_v19 = vpop.permute.xlu0 %16  }
  0x81   :  { %v29_v20 = vpop.permute.xlu1 %28   ;;  %100 = vst.msk [vmem:[%s222_s1 + $0x2] sm:$0x1] %vm7_vm0, %v17_v19  }
  0x82   :  { %102 = vst.msk [vmem:[%s222_s1 + $0x4] sm:$0x1] %vm7_vm0, %v29_v20  }
  0x84   :  { %v35_v21 = vpop.permute.xlu0 %34  }
  0x85   :  { %v41_v22 = vpop.permute.xlu1 %40   ;;  %103 = vst.msk [vmem:[%s222_s1 + $0x5] sm:$0x1] %vm7_vm0, %v35_v21  }
  0x86   :  { %104 = vst.msk [vmem:[%s222_s1 + $0x6] sm:$0x1] %vm7_vm0, %v41_v22  }
  0x88   :  { %v47_v23 = vpop.permute.xlu0 %46  }
  0x89   :  { %v53_v24 = vpop.permute.xlu1 %52   ;;  %105 = vst.msk [vmem:[%s222_s1 + $0x7] sm:$0x1] %vm7_vm0, %v47_v23  }
  0x8a   :  { %106 = vst.msk [vmem:[%s222_s1 + $0x8] sm:$0x1] %vm7_vm0, %v53_v24  }
  0x8c   :  { %v59_v25 = vpop.permute.xlu0 %58  }
  0x8d   :  { %v65_v26 = vpop.permute.xlu1 %64   ;;  %107 = vst.msk [vmem:[%s222_s1 + $0x9] sm:$0x1] %vm7_vm0, %v59_v25  }
  0x8e   :  { %108 = vst.msk [vmem:[%s222_s1 + $0xa] sm:$0x1] %vm7_vm0, %v65_v26  }
  0x90   :  { %v71_v27 = vpop.permute.xlu0 %70  }
  0x91   :  { %v77_v28 = vpop.permute.xlu1 %76   ;;  %109 = vst.msk [vmem:[%s222_s1 + $0xb] sm:$0x1] %vm7_vm0, %v71_v27  }
  0x92   :  { %110 = vst.msk [vmem:[%s222_s1 + $0xc] sm:$0x1] %vm7_vm0, %v77_v28  }
  0x94   :  { %v83_v29 = vpop.permute.xlu0 %82  }
  0x95   :  { %v89_v30 = vpop.permute.xlu1 %88   ;;  %111 = vst.msk [vmem:[%s222_s1 + $0xd] sm:$0x1] %vm7_vm0, %v83_v29  }
  0x96   :  { %112 = vst.msk [vmem:[%s222_s1 + $0xe] sm:$0x1] %vm7_vm0, %v89_v30  }
  0x98   :  { %v95_v31 = vpop.permute.xlu0 %94  }
  0x99   :  { %113 = vst.msk [vmem:[%s222_s1 + $0xf] sm:$0x1] %vm7_vm0, %v95_v31  }

// kernel: diffusion_basemodel_forward.1
= control target key start
LH: loop header
LB: loop body
LE: loop exit
PB: predicated region body
PF: predicated region fallthrough
CT: control target
= control target key end

     0   :  { %v14712_v0 = vmov 5   ;;  %s14713_s6 = smov 4   ;;  %s14714_s10 = smov 2   ;;  %v157_v37 = vlaneseq  ;;  %vm203_vm0 = vcmask 1043456   ;;  %vm235_vm1 = vcmask 1045504   ;;  %s17588_s0 = inlined_call_operand.smem [shape: u32[32], index: -1, kind: input, shape index: {}] }
   0x1   :  { %13119 = vset.pattern.permute.xlu1 %v14712_v0  ;;  %13118 = vset.pattern.permute.xlu0 %v14712_v0  ;;  %s1_s5 = sld [smem:[%s17588_s0]]   ;;  %s14715_s14 = smov 3   ;;  %vm307_vm2 = vcmask 1041408   ;;  %vm269_vm3 = vcmask 523264   ;;  %vm15011_vm5 = vmneg %vm203_vm0  ;;  %vm14718_vm6 = vmmov 1   ;;  %vm14735_vm14 = vmmov 0  }
   0x2   :  { %s14765_s9 = sld [smem:[%s17588_s0 + %s14713_s6]]   ;;  %v14803_v38 = vshrl.u32 %v157_v37, 7  ;;  %s14717_s18 = smov 64   ;;  %vm15006_vm4 = vmneg %vm269_vm3  ;;  %vm8384_vm15 = vcmask 261120  }
   0x3   :  { %s11051_s13 = sld [smem:[%s17588_s0 + %s14714_s10]]   ;;  %vm15026_vm7 = vmpackc.low %vm14718_vm6, %vm15006_vm4  ;;  %s14719_s19 = smov 5  }
   0x4   :  { %s11052_s17 = sld [smem:[%s17588_s0 + %s14715_s14]]   ;;  %17607 = vst [vmem:[#allocation4_spill] sm:$0xff] %v14803_v38  ;;  %v14806_v40 = vsub.s32 0, %v14803_v38  ;;  %v14809_v41 = vsub.s32 1, %v14803_v38  ;;  %vm11398_vm8 = vmpackc.low %vm15011_vm5, %vm14718_vm6  ;;  %s14720_s23 = smov 7  }
   0x5   :  { %vm11402_vm9 = vmpackc.low %vm14718_vm6, %vm15011_vm5  ;;  %s15551_s22 = sld [smem:[%s17588_s0 + %s14719_s19]]   ;;  %s14722_s27 = smov 8  }
   0x6   :  { %vm11405_vm10 = vmpackc.low %vm203_vm0, %vm14718_vm6  ;;  %s15589_s26 = sld [smem:[%s17588_s0 + %s14720_s23]]   ;;  %s14723_s1 = smov 9  }
   0x7   :  { %v133_v1 = vld [vmem:[%s1_s5 + $0x10] sm:$0xff]  ;;  %v134_v2 = vld [vmem:[%s1_s5 + $0x18] sm:$0xff]  ;;  %v131_v3 = vld [vmem:[%s1_s5] sm:$0xff]  ;;  %s15696_s30 = sld [smem:[%s17588_s0 + %s14722_s27]]   ;;  %s14730_s27 = smov 13  }
   0x8   :  { %148 = vperm.xlu1 %13119, %v133_v1   ;;  %v14758_v4 = vpack.c.bf16 %v134_v2, %v133_v1  ;;  %v132_v5 = vld [vmem:[%s1_s5 + $0x8] sm:$0xff]  ;;  %138 = vperm.xlu0 %13118, %v131_v3   ;;  %v13213_v9 = vld [vmem:[%s14765_s9 + $0x14] ss:$8 sps:$4 sm:$0xff]   ;;  %v13215_v10 = vld [vmem:[%s14765_s9 + $0x10] ss:$8 sps:$4 sm:$0xff]   ;;  %s15702_s4 = sld [smem:[%s17588_s0 + %s14723_s1]]   ;;  %s14724_s5 = smov 10  }
   0x9   :  { %v14760_v6 = vpack.c.bf16 %v132_v5, %v131_v3  ;;  %v13210_v7 = vld [vmem:[%s14765_s9 + $0x4] ss:$8 sps:$4 sm:$0xff]   ;;  %v13212_v8 = vld [vmem:[%s14765_s9] ss:$8 sps:$4 sm:$0xff]   ;;  %v13219_v13 = vld [vmem:[%s14765_s9 + $0x34] ss:$8 sps:$4 sm:$0xff]   ;;  %s16106_s8 = sld [smem:[%s17588_s0 + %s14724_s5]]  }
   0xa   :  { %17605 = vst [vmem:[#allocation2_spill] sm:$0xff] %v14758_v4  ;;  %2340 = vmatprep.subr.bf16.mxu0 %v13210_v7  ;;  %v13216_v11 = vld [vmem:[%s14765_s9 + $0x24] ss:$8 sps:$4 sm:$0xff]   ;;  %v13218_v12 = vld [vmem:[%s14765_s9 + $0x20] ss:$8 sps:$4 sm:$0xff]   ;;  %vm11410_vm11 = vmpackc.low %vm14718_vm6, %vm203_vm0  ;;  %s11062_s1 = sld [smem:[%s17588_s0 + %s14730_s27]]   ;;  %s14731_s2 = smov 15  }
   0xb   :  { %17606 = vst [vmem:[#allocation3_spill] sm:$0xff] %v14760_v6  ;;  %2341 = vmatpush1.bf16.msra.mxu0 %v13212_v8  ;;  %v13221_v14 = vld [vmem:[%s14765_s9 + $0x30] ss:$8 sps:$4 sm:$0xff]   ;;  %v13222_v15 = vld [vmem:[%s14765_s9 + $0x44] ss:$8 sps:$4 sm:$0xff]   ;;  %vm15575_vm12 = vmpackc.low %vm15006_vm4, %vm15006_vm4  ;;  %s11064_s6 = sld [smem:[%s17588_s0 + %s14731_s2]]   ;;  %s14733_s10 = smov 17  }
   0xc   :  { %153 = vperm.xlu1 %13119, %v134_v2   ;;  %143 = vperm.xlu0 %13118, %v132_v5   ;;  %v13224_v16 = vld [vmem:[%s14765_s9 + $0x40] ss:$8 sps:$4 sm:$0xff]   ;;  %v13225_v17 = vld [vmem:[%s14765_s9 + $0x54] ss:$8 sps:$4 sm:$0xff]   ;;  %v13227_v18 = vld [vmem:[%s14765_s9 + $0x50] ss:$8 sps:$4 sm:$0xff]  }
   0xd   :  { %2342 = vmatprep.subr.bf16.mxu0 %v13213_v9  ;;  %v13228_v19 = vld [vmem:[%s14765_s9 + $0x64] ss:$8 sps:$4 sm:$0xff]   ;;  %v13230_v20 = vld [vmem:[%s14765_s9 + $0x60] ss:$8 sps:$4 sm:$0xff]   ;;  %v13231_v21 = vld [vmem:[%s14765_s9 + $0x74] ss:$8 sps:$4 sm:$0xff]  }
   0xe   :  { %v13233_v22 = vld [vmem:[%s14765_s9 + $0x70] ss:$8 sps:$4 sm:$0xff]   ;;  %v13234_v23 = vld [vmem:[%s14765_s9 + $0x84] ss:$8 sps:$4 sm:$0xff]   ;;  %v13236_v24 = vld [vmem:[%s14765_s9 + $0x80] ss:$8 sps:$4 sm:$0xff]  }
   0xf   :  { %2343 = vmatpush1.bf16.msra.mxu0 %v13215_v10  ;;  %v13237_v25 = vld [vmem:[%s14765_s9 + $0x94] ss:$8 sps:$4 sm:$0xff]   ;;  %v13239_v26 = vld [vmem:[%s14765_s9 + $0x90] ss:$8 sps:$4 sm:$0xff]   ;;  %v13240_v27 = vld [vmem:[%s14765_s9 + $0xa4] ss:$8 sps:$4 sm:$0xff]  }
  0x10   :  { %2344 = vmatprep.subr.bf16.mxu0 %v13216_v11  ;;  %v13242_v28 = vld [vmem:[%s14765_s9 + $0xa0] ss:$8 sps:$4 sm:$0xff]   ;;  %v13243_v29 = vld [vmem:[%s14765_s9 + $0xb4] ss:$8 sps:$4 sm:$0xff]   ;;  %v13245_v30 = vld [vmem:[%s14765_s9 + $0xb0] ss:$8 sps:$4 sm:$0xff]  }
  0x11   :  { %v13246_v31 = vld [vmem:[%s14765_s9 + $0xc4] ss:$8 sps:$4 sm:$0xff]   ;;  %v13248_v32 = vld [vmem:[%s14765_s9 + $0xc0] ss:$8 sps:$4 sm:$0xff]   ;;  %v13249_v33 = vld [vmem:[%s14765_s9 + $0xd4] ss:$8 sps:$4 sm:$0xff]  }
  0x12   :  { %v13251_v34 = vld [vmem:[%s14765_s9 + $0xd0] ss:$8 sps:$4 sm:$0xff]   ;;  %v13252_v35 = vld [vmem:[%s14765_s9 + $0xe4] ss:$8 sps:$4 sm:$0xff]   ;;  %v13254_v36 = vld [vmem:[%s14765_s9 + $0xe0] ss:$8 sps:$4 sm:$0xff]  }
  0x13   :  { %2345 = vmatpush1.bf16.msra.mxu0 %v13218_v12  ;;  %v135_v39 = vld [vmem:[%s11051_s13] sm:$0x3]  ;;  %v13255_v0 = vld [vmem:[%s14765_s9 + $0xf4] ss:$8 sps:$4 sm:$0xff]   ;;  %v13257_v1 = vld [vmem:[%s14765_s9 + $0xf0] ss:$8 sps:$4 sm:$0xff]  }
  0x14   :  { %2346 = vmatprep.subr.bf16.mxu0 %v13219_v13  ;;  %v175_v42 = vld [vmem:[%s11052_s17] sm:$0x3]  ;;  %v160_v43 = vrot.slane %v135_v39, %v14806_v40  ;;  %v164_v44 = vrot.slane %v135_v39, %v14809_v41  ;;  %v17589_v12 = vmov 0.0   ;;  %vm16062_vm13 = vmpackc.low %vm15006_vm4, %vm14718_vm6  ;;  %s14727_s13 = smov 1   ;;  %s14728_s17 = smov 6  }
  0x15   :  { %v180_v45 = vrot.slane %v175_v42, %v14806_v40  ;;  %v184_v46 = vrot.slane %v175_v42, %v14809_v41  ;;  %v14844_v13 = vrot.slane %v17589_v12, 2  ;;  %v13282_v6 = vld [vmem:[%s14765_s9 + $0x180] ss:$8 sps:$4 sm:$0xff]   ;;  %s11050_s16 = sld [smem:[%s17588_s0 + %s14727_s13]]   ;;  %s14734_s14 = smov 19  }
  0x16   :  { %s16243_s21 = sld [smem:[%s17588_s0 + %s14728_s17]]   ;;  %s14738_s24 = smov 20  }
  0x17   :  { %2347 = vmatpush1.bf16.msra.mxu0 %v13221_v14  ;;  %s16769_s13 = sld [smem:[%s17588_s0 + %s14733_s10]]   ;;  %s14739_s29 = smov 22  }
  0x18   :  { %2348 = vmatprep.subr.bf16.mxu0 %v13222_v15  ;;  %s16795_s17 = sld [smem:[%s17588_s0 + %s14734_s14]]   ;;  %s14740_s5 = smov 21  }
  0x19   :  { %s11069_s28 = sld [smem:[%s17588_s0 + %s14738_s24]]   ;;  %s14744_s20 = smov 27  }
  0x1a   :  { %s11071_s3 = sld [smem:[%s17588_s0 + %s14739_s29]]   ;;  %s14746_s27 = smov 26  }
  0x1b   :  { %2349 = vmatpush1.bf16.msra.mxu0 %v13224_v16  ;;  %s11070_s7 = sld [smem:[%s17588_s0 + %s14740_s5]]   ;;  %s14747_s2 = smov 28  }
  0x1c   :  { %2350 = vmatprep.subr.bf16.mxu0 %v13225_v17  ;;  %s14749_s10 = smov 31  }
  0x1f   :  { %2351 = vmatpush1.bf16.msra.mxu0 %v13227_v18 }
  0x20   :  { %2352 = vmatprep.subr.bf16.mxu0 %v13228_v19  ;;  %v14856_v19 = vrot.slane %v17589_v12, 6 }
  0x23   :  { %2353 = vmatpush1.bf16.msra.mxu0 %v13230_v20 }
  0x24   :  { %2354 = vmatprep.subr.bf16.mxu0 %v13231_v21 }
  0x27   :  { %2355 = vmatpush1.bf16.msra.mxu0 %v13233_v22 }
  0x28   :  { %2356 = vmatprep.subr.bf16.mxu0 %v13234_v23 }
  0x2b   :  { %2357 = vmatpush1.bf16.msra.mxu0 %v13236_v24 }
  0x2c   :  { %2358 = vmatprep.subr.bf16.mxu0 %v13237_v25 }
  0x2f   :  { %2359 = vmatpush1.bf16.msra.mxu0 %v13239_v26 }
  0x30   :  { %2360 = vmatprep.subr.bf16.mxu0 %v13240_v27 }
  0x33   :  { %2361 = vmatpush1.bf16.msra.mxu0 %v13242_v28  ;;  %v13260_v28 = vld [vmem:[%s14765_s9 + $0x104] ss:$8 sps:$4 sm:$0xff]  }
  0x34   :  { %2362 = vmatprep.subr.bf16.mxu0 %v13243_v29 }
  0x37   :  { %2363 = vmatpush1.bf16.msra.mxu0 %v13245_v30 }
  0x38   :  { %2364 = vmatprep.subr.bf16.mxu0 %v13246_v31 }
  0x3b   :  { %2365 = vmatpush1.bf16.msra.mxu0 %v13248_v32 }
  0x3c   :  { %2366 = vmatprep.subr.bf16.mxu0 %v13249_v33 }
  0x3f   :  { %2367 = vmatpush1.bf16.msra.mxu0 %v13251_v34 }
  0x40   :  { %2368 = vmatprep.subr.bf16.mxu0 %v13252_v35 }
  0x43   :  { %2369 = vmatpush1.bf16.msra.mxu0 %v13254_v36 }
  0x44   :  { %2370 = vmatprep.subr.bf16.mxu0 %v13255_v0 }
  0x47   :  { %2371 = vmatpush1.bf16.msra.mxu0 %v13257_v1 }
  0x48   :  { %2393 = vmatprep.subr.bf16.mxu0 %v13260_v28 }
  0x87   :  { %v149_v47 = vpop.permute.xlu1 %148  ;;  %v139_v48 = vpop.permute.xlu0 %138 }
  0x88   :  { %v171_v49 = vmul.f32 %v160_v43, %v149_v47  ;;  %v172_v50 = vmul.f32 %v164_v44, %v149_v47  ;;  %v167_v51 = vmul.f32 %v160_v43, %v139_v48  ;;  %v168_v52 = vmul.f32 %v164_v44, %v139_v48 }
  0x8a   :  { %v14815_v53 = vadd.f32 %v180_v45, %v171_v49  ;;  %v14817_v54 = vadd.f32 %v180_v45, %v167_v51  ;;  %v14819_v55 = vadd.f32 %v184_v46, %v168_v52  ;;  %v14821_v56 = vadd.f32 %v184_v46, %v172_v50 }
  0x8b   :  { %v154_v57 = vpop.permute.xlu1 %153  ;;  %v144_v58 = vpop.permute.xlu0 %143 }
  0x8c   :  { %v14824_v59 = vrot.slane %v14817_v54, 4  ;;  %v173_v60 = vmul.f32 %v160_v43, %v154_v57  ;;  %v174_v61 = vmul.f32 %v164_v44, %v154_v57  ;;  %v169_v62 = vmul.f32 %v160_v43, %v144_v58 }
  0x8d   :  { %v170_v63 = vmul.f32 %v164_v44, %v144_v58  ;;  %v210_v2 = vrot.slane %v14815_v53, 4  ;;  %v205_v3 = vrot.slane %v14819_v55, 4  ;;  %v212_v5 = vrot.slane %v14821_v56, 4 }
  0x8e   :  { %v14831_v7 = vadd.f32 %v180_v45, %v173_v60  ;;  %v14833_v8 = vadd.f32 %v184_v46, %v174_v61  ;;  %v14835_v9 = vadd.f32 %v180_v45, %v169_v62  ;;  %v14841_v11 = vsel %vm203_vm0, 0.0, %v14824_v59 }
  0x8f   :  { %v14837_v10 = vadd.f32 %v184_v46, %v170_v63  ;;  %v14852_v17 = vsel %vm203_vm0, 0.0, %v205_v3  ;;  %v237_v23 = vrot.slane %v14841_v11, 2  ;;  %v309_v36 = vrot.slane %v14841_v11, 6 }
  0x90   :  { %v14847_v14 = vrot.slane %v14831_v7, 4  ;;  %v216_v15 = vrot.slane %v14833_v8, 4  ;;  %v206_v16 = vrot.slane %v14835_v9, 4  ;;  %v239_v35 = vrot.slane %v14852_v17, 2 }
  0x91   :  { %v208_v18 = vrot.slane %v14837_v10, 4  ;;  %v238_v42 = vsel %vm235_vm1, %v14844_v13, %v237_v23  ;;  %v311_v46 = vrot.slane %v14852_v17, 6  ;;  %v310_v60 = vsel %vm307_vm2, %v14856_v19, %v309_v36 }
  0x92   :  { %v14860_v20 = vsel %vm203_vm0, %v210_v2, %v14847_v14  ;;  %v14863_v21 = vsel %vm203_vm0, %v212_v5, %v216_v15  ;;  %v14867_v22 = vsel %vm203_vm0, %v14824_v59, %v206_v16  ;;  %v14874_v25 = vsel %vm203_vm0, %v206_v16, %v210_v2 }
  0x93   :  { %v14871_v24 = vsel %vm203_vm0, %v205_v3, %v208_v18  ;;  %v14877_v26 = vsel %vm203_vm0, %v208_v18, %v212_v5  ;;  %v241_v29 = vrot.slane %v14867_v22, 2  ;;  %v245_v30 = vrot.slane %v14874_v25, 2 }
  0x94   :  { %v249_v31 = vrot.slane %v14860_v20, 2  ;;  %v243_v32 = vrot.slane %v14871_v24, 2  ;;  %v247_v33 = vrot.slane %v14877_v26, 2  ;;  %v251_v34 = vrot.slane %v14863_v21, 2 }
  0x95   :  { %v246_v37 = vsel %vm235_vm1, %v241_v29, %v245_v30  ;;  %v242_v43 = vsel %vm235_vm1, %v237_v23, %v241_v29  ;;  %v313_v47 = vrot.slane %v14867_v22, 6  ;;  %v315_v51 = vrot.slane %v14871_v24, 6 }
  0x96   :  { %v250_v39 = vsel %vm235_vm1, %v245_v30, %v249_v31  ;;  %v13120_v45 = vpack.i.bf16 %v238_v42, %v242_v43  ;;  %v248_v48 = vsel %vm235_vm1, %v243_v32, %v247_v33  ;;  %v252_v49 = vsel %vm235_vm1, %v247_v33, %v251_v34 }
  0x97   :  { %v13125_v44 = vpack.i.bf16 %v250_v39, %v246_v37  ;;  %v244_v50 = vsel %vm235_vm1, %v239_v35, %v243_v32  ;;  %v317_v52 = vrot.slane %v14874_v25, 6  ;;  %v319_v57 = vrot.slane %v14877_v26, 6 }
  0x98   :  { %13121 = vrot.lane.b32.xlu0 %v13120_v45, %s14717_s18  ;;  %v240_v58 = vsel %vm235_vm1, %v14844_v13, %v239_v35  ;;  %v14912_v61 = vsel %vm203_vm0, %v216_v15, 0.0  ;;  %v13135_v62 = vpack.i.bf16 %v252_v49, %v248_v48  ;;  %v314_v0 = vsel %vm307_vm2, %v309_v36, %v313_v47 }
  0x99   :  { %13126 = vrot.lane.b32.xlu1 %v13125_v44, %s14717_s18  ;;  %v13130_v63 = vpack.i.bf16 %v244_v50, %v240_v58  ;;  %v316_v1 = vsel %vm307_vm2, %v311_v46, %v315_v51  ;;  %v312_v2 = vsel %vm307_vm2, %v14856_v19, %v311_v46  ;;  %v321_v3 = vrot.slane %v14860_v20, 6 }
  0x9a   :  { %v323_v5 = vrot.slane %v14863_v21, 6  ;;  %v318_v15 = vsel %vm307_vm2, %v313_v47, %v317_v52  ;;  %v320_v16 = vsel %vm307_vm2, %v315_v51, %v319_v57  ;;  %v357_v18 = vrot.slane %v14912_v61, 2 }
  0x9b   :  { %v14926_v23 = vrot.slane %v17589_v12, 4  ;;  %v13145_v28 = vpack.i.bf16 %v316_v1, %v314_v0  ;;  %v13140_v29 = vpack.i.bf16 %v312_v2, %v310_v60  ;;  %v230_v30 = vsel %vm203_vm0, %v14847_v14, 0.0  ;;  %v13264_v1 = vld [vmem:[%s14765_s9 + $0x120] ss:$8 sps:$4 sm:$0xff]  }
  0x9c   :  { %13131 = vrot.lane.b32.xlu0 %v13130_v63, %s14717_s18  ;;  %v374_v32 = vrot.slane %v14912_v61, 6  ;;  %v322_v33 = vsel %vm307_vm2, %v317_v52, %v321_v3  ;;  %v324_v35 = vsel %vm307_vm2, %v319_v57, %v323_v5  ;;  %v13150_v36 = vpack.i.bf16 %v320_v16, %v318_v15 }
  0x9d   :  { %13136 = vrot.lane.b32.xlu1 %v13135_v62, %s14717_s18  ;;  %v355_v37 = vrot.slane %v230_v30, 2  ;;  %v14937_v39 = vpack.c.bf16 %v14874_v25, %v14867_v22  ;;  %v283_v42 = vrot.slane %v14841_v11, 4  ;;  %v287_v43 = vrot.slane %v14867_v22, 4  ;;  %v13269_v62 = vld [vmem:[%s14765_s9 + $0x134] ss:$8 sps:$4 sm:$0xff]  }
  0x9e   :  { %v14943_v44 = vpack.c.bf16 %v14860_v20, %v14874_v25  ;;  %v358_v45 = vsel %vm235_vm1, %v251_v34, %v357_v18  ;;  %v372_v46 = vrot.slane %v230_v30, 6  ;;  %v291_v47 = vrot.slane %v14874_v25, 4 }
  0x9f   :  { %v295_v48 = vrot.slane %v14860_v20, 4  ;;  %v13155_v49 = vpack.i.bf16 %v324_v35, %v322_v33  ;;  %v14950_v50 = vsel %vm203_vm0, %v14926_v23, %v283_v42  ;;  %v14953_v11 = vsel %vm203_vm0, %v283_v42, %v287_v43 }
  0xa0   :  { %13141 = vrot.lane.b32.xlu0 %v13140_v29, %s14717_s18  ;;  %v366_v51 = vrot.slane %v230_v30, 4  ;;  %v375_v52 = vsel %vm307_vm2, %v323_v5, %v374_v32  ;;  %v420_v57 = vpack.c.bf16 %v14953_v11, %v14950_v50  ;;  %v14959_v34 = vsel %vm203_vm0, %v287_v43, %v291_v47 }
  0xa1   :  { %13146 = vrot.lane.b32.xlu1 %v13145_v28, %s14717_s18  ;;  %v14962_v25 = vsel %vm203_vm0, %v291_v47, %v295_v48  ;;  %v356_v58 = vsel %vm235_vm1, %v249_v31, %v355_v37  ;;  %v373_v63 = vsel %vm307_vm2, %v321_v3, %v372_v46  ;;  %v383_v15 = vsel %vm235_vm1, %v355_v37, %v14844_v13 }
  0xa2   :  { %v14971_v60 = vpack.c.bf16 %v14962_v25, %v14959_v34  ;;  %v14977_v0 = vsel %vm203_vm0, %v295_v48, %v366_v51  ;;  %v14983_v2 = vsel %vm203_vm0, %v366_v51, %v14926_v23  ;;  %v13160_v3 = vpack.i.bf16 %v375_v52, %v373_v63  ;;  %v13258_v52 = vld [vmem:[%s14765_s9 + $0x100] ss:$8 sps:$4 sm:$0xff]  }
  0xa3   :  { %v396_v16 = vsel %vm307_vm2, %v372_v46, %v14856_v19  ;;  %v397_v28 = vsel %vm307_vm2, %v374_v32, %v14856_v19  ;;  %v384_v30 = vsel %vm235_vm1, %v357_v18, %v14844_v13  ;;  %v13405_v18 = vld [vmem:[%s14765_s9 + $0x410] ss:$8 sps:$4 sm:$0xff]   ;;  %v14022_v19 = vld [vmem:[%s15551_s22 + $0x724] ss:$8 sps:$4 sm:$0xff]  }
  0xa4   :  { %13151 = vrot.lane.b32.xlu0 %v13150_v36, %s14717_s18  ;;  %v13165_v29 = vpack.i.bf16 %v397_v28, %v396_v16  ;;  %v13263_v28 = vld [vmem:[%s14765_s9 + $0x114] ss:$8 sps:$4 sm:$0xff]  }
  0xa5   :  { %13156 = vrot.lane.b32.xlu1 %v13155_v49, %s14717_s18 }
  0xa8   :  { %359 = vrot.lane.b32.xlu0 %v356_v58, %s14717_s18  ;;  %v11399_v58 = vpack.c.bf16 %v14824_v59, %v17589_v12 }
  0xa9   :  { %361 = vrot.lane.b32.xlu1 %v358_v45, %s14717_s18  ;;  %v14388_v45 = vld [vmem:[%s16243_s21 + $0x320] ss:$8 sps:$4 sm:$0xff]  }
  0xac   :  { %13161 = vrot.lane.b32.xlu0 %v13160_v3, %s14717_s18 }
  0xad   :  { %385 = vrot.lane.b32.xlu1 %v383_v15, %s14717_s18 }
  0xb0   :  { %387 = vrot.lane.b32.xlu0 %v384_v30, %s14717_s18 }
  0xb1   :  { %13166 = vrot.lane.b32.xlu1 %v13165_v29, %s14717_s18 }
  0xb4   :  { %3016 = vrot.lane.b32.xlu0 %v14926_v23, %s14717_s18 }
 0x10a   :  { %v13122_v35 = vpop.permute.xlu0 %13121 }
 0x10b   :  { %v13127_v33 = vpop.permute.xlu1 %13126  ;;  %v13124_v37 = vunpack.i.h.bf16 %v13122_v35  ;;  %v13123_v13 = vunpack.i.l.bf16 %v13122_v35 }
 0x10c   :  { %v13129_v32 = vunpack.i.h.bf16 %v13127_v33  ;;  %v13128_v36 = vunpack.i.l.bf16 %v13127_v33 }
 0x10d   :  { %v15017_v42 = vsel %vm269_vm3, %v14852_v17, %v13123_v13 }
 0x10e   :  { %v15021_v43 = vsel %vm269_vm3, %v14871_v24, %v13128_v36  ;;  %v15032_v46 = vsel %vm269_vm3, %v14877_v26, %v13129_v32  ;;  %v13132_v48 = vpop.permute.xlu0 %13131  ;;  %v11395_v51 = vpack.c.bf16 %v15017_v42, %v13124_v37 }
 0x10f   :  { %v13137_v47 = vpop.permute.xlu1 %13136  ;;  %v13134_v15 = vunpack.i.h.bf16 %v13132_v48  ;;  %v13133_v16 = vunpack.i.l.bf16 %v13132_v48  ;;  %v15048_v29 = vpack.c.bf16 %v15032_v46, %v15021_v43 }
 0x110   :  { %v13139_v63 = vunpack.i.h.bf16 %v13137_v47  ;;  %v13138_v3 = vunpack.i.l.bf16 %v13137_v47  ;;  %11396 = vmatprep.mubr.msk.bf16.mxu0 %vm15026_vm7, %v11395_v51 }
 0x111   :  { %v15051_v30 = vsel %vm269_vm3, %v13124_v37, %v13133_v16  ;;  %v15054_v33 = vsel %vm269_vm3, %v13123_v13, %v13134_v15  ;;  %11400 = vmatmul.mubr.msk.bf16.vlgmr.msra.gmra.mrb[0].mxu0 %vm11398_vm8, %v11399_v58  ;;  %v13261_v37 = vld [vmem:[%s14765_s9 + $0x110] ss:$8 sps:$4 sm:$0xff]   ;;  %v289_v58 = vrot.slane %v14871_v24, 4 }
 0x112   :  { %v15057_v35 = vsel %vm269_vm3, %v13129_v32, %v13139_v63  ;;  %v15060_v47 = vsel %vm269_vm3, %v13128_v36, %v13138_v3  ;;  %2394 = vmatpush1.bf16.msra.mxu0 %v13258_v52  ;;  %v15064_v12 = vpop.permute.xlu0 %13141  ;;  %2382 = vmatprep.mubr.bf16.mxu0 %v15048_v29  ;;  %v13266_v36 = vld [vmem:[%s14765_s9 + $0x124] ss:$8 sps:$4 sm:$0xff]   ;;  %v293_v52 = vrot.slane %v14877_v26, 4  ;;  %v17591_v3 = vrot.slane %v14852_v17, 4 }
 0x113   :  { %v13147_v51 = vpop.permute.xlu1 %13146  ;;  %v15072_v32 = vpack.c.bf16 %v15057_v35, %v15060_v47  ;;  %2395 = vmatprep.subr.bf16.mxu0 %v13263_v28 }
 0x114   :  { %v13148_v63 = vunpack.i.l.bf16 %v13147_v51  ;;  %v13149_v15 = vunpack.i.h.bf16 %v13147_v51  ;;  %v290_v24 = vsel %vm203_vm0, %v17591_v3, %v289_v58  ;;  %v294_v28 = vsel %vm203_vm0, %v289_v58, %v293_v52  ;;  %v13267_v58 = vld [vmem:[%s14765_s9 + $0x130] ss:$8 sps:$4 sm:$0xff]  }
 0x116   :  { %2396 = vmatpush1.bf16.msra.mxu0 %v13261_v37  ;;  %v13152_v5 = vpop.permute.xlu0 %13151  ;;  %v15087_v27 = vsel %vm269_vm3, %v290_v24, %v13148_v63  ;;  %v15103_v24 = vsel %vm269_vm3, %v13148_v63, %v13149_v15  ;;  %v368_v63 = vrot.slane %v14912_v61, 4 }
 0x117   :  { %v15078_v16 = vpop.permute.xlu1 %13156  ;;  %v13154_v31 = vunpack.i.h.bf16 %v13152_v5  ;;  %v13153_v13 = vunpack.i.l.bf16 %v13152_v5  ;;  %2397 = vmatprep.subr.bf16.mxu0 %v13266_v36 }
 0x118   :  { %v17596_v15 = vunpack.i.l.bf16 %v15078_v16 }
 0x119   :  { %2383 = vmatmul.mubr.bf16.gmra.mrb[4].mxu0 %v14937_v39  ;;  %v15091_v51 = vsel %vm269_vm3, %v13153_v13, %v13154_v31  ;;  %v15094_v37 = vsel %vm269_vm3, %v294_v28, %v13153_v13  ;;  %v13275_v28 = vld [vmem:[%s14765_s9 + $0x154] ss:$8 sps:$4 sm:$0xff]  }
 0x11a   :  { %2398 = vmatpush1.bf16.msra.mxu0 %v13264_v1  ;;  %v15096_v36 = vpop.permute.xlu0 %359  ;;  %2425 = vmatprep.mubr.bf16.mxu0 %v420_v57  ;;  %v13272_v1 = vld [vmem:[%s14765_s9 + $0x144] ss:$8 sps:$4 sm:$0xff]   ;;  %v297_v57 = vrot.slane %v14863_v21, 4 }
 0x11b   :  { %v362_v5 = vpop.permute.xlu1 %361  ;;  %2399 = vmatprep.subr.bf16.mxu0 %v13269_v62  ;;  %v13270_v62 = vld [vmem:[%s14765_s9 + $0x140] ss:$8 sps:$4 sm:$0xff]  }
 0x11c   :  { %v15109_v13 = vsel %vm269_vm3, %v15096_v36, %v362_v5  ;;  %v298_v50 = vsel %vm203_vm0, %v293_v52, %v297_v57  ;;  %v369_v3 = vsel %vm203_vm0, %v297_v57, %v368_v63 }
 0x11d   :  { %v15131_v48 = vsel %vm269_vm3, %v298_v50, %v17596_v15  ;;  %v13278_v50 = vld [vmem:[%s14765_s9 + $0x164] ss:$8 sps:$4 sm:$0xff]   ;;  %v13281_v15 = vld [vmem:[%s14765_s9 + $0x174] ss:$8 sps:$4 sm:$0xff]  }
 0x11e   :  { %2400 = vmatpush1.bf16.msra.mxu0 %v13267_v58  ;;  %v15121_v5 = vpop.permute.xlu0 %13161 }
 0x11f   :  { %v15119_v31 = vpop.permute.xlu1 %385  ;;  %v17595_v49 = vunpack.i.l.bf16 %v15121_v5  ;;  %2401 = vmatprep.subr.bf16.mxu0 %v13272_v1  ;;  %v13273_v1 = vld [vmem:[%s14765_s9 + $0x150] ss:$8 sps:$4 sm:$0xff]  }
 0x121   :  { %v15136_v58 = vsel %vm269_vm3, %v369_v3, %v17595_v49  ;;  %v393_v49 = vsel %vm203_vm0, %v368_v63, %v14926_v23  ;;  %v13284_v63 = vld [vmem:[%s14765_s9 + $0x184] ss:$8 sps:$4 sm:$0xff]  }
 0x122   :  { %2402 = vmatpush1.bf16.msra.mxu0 %v13270_v62  ;;  %v388_v52 = vpop.permute.xlu0 %387  ;;  %v13279_v62 = vld [vmem:[%s14765_s9 + $0x170] ss:$8 sps:$4 sm:$0xff]  }
 0x123   :  { %v15138_v38 = vpop.permute.xlu1 %13166  ;;  %2403 = vmatprep.subr.bf16.mxu0 %v13275_v28  ;;  %v15147_v3 = vsel %vm269_vm3, %v15119_v31, %v388_v52  ;;  %v13276_v28 = vld [vmem:[%s14765_s9 + $0x160] ss:$8 sps:$4 sm:$0xff]   ;;  %v13290_v52 = vld [vmem:[%s14765_s9 + $0x1a4] ss:$8 sps:$4 sm:$0xff]  }
 0x124   :  { %v17598_v4 = vunpack.i.l.bf16 %v15138_v38 }
 0x126   :  { %v15156_v57 = vsel %vm269_vm3, %v393_v49, %v17598_v4  ;;  %2404 = vmatpush1.bf16.msra.mxu0 %v13273_v1  ;;  %v13287_v49 = vld [vmem:[%s14765_s9 + $0x194] ss:$8 sps:$4 sm:$0xff]   ;;  %v13285_v1 = vld [vmem:[%s14765_s9 + $0x190] ss:$8 sps:$4 sm:$0xff]  }
 0x127   :  { %2405 = vmatprep.subr.bf16.mxu0 %v13278_v50  ;;  %v13288_v50 = vld [vmem:[%s14765_s9 + $0x1a0] ss:$8 sps:$4 sm:$0xff]   ;;  %v13311_v4 = vld [vmem:[%s14765_s9 + $0x214] ss:$8 sps:$4 sm:$0xff]  }
 0x12a   :  { %2406 = vmatpush1.bf16.msra.mxu0 %v13276_v28  ;;  %v13293_v28 = vld [vmem:[%s14765_s9 + $0x1b4] ss:$8 sps:$4 sm:$0xff]  }
 0x12b   :  { %2407 = vmatprep.subr.bf16.mxu0 %v13281_v15  ;;  %v13291_v15 = vld [vmem:[%s14765_s9 + $0x1b0] ss:$8 sps:$4 sm:$0xff]  }
 0x12e   :  { %2408 = vmatpush1.bf16.msra.mxu0 %v13279_v62  ;;  %v13296_v62 = vld [vmem:[%s14765_s9 + $0x1c4] ss:$8 sps:$4 sm:$0xff]  }
 0x12f   :  { %2409 = vmatprep.subr.bf16.mxu0 %v13284_v63  ;;  %v13294_v63 = vld [vmem:[%s14765_s9 + $0x1c0] ss:$8 sps:$4 sm:$0xff]  }
 0x132   :  { %2410 = vmatpush1.bf16.msra.mxu0 %v13282_v6  ;;  %v13299_v6 = vld [vmem:[%s14765_s9 + $0x1d4] ss:$8 sps:$4 sm:$0xff]  }
 0x133   :  { %2411 = vmatprep.subr.bf16.mxu0 %v13287_v49  ;;  %v13297_v49 = vld [vmem:[%s14765_s9 + $0x1d0] ss:$8 sps:$4 sm:$0xff]  }
 0x136   :  { %2412 = vmatpush1.bf16.msra.mxu0 %v13285_v1  ;;  %v13302_v1 = vld [vmem:[%s14765_s9 + $0x1e4] ss:$8 sps:$4 sm:$0xff]  }
 0x137   :  { %2413 = vmatprep.subr.bf16.mxu0 %v13290_v52  ;;  %v13300_v52 = vld [vmem:[%s14765_s9 + $0x1e0] ss:$8 sps:$4 sm:$0xff]  }
 0x13a   :  { %2414 = vmatpush1.bf16.msra.mxu0 %v13288_v50  ;;  %v13305_v50 = vld [vmem:[%s14765_s9 + $0x1f4] ss:$8 sps:$4 sm:$0xff]  }
 0x13b   :  { %2415 = vmatprep.subr.bf16.mxu0 %v13293_v28  ;;  %v13303_v28 = vld [vmem:[%s14765_s9 + $0x1f0] ss:$8 sps:$4 sm:$0xff]  }
 0x13e   :  { %2416 = vmatpush1.bf16.msra.mxu0 %v13291_v15  ;;  %v13308_v15 = vld [vmem:[%s14765_s9 + $0x204] ss:$8 sps:$4 sm:$0xff]  }
 0x13f   :  { %2417 = vmatprep.subr.bf16.mxu0 %v13296_v62  ;;  %v13306_v62 = vld [vmem:[%s14765_s9 + $0x200] ss:$8 sps:$4 sm:$0xff]  }
 0x142   :  { %2418 = vmatpush1.bf16.msra.mxu0 %v13294_v63  ;;  %v13144_v63 = vunpack.i.h.bf16 %v15064_v12 }
 0x143   :  { %2419 = vmatprep.subr.bf16.mxu0 %v13299_v6  ;;  %v13143_v6 = vunpack.i.l.bf16 %v15064_v12  ;;  %v13357_v12 = vld [vmem:[%s14765_s9 + $0x310] ss:$8 sps:$4 sm:$0xff]  }
 0x146   :  { %2420 = vmatpush1.bf16.msra.mxu0 %v13297_v49  ;;  %v17614_v49 = vpack.c.bf16 %v15054_v33, %v15051_v30  ;;  %v13317_v30 = vld [vmem:[%s14765_s9 + $0x234] ss:$8 sps:$4 sm:$0xff]  }
 0x147   :  { %2421 = vmatprep.subr.bf16.mxu0 %v13302_v1  ;;  %v13309_v1 = vld [vmem:[%s14765_s9 + $0x210] ss:$8 sps:$4 sm:$0xff]  }
 0x14a   :  { %2422 = vmatpush1.bf16.msra.mxu0 %v13300_v52  ;;  %v13314_v52 = vld [vmem:[%s14765_s9 + $0x224] ss:$8 sps:$4 sm:$0xff]  }
 0x14b   :  { %2423 = vmatprep.subr.bf16.mxu0 %v13305_v50  ;;  %v341_v50 = vsel %vm269_vm3, %v13143_v6, %v13144_v63  ;;  %v13318_v63 = vld [vmem:[%s14765_s9 + $0x240] ss:$8 sps:$4 sm:$0xff]  }
 0x14e   :  { %2424 = vmatpush1.bf16.msra.mxu0 %v13303_v28  ;;  %v13312_v28 = vld [vmem:[%s14765_s9 + $0x220] ss:$8 sps:$4 sm:$0xff]  }
 0x14f   :  { %2446 = vmatprep.subr.bf16.mxu0 %v13308_v15  ;;  %v422_v15 = vpack.c.bf16 %v15103_v24, %v341_v50  ;;  %v13324_v50 = vld [vmem:[%s14765_s9 + $0x260] ss:$8 sps:$4 sm:$0xff]  }
 0x151   :  { %2426 = vmatmul.mubr.bf16.vlgmr.msra.gmra.mrb[0].mxu0 %v17614_v49  ;;  %v13323_v49 = vld [vmem:[%s14765_s9 + $0x254] ss:$8 sps:$4 sm:$0xff]  }
 0x152   :  { %2435 = vmatprep.mubr.bf16.mxu0 %v14971_v60  ;;  %2447 = vmatpush1.bf16.msra.mxu0 %v13306_v62  ;;  %v13320_v62 = vld [vmem:[%s14765_s9 + $0x244] ss:$8 sps:$4 sm:$0xff]  }
 0x153   :  { %2448 = vmatprep.subr.bf16.mxu0 %v13311_v4  ;;  %v13315_v4 = vld [vmem:[%s14765_s9 + $0x230] ss:$8 sps:$4 sm:$0xff]  }
 0x156   :  { %2449 = vmatpush1.bf16.msra.mxu0 %v13309_v1  ;;  %v13321_v1 = vld [vmem:[%s14765_s9 + $0x250] ss:$8 sps:$4 sm:$0xff]  }
 0x157   :  { %2450 = vmatprep.subr.bf16.mxu0 %v13314_v52  ;;  %v13326_v52 = vld [vmem:[%s14765_s9 + $0x264] ss:$8 sps:$4 sm:$0xff]  }
 0x159   :  { %2436 = vmatmul.mubr.bf16.gmra.mrb[4].mxu0 %v15072_v32 }
 0x15a   :  { %2451 = vmatpush1.bf16.msra.mxu0 %v13312_v28  ;;  %2478 = vmatprep.mubr.bf16.mxu0 %v422_v15  ;;  %v13329_v28 = vld [vmem:[%s14765_s9 + $0x274] ss:$8 sps:$4 sm:$0xff]   ;;  %v13332_v15 = vld [vmem:[%s14765_s9 + $0x284] ss:$8 sps:$4 sm:$0xff]  }
 0x15b   :  { %2452 = vmatprep.subr.bf16.mxu0 %v13317_v30  ;;  %v13327_v30 = vld [vmem:[%s14765_s9 + $0x270] ss:$8 sps:$4 sm:$0xff]  }
 0x15e   :  { %2453 = vmatpush1.bf16.msra.mxu0 %v13315_v4  ;;  %v13330_v4 = vld [vmem:[%s14765_s9 + $0x280] ss:$8 sps:$4 sm:$0xff]  }
 0x15f   :  { %2454 = vmatprep.subr.bf16.mxu0 %v13320_v62  ;;  %v13335_v62 = vld [vmem:[%s14765_s9 + $0x294] ss:$8 sps:$4 sm:$0xff]  }
 0x162   :  { %2455 = vmatpush1.bf16.msra.mxu0 %v13318_v63  ;;  %v13333_v63 = vld [vmem:[%s14765_s9 + $0x290] ss:$8 sps:$4 sm:$0xff]  }
 0x163   :  { %2456 = vmatprep.subr.bf16.mxu0 %v13323_v49  ;;  %v13338_v49 = vld [vmem:[%s14765_s9 + $0x2a4] ss:$8 sps:$4 sm:$0xff]  }
 0x166   :  { %2457 = vmatpush1.bf16.msra.mxu0 %v13321_v1  ;;  %v13336_v1 = vld [vmem:[%s14765_s9 + $0x2a0] ss:$8 sps:$4 sm:$0xff]  }
 0x167   :  { %2458 = vmatprep.subr.bf16.mxu0 %v13326_v52  ;;  %v13341_v52 = vld [vmem:[%s14765_s9 + $0x2b4] ss:$8 sps:$4 sm:$0xff]  }
 0x16a   :  { %2459 = vmatpush1.bf16.msra.mxu0 %v13324_v50  ;;  %v13339_v50 = vld [vmem:[%s14765_s9 + $0x2b0] ss:$8 sps:$4 sm:$0xff]  }
 0x16b   :  { %2460 = vmatprep.subr.bf16.mxu0 %v13329_v28  ;;  %v13344_v28 = vld [vmem:[%s14765_s9 + $0x2c4] ss:$8 sps:$4 sm:$0xff]  }
 0x16e   :  { %2461 = vmatpush1.bf16.msra.mxu0 %v13327_v30  ;;  %v13342_v30 = vld [vmem:[%s14765_s9 + $0x2c0] ss:$8 sps:$4 sm:$0xff]  }
 0x16f   :  { %2462 = vmatprep.subr.bf16.mxu0 %v13332_v15  ;;  %v13347_v15 = vld [vmem:[%s14765_s9 + $0x2d4] ss:$8 sps:$4 sm:$0xff]  }
 0x172   :  { %2463 = vmatpush1.bf16.msra.mxu0 %v13330_v4  ;;  %v13345_v4 = vld [vmem:[%s14765_s9 + $0x2d0] ss:$8 sps:$4 sm:$0xff]  }
 0x173   :  { %2464 = vmatprep.subr.bf16.mxu0 %v13335_v62  ;;  %v13350_v62 = vld [vmem:[%s14765_s9 + $0x2e4] ss:$8 sps:$4 sm:$0xff]  }
 0x176   :  { %2465 = vmatpush1.bf16.msra.mxu0 %v13333_v63  ;;  %v13348_v63 = vld [vmem:[%s14765_s9 + $0x2e0] ss:$8 sps:$4 sm:$0xff]  }
 0x177   :  { %2466 = vmatprep.subr.bf16.mxu0 %v13338_v49  ;;  %v13353_v49 = vld [vmem:[%s14765_s9 + $0x2f4] ss:$8 sps:$4 sm:$0xff]  }
 0x17a   :  { %2467 = vmatpush1.bf16.msra.mxu0 %v13336_v1  ;;  %v13159_v1 = vunpack.i.h.bf16 %v15078_v16 }
 0x17b   :  { %2468 = vmatprep.subr.bf16.mxu0 %v13341_v52  ;;  %v13351_v52 = vld [vmem:[%s14765_s9 + $0x2f0] ss:$8 sps:$4 sm:$0xff]  }
 0x17e   :  { %2469 = vmatpush1.bf16.msra.mxu0 %v13339_v50  ;;  %v17615_v50 = vrot.slane %v14852_v17, 4 }
 0x17f   :  { %2470 = vmatprep.subr.bf16.mxu0 %v13344_v28 }
 0x180   :  { %v286_v28 = vsel %vm203_vm0, %v14926_v23, %v17615_v50  ;;  %v13359_v50 = vld [vmem:[%s14765_s9 + $0x314] ss:$8 sps:$4 sm:$0xff]  }
 0x182   :  { %2471 = vmatpush1.bf16.msra.mxu0 %v13342_v30  ;;  %v13356_v30 = vld [vmem:[%s14765_s9 + $0x304] ss:$8 sps:$4 sm:$0xff]  }
 0x183   :  { %2472 = vmatprep.subr.bf16.mxu0 %v13347_v15  ;;  %v409_v15 = vsel %vm269_vm3, %v286_v28, %v13143_v6  ;;  %v13360_v6 = vld [vmem:[%s14765_s9 + $0x320] ss:$8 sps:$4 sm:$0xff]   ;;  %v17617_v28 = vpack.c.bf16 %v15021_v43, %v15017_v42  ;;  %v13377_v43 = vld [vmem:[%s14765_s9 + $0x374] ss:$8 sps:$4 sm:$0xff]  }
 0x184   :  { %v421_v17 = vpack.c.bf16 %v15087_v27, %v409_v15  ;;  %v13368_v15 = vld [vmem:[%s14765_s9 + $0x344] ss:$8 sps:$4 sm:$0xff]   ;;  %v13372_v42 = vld [vmem:[%s14765_s9 + $0x360] ss:$8 sps:$4 sm:$0xff]  }
 0x186   :  { %2473 = vmatpush1.bf16.msra.mxu0 %v13345_v4  ;;  %v17616_v4 = vunpack.i.l.bf16 %v15078_v16  ;;  %v13362_v16 = vld [vmem:[%s14765_s9 + $0x324] ss:$8 sps:$4 sm:$0xff]  }
 0x187   :  { %2474 = vmatprep.subr.bf16.mxu0 %v13350_v62 }
 0x188   :  { %v15234_v62 = vsel %vm269_vm3, %v17616_v4, %v13159_v1  ;;  %v15249_v1 = vpack.c.bf16 %v15131_v48, %v15094_v37  ;;  %v13366_v4 = vld [vmem:[%s14765_s9 + $0x340] ss:$8 sps:$4 sm:$0xff]  }
 0x18a   :  { %2475 = vmatpush1.bf16.msra.mxu0 %v13348_v63  ;;  %v13354_v63 = vld [vmem:[%s14765_s9 + $0x300] ss:$8 sps:$4 sm:$0xff]  }
 0x18b   :  { %2476 = vmatprep.subr.bf16.mxu0 %v13353_v49  ;;  %v15241_v49 = vpack.c.bf16 %v15234_v62, %v15091_v51 }
 0x18e   :  { %2477 = vmatpush1.bf16.msra.mxu0 %v13351_v52  ;;  %v13365_v52 = vld [vmem:[%s14765_s9 + $0x334] ss:$8 sps:$4 sm:$0xff]  }
 0x18f   :  { %2499 = vmatprep.subr.bf16.mxu0 %v13356_v30  ;;  %v13363_v30 = vld [vmem:[%s14765_s9 + $0x330] ss:$8 sps:$4 sm:$0xff]  }
 0x191   :  { %2479 = vmatmul.mubr.bf16.vlgmr.msra.gmra.mrb[0].mxu0 %v421_v17  ;;  %v13369_v17 = vld [vmem:[%s14765_s9 + $0x350] ss:$8 sps:$4 sm:$0xff]  }
 0x192   :  { %2488 = vmatprep.mubr.bf16.mxu0 %v15241_v49  ;;  %2500 = vmatpush1.bf16.msra.mxu0 %v13354_v63  ;;  %v13371_v63 = vld [vmem:[%s14765_s9 + $0x354] ss:$8 sps:$4 sm:$0xff]  }
 0x193   :  { %2501 = vmatprep.subr.bf16.mxu0 %v13359_v50  ;;  %v13374_v50 = vld [vmem:[%s14765_s9 + $0x364] ss:$8 sps:$4 sm:$0xff]  }
 0x196   :  { %2502 = vmatpush1.bf16.msra.mxu0 %v13357_v12  ;;  %v13375_v12 = vld [vmem:[%s14765_s9 + $0x370] ss:$8 sps:$4 sm:$0xff]  }
 0x197   :  { %2503 = vmatprep.subr.bf16.mxu0 %v13362_v16  ;;  %v13380_v16 = vld [vmem:[%s14765_s9 + $0x384] ss:$8 sps:$4 sm:$0xff]  }
 0x199   :  { %2489 = vmatmul.mubr.bf16.gmra.mrb[4].mxu0 %v15249_v1 }
 0x19a   :  { %2504 = vmatpush1.bf16.msra.mxu0 %v13360_v6  ;;  %2531 = vmatprep.mubr.bf16.mxu0 %v17617_v28  ;;  %v13378_v6 = vld [vmem:[%s14765_s9 + $0x380] ss:$8 sps:$4 sm:$0xff]   ;;  %v13381_v28 = vld [vmem:[%s14765_s9 + $0x390] ss:$8 sps:$4 sm:$0xff]  }
 0x19b   :  { %2505 = vmatprep.subr.bf16.mxu0 %v13365_v52  ;;  %v13383_v52 = vld [vmem:[%s14765_s9 + $0x394] ss:$8 sps:$4 sm:$0xff]  }
 0x19e   :  { %2506 = vmatpush1.bf16.msra.mxu0 %v13363_v30  ;;  %v13386_v30 = vld [vmem:[%s14765_s9 + $0x3a4] ss:$8 sps:$4 sm:$0xff]  }
 0x19f   :  { %2507 = vmatprep.subr.bf16.mxu0 %v13368_v15  ;;  %v13384_v15 = vld [vmem:[%s14765_s9 + $0x3a0] ss:$8 sps:$4 sm:$0xff]  }
 0x1a2   :  { %2508 = vmatpush1.bf16.msra.mxu0 %v13366_v4  ;;  %v13389_v4 = vld [vmem:[%s14765_s9 + $0x3b4] ss:$8 sps:$4 sm:$0xff]  }
 0x1a3   :  { %2509 = vmatprep.subr.bf16.mxu0 %v13371_v63  ;;  %v13387_v63 = vld [vmem:[%s14765_s9 + $0x3b0] ss:$8 sps:$4 sm:$0xff]  }
 0x1a6   :  { %2510 = vmatpush1.bf16.msra.mxu0 %v13369_v17  ;;  %v13392_v17 = vld [vmem:[%s14765_s9 + $0x3c4] ss:$8 sps:$4 sm:$0xff]  }
 0x1a7   :  { %2511 = vmatprep.subr.bf16.mxu0 %v13374_v50  ;;  %v13390_v50 = vld [vmem:[%s14765_s9 + $0x3c0] ss:$8 sps:$4 sm:$0xff]  }
 0x1aa   :  { %2512 = vmatpush1.bf16.msra.mxu0 %v13372_v42  ;;  %v13395_v42 = vld [vmem:[%s14765_s9 + $0x3d4] ss:$8 sps:$4 sm:$0xff]  }
 0x1ab   :  { %2513 = vmatprep.subr.bf16.mxu0 %v13377_v43  ;;  %v13393_v43 = vld [vmem:[%s14765_s9 + $0x3d0] ss:$8 sps:$4 sm:$0xff]  }
 0x1ae   :  { %2514 = vmatpush1.bf16.msra.mxu0 %v13375_v12  ;;  %v13398_v12 = vld [vmem:[%s14765_s9 + $0x3e4] ss:$8 sps:$4 sm:$0xff]  }
 0x1af   :  { %2515 = vmatprep.subr.bf16.mxu0 %v13380_v16  ;;  %v13396_v16 = vld [vmem:[%s14765_s9 + $0x3e0] ss:$8 sps:$4 sm:$0xff]  }
 0x1b2   :  { %2516 = vmatpush1.bf16.msra.mxu0 %v13378_v6  ;;  %v13401_v6 = vld [vmem:[%s14765_s9 + $0x3f4] ss:$8 sps:$4 sm:$0xff]  }
 0x1b3   :  { %2517 = vmatprep.subr.bf16.mxu0 %v13383_v52  ;;  %v13399_v52 = vld [vmem:[%s14765_s9 + $0x3f0] ss:$8 sps:$4 sm:$0xff]  }
 0x1b6   :  { %2518 = vmatpush1.bf16.msra.mxu0 %v13381_v28  ;;  %v13404_v28 = vld [vmem:[%s14765_s9 + $0x404] ss:$8 sps:$4 sm:$0xff]  }
 0x1b7   :  { %2519 = vmatprep.subr.bf16.mxu0 %v13386_v30  ;;  %v15285_v30 = vsel %vm269_vm3, %v14863_v21, %v15096_v36  ;;  %v13410_v36 = vld [vmem:[%s14765_s9 + $0x424] ss:$8 sps:$4 sm:$0xff]  }
 0x1ba   :  { %2520 = vmatpush1.bf16.msra.mxu0 %v13384_v15  ;;  %v13402_v15 = vld [vmem:[%s14765_s9 + $0x400] ss:$8 sps:$4 sm:$0xff]  }
 0x1bb   :  { %2521 = vmatprep.subr.bf16.mxu0 %v13389_v4  ;;  %v13407_v4 = vld [vmem:[%s14765_s9 + $0x414] ss:$8 sps:$4 sm:$0xff]  }
 0x1be   :  { %2522 = vmatpush1.bf16.msra.mxu0 %v13387_v63  ;;  %v437_v63 = vpack.c.bf16 %v15285_v30, %v15032_v46  ;;  %v13416_v46 = vld [vmem:[%s14765_s9 + $0x444] ss:$8 sps:$4 sm:$0xff]  }
 0x1bf   :  { %2523 = vmatprep.subr.bf16.mxu0 %v13392_v17  ;;  %v17618_v17 = vpack.c.bf16 %v14867_v22, %v14824_v59  ;;  %v17619_v59 = vpack.c.bf16 %v14959_v34, %v14953_v11  ;;  %v13411_v22 = vld [vmem:[%s14765_s9 + $0x430] ss:$8 sps:$4 sm:$0xff]   ;;  %v13420_v11 = vld [vmem:[%s14765_s9 + $0x460] ss:$8 sps:$4 sm:$0xff]   ;;  %v13425_v34 = vld [vmem:[%s14765_s9 + $0x474] ss:$8 sps:$4 sm:$0xff]  }
 0x1c2   :  { %2524 = vmatpush1.bf16.msra.mxu0 %v13390_v50  ;;  %v13408_v50 = vld [vmem:[%s14765_s9 + $0x420] ss:$8 sps:$4 sm:$0xff]  }
 0x1c3   :  { %2525 = vmatprep.subr.bf16.mxu0 %v13395_v42  ;;  %v13413_v42 = vld [vmem:[%s14765_s9 + $0x434] ss:$8 sps:$4 sm:$0xff]  }
 0x1c6   :  { %2526 = vmatpush1.bf16.msra.mxu0 %v13393_v43  ;;  %v13414_v43 = vld [vmem:[%s14765_s9 + $0x440] ss:$8 sps:$4 sm:$0xff]  }
 0x1c7   :  { %2527 = vmatprep.subr.bf16.mxu0 %v13398_v12  ;;  %v13419_v12 = vld [vmem:[%s14765_s9 + $0x454] ss:$8 sps:$4 sm:$0xff]  }
 0x1ca   :  { %2528 = vmatpush1.bf16.msra.mxu0 %v13396_v16  ;;  %v13417_v16 = vld [vmem:[%s14765_s9 + $0x450] ss:$8 sps:$4 sm:$0xff]  }
 0x1cb   :  { %2529 = vmatprep.subr.bf16.mxu0 %v13401_v6  ;;  %v13422_v6 = vld [vmem:[%s14765_s9 + $0x464] ss:$8 sps:$4 sm:$0xff]  }
 0x1ce   :  { %2530 = vmatpush1.bf16.msra.mxu0 %v13399_v52  ;;  %v13423_v52 = vld [vmem:[%s14765_s9 + $0x470] ss:$8 sps:$4 sm:$0xff]  }
 0x1cf   :  { %2552 = vmatprep.subr.bf16.mxu0 %v13404_v28  ;;  %v13428_v28 = vld [vmem:[%s14765_s9 + $0x484] ss:$8 sps:$4 sm:$0xff]  }
 0x1d1   :  { %11404 = vmatmul.mubr.msk.bf16.vlgmr.msra.gmra.mrb[0].mxu0 %vm11402_vm9, %v17618_v17  ;;  %v13434_v17 = vld [vmem:[%s14765_s9 + $0x4a4] ss:$8 sps:$4 sm:$0xff]  }
 0x1d2   :  { %2541 = vmatprep.mubr.bf16.mxu0 %v437_v63  ;;  %2553 = vmatpush1.bf16.msra.mxu0 %v13402_v15  ;;  %v13426_v15 = vld [vmem:[%s14765_s9 + $0x480] ss:$8 sps:$4 sm:$0xff]   ;;  %v13429_v63 = vld [vmem:[%s14765_s9 + $0x490] ss:$8 sps:$4 sm:$0xff]  }
 0x1d3   :  { %2554 = vmatprep.subr.bf16.mxu0 %v13407_v4  ;;  %v13431_v4 = vld [vmem:[%s14765_s9 + $0x494] ss:$8 sps:$4 sm:$0xff]  }
 0x1d6   :  { %2555 = vmatpush1.bf16.msra.mxu0 %v13405_v18  ;;  %v13432_v18 = vld [vmem:[%s14765_s9 + $0x4a0] ss:$8 sps:$4 sm:$0xff]  }
 0x1d7   :  { %2556 = vmatprep.subr.bf16.mxu0 %v13410_v36  ;;  %v13437_v36 = vld [vmem:[%s14765_s9 + $0x4b4] ss:$8 sps:$4 sm:$0xff]  }
 0x1d9   :  { %2542 = vmatmul.mubr.bf16.gmra.mrb[4].mxu0 %v14943_v44 }
 0x1da   :  { %2557 = vmatpush1.bf16.msra.mxu0 %v13408_v50  ;;  %2584 = vmatprep.mubr.bf16.mxu0 %v17619_v59  ;;  %v13435_v50 = vld [vmem:[%s14765_s9 + $0x4b0] ss:$8 sps:$4 sm:$0xff]   ;;  %v13438_v59 = vld [vmem:[%s14765_s9 + $0x4c0] ss:$8 sps:$4 sm:$0xff]  }
 0x1db   :  { %2558 = vmatprep.subr.bf16.mxu0 %v13413_v42  ;;  %v13440_v42 = vld [vmem:[%s14765_s9 + $0x4c4] ss:$8 sps:$4 sm:$0xff]  }
 0x1de   :  { %2559 = vmatpush1.bf16.msra.mxu0 %v13411_v22  ;;  %v13443_v22 = vld [vmem:[%s14765_s9 + $0x4d4] ss:$8 sps:$4 sm:$0xff]  }
 0x1df   :  { %2560 = vmatprep.subr.bf16.mxu0 %v13416_v46  ;;  %v13441_v46 = vld [vmem:[%s14765_s9 + $0x4d0] ss:$8 sps:$4 sm:$0xff]  }
 0x1e2   :  { %2561 = vmatpush1.bf16.msra.mxu0 %v13414_v43  ;;  %v13446_v43 = vld [vmem:[%s14765_s9 + $0x4e4] ss:$8 sps:$4 sm:$0xff]  }
 0x1e3   :  { %2562 = vmatprep.subr.bf16.mxu0 %v13419_v12  ;;  %v13444_v12 = vld [vmem:[%s14765_s9 + $0x4e0] ss:$8 sps:$4 sm:$0xff]  }
 0x1e6   :  { %2563 = vmatpush1.bf16.msra.mxu0 %v13417_v16  ;;  %v13449_v16 = vld [vmem:[%s14765_s9 + $0x4f4] ss:$8 sps:$4 sm:$0xff]  }
 0x1e7   :  { %2564 = vmatprep.subr.bf16.mxu0 %v13422_v6  ;;  %v13447_v6 = vld [vmem:[%s14765_s9 + $0x4f0] ss:$8 sps:$4 sm:$0xff]  }
 0x1ea   :  { %2565 = vmatpush1.bf16.msra.mxu0 %v13420_v11  ;;  %v13452_v11 = vld [vmem:[%s14765_s9 + $0x504] ss:$8 sps:$4 sm:$0xff]  }
 0x1eb   :  { %2566 = vmatprep.subr.bf16.mxu0 %v13425_v34  ;;  %v13450_v34 = vld [vmem:[%s14765_s9 + $0x500] ss:$8 sps:$4 sm:$0xff]  }
 0x1ee   :  { %2567 = vmatpush1.bf16.msra.mxu0 %v13423_v52  ;;  %v13455_v52 = vld [vmem:[%s14765_s9 + $0x514] ss:$8 sps:$4 sm:$0xff]  }
 0x1ef   :  { %2568 = vmatprep.subr.bf16.mxu0 %v13428_v28  ;;  %v17620_v28 = vpack.c.bf16 %v15060_v47, %v15054_v33  ;;  %v17622_v33 = vpack.c.bf16 %v15109_v13, %v15057_v35  ;;  %v13459_v47 = vld [vmem:[%s14765_s9 + $0x530] ss:$8 sps:$4 sm:$0xff]  }
 0x1f0   :  { %v13465_v35 = vld [vmem:[%s14765_s9 + $0x550] ss:$8 sps:$4 sm:$0xff]  }
 0x1f2   :  { %2569 = vmatpush1.bf16.msra.mxu0 %v13426_v15  ;;  %v17621_v15 = vpack.c.bf16 %v14977_v0, %v14962_v25  ;;  %v17623_v25 = vpack.c.bf16 %v15091_v51, %v15103_v24  ;;  %v13468_v51 = vld [vmem:[%s14765_s9 + $0x560] ss:$8 sps:$4 sm:$0xff]   ;;  %v13473_v24 = vld [vmem:[%s14765_s9 + $0x574] ss:$8 sps:$4 sm:$0xff]  }
 0x1f3   :  { %2570 = vmatprep.subr.bf16.mxu0 %v13431_v4  ;;  %v13453_v4 = vld [vmem:[%s14765_s9 + $0x510] ss:$8 sps:$4 sm:$0xff]  }
 0x1f6   :  { %2571 = vmatpush1.bf16.msra.mxu0 %v13429_v63  ;;  %v13458_v63 = vld [vmem:[%s14765_s9 + $0x524] ss:$8 sps:$4 sm:$0xff]  }
 0x1f7   :  { %2572 = vmatprep.subr.bf16.mxu0 %v13434_v17  ;;  %v13456_v17 = vld [vmem:[%s14765_s9 + $0x520] ss:$8 sps:$4 sm:$0xff]  }
 0x1fa   :  { %2573 = vmatpush1.bf16.msra.mxu0 %v13432_v18  ;;  %v13461_v18 = vld [vmem:[%s14765_s9 + $0x534] ss:$8 sps:$4 sm:$0xff]  }
 0x1fb   :  { %2574 = vmatprep.subr.bf16.mxu0 %v13437_v36  ;;  %v13464_v36 = vld [vmem:[%s14765_s9 + $0x544] ss:$8 sps:$4 sm:$0xff]  }
 0x1fe   :  { %2575 = vmatpush1.bf16.msra.mxu0 %v13435_v50  ;;  %v13462_v50 = vld [vmem:[%s14765_s9 + $0x540] ss:$8 sps:$4 sm:$0xff]  }
 0x1ff   :  { %2576 = vmatprep.subr.bf16.mxu0 %v13440_v42  ;;  %v13467_v42 = vld [vmem:[%s14765_s9 + $0x554] ss:$8 sps:$4 sm:$0xff]  }
 0x202   :  { %2577 = vmatpush1.bf16.msra.mxu0 %v13438_v59  ;;  %v13470_v59 = vld [vmem:[%s14765_s9 + $0x564] ss:$8 sps:$4 sm:$0xff]  }
 0x203   :  { %2578 = vmatprep.subr.bf16.mxu0 %v13443_v22  ;;  %v13471_v22 = vld [vmem:[%s14765_s9 + $0x570] ss:$8 sps:$4 sm:$0xff]  }
 0x206   :  { %2579 = vmatpush1.bf16.msra.mxu0 %v13441_v46  ;;  %v13476_v46 = vld [vmem:[%s14765_s9 + $0x584] ss:$8 sps:$4 sm:$0xff]  }
 0x207   :  { %2580 = vmatprep.subr.bf16.mxu0 %v13446_v43  ;;  %v13474_v43 = vld [vmem:[%s14765_s9 + $0x580] ss:$8 sps:$4 sm:$0xff]  }
 0x20a   :  { %2581 = vmatpush1.bf16.msra.mxu0 %v13444_v12  ;;  %v13479_v12 = vld [vmem:[%s14765_s9 + $0x594] ss:$8 sps:$4 sm:$0xff]  }
 0x20b   :  { %2582 = vmatprep.subr.bf16.mxu0 %v13449_v16  ;;  %v13477_v16 = vld [vmem:[%s14765_s9 + $0x590] ss:$8 sps:$4 sm:$0xff]  }
 0x20e   :  { %2583 = vmatpush1.bf16.msra.mxu0 %v13447_v6  ;;  %v13482_v6 = vld [vmem:[%s14765_s9 + $0x5a4] ss:$8 sps:$4 sm:$0xff]  }
 0x20f   :  { %2605 = vmatprep.subr.bf16.mxu0 %v13452_v11  ;;  %v13480_v11 = vld [vmem:[%s14765_s9 + $0x5a0] ss:$8 sps:$4 sm:$0xff]  }
 0x211   :  { %2585 = vmatmul.mubr.bf16.vlgmr.msra.gmra.mrb[0].mxu0 %v17620_v28  ;;  %v13488_v28 = vld [vmem:[%s14765_s9 + $0x5c4] ss:$8 sps:$4 sm:$0xff]  }
 0x212   :  { %2594 = vmatprep.mubr.bf16.mxu0 %v17621_v15  ;;  %2606 = vmatpush1.bf16.msra.mxu0 %v13450_v34  ;;  %v13485_v34 = vld [vmem:[%s14765_s9 + $0x5b4] ss:$8 sps:$4 sm:$0xff]   ;;  %v13486_v15 = vld [vmem:[%s14765_s9 + $0x5c0] ss:$8 sps:$4 sm:$0xff]  }
 0x213   :  { %2607 = vmatprep.subr.bf16.mxu0 %v13455_v52  ;;  %v13483_v52 = vld [vmem:[%s14765_s9 + $0x5b0] ss:$8 sps:$4 sm:$0xff]  }
 0x216   :  { %2608 = vmatpush1.bf16.msra.mxu0 %v13453_v4  ;;  %v13491_v4 = vld [vmem:[%s14765_s9 + $0x5d4] ss:$8 sps:$4 sm:$0xff]  }
 0x217   :  { %2609 = vmatprep.subr.bf16.mxu0 %v13458_v63  ;;  %v13489_v63 = vld [vmem:[%s14765_s9 + $0x5d0] ss:$8 sps:$4 sm:$0xff]  }
 0x219   :  { %2595 = vmatmul.mubr.bf16.gmra.mrb[4].mxu0 %v17622_v33  ;;  %v13497_v33 = vld [vmem:[%s14765_s9 + $0x5f4] ss:$8 sps:$4 sm:$0xff]  }
 0x21a   :  { %2610 = vmatpush1.bf16.msra.mxu0 %v13456_v17  ;;  %2637 = vmatprep.mubr.bf16.mxu0 %v17623_v25  ;;  %v13494_v17 = vld [vmem:[%s14765_s9 + $0x5e4] ss:$8 sps:$4 sm:$0xff]   ;;  %v13164_v25 = vunpack.i.h.bf16 %v15121_v5 }
 0x21b   :  { %2611 = vmatprep.subr.bf16.mxu0 %v13461_v18  ;;  %v13492_v18 = vld [vmem:[%s14765_s9 + $0x5e0] ss:$8 sps:$4 sm:$0xff]  }
 0x21e   :  { %2612 = vmatpush1.bf16.msra.mxu0 %v13459_v47  ;;  %v13495_v47 = vld [vmem:[%s14765_s9 + $0x5f0] ss:$8 sps:$4 sm:$0xff]  }
 0x21f   :  { %2613 = vmatprep.subr.bf16.mxu0 %v13464_v36  ;;  %v13500_v36 = vld [vmem:[%s14765_s9 + $0x604] ss:$8 sps:$4 sm:$0xff]  }
 0x222   :  { %2614 = vmatpush1.bf16.msra.mxu0 %v13462_v50  ;;  %v17624_v50 = vunpack.i.l.bf16 %v15121_v5  ;;  %v13501_v5 = vld [vmem:[%s14765_s9 + $0x610] ss:$8 sps:$4 sm:$0xff]  }
 0x223   :  { %2615 = vmatprep.subr.bf16.mxu0 %v13467_v42 }
 0x224   :  { %v15379_v42 = vsel %vm269_vm3, %v17624_v50, %v13164_v25  ;;  %v13536_v25 = vld [vmem:[%s14765_s9 + $0x6c4] ss:$8 sps:$4 sm:$0xff]   ;;  %v13537_v50 = vld [vmem:[%s14765_s9 + $0x6d0] ss:$8 sps:$4 sm:$0xff]  }
 0x226   :  { %2616 = vmatpush1.bf16.msra.mxu0 %v13465_v35  ;;  %v13498_v35 = vld [vmem:[%s14765_s9 + $0x600] ss:$8 sps:$4 sm:$0xff]  }
 0x227   :  { %2617 = vmatprep.subr.bf16.mxu0 %v13470_v59  ;;  %v13503_v59 = vld [vmem:[%s14765_s9 + $0x614] ss:$8 sps:$4 sm:$0xff]  }
 0x22a   :  { %2618 = vmatpush1.bf16.msra.mxu0 %v13468_v51  ;;  %v441_v51 = vpack.c.bf16 %v15379_v42, %v15234_v62  ;;  %v17626_v62 = vpack.c.bf16 %v15136_v58, %v15131_v48  ;;  %v13518_v48 = vld [vmem:[%s14765_s9 + $0x664] ss:$8 sps:$4 sm:$0xff]  }
 0x22b   :  { %2619 = vmatprep.subr.bf16.mxu0 %v13473_v24  ;;  %v17625_v24 = vpack.c.bf16 %v15094_v37, %v15087_v27  ;;  %v13507_v27 = vld [vmem:[%s14765_s9 + $0x630] ss:$8 sps:$4 sm:$0xff]   ;;  %v13512_v37 = vld [vmem:[%s14765_s9 + $0x644] ss:$8 sps:$4 sm:$0xff]  }
 0x22e   :  { %2620 = vmatpush1.bf16.msra.mxu0 %v13471_v22  ;;  %v13506_v22 = vld [vmem:[%s14765_s9 + $0x624] ss:$8 sps:$4 sm:$0xff]  }
 0x22f   :  { %2621 = vmatprep.subr.bf16.mxu0 %v13476_v46  ;;  %v13504_v46 = vld [vmem:[%s14765_s9 + $0x620] ss:$8 sps:$4 sm:$0xff]  }
 0x232   :  { %2622 = vmatpush1.bf16.msra.mxu0 %v13474_v43  ;;  %v13509_v43 = vld [vmem:[%s14765_s9 + $0x634] ss:$8 sps:$4 sm:$0xff]  }
 0x233   :  { %2623 = vmatprep.subr.bf16.mxu0 %v13479_v12  ;;  %v13510_v12 = vld [vmem:[%s14765_s9 + $0x640] ss:$8 sps:$4 sm:$0xff]  }
 0x236   :  { %2624 = vmatpush1.bf16.msra.mxu0 %v13477_v16  ;;  %v13515_v16 = vld [vmem:[%s14765_s9 + $0x654] ss:$8 sps:$4 sm:$0xff]  }
 0x237   :  { %2625 = vmatprep.subr.bf16.mxu0 %v13482_v6  ;;  %v13513_v6 = vld [vmem:[%s14765_s9 + $0x650] ss:$8 sps:$4 sm:$0xff]  }
 0x23a   :  { %2626 = vmatpush1.bf16.msra.mxu0 %v13480_v11  ;;  %v13516_v11 = vld [vmem:[%s14765_s9 + $0x660] ss:$8 sps:$4 sm:$0xff]  }
 0x23b   :  { %2627 = vmatprep.subr.bf16.mxu0 %v13485_v34  ;;  %v13519_v34 = vld [vmem:[%s14765_s9 + $0x670] ss:$8 sps:$4 sm:$0xff]  }
 0x23e   :  { %2628 = vmatpush1.bf16.msra.mxu0 %v13483_v52  ;;  %v13524_v52 = vld [vmem:[%s14765_s9 + $0x684] ss:$8 sps:$4 sm:$0xff]  }
 0x23f   :  { %2629 = vmatprep.subr.bf16.mxu0 %v13488_v28  ;;  %v13522_v28 = vld [vmem:[%s14765_s9 + $0x680] ss:$8 sps:$4 sm:$0xff]  }
 0x242   :  { %2630 = vmatpush1.bf16.msra.mxu0 %v13486_v15  ;;  %v13527_v15 = vld [vmem:[%s14765_s9 + $0x694] ss:$8 sps:$4 sm:$0xff]  }
 0x243   :  { %2631 = vmatprep.subr.bf16.mxu0 %v13491_v4  ;;  %v13525_v4 = vld [vmem:[%s14765_s9 + $0x690] ss:$8 sps:$4 sm:$0xff]  }
 0x246   :  { %2632 = vmatpush1.bf16.msra.mxu0 %v13489_v63  ;;  %v13530_v63 = vld [vmem:[%s14765_s9 + $0x6a4] ss:$8 sps:$4 sm:$0xff]  }
 0x247   :  { %2633 = vmatprep.subr.bf16.mxu0 %v13494_v17  ;;  %v13528_v17 = vld [vmem:[%s14765_s9 + $0x6a0] ss:$8 sps:$4 sm:$0xff]  }
 0x24a   :  { %2634 = vmatpush1.bf16.msra.mxu0 %v13492_v18  ;;  %v13533_v18 = vld [vmem:[%s14765_s9 + $0x6b4] ss:$8 sps:$4 sm:$0xff]  }
 0x24b   :  { %2635 = vmatprep.subr.bf16.mxu0 %v13497_v33  ;;  %v13531_v33 = vld [vmem:[%s14765_s9 + $0x6b0] ss:$8 sps:$4 sm:$0xff]  }
 0x24e   :  { %2636 = vmatpush1.bf16.msra.mxu0 %v13495_v47  ;;  %v13534_v47 = vld [vmem:[%s14765_s9 + $0x6c0] ss:$8 sps:$4 sm:$0xff]  }
 0x24f   :  { %2658 = vmatprep.subr.bf16.mxu0 %v13500_v36  ;;  %v13539_v36 = vld [vmem:[%s14765_s9 + $0x6d4] ss:$8 sps:$4 sm:$0xff]  }
 0x251   :  { %2638 = vmatmul.mubr.bf16.vlgmr.msra.gmra.mrb[0].mxu0 %v17625_v24  ;;  %v13543_v24 = vld [vmem:[%s14765_s9 + $0x6f0] ss:$8 sps:$4 sm:$0xff]  }
 0x252   :  { %2647 = vmatprep.mubr.bf16.mxu0 %v441_v51  ;;  %2659 = vmatpush1.bf16.msra.mxu0 %v13498_v35  ;;  %v13542_v35 = vld [vmem:[%s14765_s9 + $0x6e4] ss:$8 sps:$4 sm:$0xff]   ;;  %v13545_v51 = vld [vmem:[%s14765_s9 + $0x6f4] ss:$8 sps:$4 sm:$0xff]  }
 0x253   :  { %2660 = vmatprep.subr.bf16.mxu0 %v13503_v59  ;;  %v13540_v59 = vld [vmem:[%s14765_s9 + $0x6e0] ss:$8 sps:$4 sm:$0xff]  }
 0x256   :  { %2661 = vmatpush1.bf16.msra.mxu0 %v13501_v5  ;;  %v13548_v5 = vld [vmem:[%s14765_s9 + $0x704] ss:$8 sps:$4 sm:$0xff]  }
 0x257   :  { %2662 = vmatprep.subr.bf16.mxu0 %v13506_v22  ;;  %v415_v22 = vsel %vm269_vm3, %v14912_v61, %v15119_v31  ;;  %v13552_v31 = vld [vmem:[%s14765_s9 + $0x720] ss:$8 sps:$4 sm:$0xff]  }
 0x259   :  { %2648 = vmatmul.mubr.bf16.gmra.mrb[4].mxu0 %v17626_v62  ;;  %v443_v62 = vpack.c.bf16 %v415_v22, %v15285_v30  ;;  %v13555_v30 = vld [vmem:[%s14765_s9 + $0x730] ss:$8 sps:$4 sm:$0xff]   ;;  %v13594_v22 = vld [vmem:[%s14765_s9 + $0x800] ss:$8 sps:$4 sm:$0xff]  }
 0x25a   :  { %2663 = vmatpush1.bf16.msra.mxu0 %v13504_v46  ;;  %2690 = vmatprep.mubr.bf16.mxu0 %v15048_v29  ;;  %v13521_v29 = vld [vmem:[%s14765_s9 + $0x674] ss:$8 sps:$4 sm:$0xff]   ;;  %v13546_v46 = vld [vmem:[%s14765_s9 + $0x700] ss:$8 sps:$4 sm:$0xff]  }
 0x25b   :  { %2664 = vmatprep.subr.bf16.mxu0 %v13509_v43  ;;  %v13551_v43 = vld [vmem:[%s14765_s9 + $0x714] ss:$8 sps:$4 sm:$0xff]  }
 0x25e   :  { %2665 = vmatpush1.bf16.msra.mxu0 %v13507_v27  ;;  %v13549_v27 = vld [vmem:[%s14765_s9 + $0x710] ss:$8 sps:$4 sm:$0xff]  }
 0x25f   :  { %2666 = vmatprep.subr.bf16.mxu0 %v13512_v37  ;;  %v13554_v37 = vld [vmem:[%s14765_s9 + $0x724] ss:$8 sps:$4 sm:$0xff]  }
 0x262   :  { %2667 = vmatpush1.bf16.msra.mxu0 %v13510_v12  ;;  %v13557_v12 = vld [vmem:[%s14765_s9 + $0x734] ss:$8 sps:$4 sm:$0xff]  }
 0x263   :  { %2668 = vmatprep.subr.bf16.mxu0 %v13515_v16  ;;  %v13560_v16 = vld [vmem:[%s14765_s9 + $0x744] ss:$8 sps:$4 sm:$0xff]  }
 0x266   :  { %2669 = vmatpush1.bf16.msra.mxu0 %v13513_v6  ;;  %v13558_v6 = vld [vmem:[%s14765_s9 + $0x740] ss:$8 sps:$4 sm:$0xff]  }
 0x267   :  { %2670 = vmatprep.subr.bf16.mxu0 %v13518_v48  ;;  %v13563_v48 = vld [vmem:[%s14765_s9 + $0x754] ss:$8 sps:$4 sm:$0xff]  }
 0x26a   :  { %2671 = vmatpush1.bf16.msra.mxu0 %v13516_v11  ;;  %v13561_v11 = vld [vmem:[%s14765_s9 + $0x750] ss:$8 sps:$4 sm:$0xff]  }
 0x26b   :  { %2672 = vmatprep.subr.bf16.mxu0 %v13521_v29  ;;  %v13564_v29 = vld [vmem:[%s14765_s9 + $0x760] ss:$8 sps:$4 sm:$0xff]  }
 0x26e   :  { %2673 = vmatpush1.bf16.msra.mxu0 %v13519_v34  ;;  %v13567_v34 = vld [vmem:[%s14765_s9 + $0x770] ss:$8 sps:$4 sm:$0xff]  }
 0x26f   :  { %2674 = vmatprep.subr.bf16.mxu0 %v13524_v52  ;;  %v13572_v52 = vld [vmem:[%s14765_s9 + $0x784] ss:$8 sps:$4 sm:$0xff]  }
 0x272   :  { %2675 = vmatpush1.bf16.msra.mxu0 %v13522_v28  ;;  %v13570_v28 = vld [vmem:[%s14765_s9 + $0x780] ss:$8 sps:$4 sm:$0xff]  }
 0x273   :  { %2676 = vmatprep.subr.bf16.mxu0 %v13527_v15  ;;  %v13575_v15 = vld [vmem:[%s14765_s9 + $0x794] ss:$8 sps:$4 sm:$0xff]  }
 0x276   :  { %2677 = vmatpush1.bf16.msra.mxu0 %v13525_v4  ;;  %v13573_v4 = vld [vmem:[%s14765_s9 + $0x790] ss:$8 sps:$4 sm:$0xff]  }
 0x277   :  { %2678 = vmatprep.subr.bf16.mxu0 %v13530_v63  ;;  %v13578_v63 = vld [vmem:[%s14765_s9 + $0x7a4] ss:$8 sps:$4 sm:$0xff]  }
 0x27a   :  { %2679 = vmatpush1.bf16.msra.mxu0 %v13528_v17  ;;  %v13576_v17 = vld [vmem:[%s14765_s9 + $0x7a0] ss:$8 sps:$4 sm:$0xff]  }
 0x27b   :  { %2680 = vmatprep.subr.bf16.mxu0 %v13533_v18  ;;  %v13581_v18 = vld [vmem:[%s14765_s9 + $0x7b4] ss:$8 sps:$4 sm:$0xff]  }
 0x27e   :  { %2681 = vmatpush1.bf16.msra.mxu0 %v13531_v33  ;;  %v13579_v33 = vld [vmem:[%s14765_s9 + $0x7b0] ss:$8 sps:$4 sm:$0xff]  }
 0x27f   :  { %2682 = vmatprep.subr.bf16.mxu0 %v13536_v25  ;;  %v13584_v25 = vld [vmem:[%s14765_s9 + $0x7c4] ss:$8 sps:$4 sm:$0xff]  }
 0x282   :  { %2683 = vmatpush1.bf16.msra.mxu0 %v13534_v47  ;;  %v13582_v47 = vld [vmem:[%s14765_s9 + $0x7c0] ss:$8 sps:$4 sm:$0xff]  }
 0x283   :  { %2684 = vmatprep.subr.bf16.mxu0 %v13539_v36  ;;  %v13587_v36 = vld [vmem:[%s14765_s9 + $0x7d4] ss:$8 sps:$4 sm:$0xff]  }
 0x286   :  { %2685 = vmatpush1.bf16.msra.mxu0 %v13537_v50  ;;  %v13585_v50 = vld [vmem:[%s14765_s9 + $0x7d0] ss:$8 sps:$4 sm:$0xff]  }
 0x287   :  { %2686 = vmatprep.subr.bf16.mxu0 %v13542_v35  ;;  %v13590_v35 = vld [vmem:[%s14765_s9 + $0x7e4] ss:$8 sps:$4 sm:$0xff]  }
 0x28a   :  { %2687 = vmatpush1.bf16.msra.mxu0 %v13540_v59  ;;  %v13588_v59 = vld [vmem:[%s14765_s9 + $0x7e0] ss:$8 sps:$4 sm:$0xff]  }
 0x28b   :  { %2688 = vmatprep.subr.bf16.mxu0 %v13545_v51  ;;  %v13593_v51 = vld [vmem:[%s14765_s9 + $0x7f4] ss:$8 sps:$4 sm:$0xff]  }
 0x28e   :  { %2689 = vmatpush1.bf16.msra.mxu0 %v13543_v24  ;;  %v13591_v24 = vld [vmem:[%s14765_s9 + $0x7f0] ss:$8 sps:$4 sm:$0xff]  }
 0x28f   :  { %2711 = vmatprep.subr.bf16.mxu0 %v13548_v5  ;;  %v13596_v5 = vld [vmem:[%s14765_s9 + $0x804] ss:$8 sps:$4 sm:$0xff]  }
 0x291   :  { %2691 = vmatmul.mubr.bf16.vlgmr.msra.gmra.mrb[0].mxu0 %v14937_v39  ;;  %v17627_v39 = vpack.c.bf16 %v14847_v14, %v14860_v20  ;;  %v13566_v20 = vld [vmem:[%s14765_s9 + $0x764] ss:$8 sps:$4 sm:$0xff]  }
 0x292   :  { %2700 = vmatprep.mubr.bf16.mxu0 %v443_v62  ;;  %2712 = vmatpush1.bf16.msra.mxu0 %v13546_v46  ;;  %v13599_v46 = vld [vmem:[%s14765_s9 + $0x814] ss:$8 sps:$4 sm:$0xff]   ;;  %v13597_v62 = vld [vmem:[%s14765_s9 + $0x810] ss:$8 sps:$4 sm:$0xff]  }
 0x293   :  { %2713 = vmatprep.subr.bf16.mxu0 %v13551_v43  ;;  %v17628_v43 = vpack.c.bf16 %v14983_v2, %v14977_v0  ;;  %v13603_v0 = vld [vmem:[%s14765_s9 + $0x830] ss:$8 sps:$4 sm:$0xff]   ;;  %v13608_v2 = vld [vmem:[%s14765_s9 + $0x844] ss:$8 sps:$4 sm:$0xff]  }
 0x296   :  { %2714 = vmatpush1.bf16.msra.mxu0 %v13549_v27  ;;  %v13602_v27 = vld [vmem:[%s14765_s9 + $0x824] ss:$8 sps:$4 sm:$0xff]  }
 0x297   :  { %2715 = vmatprep.subr.bf16.mxu0 %v13554_v37  ;;  %v13600_v37 = vld [vmem:[%s14765_s9 + $0x820] ss:$8 sps:$4 sm:$0xff]  }
 0x299   :  { %11407 = vmatmul.mubr.msk.bf16.gmra.mrb[4].mxu0 %vm11405_vm10, %v17627_v39  ;;  %v13611_v39 = vld [vmem:[%s14765_s9 + $0x854] ss:$8 sps:$4 sm:$0xff]  }
 0x29a   :  { %2716 = vmatpush1.bf16.msra.mxu0 %v13552_v31  ;;  %2743 = vmatprep.mubr.bf16.mxu0 %v14971_v60  ;;  %v13569_v60 = vld [vmem:[%s14765_s9 + $0x774] ss:$8 sps:$4 sm:$0xff]  }
 0x29b   :  { %2717 = vmatprep.subr.bf16.mxu0 %v13557_v12  ;;  %v13605_v31 = vld [vmem:[%s14765_s9 + $0x834] ss:$8 sps:$4 sm:$0xff]   ;;  %v17629_v12 = vpack.c.bf16 %v15147_v3, %v15109_v13  ;;  %v13614_v13 = vld [vmem:[%s14765_s9 + $0x864] ss:$8 sps:$4 sm:$0xff]   ;;  %v13612_v3 = vld [vmem:[%s14765_s9 + $0x860] ss:$8 sps:$4 sm:$0xff]  }
 0x29e   :  { %2718 = vmatpush1.bf16.msra.mxu0 %v13555_v30  ;;  %v13609_v30 = vld [vmem:[%s14765_s9 + $0x850] ss:$8 sps:$4 sm:$0xff]  }
 0x29f   :  { %2719 = vmatprep.subr.bf16.mxu0 %v13560_v16  ;;  %v13615_v16 = vld [vmem:[%s14765_s9 + $0x870] ss:$8 sps:$4 sm:$0xff]  }
 0x2a2   :  { %2720 = vmatpush1.bf16.msra.mxu0 %v13558_v6  ;;  %v13620_v6 = vld [vmem:[%s14765_s9 + $0x884] ss:$8 sps:$4 sm:$0xff]  }
 0x2a3   :  { %2721 = vmatprep.subr.bf16.mxu0 %v13563_v48  ;;  %v13618_v48 = vld [vmem:[%s14765_s9 + $0x880] ss:$8 sps:$4 sm:$0xff]  }
 0x2a6   :  { %2722 = vmatpush1.bf16.msra.mxu0 %v13561_v11  ;;  %v13623_v11 = vld [vmem:[%s14765_s9 + $0x894] ss:$8 sps:$4 sm:$0xff]  }
 0x2a7   :  { %2723 = vmatprep.subr.bf16.mxu0 %v13566_v20  ;;  %v13621_v20 = vld [vmem:[%s14765_s9 + $0x890] ss:$8 sps:$4 sm:$0xff]  }
 0x2aa   :  { %2724 = vmatpush1.bf16.msra.mxu0 %v13564_v29  ;;  %v13626_v29 = vld [vmem:[%s14765_s9 + $0x8a4] ss:$8 sps:$4 sm:$0xff]  }
 0x2ab   :  { %2725 = vmatprep.subr.bf16.mxu0 %v13569_v60  ;;  %v13624_v60 = vld [vmem:[%s14765_s9 + $0x8a0] ss:$8 sps:$4 sm:$0xff]  }
 0x2ae   :  { %2726 = vmatpush1.bf16.msra.mxu0 %v13567_v34  ;;  %v13629_v34 = vld [vmem:[%s14765_s9 + $0x8b4] ss:$8 sps:$4 sm:$0xff]  }
 0x2af   :  { %2727 = vmatprep.subr.bf16.mxu0 %v13572_v52  ;;  %v13627_v52 = vld [vmem:[%s14765_s9 + $0x8b0] ss:$8 sps:$4 sm:$0xff]  }
 0x2b2   :  { %2728 = vmatpush1.bf16.msra.mxu0 %v13570_v28  ;;  %v13632_v28 = vld [vmem:[%s14765_s9 + $0x8c4] ss:$8 sps:$4 sm:$0xff]  }
 0x2b3   :  { %2729 = vmatprep.subr.bf16.mxu0 %v13575_v15  ;;  %v13630_v15 = vld [vmem:[%s14765_s9 + $0x8c0] ss:$8 sps:$4 sm:$0xff]  }
 0x2b6   :  { %2730 = vmatpush1.bf16.msra.mxu0 %v13573_v4  ;;  %v13635_v4 = vld [vmem:[%s14765_s9 + $0x8d4] ss:$8 sps:$4 sm:$0xff]  }
 0x2b7   :  { %2731 = vmatprep.subr.bf16.mxu0 %v13578_v63  ;;  %v13633_v63 = vld [vmem:[%s14765_s9 + $0x8d0] ss:$8 sps:$4 sm:$0xff]  }
 0x2ba   :  { %2732 = vmatpush1.bf16.msra.mxu0 %v13576_v17  ;;  %v13638_v17 = vld [vmem:[%s14765_s9 + $0x8e4] ss:$8 sps:$4 sm:$0xff]  }
 0x2bb   :  { %2733 = vmatprep.subr.bf16.mxu0 %v13581_v18  ;;  %v13636_v18 = vld [vmem:[%s14765_s9 + $0x8e0] ss:$8 sps:$4 sm:$0xff]  }
 0x2be   :  { %2734 = vmatpush1.bf16.msra.mxu0 %v13579_v33  ;;  %v13641_v33 = vld [vmem:[%s14765_s9 + $0x8f4] ss:$8 sps:$4 sm:$0xff]  }
 0x2bf   :  { %2735 = vmatprep.subr.bf16.mxu0 %v13584_v25  ;;  %v13169_v25 = vunpack.i.h.bf16 %v15138_v38 }
 0x2c2   :  { %2736 = vmatpush1.bf16.msra.mxu0 %v13582_v47  ;;  %v13639_v47 = vld [vmem:[%s14765_s9 + $0x8f0] ss:$8 sps:$4 sm:$0xff]  }
 0x2c3   :  { %2737 = vmatprep.subr.bf16.mxu0 %v13587_v36  ;;  %v13644_v36 = vld [vmem:[%s14765_s9 + $0x904] ss:$8 sps:$4 sm:$0xff]  }
 0x2c6   :  { %2738 = vmatpush1.bf16.msra.mxu0 %v13585_v50  ;;  %v17630_v50 = vunpack.i.l.bf16 %v15138_v38  ;;  %v13650_v38 = vld [vmem:[%s14765_s9 + $0x924] ss:$8 sps:$4 sm:$0xff]  }
 0x2c7   :  { %2739 = vmatprep.subr.bf16.mxu0 %v13590_v35 }
 0x2c8   :  { %v402_v35 = vsel %vm269_vm3, %v17630_v50, %v13169_v25  ;;  %v13699_v25 = vld [vmem:[%s15551_s22 + $0x74] ss:$8 sps:$4 sm:$0xff]   ;;  %v13704_v50 = vld [vmem:[%s15551_s22 + $0x80] ss:$8 sps:$4 sm:$0xff]  }
 0x2ca   :  { %2740 = vmatpush1.bf16.msra.mxu0 %v13588_v59  ;;  %v13642_v59 = vld [vmem:[%s14765_s9 + $0x900] ss:$8 sps:$4 sm:$0xff]  }
 0x2cb   :  { %2741 = vmatprep.subr.bf16.mxu0 %v13593_v51  ;;  %v13647_v51 = vld [vmem:[%s14765_s9 + $0x914] ss:$8 sps:$4 sm:$0xff]  }
 0x2ce   :  { %2742 = vmatpush1.bf16.msra.mxu0 %v13591_v24  ;;  %v447_v24 = vpack.c.bf16 %v402_v35, %v15379_v42  ;;  %v13651_v42 = vld [vmem:[%s14765_s9 + $0x930] ss:$8 sps:$4 sm:$0xff]   ;;  %v13705_v35 = vld [vmem:[%s15551_s22 + $0x94] ss:$8 sps:$4 sm:$0xff]  }
 0x2cf   :  { %2764 = vmatprep.subr.bf16.mxu0 %v13596_v5  ;;  %v13645_v5 = vld [vmem:[%s14765_s9 + $0x910] ss:$8 sps:$4 sm:$0xff]  }
 0x2d1   :  { %2744 = vmatmul.mubr.bf16.vlgmr.msra.gmra.mrb[0].mxu0 %v15072_v32  ;;  %v13606_v32 = vld [vmem:[%s14765_s9 + $0x840] ss:$8 sps:$4 sm:$0xff]  }
 0x2d2   :  { %2753 = vmatprep.mubr.bf16.mxu0 %v17628_v43  ;;  %2765 = vmatpush1.bf16.msra.mxu0 %v13594_v22  ;;  %v13648_v22 = vld [vmem:[%s14765_s9 + $0x920] ss:$8 sps:$4 sm:$0xff]   ;;  %v436_v43 = vpack.c.bf16 %v14863_v21, %v14877_v26  ;;  %v13657_v21 = vld [vmem:[%s14765_s9 + $0x950] ss:$8 sps:$4 sm:$0xff]   ;;  %v13662_v26 = vld [vmem:[%s14765_s9 + $0x964] ss:$8 sps:$4 sm:$0xff]  }
 0x2d3   :  { %2766 = vmatprep.subr.bf16.mxu0 %v13599_v46  ;;  %v13653_v46 = vld [vmem:[%s14765_s9 + $0x934] ss:$8 sps:$4 sm:$0xff]  }
 0x2d6   :  { %2767 = vmatpush1.bf16.msra.mxu0 %v13597_v62  ;;  %v13656_v62 = vld [vmem:[%s14765_s9 + $0x944] ss:$8 sps:$4 sm:$0xff]  }
 0x2d7   :  { %2768 = vmatprep.subr.bf16.mxu0 %v13602_v27  ;;  %v13654_v27 = vld [vmem:[%s14765_s9 + $0x940] ss:$8 sps:$4 sm:$0xff]  }
 0x2d9   :  { %2754 = vmatmul.mubr.bf16.gmra.mrb[4].mxu0 %v17629_v12  ;;  %v13668_v12 = vld [vmem:[%s14765_s9 + $0x984] ss:$8 sps:$4 sm:$0xff]  }
 0x2da   :  { %2769 = vmatpush1.bf16.msra.mxu0 %v13600_v37  ;;  %2796 = vmatprep.mubr.bf16.mxu0 %v15241_v49  ;;  %v13617_v49 = vld [vmem:[%s14765_s9 + $0x874] ss:$8 sps:$4 sm:$0xff]  }
 0x2db   :  { %2770 = vmatprep.subr.bf16.mxu0 %v13605_v31  ;;  %v13659_v37 = vld [vmem:[%s14765_s9 + $0x954] ss:$8 sps:$4 sm:$0xff]   ;;  %v13663_v31 = vld [vmem:[%s14765_s9 + $0x970] ss:$8 sps:$4 sm:$0xff]  }
 0x2de   :  { %2771 = vmatpush1.bf16.msra.mxu0 %v13603_v0  ;;  %v13666_v0 = vld [vmem:[%s14765_s9 + $0x980] ss:$8 sps:$4 sm:$0xff]  }
 0x2df   :  { %2772 = vmatprep.subr.bf16.mxu0 %v13608_v2  ;;  %v13671_v2 = vld [vmem:[%s14765_s9 + $0x994] ss:$8 sps:$4 sm:$0xff]  }
 0x2e2   :  { %2773 = vmatpush1.bf16.msra.mxu0 %v13606_v32  ;;  %v13669_v32 = vld [vmem:[%s14765_s9 + $0x990] ss:$8 sps:$4 sm:$0xff]  }
 0x2e3   :  { %2774 = vmatprep.subr.bf16.mxu0 %v13611_v39  ;;  %v13674_v39 = vld [vmem:[%s14765_s9 + $0x9a4] ss:$8 sps:$4 sm:$0xff]  }
 0x2e6   :  { %2775 = vmatpush1.bf16.msra.mxu0 %v13609_v30  ;;  %v13672_v30 = vld [vmem:[%s14765_s9 + $0x9a0] ss:$8 sps:$4 sm:$0xff]  }
 0x2e7   :  { %2776 = vmatprep.subr.bf16.mxu0 %v13614_v13  ;;  %v13677_v13 = vld [vmem:[%s14765_s9 + $0x9b4] ss:$8 sps:$4 sm:$0xff]  }
 0x2ea   :  { %2777 = vmatpush1.bf16.msra.mxu0 %v13612_v3  ;;  %v13675_v3 = vld [vmem:[%s14765_s9 + $0x9b0] ss:$8 sps:$4 sm:$0xff]  }
 0x2eb   :  { %2778 = vmatprep.subr.bf16.mxu0 %v13617_v49  ;;  %v17632_v49 = vmov 0.0  }
 0x2ee   :  { %2779 = vmatpush1.bf16.msra.mxu0 %v13615_v16  ;;  %v449_v16 = vpack.c.bf16 %v17632_v49, %v14912_v61  ;;  %v13678_v61 = vld [vmem:[%s15551_s22 + $0x4] ss:$8 sps:$4 sm:$0xff]  }
 0x2ef   :  { %2780 = vmatprep.subr.bf16.mxu0 %v13620_v6  ;;  %v11411_v6 = vpack.c.bf16 %v17632_v49, %v14847_v14  ;;  %4986 = vmatprep.subr.bf16.mxu1 %v13678_v61  ;;  %v13681_v14 = vld [vmem:[%s15551_s22 + $0x14] ss:$8 sps:$4 sm:$0xff]  }
 0x2f2   :  { %2781 = vmatpush1.bf16.msra.mxu0 %v13618_v48  ;;  %v13683_v48 = vld [vmem:[%s15551_s22 + $0x10] ss:$8 sps:$4 sm:$0xff]  }
 0x2f3   :  { %2782 = vmatprep.subr.bf16.mxu0 %v13623_v11  ;;  %v13684_v11 = vld [vmem:[%s15551_s22 + $0x24] ss:$8 sps:$4 sm:$0xff]  }
 0x2f6   :  { %2783 = vmatpush1.bf16.msra.mxu0 %v13621_v20  ;;  %v13686_v20 = vld [vmem:[%s15551_s22 + $0x20] ss:$8 sps:$4 sm:$0xff]  }
 0x2f7   :  { %2784 = vmatprep.subr.bf16.mxu0 %v13626_v29  ;;  %v13687_v29 = vld [vmem:[%s15551_s22 + $0x34] ss:$8 sps:$4 sm:$0xff]  }
 0x2fa   :  { %2785 = vmatpush1.bf16.msra.mxu0 %v13624_v60  ;;  %v13689_v60 = vld [vmem:[%s15551_s22 + $0x30] ss:$8 sps:$4 sm:$0xff]  }
 0x2fb   :  { %2786 = vmatprep.subr.bf16.mxu0 %v13629_v34  ;;  %v13690_v34 = vld [vmem:[%s15551_s22 + $0x44] ss:$8 sps:$4 sm:$0xff]  }
 0x2fe   :  { %2787 = vmatpush1.bf16.msra.mxu0 %v13627_v52  ;;  %v13692_v52 = vld [vmem:[%s15551_s22 + $0x40] ss:$8 sps:$4 sm:$0xff]  }
 0x2ff   :  { %2788 = vmatprep.subr.bf16.mxu0 %v13632_v28  ;;  %v15563_v28 = vpop.permute.xlu0 %3016 }
 0x302   :  { %2789 = vmatpush1.bf16.msra.mxu0 %v13630_v15  ;;  %v13693_v15 = vld [vmem:[%s15551_s22 + $0x54] ss:$8 sps:$4 sm:$0xff]  }
 0x303   :  { %2790 = vmatprep.subr.bf16.mxu0 %v13635_v4  ;;  %v15568_v4 = vpack.c.bf16 %v15563_v28, %v15563_v28 }
 0x305   :  { %11730 = vmatprep.mubr.msk.bf16.mxu1 %vm15575_vm12, %v15568_v4 }
 0x306   :  { %2791 = vmatpush1.bf16.msra.mxu0 %v13633_v63  ;;  %v13695_v63 = vld [vmem:[%s15551_s22 + $0x50] ss:$8 sps:$4 sm:$0xff]  }
 0x307   :  { %2792 = vmatprep.subr.bf16.mxu0 %v13638_v17  ;;  %v13696_v17 = vld [vmem:[%s15551_s22 + $0x64] ss:$8 sps:$4 sm:$0xff]  }
 0x30a   :  { %2793 = vmatpush1.bf16.msra.mxu0 %v13636_v18  ;;  %v14210_v18 = vld [vmem:[%s16243_s21 + $0x24] ss:$8 sps:$4 sm:$0xff]  }
 0x30b   :  { %2794 = vmatprep.subr.bf16.mxu0 %v13641_v33  ;;  %v13698_v33 = vld [vmem:[%s15551_s22 + $0x60] ss:$8 sps:$4 sm:$0xff]  }
 0x30e   :  { %2795 = vmatpush1.bf16.msra.mxu0 %v13639_v47  ;;  %v13701_v47 = vld [vmem:[%s15551_s22 + $0x70] ss:$8 sps:$4 sm:$0xff]  }
 0x30f   :  { %2817 = vmatprep.subr.bf16.mxu0 %v13644_v36  ;;  %v13702_v36 = vld [vmem:[%s15551_s22 + $0x84] ss:$8 sps:$4 sm:$0xff]  }
 0x311   :  { %2797 = vmatmul.mubr.bf16.vlgmr.msra.gmra.mrb[0].mxu0 %v15249_v1  ;;  %v17631_v1 = vpack.c.bf16 %v15156_v57, %v15136_v58  ;;  %v13660_v58 = vld [vmem:[%s14765_s9 + $0x960] ss:$8 sps:$4 sm:$0xff]   ;;  %v13665_v57 = vld [vmem:[%s14765_s9 + $0x974] ss:$8 sps:$4 sm:$0xff]   ;;  %s14725_s9 = smov 12  }
 0x312   :  { %2806 = vmatprep.mubr.bf16.mxu0 %v447_v24  ;;  %2818 = vmatpush1.bf16.msra.mxu0 %v13642_v59  ;;  %v13707_v59 = vld [vmem:[%s15551_s22 + $0x90] ss:$8 sps:$4 sm:$0xff]   ;;  %v762_v24 = vld [vmem:[%s15589_s26] sm:$0x3]  ;;  %s16147_s12 = sld [smem:[%s17588_s0 + %s14725_s9]]  }
 0x313   :  { %2819 = vmatprep.subr.bf16.mxu0 %v13647_v51  ;;  %v13708_v51 = vld [vmem:[%s15551_s22 + $0xa4] ss:$8 sps:$4 sm:$0xff]  }
 0x316   :  { %2820 = vmatpush1.bf16.msra.mxu0 %v13645_v5  ;;  %v13710_v5 = vld [vmem:[%s15551_s22 + $0xa0] ss:$8 sps:$4 sm:$0xff]  }
 0x317   :  { %2821 = vmatprep.subr.bf16.mxu0 %v13650_v38  ;;  %v13711_v38 = vld [vmem:[%s15551_s22 + $0xb4] ss:$8 sps:$4 sm:$0xff]  }
 0x319   :  { %2807 = vmatmul.mubr.bf16.gmra.mrb[4].mxu0 %v17631_v1  ;;  %v13714_v1 = vld [vmem:[%s15551_s22 + $0xc4] ss:$8 sps:$4 sm:$0xff]  }
 0x31a   :  { %2822 = vmatpush1.bf16.msra.mxu0 %v13648_v22  ;;  %11408 = vmatprep.mubr.msk.bf16.mxu0 %vm269_vm3, %v436_v43  ;;  %v767_v22 = vrot.slane %v762_v24, %v14806_v40  ;;  %v771_v43 = vrot.slane %v762_v24, %v14809_v41 }
 0x31b   :  { %2823 = vmatprep.subr.bf16.mxu0 %v13653_v46  ;;  %v13713_v46 = vld [vmem:[%s15551_s22 + $0xb0] ss:$8 sps:$4 sm:$0xff]  }
 0x31e   :  { %2824 = vmatpush1.bf16.msra.mxu0 %v13651_v42 }
 0x31f   :  { %2825 = vmatprep.subr.bf16.mxu0 %v13656_v62 }
 0x322   :  { %2826 = vmatpush1.bf16.msra.mxu0 %v13654_v27 }
 0x323   :  { %2827 = vmatprep.subr.bf16.mxu0 %v13659_v37  ;;  %v13716_v37 = vld [vmem:[%s15551_s22 + $0xc0] ss:$8 sps:$4 sm:$0xff]  }
 0x326   :  { %2828 = vmatpush1.bf16.msra.mxu0 %v13657_v21 }
 0x327   :  { %2829 = vmatprep.subr.bf16.mxu0 %v13662_v26 }
 0x32a   :  { %2830 = vmatpush1.bf16.msra.mxu0 %v13660_v58  ;;  %v13717_v58 = vld [vmem:[%s15551_s22 + $0xd4] ss:$8 sps:$4 sm:$0xff]  }
 0x32b   :  { %2831 = vmatprep.subr.bf16.mxu0 %v13665_v57 }
 0x32e   :  { %2832 = vmatpush1.bf16.msra.mxu0 %v13663_v31 }
 0x32f   :  { %2833 = vmatprep.subr.bf16.mxu0 %v13668_v12 }
 0x332   :  { %2834 = vmatpush1.bf16.msra.mxu0 %v13666_v0 }
 0x333   :  { %2835 = vmatprep.subr.bf16.mxu0 %v13671_v2 }
 0x336   :  { %2836 = vmatpush1.bf16.msra.mxu0 %v13669_v32 }
 0x337   :  { %2837 = vmatprep.subr.bf16.mxu0 %v13674_v39  ;;  %v13719_v39 = vld [vmem:[%s15551_s22 + $0xd0] ss:$8 sps:$4 sm:$0xff]  }
 0x33a   :  { %2838 = vmatpush1.bf16.msra.mxu0 %v13672_v30 }
 0x33b   :  { %2839 = vmatprep.subr.bf16.mxu0 %v13677_v13 }
 0x33e   :  { %2840 = vmatpush1.bf16.msra.mxu0 %v13675_v3  ;;  %v13720_v3 = vld [vmem:[%s15551_s22 + $0xe4] ss:$8 sps:$4 sm:$0xff]  }
 0x341   :  { %2850 = vmatmul.mubr.bf16.vlgmr.msra.gmra.mrb[0].mxu0 %v14943_v44  ;;  %v13680_v44 = vld [vmem:[%s15551_s22] ss:$8 sps:$4 sm:$0xff]  }
 0x342   :  { %11409 = vmatprep.mubr.msk.bf16.mxu0 %vm269_vm3, %v449_v16  ;;  %4987 = vmatpush1.bf16.msra.mxu1 %v13680_v44 }
 0x343   :  { %4988 = vmatprep.subr.bf16.mxu1 %v13681_v14 }
 0x346   :  { %4989 = vmatpush1.bf16.msra.mxu1 %v13683_v48 }
 0x347   :  { %4990 = vmatprep.subr.bf16.mxu1 %v13684_v11  ;;  %v13722_v11 = vld [vmem:[%s15551_s22 + $0xe0] ss:$8 sps:$4 sm:$0xff]  }
 0x349   :  { %11412 = vmatmul.mubr.msk.bf16.gmra.mrb[4].mxu0 %vm11410_vm11, %v11411_v6 }
 0x34a   :  { %4991 = vmatpush1.bf16.msra.mxu1 %v13686_v20 }
 0x34b   :  { %4992 = vmatprep.subr.bf16.mxu1 %v13687_v29 }
 0x34e   :  { %4993 = vmatpush1.bf16.msra.mxu1 %v13689_v60 }
 0x34f   :  { %4994 = vmatprep.subr.bf16.mxu1 %v13690_v34 }
 0x352   :  { %4995 = vmatpush1.bf16.msra.mxu1 %v13692_v52 }
 0x353   :  { %4996 = vmatprep.subr.bf16.mxu1 %v13693_v15 }
 0x356   :  { %4997 = vmatpush1.bf16.msra.mxu1 %v13695_v63 }
 0x357   :  { %4998 = vmatprep.subr.bf16.mxu1 %v13696_v17 }
 0x35a   :  { %4999 = vmatpush1.bf16.msra.mxu1 %v13698_v33 }
 0x35b   :  { %5000 = vmatprep.subr.bf16.mxu1 %v13699_v25 }
 0x35e   :  { %5001 = vmatpush1.bf16.msra.mxu1 %v13701_v47  ;;  %v13725_v47 = vld [vmem:[%s15551_s22 + $0xf0] ss:$8 sps:$4 sm:$0xff]  }
 0x35f   :  { %5002 = vmatprep.subr.bf16.mxu1 %v13702_v36 }
 0x362   :  { %5003 = vmatpush1.bf16.msra.mxu1 %v13704_v50 }
 0x363   :  { %5004 = vmatprep.subr.bf16.mxu1 %v13705_v35  ;;  %v13728_v35 = vld [vmem:[%s15551_s22 + $0x104] ss:$8 sps:$4 sm:$0xff]  }
 0x366   :  { %5005 = vmatpush1.bf16.msra.mxu1 %v13707_v59 }
 0x367   :  { %5006 = vmatprep.subr.bf16.mxu1 %v13708_v51 }
 0x36a   :  { %5007 = vmatpush1.bf16.msra.mxu1 %v13710_v5 }
 0x36b   :  { %5008 = vmatprep.subr.bf16.mxu1 %v13711_v38 }
 0x36e   :  { %5009 = vmatpush1.bf16.msra.mxu1 %v13713_v46 }
 0x36f   :  { %5010 = vmatprep.subr.bf16.mxu1 %v13714_v1 }
 0x372   :  { %5011 = vmatpush1.bf16.msra.mxu1 %v13716_v37 }
 0x373   :  { %5012 = vmatprep.subr.bf16.mxu1 %v13717_v58 }
 0x376   :  { %5013 = vmatpush1.bf16.msra.mxu1 %v13719_v39  ;;  %v13735_v39 = vld [vmem:[%s15551_s22 + $0x130] ss:$8 sps:$4 sm:$0xff]  }
 0x377   :  { %5014 = vmatprep.subr.bf16.mxu1 %v13720_v3 }
 0x37a   :  { %5015 = vmatpush1.bf16.msra.mxu1 %v13722_v11 }
 0x414   :  { %v2851_v42 = vpop.f32.mrb[0].mxu0 }
 0x415   :  { %v12872_v62 = vadd.f32 %v2851_v42, %v767_v22  ;;  %v2853_v27 = vpop.f32.mrb[1].mxu0 }
 0x416   :  { %v12873_v21 = vadd.f32 %v2853_v27, %v771_v43  ;;  %v2855_v26 = vpop.f32.mrb[2].mxu0  ;;  %v14721_v27 = vmov 0.0|0.0  }
 0x417   :  { %v2870_v57 = vmax.f32 %v12872_v62, 0.0  ;;  %v12874_v31 = vadd.f32 %v2855_v26, %v767_v22  ;;  %v2857_v12 = vpop.f32.mrb[3].mxu0  ;;  %v13729_v62 = vld [vmem:[%s15551_s22 + $0x110] ss:$8 sps:$4 sm:$0xff]  }
 0x418   :  { %v2871_v0 = vmax.f32 %v12873_v21, 0.0  ;;  %v12875_v2 = vadd.f32 %v2857_v12, %v771_v43 }
 0x419   :  { %v2872_v32 = vmax.f32 %v12874_v31, 0.0  ;;  %v15610_v16 = vadd.f32 %v2870_v57, %v14817_v54  ;;  %v13732_v57 = vld [vmem:[%s15551_s22 + $0x120] ss:$8 sps:$4 sm:$0xff]   ;;  %v13737_v31 = vld [vmem:[%s15551_s22 + $0x134] ss:$8 sps:$4 sm:$0xff]  }
 0x41a   :  { %v15606_v30 = vadd.f32 %v2871_v0, %v14819_v55  ;;  %v2873_v13 = vmax.f32 %v12875_v2, 0.0 }
 0x41b   :  { %v15613_v6 = vadd.f32 %v2872_v32, %v14835_v9 }
 0x41c   :  { %v15616_v61 = vadd.f32 %v2873_v13, %v14837_v10  ;;  %v2861_v44 = vpop.f32.mrb[4].mxu0  ;;  %v2895_v54 = vsel %vm269_vm3, %v15606_v30, 0.0  ;;  %v13723_v10 = vld [vmem:[%s15551_s22 + $0xf4] ss:$8 sps:$4 sm:$0xff]   ;;  %v13740_v13 = vld [vmem:[%s15551_s22 + $0x144] ss:$8 sps:$4 sm:$0xff]  }
 0x41d   :  { %v2886_v14 = vadd.f32 %v15613_v6, %v15610_v16  ;;  %v12876_v55 = vadd.f32 %v2861_v44, %v767_v22  ;;  %v2863_v48 = vpop.f32.mrb[5].mxu0  ;;  %5016 = vmatprep.subr.bf16.mxu1 %v13723_v10 }
 0x41e   :  { %v2896_v9 = vsel %vm269_vm3, %v15616_v61, 0.0  ;;  %v12877_v20 = vadd.f32 %v2863_v48, %v771_v43  ;;  %v2865_v29 = vpop.f32.mrb[6].mxu0  ;;  %5017 = vmatpush1.bf16.msra.mxu1 %v13725_v47 }
 0x41f   :  { %v2897_v60 = vadd.f32 %v2896_v9, %v2895_v54  ;;  %v2874_v34 = vmax.f32 %v12876_v55, 0.0  ;;  %v12878_v52 = vadd.f32 %v2865_v29, %v767_v22  ;;  %v2867_v15 = vpop.f32.mrb[7].mxu0  ;;  %v13726_v22 = vld [vmem:[%s15551_s22 + $0x100] ss:$8 sps:$4 sm:$0xff]   ;;  %5039 = vmatprep.subr.bf16.mxu1 %v13728_v35 }
 0x420   :  { %v2875_v63 = vmax.f32 %v12877_v20, 0.0  ;;  %v12879_v17 = vadd.f32 %v2867_v15, %v771_v43  ;;  %v13731_v43 = vld [vmem:[%s15551_s22 + $0x114] ss:$8 sps:$4 sm:$0xff]   ;;  %v13738_v54 = vld [vmem:[%s15551_s22 + $0x140] ss:$8 sps:$4 sm:$0xff]  }
 0x421   :  { %v2882_v33 = vadd.f32 %v2874_v34, %v14815_v53  ;;  %v2876_v25 = vmax.f32 %v12878_v52, 0.0  ;;  %5019 = vmatmul.mubr.bf16.vlgmr.msra.gmra.mrb[0].mxu1 %v14721_v27  ;;  %v13743_v20 = vld [vmem:[%s15551_s22 + $0x154] ss:$8 sps:$4 sm:$0xff]   ;;  %v13741_v15 = vld [vmem:[%s15551_s22 + $0x150] ss:$8 sps:$4 sm:$0xff]  }
 0x422   :  { %v2883_v36 = vadd.f32 %v2875_v63, %v14821_v56  ;;  %v2877_v50 = vmax.f32 %v12879_v17, 0.0  ;;  %5040 = vmatpush1.bf16.msra.mxu1 %v13726_v22 }
 0x423   :  { %v2887_v59 = vadd.f32 %v2886_v14, %v2882_v33  ;;  %v2884_v51 = vadd.f32 %v2876_v25, %v14831_v7  ;;  %5041 = vmatprep.subr.bf16.mxu1 %v13731_v43 }
 0x424   :  { %v2898_v24 = vsel %vm269_vm3, %v2883_v36, 0.0  ;;  %v2885_v5 = vadd.f32 %v2877_v50, %v14833_v8  ;;  %v13734_v8 = vld [vmem:[%s15551_s22 + $0x124] ss:$8 sps:$4 sm:$0xff]  }
 0x425   :  { %v2899_v38 = vadd.f32 %v2898_v24, %v2897_v60  ;;  %v2888_v53 = vadd.f32 %v2887_v59, %v2884_v51 }
 0x426   :  { %v2900_v46 = vsel %vm269_vm3, %v2885_v5, 0.0  ;;  %5042 = vmatpush1.bf16.msra.mxu1 %v13729_v62 }
 0x427   :  { %v2889_v56 = vrot.slane %v2888_v53, 4  ;;  %v2901_v1 = vadd.f32 %v2900_v46, %v2899_v38  ;;  %5043 = vmatprep.subr.bf16.mxu1 %v13734_v8 }
 0x429   :  { %v2890_v7 = vadd.f32 %v2889_v56, %v2888_v53  ;;  %v2902_v42 = vrot.slane %v2901_v1, 4  ;;  %v13747_v56 = vld [vmem:[%s15551_s22 + $0x170] ss:$8 sps:$4 sm:$0xff]  }
 0x42a   :  { %5044 = vmatpush1.bf16.msra.mxu1 %v13732_v57 }
 0x42b   :  { %v2891_v37 = vrot.slane %v2890_v7, 2  ;;  %v2903_v21 = vadd.f32 %v2902_v42, %v2901_v1  ;;  %5045 = vmatprep.subr.bf16.mxu1 %v13737_v31 }
 0x42d   :  { %v2892_v26 = vadd.f32 %v2891_v37, %v2890_v7  ;;  %v2904_v58 = vrot.slane %v2903_v21, 2  ;;  %v13752_v7 = vld [vmem:[%s15551_s22 + $0x184] ss:$8 sps:$4 sm:$0xff]   ;;  %v13750_v37 = vld [vmem:[%s15551_s22 + $0x180] ss:$8 sps:$4 sm:$0xff]  }
 0x42e   :  { %5046 = vmatpush1.bf16.msra.mxu1 %v13735_v39 }
 0x42f   :  { %v2893_v12 = vrot.slane %v2892_v26, 1  ;;  %v2905_v0 = vadd.f32 %v2904_v58, %v2903_v21  ;;  %5047 = vmatprep.subr.bf16.mxu1 %v13740_v13 }
 0x431   :  { %v2894_v2 = vadd.f32 %v2893_v12, %v2892_v26  ;;  %v2906_v32 = vrot.slane %v2905_v0, 1  ;;  %v13755_v26 = vld [vmem:[%s15551_s22 + $0x194] ss:$8 sps:$4 sm:$0xff]   ;;  %v13753_v12 = vld [vmem:[%s15551_s22 + $0x190] ss:$8 sps:$4 sm:$0xff]  }
 0x432   :  { %5048 = vmatpush1.bf16.msra.mxu1 %v13738_v54  ;;  %v13761_v54 = vld [vmem:[%s15551_s22 + $0x1b4] ss:$8 sps:$4 sm:$0xff]  }
 0x433   :  { %v2909_v3 = vmul.f32 0.03125, %v2894_v2  ;;  %v2907_v44 = vadd.f32 %v2906_v32, %v2905_v0  ;;  %5049 = vmatprep.subr.bf16.mxu1 %v13743_v20  ;;  %v13758_v2 = vld [vmem:[%s15551_s22 + $0x1a4] ss:$8 sps:$4 sm:$0xff]  }
 0x435   :  { %v15644_v14 = vsub.f32 %v15610_v16, %v2909_v3  ;;  %v15647_v55 = vsub.f32 %v15613_v6, %v2909_v3  ;;  %v15649_v48 = vsub.f32 %v2882_v33, %v2909_v3  ;;  %v15651_v11 = vsub.f32 %v2884_v51, %v2909_v3  ;;  %v13746_v33 = vld [vmem:[%s15551_s22 + $0x164] ss:$8 sps:$4 sm:$0xff]   ;;  %v13744_v51 = vld [vmem:[%s15551_s22 + $0x160] ss:$8 sps:$4 sm:$0xff]  }
 0x436   :  { %v2910_v9 = vmul.f32 0.03125, %v2907_v44  ;;  %5050 = vmatpush1.bf16.msra.mxu1 %v13741_v15  ;;  %v13756_v3 = vld [vmem:[%s15551_s22 + $0x1a0] ss:$8 sps:$4 sm:$0xff]  }
 0x437   :  { %v2919_v29 = vmul.f32 %v15644_v14, %v15644_v14  ;;  %v2921_v10 = vmul.f32 %v15647_v55, %v15647_v55  ;;  %v2923_v16 = vmul.f32 %v15649_v48, %v15649_v48  ;;  %v2925_v63 = vmul.f32 %v15651_v11, %v15651_v11  ;;  %5051 = vmatprep.subr.bf16.mxu1 %v13746_v33 }
 0x438   :  { %v15662_v60 = vsub.f32 %v15606_v30, %v2910_v9  ;;  %v15665_v34 = vsub.f32 %v15616_v61, %v2910_v9  ;;  %v15667_v52 = vsub.f32 %v2883_v36, %v2910_v9  ;;  %v15672_v17 = vsub.f32 %v2885_v5, %v2910_v9  ;;  %v13749_v5 = vld [vmem:[%s15551_s22 + $0x174] ss:$8 sps:$4 sm:$0xff]   ;;  %v2951_v9 = vld [vmem:[%s15696_s30] sm:$0x3] }
 0x439   :  { %v2927_v6 = vadd.f32 %v2921_v10, %v2919_v29  ;;  %v13759_v29 = vld [vmem:[%s15551_s22 + $0x1b0] ss:$8 sps:$4 sm:$0xff]   ;;  %v2983_v10 = vld [vmem:[%s15702_s4] sm:$0x3]  ;;  %v2956_v15 = vrot.slane %v2951_v9, %v14806_v40 }
 0x43a   :  { %v2920_v47 = vmul.f32 %v15662_v60, %v15662_v60  ;;  %v2922_v30 = vmul.f32 %v15665_v34, %v15665_v34  ;;  %v2924_v61 = vmul.f32 %v15667_v52, %v15667_v52  ;;  %v2926_v50 = vmul.f32 %v15672_v17, %v15672_v17  ;;  %5052 = vmatpush1.bf16.msra.mxu1 %v13744_v51 }
 0x43b   :  { %v2928_v25 = vadd.f32 %v2927_v6, %v2923_v16  ;;  %5053 = vmatprep.subr.bf16.mxu1 %v13749_v5  ;;  %v13764_v6 = vld [vmem:[%s15551_s22 + $0x1c4] ss:$8 sps:$4 sm:$0xff]   ;;  %v2988_v33 = vrot.slane %v2983_v10, %v14806_v40 }
 0x43c   :  { %v2936_v35 = vsel %vm269_vm3, %v2920_v47, 0.0  ;;  %v2937_v59 = vsel %vm269_vm3, %v2922_v30, 0.0  ;;  %v2939_v53 = vsel %vm269_vm3, %v2924_v61, 0.0  ;;  %v2941_v43 = vsel %vm269_vm3, %v2926_v50, 0.0 }
 0x43d   :  { %v2929_v36 = vadd.f32 %v2928_v25, %v2925_v63  ;;  %v2938_v24 = vadd.f32 %v2937_v59, %v2936_v35  ;;  %v13762_v63 = vld [vmem:[%s15551_s22 + $0x1c0] ss:$8 sps:$4 sm:$0xff]   ;;  %v2963_v25 = vmul.f32 %v2956_v15, %v15644_v14  ;;  %v2965_v47 = vmul.f32 %v2956_v15, %v15647_v55  ;;  %v13765_v35 = vld [vmem:[%s15551_s22 + $0x1d0] ss:$8 sps:$4 sm:$0xff]   ;;  %v13767_v59 = vld [vmem:[%s15551_s22 + $0x1d4] ss:$8 sps:$4 sm:$0xff]  }
 0x43e   :  { %5054 = vmatpush1.bf16.msra.mxu1 %v13747_v56  ;;  %v2967_v30 = vmul.f32 %v2956_v15, %v15649_v48  ;;  %v2969_v61 = vmul.f32 %v2956_v15, %v15651_v11  ;;  %v2960_v50 = vrot.slane %v2951_v9, %v14809_v41  ;;  %v2992_v14 = vrot.slane %v2983_v10, %v14809_v41  ;;  %v13770_v11 = vld [vmem:[%s15551_s22 + $0x1e4] ss:$8 sps:$4 sm:$0xff]  }
 0x43f   :  { %v2930_v38 = vrot.slane %v2929_v36, 4  ;;  %v2940_v22 = vadd.f32 %v2939_v53, %v2938_v24  ;;  %5055 = vmatprep.subr.bf16.mxu1 %v13752_v7 }
 0x440   :  { %v2970_v53 = vmul.f32 %v2960_v50, %v15672_v17 }
 0x441   :  { %v2931_v46 = vadd.f32 %v2930_v38, %v2929_v36  ;;  %v2942_v1 = vadd.f32 %v2941_v43, %v2940_v22  ;;  %v2964_v22 = vmul.f32 %v2960_v50, %v15662_v60  ;;  %v2968_v43 = vmul.f32 %v2960_v50, %v15667_v52 }
 0x442   :  { %5056 = vmatpush1.bf16.msra.mxu1 %v13750_v37 }
 0x443   :  { %v2932_v42 = vrot.slane %v2931_v46, 2  ;;  %v2943_v62 = vrot.slane %v2942_v1, 4  ;;  %5057 = vmatprep.subr.bf16.mxu1 %v13755_v26 }
 0x445   :  { %v2933_v8 = vadd.f32 %v2932_v42, %v2931_v46  ;;  %v2944_v21 = vadd.f32 %v2943_v62, %v2942_v1  ;;  %v2966_v46 = vmul.f32 %v2960_v50, %v15665_v34  ;;  %v13768_v62 = vld [vmem:[%s15551_s22 + $0x1e0] ss:$8 sps:$4 sm:$0xff]  }
 0x446   :  { %5058 = vmatpush1.bf16.msra.mxu1 %v13753_v12 }
 0x447   :  { %v2934_v58 = vrot.slane %v2933_v8, 1  ;;  %v2945_v57 = vrot.slane %v2944_v21, 2  ;;  %5059 = vmatprep.subr.bf16.mxu1 %v13758_v2 }
 0x449   :  { %v2935_v31 = vadd.f32 %v2934_v58, %v2933_v8  ;;  %v2946_v0 = vadd.f32 %v2945_v57, %v2944_v21  ;;  %v13773_v57 = vld [vmem:[%s15551_s22 + $0x1f4] ss:$8 sps:$4 sm:$0xff]  }
 0x44a   :  { %5060 = vmatpush1.bf16.msra.mxu1 %v13756_v3 }
 0x44b   :  { %v2949_v32 = vmul.f32 0.03125, %v2935_v31  ;;  %v2947_v39 = vrot.slane %v2946_v0, 1  ;;  %5061 = vmatprep.subr.bf16.mxu1 %v13761_v54 }
 0x44d   :  { %v2971_v13 = vadd.f32 1e-05, %v2949_v32  ;;  %v2948_v44 = vadd.f32 %v2947_v39, %v2946_v0 }
 0x44e   :  { %5062 = vmatpush1.bf16.msra.mxu1 %v13759_v29 }
 0x44f   :  { %14568 = vrsqrt.f32 %v2971_v13  ;;  %v2950_v20 = vmul.f32 0.03125, %v2948_v44  ;;  %5063 = vmatprep.subr.bf16.mxu1 %v13764_v6  ;;  %v13771_v13 = vld [vmem:[%s15551_s22 + $0x1f0] ss:$8 sps:$4 sm:$0xff]   ;;  %v13776_v44 = vld [vmem:[%s15551_s22 + $0x204] ss:$8 sps:$4 sm:$0xff]  }
 0x451   :  { %v2972_v16 = vadd.f32 1e-05, %v2950_v20 }
 0x452   :  { %5064 = vmatpush1.bf16.msra.mxu1 %v13762_v63 }
 0x453   :  { %14570 = vrsqrt.f32 %v2972_v16  ;;  %5065 = vmatprep.subr.bf16.mxu1 %v13767_v59 }
 0x456   :  { %5066 = vmatpush1.bf16.msra.mxu1 %v13765_v35 }
 0x457   :  { %5067 = vmatprep.subr.bf16.mxu1 %v13770_v11 }
 0x459   :  { %v14569_v36 = vpop.eup %14568 }
 0x45a   :  { %v2979_v51 = vmul.f32 %v14569_v36, %v2967_v30  ;;  %v2981_v24 = vmul.f32 %v14569_v36, %v2969_v61  ;;  %v2975_v5 = vmul.f32 %v14569_v36, %v2963_v25  ;;  %v2977_v38 = vmul.f32 %v14569_v36, %v2965_v47  ;;  %5068 = vmatpush1.bf16.msra.mxu1 %v13768_v62 }
 0x45b   :  { %5069 = vmatprep.subr.bf16.mxu1 %v13773_v57 }
 0x45c   :  { %v15722_v55 = vadd.f32 %v2988_v33, %v2975_v5  ;;  %v15724_v48 = vadd.f32 %v2988_v33, %v2977_v38  ;;  %v15733_v42 = vadd.f32 %v2988_v33, %v2979_v51  ;;  %v15747_v0 = vadd.f32 %v2988_v33, %v2981_v24 }
 0x45d   :  { %v14571_v56 = vpop.eup %14570 }
 0x45e   :  { %v3008_v1 = vrot.slane %v15722_v55, 4  ;;  %v3012_v7 = vrot.slane %v15724_v48, 4  ;;  %v2982_v8 = vmul.f32 %v14571_v56, %v2970_v53  ;;  %v2976_v37 = vmul.f32 %v14571_v56, %v2964_v22  ;;  %5070 = vmatpush1.bf16.msra.mxu1 %v13771_v13  ;;  %v13791_v13 = vld [vmem:[%s15551_s22 + $0x254] ss:$8 sps:$4 sm:$0xff]  }
 0x45f   :  { %v2978_v21 = vmul.f32 %v14571_v56, %v2966_v46  ;;  %v2980_v26 = vmul.f32 %v14571_v56, %v2968_v43  ;;  %v3035_v12 = vrot.slane %v15733_v42, 4  ;;  %v3048_v6 = vrot.slane %v15747_v0, 4  ;;  %5092 = vmatprep.subr.bf16.mxu1 %v13776_v44  ;;  %v13774_v43 = vld [vmem:[%s15551_s22 + $0x200] ss:$8 sps:$4 sm:$0xff]   ;;  %v13779_v56 = vld [vmem:[%s15551_s22 + $0x214] ss:$8 sps:$4 sm:$0xff]  }
 0x460   :  { %v3009_v60 = vsel %vm203_vm0, %v14926_v23, %v3008_v1  ;;  %v3013_v34 = vsel %vm203_vm0, %v3008_v1, %v3012_v7  ;;  %v15739_v17 = vadd.f32 %v2992_v14, %v2976_v37  ;;  %v15749_v2 = vadd.f32 %v2992_v14, %v2982_v8  ;;  %v13777_v8 = vld [vmem:[%s15551_s22 + $0x210] ss:$8 sps:$4 sm:$0xff]   ;;  %v13782_v37 = vld [vmem:[%s15551_s22 + $0x224] ss:$8 sps:$4 sm:$0xff]  }
 0x461   :  { %v13170_v52 = vpack.i.bf16 %v3009_v60, %v3013_v34  ;;  %v15741_v58 = vadd.f32 %v2992_v14, %v2978_v21  ;;  %v15744_v31 = vadd.f32 %v2992_v14, %v2980_v26  ;;  %v3036_v29 = vsel %vm203_vm0, %v3012_v7, %v3035_v12  ;;  %v13780_v60 = vld [vmem:[%s15551_s22 + $0x220] ss:$8 sps:$4 sm:$0xff]   ;;  %v13794_v44 = vld [vmem:[%s15551_s22 + $0x264] ss:$8 sps:$4 sm:$0xff]  }
 0x462   :  { %v3010_v32 = vrot.slane %v15739_v17, 4  ;;  %v3050_v15 = vrot.slane %v15749_v2, 4  ;;  %v3049_v63 = vsel %vm203_vm0, %v3035_v12, %v3048_v6  ;;  %v3059_v47 = vsel %vm203_vm0, %v3048_v6, %v14926_v23  ;;  %v13783_v12 = vld [vmem:[%s15551_s22 + $0x230] ss:$8 sps:$4 sm:$0xff]  }
 0x463   :  { %13171 = vrot.lane.b32.xlu1 %v13170_v52, %s14717_s18  ;;  %v3014_v39 = vrot.slane %v15741_v58, 4  ;;  %v3037_v3 = vrot.slane %v15744_v31, 4  ;;  %v15789_v51 = vpack.c.bf16 %v15722_v55, %v17632_v49  ;;  %v15819_v62 = vpack.c.bf16 %v15724_v48, %v15722_v55  ;;  %v13785_v52 = vld [vmem:[%s15551_s22 + $0x234] ss:$8 sps:$4 sm:$0xff]   ;;  %v13801_v6 = vld [vmem:[%s15551_s22 + $0x290] ss:$8 sps:$4 sm:$0xff]  }
 0x464   :  { %v3011_v54 = vsel %vm203_vm0, %v14926_v23, %v3010_v32  ;;  %v3060_v33 = vsel %vm203_vm0, %v3050_v15, %v14926_v23 }
 0x465   :  { %v3015_v9 = vsel %vm203_vm0, %v3010_v32, %v3014_v39  ;;  %v3038_v10 = vsel %vm203_vm0, %v3014_v39, %v3037_v3  ;;  %v3051_v25 = vsel %vm203_vm0, %v3037_v3, %v3050_v15  ;;  %v13185_v30 = vpack.i.bf16 %v3060_v33, %v3059_v47  ;;  %v13788_v32 = vld [vmem:[%s15551_s22 + $0x244] ss:$8 sps:$4 sm:$0xff]   ;;  %v13786_v39 = vld [vmem:[%s15551_s22 + $0x240] ss:$8 sps:$4 sm:$0xff]   ;;  %v13789_v3 = vld [vmem:[%s15551_s22 + $0x250] ss:$8 sps:$4 sm:$0xff]  }
 0x466   :  { %v13175_v20 = vpack.i.bf16 %v3015_v9, %v3011_v54  ;;  %v13180_v16 = vpack.i.bf16 %v3038_v10, %v3036_v29  ;;  %v13792_v54 = vld [vmem:[%s15551_s22 + $0x260] ss:$8 sps:$4 sm:$0xff]   ;;  %v13797_v9 = vld [vmem:[%s15551_s22 + $0x274] ss:$8 sps:$4 sm:$0xff]   ;;  %v13800_v29 = vld [vmem:[%s15551_s22 + $0x284] ss:$8 sps:$4 sm:$0xff]  }
 0x467   :  { %v13798_v10 = vld [vmem:[%s15551_s22 + $0x280] ss:$8 sps:$4 sm:$0xff]   ;;  %v13806_v15 = vld [vmem:[%s15551_s22 + $0x2a4] ss:$8 sps:$4 sm:$0xff]   ;;  %v13809_v33 = vld [vmem:[%s15551_s22 + $0x2b4] ss:$8 sps:$4 sm:$0xff]  }
 0x468   :  { %13176 = vrot.lane.b32.xlu0 %v13175_v20, %s14717_s18  ;;  %13181 = vrot.lane.b32.xlu1 %v13180_v16, %s14717_s18  ;;  %v13795_v20 = vld [vmem:[%s15551_s22 + $0x270] ss:$8 sps:$4 sm:$0xff]   ;;  %v13803_v16 = vld [vmem:[%s15551_s22 + $0x294] ss:$8 sps:$4 sm:$0xff]  }
 0x469   :  { %v13812_v47 = vld [vmem:[%s15551_s22 + $0x2c4] ss:$8 sps:$4 sm:$0xff]  }
 0x46c   :  { %3052 = vrot.lane.b32.xlu0 %v3049_v63, %s14717_s18  ;;  %3054 = vrot.lane.b32.xlu1 %v3051_v25, %s14717_s18  ;;  %v13804_v63 = vld [vmem:[%s15551_s22 + $0x2a0] ss:$8 sps:$4 sm:$0xff]   ;;  %v13807_v25 = vld [vmem:[%s15551_s22 + $0x2b0] ss:$8 sps:$4 sm:$0xff]  }
 0x470   :  { %13186 = vrot.lane.b32.xlu0 %v13185_v30, %s14717_s18  ;;  %5654 = vrot.lane.b32.xlu1 %v17632_v49, %s14717_s18  ;;  %v13810_v30 = vld [vmem:[%s15551_s22 + $0x2c0] ss:$8 sps:$4 sm:$0xff]  }
 0x4d5   :  { %v13172_v61 = vpop.permute.xlu1 %13171 }
 0x4d6   :  { %v15777_v36 = vunpack.i.h.bf16 %v13172_v61  ;;  %v13173_v50 = vunpack.i.l.bf16 %v13172_v61  ;;  %v13815_v61 = vld [vmem:[%s15551_s22 + $0x2d4] ss:$8 sps:$4 sm:$0xff]  }
 0x4d8   :  { %v15781_v35 = vsel %vm269_vm3, %v15739_v17, %v13173_v50 }
 0x4d9   :  { %v15785_v59 = vpack.c.bf16 %v15781_v35, %v15777_v36 }
 0x4da   :  { %v13177_v23 = vpop.permute.xlu0 %13176  ;;  %v15791_v24 = vpop.permute.xlu1 %13181 }
 0x4db   :  { %11734 = vmatprep.mubr.msk.bf16.mxu1 %vm15026_vm7, %v15785_v59  ;;  %v13184_v5 = vunpack.i.h.bf16 %v15791_v24  ;;  %v13183_v38 = vunpack.i.l.bf16 %v15791_v24  ;;  %v13179_v1 = vunpack.i.h.bf16 %v13177_v23  ;;  %v13178_v7 = vunpack.i.l.bf16 %v13177_v23  ;;  %v13818_v23 = vld [vmem:[%s15551_s22 + $0x2e4] ss:$8 sps:$4 sm:$0xff]   ;;  %v13831_v24 = vld [vmem:[%s15551_s22 + $0x330] ss:$8 sps:$4 sm:$0xff]  }
 0x4dc   :  { %5029 = vmatmul.mubr.bf16.gmra.mrb[4].mxu1 %v15789_v51 }
 0x4dd   :  { %5071 = vmatprep.mubr.bf16.mxu1 %v14721_v27  ;;  %v15805_v53 = vsel %vm269_vm3, %v13183_v38, %v13184_v5  ;;  %v3026_v21 = vsel %vm269_vm3, %v15777_v36, %v13178_v7  ;;  %v15828_v26 = vsel %vm269_vm3, %v13173_v50, %v13179_v1  ;;  %v13813_v50 = vld [vmem:[%s15551_s22 + $0x2d0] ss:$8 sps:$4 sm:$0xff]   ;;  %v13816_v5 = vld [vmem:[%s15551_s22 + $0x2e0] ss:$8 sps:$4 sm:$0xff]   ;;  %v11738_v7 = vpack.c.bf16 %v15777_v36, %v15563_v28 }
 0x4de   :  { %v15800_v14 = vpop.permute.xlu0 %3052  ;;  %v3055_v11 = vpop.permute.xlu1 %3054  ;;  %v15832_v34 = vpack.c.bf16 %v15828_v26, %v3026_v21  ;;  %v3078_v57 = vpack.c.bf16 %v3026_v21, %v15563_v28  ;;  %v13822_v1 = vld [vmem:[%s15551_s22 + $0x300] ss:$8 sps:$4 sm:$0xff]   ;;  %v13825_v21 = vld [vmem:[%s15551_s22 + $0x310] ss:$8 sps:$4 sm:$0xff]   ;;  %v15880_v36 = vsel %vm269_vm3, %v15741_v58, %v13183_v38  ;;  %v13836_v38 = vld [vmem:[%s15551_s22 + $0x344] ss:$8 sps:$4 sm:$0xff]  }
 0x4df   :  { %v15809_v22 = vsel %vm269_vm3, %v15800_v14, %v3055_v11  ;;  %v13821_v11 = vld [vmem:[%s15551_s22 + $0x2f4] ss:$8 sps:$4 sm:$0xff]  }
 0x4e0   :  { %v15813_v46 = vpack.c.bf16 %v15809_v22, %v15805_v53 }
 0x4e4   :  { %5072 = vmatmul.mubr.bf16.vlgmr.msra.gmra.mrb[0].mxu1 %v15568_v4 }
 0x4e5   :  { %5093 = vmatpush1.bf16.msra.mxu1 %v13774_v43  ;;  %5081 = vmatprep.mubr.bf16.mxu1 %v15819_v62  ;;  %v13819_v43 = vld [vmem:[%s15551_s22 + $0x2f0] ss:$8 sps:$4 sm:$0xff]  }
 0x4e6   :  { %5094 = vmatprep.subr.bf16.mxu1 %v13779_v56  ;;  %v13824_v56 = vld [vmem:[%s15551_s22 + $0x304] ss:$8 sps:$4 sm:$0xff]  }
 0x4e9   :  { %5095 = vmatpush1.bf16.msra.mxu1 %v13777_v8  ;;  %v13827_v8 = vld [vmem:[%s15551_s22 + $0x314] ss:$8 sps:$4 sm:$0xff]  }
 0x4ea   :  { %5096 = vmatprep.subr.bf16.mxu1 %v13782_v37  ;;  %v15869_v37 = vpack.c.bf16 %v15805_v53, %v15828_v26  ;;  %v13828_v53 = vld [vmem:[%s15551_s22 + $0x320] ss:$8 sps:$4 sm:$0xff]   ;;  %v15885_v26 = vpack.c.bf16 %v15880_v36, %v15781_v35 }
 0x4eb   :  { %v13834_v35 = vld [vmem:[%s15551_s22 + $0x340] ss:$8 sps:$4 sm:$0xff]  }
 0x4ec   :  { %5082 = vmatmul.mubr.bf16.gmra.mrb[4].mxu1 %v15832_v34 }
 0x4ed   :  { %5097 = vmatpush1.bf16.msra.mxu1 %v13780_v60  ;;  %5124 = vmatprep.mubr.bf16.mxu1 %v3078_v57  ;;  %v13830_v60 = vld [vmem:[%s15551_s22 + $0x324] ss:$8 sps:$4 sm:$0xff]   ;;  %v13839_v57 = vld [vmem:[%s15551_s22 + $0x354] ss:$8 sps:$4 sm:$0xff]  }
 0x4ee   :  { %5098 = vmatprep.subr.bf16.mxu1 %v13785_v52  ;;  %v13833_v52 = vld [vmem:[%s15551_s22 + $0x334] ss:$8 sps:$4 sm:$0xff]  }
 0x4f1   :  { %5099 = vmatpush1.bf16.msra.mxu1 %v13783_v12  ;;  %v13837_v12 = vld [vmem:[%s15551_s22 + $0x350] ss:$8 sps:$4 sm:$0xff]  }
 0x4f2   :  { %5100 = vmatprep.subr.bf16.mxu1 %v13788_v32  ;;  %v13842_v32 = vld [vmem:[%s15551_s22 + $0x364] ss:$8 sps:$4 sm:$0xff]  }
 0x4f5   :  { %5101 = vmatpush1.bf16.msra.mxu1 %v13786_v39  ;;  %v13840_v39 = vld [vmem:[%s15551_s22 + $0x360] ss:$8 sps:$4 sm:$0xff]  }
 0x4f6   :  { %5102 = vmatprep.subr.bf16.mxu1 %v13791_v13  ;;  %v13843_v13 = vld [vmem:[%s15551_s22 + $0x370] ss:$8 sps:$4 sm:$0xff]  }
 0x4f9   :  { %5103 = vmatpush1.bf16.msra.mxu1 %v13789_v3  ;;  %v13848_v3 = vld [vmem:[%s15551_s22 + $0x384] ss:$8 sps:$4 sm:$0xff]  }
 0x4fa   :  { %5104 = vmatprep.subr.bf16.mxu1 %v13794_v44  ;;  %v13846_v44 = vld [vmem:[%s15551_s22 + $0x380] ss:$8 sps:$4 sm:$0xff]  }
 0x4fd   :  { %5105 = vmatpush1.bf16.msra.mxu1 %v13792_v54  ;;  %v13851_v54 = vld [vmem:[%s15551_s22 + $0x394] ss:$8 sps:$4 sm:$0xff]  }
 0x4fe   :  { %5106 = vmatprep.subr.bf16.mxu1 %v13797_v9  ;;  %v13849_v9 = vld [vmem:[%s15551_s22 + $0x390] ss:$8 sps:$4 sm:$0xff]  }
 0x501   :  { %5107 = vmatpush1.bf16.msra.mxu1 %v13795_v20  ;;  %v13854_v20 = vld [vmem:[%s15551_s22 + $0x3a4] ss:$8 sps:$4 sm:$0xff]  }
 0x502   :  { %5108 = vmatprep.subr.bf16.mxu1 %v13800_v29  ;;  %v13852_v29 = vld [vmem:[%s15551_s22 + $0x3a0] ss:$8 sps:$4 sm:$0xff]  }
 0x505   :  { %5109 = vmatpush1.bf16.msra.mxu1 %v13798_v10  ;;  %v13857_v10 = vld [vmem:[%s15551_s22 + $0x3b4] ss:$8 sps:$4 sm:$0xff]  }
 0x506   :  { %5110 = vmatprep.subr.bf16.mxu1 %v13803_v16  ;;  %v13855_v16 = vld [vmem:[%s15551_s22 + $0x3b0] ss:$8 sps:$4 sm:$0xff]  }
 0x509   :  { %5111 = vmatpush1.bf16.msra.mxu1 %v13801_v6  ;;  %v13860_v6 = vld [vmem:[%s15551_s22 + $0x3c4] ss:$8 sps:$4 sm:$0xff]  }
 0x50a   :  { %5112 = vmatprep.subr.bf16.mxu1 %v13806_v15  ;;  %v13858_v15 = vld [vmem:[%s15551_s22 + $0x3c0] ss:$8 sps:$4 sm:$0xff]  }
 0x50d   :  { %5113 = vmatpush1.bf16.msra.mxu1 %v13804_v63  ;;  %v13863_v63 = vld [vmem:[%s15551_s22 + $0x3d4] ss:$8 sps:$4 sm:$0xff]  }
 0x50e   :  { %5114 = vmatprep.subr.bf16.mxu1 %v13809_v33  ;;  %v13861_v33 = vld [vmem:[%s15551_s22 + $0x3d0] ss:$8 sps:$4 sm:$0xff]  }
 0x511   :  { %5115 = vmatpush1.bf16.msra.mxu1 %v13807_v25  ;;  %v13866_v25 = vld [vmem:[%s15551_s22 + $0x3e4] ss:$8 sps:$4 sm:$0xff]  }
 0x512   :  { %5116 = vmatprep.subr.bf16.mxu1 %v13812_v47  ;;  %v13864_v47 = vld [vmem:[%s15551_s22 + $0x3e0] ss:$8 sps:$4 sm:$0xff]  }
 0x515   :  { %5117 = vmatpush1.bf16.msra.mxu1 %v13810_v30  ;;  %v13869_v30 = vld [vmem:[%s15551_s22 + $0x3f4] ss:$8 sps:$4 sm:$0xff]  }
 0x516   :  { %5118 = vmatprep.subr.bf16.mxu1 %v13815_v61  ;;  %v13867_v61 = vld [vmem:[%s15551_s22 + $0x3f0] ss:$8 sps:$4 sm:$0xff]  }
 0x519   :  { %5119 = vmatpush1.bf16.msra.mxu1 %v13813_v50  ;;  %v13872_v50 = vld [vmem:[%s15551_s22 + $0x404] ss:$8 sps:$4 sm:$0xff]  }
 0x51a   :  { %5120 = vmatprep.subr.bf16.mxu1 %v13818_v23  ;;  %v15921_v23 = vsel %vm269_vm3, %v15744_v31, %v15800_v14  ;;  %v13878_v14 = vld [vmem:[%s15551_s22 + $0x424] ss:$8 sps:$4 sm:$0xff]  }
 0x51d   :  { %5121 = vmatpush1.bf16.msra.mxu1 %v13816_v5  ;;  %v13870_v5 = vld [vmem:[%s15551_s22 + $0x400] ss:$8 sps:$4 sm:$0xff]  }
 0x51e   :  { %5122 = vmatprep.subr.bf16.mxu1 %v13821_v11  ;;  %v13875_v11 = vld [vmem:[%s15551_s22 + $0x414] ss:$8 sps:$4 sm:$0xff]  }
 0x521   :  { %5123 = vmatpush1.bf16.msra.mxu1 %v13819_v43  ;;  %v15927_v43 = vpack.c.bf16 %v15921_v23, %v15880_v36  ;;  %v13887_v36 = vld [vmem:[%s15551_s22 + $0x454] ss:$8 sps:$4 sm:$0xff]  }
 0x522   :  { %5145 = vmatprep.subr.bf16.mxu1 %v13824_v56  ;;  %v13873_v56 = vld [vmem:[%s15551_s22 + $0x410] ss:$8 sps:$4 sm:$0xff]  }
 0x524   :  { %11739 = vmatmul.mubr.msk.bf16.vlgmr.msra.gmra.mrb[0].mxu1 %vm15575_vm12, %v11738_v7  ;;  %v15936_v7 = vpack.c.bf16 %v15733_v42, %v15724_v48 }
 0x525   :  { %5134 = vmatprep.mubr.bf16.mxu1 %v15869_v37  ;;  %5146 = vmatpush1.bf16.msra.mxu1 %v13822_v1  ;;  %v13876_v1 = vld [vmem:[%s15551_s22 + $0x420] ss:$8 sps:$4 sm:$0xff]  }
 0x526   :  { %5147 = vmatprep.subr.bf16.mxu1 %v13827_v8  ;;  %v13881_v8 = vld [vmem:[%s15551_s22 + $0x434] ss:$8 sps:$4 sm:$0xff]  }
 0x529   :  { %5148 = vmatpush1.bf16.msra.mxu1 %v13825_v21  ;;  %v13884_v21 = vld [vmem:[%s15551_s22 + $0x444] ss:$8 sps:$4 sm:$0xff]  }
 0x52a   :  { %5149 = vmatprep.subr.bf16.mxu1 %v13830_v60  ;;  %v13882_v60 = vld [vmem:[%s15551_s22 + $0x440] ss:$8 sps:$4 sm:$0xff]  }
 0x52c   :  { %5135 = vmatmul.mubr.bf16.gmra.mrb[4].mxu1 %v15885_v26 }
 0x52d   :  { %5150 = vmatpush1.bf16.msra.mxu1 %v13828_v53  ;;  %11743 = vmatprep.mubr.msk.bf16.mxu1 %vm15026_vm7, %v15785_v59  ;;  %v13845_v59 = vld [vmem:[%s15551_s22 + $0x374] ss:$8 sps:$4 sm:$0xff]   ;;  %v13885_v53 = vld [vmem:[%s15551_s22 + $0x450] ss:$8 sps:$4 sm:$0xff]  }
 0x52e   :  { %5151 = vmatprep.subr.bf16.mxu1 %v13833_v52  ;;  %v13890_v52 = vld [vmem:[%s15551_s22 + $0x464] ss:$8 sps:$4 sm:$0xff]  }
 0x531   :  { %5152 = vmatpush1.bf16.msra.mxu1 %v13831_v24  ;;  %v13888_v24 = vld [vmem:[%s15551_s22 + $0x460] ss:$8 sps:$4 sm:$0xff]  }
 0x532   :  { %5153 = vmatprep.subr.bf16.mxu1 %v13836_v38  ;;  %v13891_v38 = vld [vmem:[%s15551_s22 + $0x470] ss:$8 sps:$4 sm:$0xff]  }
 0x535   :  { %5154 = vmatpush1.bf16.msra.mxu1 %v13834_v35  ;;  %v13896_v35 = vld [vmem:[%s15551_s22 + $0x484] ss:$8 sps:$4 sm:$0xff]  }
 0x536   :  { %5155 = vmatprep.subr.bf16.mxu1 %v13839_v57  ;;  %v13894_v57 = vld [vmem:[%s15551_s22 + $0x480] ss:$8 sps:$4 sm:$0xff]  }
 0x539   :  { %5156 = vmatpush1.bf16.msra.mxu1 %v13837_v12  ;;  %v13899_v12 = vld [vmem:[%s15551_s22 + $0x494] ss:$8 sps:$4 sm:$0xff]  }
 0x53a   :  { %5157 = vmatprep.subr.bf16.mxu1 %v13842_v32  ;;  %v13897_v32 = vld [vmem:[%s15551_s22 + $0x490] ss:$8 sps:$4 sm:$0xff]  }
 0x53d   :  { %5158 = vmatpush1.bf16.msra.mxu1 %v13840_v39  ;;  %v13902_v39 = vld [vmem:[%s15551_s22 + $0x4a4] ss:$8 sps:$4 sm:$0xff]  }
 0x53e   :  { %5159 = vmatprep.subr.bf16.mxu1 %v13845_v59  ;;  %v13900_v59 = vld [vmem:[%s15551_s22 + $0x4a0] ss:$8 sps:$4 sm:$0xff]  }
 0x541   :  { %5160 = vmatpush1.bf16.msra.mxu1 %v13843_v13  ;;  %v13905_v13 = vld [vmem:[%s15551_s22 + $0x4b4] ss:$8 sps:$4 sm:$0xff]  }
 0x542   :  { %5161 = vmatprep.subr.bf16.mxu1 %v13848_v3  ;;  %v13903_v3 = vld [vmem:[%s15551_s22 + $0x4b0] ss:$8 sps:$4 sm:$0xff]  }
 0x545   :  { %5162 = vmatpush1.bf16.msra.mxu1 %v13846_v44  ;;  %v13908_v44 = vld [vmem:[%s15551_s22 + $0x4c4] ss:$8 sps:$4 sm:$0xff]  }
 0x546   :  { %5163 = vmatprep.subr.bf16.mxu1 %v13851_v54  ;;  %v13906_v54 = vld [vmem:[%s15551_s22 + $0x4c0] ss:$8 sps:$4 sm:$0xff]  }
 0x549   :  { %5164 = vmatpush1.bf16.msra.mxu1 %v13849_v9  ;;  %v13911_v9 = vld [vmem:[%s15551_s22 + $0x4d4] ss:$8 sps:$4 sm:$0xff]  }
 0x54a   :  { %5165 = vmatprep.subr.bf16.mxu1 %v13854_v20  ;;  %v13909_v20 = vld [vmem:[%s15551_s22 + $0x4d0] ss:$8 sps:$4 sm:$0xff]  }
 0x54d   :  { %5166 = vmatpush1.bf16.msra.mxu1 %v13852_v29  ;;  %v13914_v29 = vld [vmem:[%s15551_s22 + $0x4e4] ss:$8 sps:$4 sm:$0xff]  }
 0x54e   :  { %5167 = vmatprep.subr.bf16.mxu1 %v13857_v10  ;;  %v13912_v10 = vld [vmem:[%s15551_s22 + $0x4e0] ss:$8 sps:$4 sm:$0xff]  }
 0x551   :  { %5168 = vmatpush1.bf16.msra.mxu1 %v13855_v16  ;;  %v13917_v16 = vld [vmem:[%s15551_s22 + $0x4f4] ss:$8 sps:$4 sm:$0xff]  }
 0x552   :  { %5169 = vmatprep.subr.bf16.mxu1 %v13860_v6  ;;  %v13915_v6 = vld [vmem:[%s15551_s22 + $0x4f0] ss:$8 sps:$4 sm:$0xff]  }
 0x555   :  { %5170 = vmatpush1.bf16.msra.mxu1 %v13858_v15  ;;  %v13920_v15 = vld [vmem:[%s15551_s22 + $0x504] ss:$8 sps:$4 sm:$0xff]  }
 0x556   :  { %5171 = vmatprep.subr.bf16.mxu1 %v13863_v63  ;;  %v13918_v63 = vld [vmem:[%s15551_s22 + $0x500] ss:$8 sps:$4 sm:$0xff]  }
 0x559   :  { %5172 = vmatpush1.bf16.msra.mxu1 %v13861_v33  ;;  %v13923_v33 = vld [vmem:[%s15551_s22 + $0x514] ss:$8 sps:$4 sm:$0xff]  }
 0x55a   :  { %5173 = vmatprep.subr.bf16.mxu1 %v13866_v25  ;;  %v15971_v25 = vpack.c.bf16 %v15747_v0, %v15733_v42 }
 0x55d   :  { %5174 = vmatpush1.bf16.msra.mxu1 %v13864_v47  ;;  %v13921_v47 = vld [vmem:[%s15551_s22 + $0x510] ss:$8 sps:$4 sm:$0xff]  }
 0x55e   :  { %5175 = vmatprep.subr.bf16.mxu1 %v13869_v30  ;;  %v13926_v30 = vld [vmem:[%s15551_s22 + $0x524] ss:$8 sps:$4 sm:$0xff]  }
 0x561   :  { %5176 = vmatpush1.bf16.msra.mxu1 %v13867_v61  ;;  %v13924_v61 = vld [vmem:[%s15551_s22 + $0x520] ss:$8 sps:$4 sm:$0xff]  }
 0x562   :  { %5198 = vmatprep.subr.bf16.mxu1 %v13872_v50  ;;  %v13929_v50 = vld [vmem:[%s15551_s22 + $0x534] ss:$8 sps:$4 sm:$0xff]  }
 0x564   :  { %5178 = vmatmul.mubr.bf16.vlgmr.msra.gmra.mrb[0].mxu1 %v15789_v51  ;;  %v13879_v51 = vld [vmem:[%s15551_s22 + $0x430] ss:$8 sps:$4 sm:$0xff]  }
 0x565   :  { %5187 = vmatprep.mubr.bf16.mxu1 %v15927_v43  ;;  %5199 = vmatpush1.bf16.msra.mxu1 %v13870_v5  ;;  %v13932_v5 = vld [vmem:[%s15551_s22 + $0x544] ss:$8 sps:$4 sm:$0xff]  }
 0x566   :  { %5200 = vmatprep.subr.bf16.mxu1 %v13875_v11  ;;  %v13930_v11 = vld [vmem:[%s15551_s22 + $0x540] ss:$8 sps:$4 sm:$0xff]  }
 0x569   :  { %5201 = vmatpush1.bf16.msra.mxu1 %v13873_v56  ;;  %v13935_v56 = vld [vmem:[%s15551_s22 + $0x554] ss:$8 sps:$4 sm:$0xff]  }
 0x56a   :  { %5202 = vmatprep.subr.bf16.mxu1 %v13878_v14  ;;  %v13933_v14 = vld [vmem:[%s15551_s22 + $0x550] ss:$8 sps:$4 sm:$0xff]  }
 0x56c   :  { %5188 = vmatmul.mubr.bf16.gmra.mrb[4].mxu1 %v15936_v7 }
 0x56d   :  { %5203 = vmatpush1.bf16.msra.mxu1 %v13876_v1  ;;  %5230 = vmatprep.mubr.bf16.mxu1 %v15819_v62  ;;  %v13893_v62 = vld [vmem:[%s15551_s22 + $0x474] ss:$8 sps:$4 sm:$0xff]   ;;  %v13938_v1 = vld [vmem:[%s15551_s22 + $0x564] ss:$8 sps:$4 sm:$0xff]  }
 0x56e   :  { %5204 = vmatprep.subr.bf16.mxu1 %v13881_v8  ;;  %v13936_v8 = vld [vmem:[%s15551_s22 + $0x560] ss:$8 sps:$4 sm:$0xff]  }
 0x571   :  { %5205 = vmatpush1.bf16.msra.mxu1 %v13879_v51  ;;  %v13939_v51 = vld [vmem:[%s15551_s22 + $0x570] ss:$8 sps:$4 sm:$0xff]  }
 0x572   :  { %5206 = vmatprep.subr.bf16.mxu1 %v13884_v21  ;;  %v13944_v21 = vld [vmem:[%s15551_s22 + $0x584] ss:$8 sps:$4 sm:$0xff]  }
 0x575   :  { %5207 = vmatpush1.bf16.msra.mxu1 %v13882_v60  ;;  %v13942_v60 = vld [vmem:[%s15551_s22 + $0x580] ss:$8 sps:$4 sm:$0xff]  }
 0x576   :  { %5208 = vmatprep.subr.bf16.mxu1 %v13887_v36  ;;  %v13947_v36 = vld [vmem:[%s15551_s22 + $0x594] ss:$8 sps:$4 sm:$0xff]  }
 0x579   :  { %5209 = vmatpush1.bf16.msra.mxu1 %v13885_v53  ;;  %v13945_v53 = vld [vmem:[%s15551_s22 + $0x590] ss:$8 sps:$4 sm:$0xff]  }
 0x57a   :  { %5210 = vmatprep.subr.bf16.mxu1 %v13890_v52  ;;  %v13950_v52 = vld [vmem:[%s15551_s22 + $0x5a4] ss:$8 sps:$4 sm:$0xff]  }
 0x57d   :  { %5211 = vmatpush1.bf16.msra.mxu1 %v13888_v24  ;;  %v13948_v24 = vld [vmem:[%s15551_s22 + $0x5a0] ss:$8 sps:$4 sm:$0xff]  }
 0x57e   :  { %5212 = vmatprep.subr.bf16.mxu1 %v13893_v62  ;;  %v13953_v62 = vld [vmem:[%s15551_s22 + $0x5b4] ss:$8 sps:$4 sm:$0xff]  }
 0x581   :  { %5213 = vmatpush1.bf16.msra.mxu1 %v13891_v38  ;;  %v13951_v38 = vld [vmem:[%s15551_s22 + $0x5b0] ss:$8 sps:$4 sm:$0xff]  }
 0x582   :  { %5214 = vmatprep.subr.bf16.mxu1 %v13896_v35  ;;  %v13956_v35 = vld [vmem:[%s15551_s22 + $0x5c4] ss:$8 sps:$4 sm:$0xff]  }
 0x585   :  { %5215 = vmatpush1.bf16.msra.mxu1 %v13894_v57  ;;  %v13954_v57 = vld [vmem:[%s15551_s22 + $0x5c0] ss:$8 sps:$4 sm:$0xff]  }
 0x586   :  { %5216 = vmatprep.subr.bf16.mxu1 %v13899_v12  ;;  %v13959_v12 = vld [vmem:[%s15551_s22 + $0x5d4] ss:$8 sps:$4 sm:$0xff]  }
 0x589   :  { %5217 = vmatpush1.bf16.msra.mxu1 %v13897_v32  ;;  %v13957_v32 = vld [vmem:[%s15551_s22 + $0x5d0] ss:$8 sps:$4 sm:$0xff]  }
 0x58a   :  { %5218 = vmatprep.subr.bf16.mxu1 %v13902_v39  ;;  %v13962_v39 = vld [vmem:[%s15551_s22 + $0x5e4] ss:$8 sps:$4 sm:$0xff]  }
 0x58d   :  { %5219 = vmatpush1.bf16.msra.mxu1 %v13900_v59  ;;  %v13187_v59 = vpop.permute.xlu0 %13186 }
 0x58e   :  { %5220 = vmatprep.subr.bf16.mxu1 %v13905_v13  ;;  %v13960_v13 = vld [vmem:[%s15551_s22 + $0x5e0] ss:$8 sps:$4 sm:$0xff]  }
 0x591   :  { %5221 = vmatpush1.bf16.msra.mxu1 %v13903_v3  ;;  %v13965_v3 = vld [vmem:[%s15551_s22 + $0x5f4] ss:$8 sps:$4 sm:$0xff]  }
 0x592   :  { %5222 = vmatprep.subr.bf16.mxu1 %v13908_v44  ;;  %v13189_v44 = vunpack.i.h.bf16 %v13187_v59 }
 0x595   :  { %5223 = vmatpush1.bf16.msra.mxu1 %v13906_v54  ;;  %v13188_v54 = vunpack.i.l.bf16 %v13187_v59  ;;  %v14439_v59 = vld [vmem:[%s16243_s21 + $0x430] ss:$8 sps:$4 sm:$0xff]  }
 0x596   :  { %5224 = vmatprep.subr.bf16.mxu1 %v13911_v9  ;;  %v13963_v9 = vld [vmem:[%s15551_s22 + $0x5f0] ss:$8 sps:$4 sm:$0xff]  }
 0x599   :  { %5225 = vmatpush1.bf16.msra.mxu1 %v13909_v20  ;;  %v13968_v20 = vld [vmem:[%s15551_s22 + $0x604] ss:$8 sps:$4 sm:$0xff]  }
 0x59a   :  { %5226 = vmatprep.subr.bf16.mxu1 %v13914_v29  ;;  %v16008_v29 = vsel %vm269_vm3, %v13188_v54, %v13189_v44  ;;  %v14017_v44 = vld [vmem:[%s15551_s22 + $0x710] ss:$8 sps:$4 sm:$0xff]  }
 0x59d   :  { %5227 = vmatpush1.bf16.msra.mxu1 %v13912_v10  ;;  %v13966_v10 = vld [vmem:[%s15551_s22 + $0x600] ss:$8 sps:$4 sm:$0xff]  }
 0x59e   :  { %5228 = vmatprep.subr.bf16.mxu1 %v13917_v16  ;;  %v13971_v16 = vld [vmem:[%s15551_s22 + $0x614] ss:$8 sps:$4 sm:$0xff]  }
 0x5a1   :  { %5229 = vmatpush1.bf16.msra.mxu1 %v13915_v6  ;;  %v16014_v6 = vpack.c.bf16 %v16008_v29, %v15809_v22  ;;  %v13972_v22 = vld [vmem:[%s15551_s22 + $0x620] ss:$8 sps:$4 sm:$0xff]  }
 0x5a2   :  { %5251 = vmatprep.subr.bf16.mxu1 %v13920_v15  ;;  %v13969_v15 = vld [vmem:[%s15551_s22 + $0x610] ss:$8 sps:$4 sm:$0xff]  }
 0x5a4   :  { %5231 = vmatmul.mubr.bf16.vlgmr.msra.gmra.mrb[0].mxu1 %v15832_v34  ;;  %v13927_v34 = vld [vmem:[%s15551_s22 + $0x530] ss:$8 sps:$4 sm:$0xff]  }
 0x5a5   :  { %5240 = vmatprep.mubr.bf16.mxu1 %v15971_v25  ;;  %5252 = vmatpush1.bf16.msra.mxu1 %v13918_v63  ;;  %v13974_v63 = vld [vmem:[%s15551_s22 + $0x624] ss:$8 sps:$4 sm:$0xff]  }
 0x5a6   :  { %5253 = vmatprep.subr.bf16.mxu1 %v13923_v33  ;;  %v16022_v33 = vsel %vm269_vm3, %v15749_v2, %v13188_v54  ;;  %v14020_v54 = vld [vmem:[%s15551_s22 + $0x720] ss:$8 sps:$4 sm:$0xff]  }
 0x5a9   :  { %5254 = vmatpush1.bf16.msra.mxu1 %v13921_v47  ;;  %v16027_v47 = vpack.c.bf16 %v16022_v33, %v15921_v23  ;;  %v13983_v23 = vld [vmem:[%s15551_s22 + $0x654] ss:$8 sps:$4 sm:$0xff]  }
 0x5aa   :  { %5255 = vmatprep.subr.bf16.mxu1 %v13926_v30  ;;  %v13975_v30 = vld [vmem:[%s15551_s22 + $0x630] ss:$8 sps:$4 sm:$0xff]  }
 0x5ac   :  { %5241 = vmatmul.mubr.bf16.gmra.mrb[4].mxu1 %v15813_v46 }
 0x5ad   :  { %5256 = vmatpush1.bf16.msra.mxu1 %v13924_v61  ;;  %5283 = vmatprep.mubr.bf16.mxu1 %v15869_v37  ;;  %v13941_v37 = vld [vmem:[%s15551_s22 + $0x574] ss:$8 sps:$4 sm:$0xff]   ;;  %v13980_v61 = vld [vmem:[%s15551_s22 + $0x644] ss:$8 sps:$4 sm:$0xff]  }
 0x5ae   :  { %5257 = vmatprep.subr.bf16.mxu1 %v13929_v50  ;;  %v13978_v50 = vld [vmem:[%s15551_s22 + $0x640] ss:$8 sps:$4 sm:$0xff]  }
 0x5b1   :  { %5258 = vmatpush1.bf16.msra.mxu1 %v13927_v34  ;;  %v13981_v34 = vld [vmem:[%s15551_s22 + $0x650] ss:$8 sps:$4 sm:$0xff]  }
 0x5b2   :  { %5259 = vmatprep.subr.bf16.mxu1 %v13932_v5  ;;  %v13986_v5 = vld [vmem:[%s15551_s22 + $0x664] ss:$8 sps:$4 sm:$0xff]  }
 0x5b5   :  { %5260 = vmatpush1.bf16.msra.mxu1 %v13930_v11  ;;  %v13984_v11 = vld [vmem:[%s15551_s22 + $0x660] ss:$8 sps:$4 sm:$0xff]  }
 0x5b6   :  { %5261 = vmatprep.subr.bf16.mxu1 %v13935_v56  ;;  %v13987_v56 = vld [vmem:[%s15551_s22 + $0x670] ss:$8 sps:$4 sm:$0xff]  }
 0x5b9   :  { %5262 = vmatpush1.bf16.msra.mxu1 %v13933_v14  ;;  %v13992_v14 = vld [vmem:[%s15551_s22 + $0x684] ss:$8 sps:$4 sm:$0xff]  }
 0x5ba   :  { %5263 = vmatprep.subr.bf16.mxu1 %v13938_v1  ;;  %v13990_v1 = vld [vmem:[%s15551_s22 + $0x680] ss:$8 sps:$4 sm:$0xff]  }
 0x5bd   :  { %5264 = vmatpush1.bf16.msra.mxu1 %v13936_v8  ;;  %v13995_v8 = vld [vmem:[%s15551_s22 + $0x694] ss:$8 sps:$4 sm:$0xff]  }
 0x5be   :  { %5265 = vmatprep.subr.bf16.mxu1 %v13941_v37  ;;  %v13993_v37 = vld [vmem:[%s15551_s22 + $0x690] ss:$8 sps:$4 sm:$0xff]  }
 0x5c1   :  { %5266 = vmatpush1.bf16.msra.mxu1 %v13939_v51  ;;  %v13998_v51 = vld [vmem:[%s15551_s22 + $0x6a4] ss:$8 sps:$4 sm:$0xff]  }
 0x5c2   :  { %5267 = vmatprep.subr.bf16.mxu1 %v13944_v21  ;;  %v13996_v21 = vld [vmem:[%s15551_s22 + $0x6a0] ss:$8 sps:$4 sm:$0xff]  }
 0x5c5   :  { %5268 = vmatpush1.bf16.msra.mxu1 %v13942_v60  ;;  %v14001_v60 = vld [vmem:[%s15551_s22 + $0x6b4] ss:$8 sps:$4 sm:$0xff]  }
 0x5c6   :  { %5269 = vmatprep.subr.bf16.mxu1 %v13947_v36  ;;  %v13999_v36 = vld [vmem:[%s15551_s22 + $0x6b0] ss:$8 sps:$4 sm:$0xff]  }
 0x5c9   :  { %5270 = vmatpush1.bf16.msra.mxu1 %v13945_v53  ;;  %v14004_v53 = vld [vmem:[%s15551_s22 + $0x6c4] ss:$8 sps:$4 sm:$0xff]  }
 0x5ca   :  { %5271 = vmatprep.subr.bf16.mxu1 %v13950_v52  ;;  %v14002_v52 = vld [vmem:[%s15551_s22 + $0x6c0] ss:$8 sps:$4 sm:$0xff]  }
 0x5cd   :  { %5272 = vmatpush1.bf16.msra.mxu1 %v13948_v24  ;;  %v14007_v24 = vld [vmem:[%s15551_s22 + $0x6d4] ss:$8 sps:$4 sm:$0xff]  }
 0x5ce   :  { %5273 = vmatprep.subr.bf16.mxu1 %v13953_v62  ;;  %v14005_v62 = vld [vmem:[%s15551_s22 + $0x6d0] ss:$8 sps:$4 sm:$0xff]  }
 0x5d1   :  { %5274 = vmatpush1.bf16.msra.mxu1 %v13951_v38  ;;  %v14010_v38 = vld [vmem:[%s15551_s22 + $0x6e4] ss:$8 sps:$4 sm:$0xff]  }
 0x5d2   :  { %5275 = vmatprep.subr.bf16.mxu1 %v13956_v35  ;;  %v14008_v35 = vld [vmem:[%s15551_s22 + $0x6e0] ss:$8 sps:$4 sm:$0xff]  }
 0x5d5   :  { %5276 = vmatpush1.bf16.msra.mxu1 %v13954_v57  ;;  %v14013_v57 = vld [vmem:[%s15551_s22 + $0x6f4] ss:$8 sps:$4 sm:$0xff]  }
 0x5d6   :  { %5277 = vmatprep.subr.bf16.mxu1 %v13959_v12  ;;  %v14011_v12 = vld [vmem:[%s15551_s22 + $0x6f0] ss:$8 sps:$4 sm:$0xff]  }
 0x5d9   :  { %5278 = vmatpush1.bf16.msra.mxu1 %v13957_v32  ;;  %v14016_v32 = vld [vmem:[%s15551_s22 + $0x704] ss:$8 sps:$4 sm:$0xff]  }
 0x5da   :  { %5279 = vmatprep.subr.bf16.mxu1 %v13962_v39  ;;  %v14014_v39 = vld [vmem:[%s15551_s22 + $0x700] ss:$8 sps:$4 sm:$0xff]  }
 0x5dd   :  { %5280 = vmatpush1.bf16.msra.mxu1 %v13960_v13  ;;  %v14019_v13 = vld [vmem:[%s15551_s22 + $0x714] ss:$8 sps:$4 sm:$0xff]  }
 0x5de   :  { %5281 = vmatprep.subr.bf16.mxu1 %v13965_v3  ;;  %v11746_v3 = vpack.c.bf16 %v15563_v28, %v16022_v33  ;;  %v14034_v33 = vld [vmem:[%s15551_s22 + $0x764] ss:$8 sps:$4 sm:$0xff]  }
 0x5e1   :  { %5282 = vmatpush1.bf16.msra.mxu1 %v13963_v9  ;;  %v16077_v9 = vpack.c.bf16 %v17632_v49, %v15747_v0 }
 0x5e2   :  { %5304 = vmatprep.subr.bf16.mxu1 %v13968_v20  ;;  %v14023_v20 = vld [vmem:[%s15551_s22 + $0x730] ss:$8 sps:$4 sm:$0xff]  }
 0x5e4   :  { %5284 = vmatmul.mubr.bf16.vlgmr.msra.gmra.mrb[0].mxu1 %v15885_v26  ;;  %v13977_v26 = vld [vmem:[%s15551_s22 + $0x634] ss:$8 sps:$4 sm:$0xff]  }
 0x5e5   :  { %5293 = vmatprep.mubr.bf16.mxu1 %v16014_v6  ;;  %5305 = vmatpush1.bf16.msra.mxu1 %v13966_v10  ;;  %v14028_v10 = vld [vmem:[%s15551_s22 + $0x744] ss:$8 sps:$4 sm:$0xff]  }
 0x5e6   :  { %5306 = vmatprep.subr.bf16.mxu1 %v13971_v16  ;;  %v14026_v16 = vld [vmem:[%s15551_s22 + $0x740] ss:$8 sps:$4 sm:$0xff]  }
 0x5e9   :  { %5307 = vmatpush1.bf16.msra.mxu1 %v13969_v15  ;;  %v14031_v15 = vld [vmem:[%s15551_s22 + $0x754] ss:$8 sps:$4 sm:$0xff]  }
 0x5ea   :  { %5308 = vmatprep.subr.bf16.mxu1 %v13974_v63  ;;  %v14029_v63 = vld [vmem:[%s15551_s22 + $0x750] ss:$8 sps:$4 sm:$0xff]  }
 0x5ec   :  { %5294 = vmatmul.mubr.bf16.gmra.mrb[4].mxu1 %v16027_v47 }
 0x5ed   :  { %5309 = vmatpush1.bf16.msra.mxu1 %v13972_v22  ;;  %5336 = vmatprep.mubr.bf16.mxu1 %v15927_v43  ;;  %v13989_v43 = vld [vmem:[%s15551_s22 + $0x674] ss:$8 sps:$4 sm:$0xff]   ;;  %v14032_v22 = vld [vmem:[%s15551_s22 + $0x760] ss:$8 sps:$4 sm:$0xff]  }
 0x5ee   :  { %5310 = vmatprep.subr.bf16.mxu1 %v13977_v26  ;;  %v14035_v26 = vld [vmem:[%s15551_s22 + $0x770] ss:$8 sps:$4 sm:$0xff]  }
 0x5f1   :  { %5311 = vmatpush1.bf16.msra.mxu1 %v13975_v30  ;;  %v14040_v30 = vld [vmem:[%s15551_s22 + $0x784] ss:$8 sps:$4 sm:$0xff]  }
 0x5f2   :  { %5312 = vmatprep.subr.bf16.mxu1 %v13980_v61  ;;  %v14038_v61 = vld [vmem:[%s15551_s22 + $0x780] ss:$8 sps:$4 sm:$0xff]  }
 0x5f5   :  { %5313 = vmatpush1.bf16.msra.mxu1 %v13978_v50  ;;  %v14043_v50 = vld [vmem:[%s15551_s22 + $0x794] ss:$8 sps:$4 sm:$0xff]  }
 0x5f6   :  { %5314 = vmatprep.subr.bf16.mxu1 %v13983_v23  ;;  %v14041_v23 = vld [vmem:[%s15551_s22 + $0x790] ss:$8 sps:$4 sm:$0xff]  }
 0x5f9   :  { %5315 = vmatpush1.bf16.msra.mxu1 %v13981_v34  ;;  %v14046_v34 = vld [vmem:[%s15551_s22 + $0x7a4] ss:$8 sps:$4 sm:$0xff]  }
 0x5fa   :  { %5316 = vmatprep.subr.bf16.mxu1 %v13986_v5  ;;  %v14044_v5 = vld [vmem:[%s15551_s22 + $0x7a0] ss:$8 sps:$4 sm:$0xff]  }
 0x5fd   :  { %5317 = vmatpush1.bf16.msra.mxu1 %v13984_v11  ;;  %v14049_v11 = vld [vmem:[%s15551_s22 + $0x7b4] ss:$8 sps:$4 sm:$0xff]  }
 0x5fe   :  { %5318 = vmatprep.subr.bf16.mxu1 %v13989_v43  ;;  %v14047_v43 = vld [vmem:[%s15551_s22 + $0x7b0] ss:$8 sps:$4 sm:$0xff]  }
 0x601   :  { %5319 = vmatpush1.bf16.msra.mxu1 %v13987_v56  ;;  %v14052_v56 = vld [vmem:[%s15551_s22 + $0x7c4] ss:$8 sps:$4 sm:$0xff]  }
 0x602   :  { %5320 = vmatprep.subr.bf16.mxu1 %v13992_v14  ;;  %v14050_v14 = vld [vmem:[%s15551_s22 + $0x7c0] ss:$8 sps:$4 sm:$0xff]  }
 0x605   :  { %5321 = vmatpush1.bf16.msra.mxu1 %v13990_v1  ;;  %v14055_v1 = vld [vmem:[%s15551_s22 + $0x7d4] ss:$8 sps:$4 sm:$0xff]  }
 0x606   :  { %5322 = vmatprep.subr.bf16.mxu1 %v13995_v8  ;;  %v14053_v8 = vld [vmem:[%s15551_s22 + $0x7d0] ss:$8 sps:$4 sm:$0xff]  }
 0x609   :  { %5323 = vmatpush1.bf16.msra.mxu1 %v13993_v37  ;;  %v14058_v37 = vld [vmem:[%s15551_s22 + $0x7e4] ss:$8 sps:$4 sm:$0xff]  }
 0x60a   :  { %5324 = vmatprep.subr.bf16.mxu1 %v13998_v51  ;;  %v14056_v51 = vld [vmem:[%s15551_s22 + $0x7e0] ss:$8 sps:$4 sm:$0xff]  }
 0x60d   :  { %5325 = vmatpush1.bf16.msra.mxu1 %v13996_v21  ;;  %v14061_v21 = vld [vmem:[%s15551_s22 + $0x7f4] ss:$8 sps:$4 sm:$0xff]  }
 0x60e   :  { %5326 = vmatprep.subr.bf16.mxu1 %v14001_v60  ;;  %v14059_v60 = vld [vmem:[%s15551_s22 + $0x7f0] ss:$8 sps:$4 sm:$0xff]  }
 0x611   :  { %5327 = vmatpush1.bf16.msra.mxu1 %v13999_v36  ;;  %v14064_v36 = vld [vmem:[%s15551_s22 + $0x804] ss:$8 sps:$4 sm:$0xff]  }
 0x612   :  { %5328 = vmatprep.subr.bf16.mxu1 %v14004_v53  ;;  %v14062_v53 = vld [vmem:[%s15551_s22 + $0x800] ss:$8 sps:$4 sm:$0xff]  }
 0x615   :  { %5329 = vmatpush1.bf16.msra.mxu1 %v14002_v52  ;;  %v14067_v52 = vld [vmem:[%s15551_s22 + $0x814] ss:$8 sps:$4 sm:$0xff]  }
 0x616   :  { %5330 = vmatprep.subr.bf16.mxu1 %v14007_v24  ;;  %v14065_v24 = vld [vmem:[%s15551_s22 + $0x810] ss:$8 sps:$4 sm:$0xff]  }
 0x619   :  { %5331 = vmatpush1.bf16.msra.mxu1 %v14005_v62  ;;  %v14070_v62 = vld [vmem:[%s15551_s22 + $0x824] ss:$8 sps:$4 sm:$0xff]  }
 0x61a   :  { %5332 = vmatprep.subr.bf16.mxu1 %v14010_v38  ;;  %v14068_v38 = vld [vmem:[%s15551_s22 + $0x820] ss:$8 sps:$4 sm:$0xff]  }
 0x61d   :  { %5333 = vmatpush1.bf16.msra.mxu1 %v14008_v35  ;;  %v3094_v35 = vpack.c.bf16 %v15563_v28, %v16008_v29  ;;  %v14077_v28 = vld [vmem:[%s15551_s22 + $0x850] ss:$8 sps:$4 sm:$0xff]   ;;  %v14082_v29 = vld [vmem:[%s15551_s22 + $0x864] ss:$8 sps:$4 sm:$0xff]  }
 0x61e   :  { %5334 = vmatprep.subr.bf16.mxu1 %v14013_v57  ;;  %v14073_v57 = vld [vmem:[%s15551_s22 + $0x834] ss:$8 sps:$4 sm:$0xff]  }
 0x621   :  { %5335 = vmatpush1.bf16.msra.mxu1 %v14011_v12  ;;  %v14076_v12 = vld [vmem:[%s15551_s22 + $0x844] ss:$8 sps:$4 sm:$0xff]  }
 0x622   :  { %5357 = vmatprep.subr.bf16.mxu1 %v14016_v32  ;;  %v14074_v32 = vld [vmem:[%s15551_s22 + $0x840] ss:$8 sps:$4 sm:$0xff]  }
 0x624   :  { %5337 = vmatmul.mubr.bf16.vlgmr.msra.gmra.mrb[0].mxu1 %v15936_v7  ;;  %v14025_v7 = vld [vmem:[%s15551_s22 + $0x734] ss:$8 sps:$4 sm:$0xff]  }
 0x625   :  { %11747 = vmatprep.mubr.msk.bf16.mxu1 %vm16062_vm13, %v11746_v3  ;;  %5358 = vmatpush1.bf16.msra.mxu1 %v14014_v39  ;;  %v14079_v39 = vld [vmem:[%s15551_s22 + $0x854] ss:$8 sps:$4 sm:$0xff]   ;;  %v14083_v3 = vld [vmem:[%s15551_s22 + $0x870] ss:$8 sps:$4 sm:$0xff]  }
 0x626   :  { %5359 = vmatprep.subr.bf16.mxu1 %v14019_v13  ;;  %v14080_v13 = vld [vmem:[%s15551_s22 + $0x860] ss:$8 sps:$4 sm:$0xff]  }
 0x629   :  { %5360 = vmatpush1.bf16.msra.mxu1 %v14017_v44  ;;  %v14088_v44 = vld [vmem:[%s15551_s22 + $0x884] ss:$8 sps:$4 sm:$0xff]  }
 0x62a   :  { %5361 = vmatprep.subr.bf16.mxu1 %v14022_v19  ;;  %v14086_v19 = vld [vmem:[%s15551_s22 + $0x880] ss:$8 sps:$4 sm:$0xff]  }
 0x62c   :  { %5347 = vmatmul.mubr.bf16.gmra.mrb[4].mxu1 %v16077_v9 }
 0x62d   :  { %5362 = vmatpush1.bf16.msra.mxu1 %v14020_v54  ;;  %5389 = vmatprep.mubr.bf16.mxu1 %v15971_v25  ;;  %v14037_v25 = vld [vmem:[%s15551_s22 + $0x774] ss:$8 sps:$4 sm:$0xff]  }
 0x62e   :  { %5363 = vmatprep.subr.bf16.mxu1 %v14025_v7  ;;  %v14091_v54 = vld [vmem:[%s15551_s22 + $0x894] ss:$8 sps:$4 sm:$0xff]   ;;  %v14089_v7 = vld [vmem:[%s15551_s22 + $0x890] ss:$8 sps:$4 sm:$0xff]  }
 0x631   :  { %5364 = vmatpush1.bf16.msra.mxu1 %v14023_v20  ;;  %v14094_v20 = vld [vmem:[%s15551_s22 + $0x8a4] ss:$8 sps:$4 sm:$0xff]  }
 0x632   :  { %5365 = vmatprep.subr.bf16.mxu1 %v14028_v10  ;;  %v14092_v10 = vld [vmem:[%s15551_s22 + $0x8a0] ss:$8 sps:$4 sm:$0xff]  }
 0x635   :  { %5366 = vmatpush1.bf16.msra.mxu1 %v14026_v16  ;;  %v14097_v16 = vld [vmem:[%s15551_s22 + $0x8b4] ss:$8 sps:$4 sm:$0xff]  }
 0x636   :  { %5367 = vmatprep.subr.bf16.mxu1 %v14031_v15  ;;  %v14095_v15 = vld [vmem:[%s15551_s22 + $0x8b0] ss:$8 sps:$4 sm:$0xff]  }
 0x639   :  { %5368 = vmatpush1.bf16.msra.mxu1 %v14029_v63  ;;  %v14100_v63 = vld [vmem:[%s15551_s22 + $0x8c4] ss:$8 sps:$4 sm:$0xff]  }
 0x63a   :  { %5369 = vmatprep.subr.bf16.mxu1 %v14034_v33  ;;  %v14098_v33 = vld [vmem:[%s15551_s22 + $0x8c0] ss:$8 sps:$4 sm:$0xff]  }
 0x63d   :  { %5370 = vmatpush1.bf16.msra.mxu1 %v14032_v22  ;;  %v14103_v22 = vld [vmem:[%s15551_s22 + $0x8d4] ss:$8 sps:$4 sm:$0xff]  }
 0x63e   :  { %5371 = vmatprep.subr.bf16.mxu1 %v14037_v25  ;;  %v14101_v25 = vld [vmem:[%s15551_s22 + $0x8d0] ss:$8 sps:$4 sm:$0xff]  }
 0x641   :  { %5372 = vmatpush1.bf16.msra.mxu1 %v14035_v26  ;;  %v14106_v26 = vld [vmem:[%s15551_s22 + $0x8e4] ss:$8 sps:$4 sm:$0xff]  }
 0x642   :  { %5373 = vmatprep.subr.bf16.mxu1 %v14040_v30  ;;  %v14104_v30 = vld [vmem:[%s15551_s22 + $0x8e0] ss:$8 sps:$4 sm:$0xff]  }
 0x645   :  { %5374 = vmatpush1.bf16.msra.mxu1 %v14038_v61  ;;  %v14109_v61 = vld [vmem:[%s15551_s22 + $0x8f4] ss:$8 sps:$4 sm:$0xff]  }
 0x646   :  { %5375 = vmatprep.subr.bf16.mxu1 %v14043_v50  ;;  %v14107_v50 = vld [vmem:[%s15551_s22 + $0x8f0] ss:$8 sps:$4 sm:$0xff]  }
 0x649   :  { %5376 = vmatpush1.bf16.msra.mxu1 %v14041_v23  ;;  %v14112_v23 = vld [vmem:[%s15551_s22 + $0x904] ss:$8 sps:$4 sm:$0xff]  }
 0x64a   :  { %5377 = vmatprep.subr.bf16.mxu1 %v14046_v34  ;;  %v14110_v34 = vld [vmem:[%s15551_s22 + $0x900] ss:$8 sps:$4 sm:$0xff]  }
 0x64d   :  { %5378 = vmatpush1.bf16.msra.mxu1 %v14044_v5  ;;  %v14115_v5 = vld [vmem:[%s15551_s22 + $0x914] ss:$8 sps:$4 sm:$0xff]  }
 0x64e   :  { %5379 = vmatprep.subr.bf16.mxu1 %v14049_v11  ;;  %v14113_v11 = vld [vmem:[%s15551_s22 + $0x910] ss:$8 sps:$4 sm:$0xff]  }
 0x651   :  { %5380 = vmatpush1.bf16.msra.mxu1 %v14047_v43  ;;  %v14118_v43 = vld [vmem:[%s15551_s22 + $0x924] ss:$8 sps:$4 sm:$0xff]  }
 0x652   :  { %5381 = vmatprep.subr.bf16.mxu1 %v14052_v56  ;;  %v14116_v56 = vld [vmem:[%s15551_s22 + $0x920] ss:$8 sps:$4 sm:$0xff]  }
 0x655   :  { %5382 = vmatpush1.bf16.msra.mxu1 %v14050_v14  ;;  %v14121_v14 = vld [vmem:[%s15551_s22 + $0x934] ss:$8 sps:$4 sm:$0xff]  }
 0x656   :  { %5383 = vmatprep.subr.bf16.mxu1 %v14055_v1  ;;  %v3092_v1 = vpack.c.bf16 %v17632_v49, %v15749_v2 }
 0x659   :  { %5384 = vmatpush1.bf16.msra.mxu1 %v14053_v8  ;;  %v14124_v8 = vld [vmem:[%s15551_s22 + $0x944] ss:$8 sps:$4 sm:$0xff]  }
 0x65a   :  { %5385 = vmatprep.subr.bf16.mxu1 %v14058_v37  ;;  %v14122_v37 = vld [vmem:[%s15551_s22 + $0x940] ss:$8 sps:$4 sm:$0xff]  }
 0x65d   :  { %5386 = vmatpush1.bf16.msra.mxu1 %v14056_v51  ;;  %v14127_v51 = vld [vmem:[%s15551_s22 + $0x954] ss:$8 sps:$4 sm:$0xff]  }
 0x65e   :  { %5387 = vmatprep.subr.bf16.mxu1 %v14061_v21  ;;  %v14125_v21 = vld [vmem:[%s15551_s22 + $0x950] ss:$8 sps:$4 sm:$0xff]  }
 0x661   :  { %5388 = vmatpush1.bf16.msra.mxu1 %v14059_v60  ;;  %v14128_v60 = vld [vmem:[%s15551_s22 + $0x960] ss:$8 sps:$4 sm:$0xff]  }
 0x662   :  { %5410 = vmatprep.subr.bf16.mxu1 %v14064_v36  ;;  %v14133_v36 = vld [vmem:[%s15551_s22 + $0x974] ss:$8 sps:$4 sm:$0xff]  }
 0x664   :  { %5390 = vmatmul.mubr.bf16.vlgmr.msra.gmra.mrb[0].mxu1 %v15813_v46  ;;  %v14071_v46 = vld [vmem:[%s15551_s22 + $0x830] ss:$8 sps:$4 sm:$0xff]  }
 0x665   :  { %5411 = vmatpush1.bf16.msra.mxu1 %v14062_v53  ;;  %5399 = vmatprep.mubr.bf16.mxu1 %v14721_v27  ;;  %v14131_v53 = vld [vmem:[%s15551_s22 + $0x970] ss:$8 sps:$4 sm:$0xff]  }
 0x666   :  { %5412 = vmatprep.subr.bf16.mxu1 %v14067_v52  ;;  %v14136_v52 = vld [vmem:[%s15551_s22 + $0x984] ss:$8 sps:$4 sm:$0xff]  }
 0x669   :  { %5413 = vmatpush1.bf16.msra.mxu1 %v14065_v24  ;;  %v14134_v24 = vld [vmem:[%s15551_s22 + $0x980] ss:$8 sps:$4 sm:$0xff]  }
 0x66a   :  { %5414 = vmatprep.subr.bf16.mxu1 %v14070_v62  ;;  %v14139_v62 = vld [vmem:[%s15551_s22 + $0x994] ss:$8 sps:$4 sm:$0xff]  }
 0x66c   :  { %5400 = vmatmul.mubr.bf16.gmra.mrb[4].mxu1 %v3094_v35  ;;  %v14142_v35 = vld [vmem:[%s15551_s22 + $0x9a4] ss:$8 sps:$4 sm:$0xff]  }
 0x66d   :  { %5415 = vmatpush1.bf16.msra.mxu1 %v14068_v38  ;;  %5442 = vmatprep.mubr.bf16.mxu1 %v16014_v6  ;;  %v14085_v6 = vld [vmem:[%s15551_s22 + $0x874] ss:$8 sps:$4 sm:$0xff]   ;;  %v14137_v38 = vld [vmem:[%s15551_s22 + $0x990] ss:$8 sps:$4 sm:$0xff]  }
 0x66e   :  { %5416 = vmatprep.subr.bf16.mxu1 %v14073_v57  ;;  %v14140_v57 = vld [vmem:[%s15551_s22 + $0x9a0] ss:$8 sps:$4 sm:$0xff]  }
 0x671   :  { %5417 = vmatpush1.bf16.msra.mxu1 %v14071_v46  ;;  %v14145_v46 = vld [vmem:[%s15551_s22 + $0x9b4] ss:$8 sps:$4 sm:$0xff]  }
 0x672   :  { %5418 = vmatprep.subr.bf16.mxu1 %v14076_v12  ;;  %v14143_v12 = vld [vmem:[%s15551_s22 + $0x9b0] ss:$8 sps:$4 sm:$0xff]  }
 0x675   :  { %5419 = vmatpush1.bf16.msra.mxu1 %v14074_v32  ;;  %v14148_v32 = vld [vmem:[%s16106_s8 + $0x4] ss:$12 sps:$4 sm:$0xff]  }
 0x676   :  { %5420 = vmatprep.subr.bf16.mxu1 %v14079_v39  ;;  %v14146_v39 = vld [vmem:[%s16106_s8] ss:$12 sps:$4 sm:$0xff]  }
 0x679   :  { %5421 = vmatpush1.bf16.msra.mxu1 %v14077_v28  ;;  %v14151_v28 = vld [vmem:[%s16106_s8 + $0x1c] ss:$12 sps:$4 sm:$0xff]  }
 0x67a   :  { %5422 = vmatprep.subr.bf16.mxu1 %v14082_v29  ;;  %v14149_v29 = vld [vmem:[%s16106_s8 + $0x18] ss:$12 sps:$4 sm:$0xff]  }
 0x67d   :  { %5423 = vmatpush1.bf16.msra.mxu1 %v14080_v13  ;;  %v14154_v13 = vld [vmem:[%s16106_s8 + $0x34] ss:$12 sps:$4 sm:$0xff]  }
 0x67e   :  { %5424 = vmatprep.subr.bf16.mxu1 %v14085_v6  ;;  %v14152_v6 = vld [vmem:[%s16106_s8 + $0x30] ss:$12 sps:$4 sm:$0xff]  }
 0x681   :  { %5425 = vmatpush1.bf16.msra.mxu1 %v14083_v3  ;;  %v14157_v3 = vld [vmem:[%s16106_s8 + $0x4c] ss:$12 sps:$4 sm:$0xff]  }
 0x682   :  { %5426 = vmatprep.subr.bf16.mxu1 %v14088_v44  ;;  %v17600_v44 = vmov 0  }
 0x685   :  { %5427 = vmatpush1.bf16.msra.mxu1 %v14086_v19  ;;  %v14160_v19 = vld [vmem:[%s16106_s8 + $0x64] ss:$12 sps:$4 sm:$0xff]  }
 0x686   :  { %5428 = vmatprep.subr.bf16.mxu1 %v14091_v54  ;;  %v14158_v54 = vld [vmem:[%s16106_s8 + $0x60] ss:$12 sps:$4 sm:$0xff]  }
 0x689   :  { %5429 = vmatpush1.bf16.msra.mxu1 %v14089_v7  ;;  %v14163_v7 = vld [vmem:[%s16106_s8 + $0x7c] ss:$12 sps:$4 sm:$0xff]  }
 0x68a   :  { %5430 = vmatprep.subr.bf16.mxu1 %v14094_v20  ;;  %v14161_v20 = vld [vmem:[%s16106_s8 + $0x78] ss:$12 sps:$4 sm:$0xff]  }
 0x68d   :  { %5431 = vmatpush1.bf16.msra.mxu1 %v14092_v10  ;;  %v14166_v10 = vld [vmem:[%s16106_s8 + $0x94] ss:$12 sps:$4 sm:$0xff]  }
 0x68e   :  { %5432 = vmatprep.subr.bf16.mxu1 %v14097_v16  ;;  %v14164_v16 = vld [vmem:[%s16106_s8 + $0x90] ss:$12 sps:$4 sm:$0xff]  }
 0x691   :  { %5433 = vmatpush1.bf16.msra.mxu1 %v14095_v15  ;;  %v14169_v15 = vld [vmem:[%s16106_s8 + $0xac] ss:$12 sps:$4 sm:$0xff]  }
 0x692   :  { %5434 = vmatprep.subr.bf16.mxu1 %v14100_v63  ;;  %v14167_v63 = vld [vmem:[%s16106_s8 + $0xa8] ss:$12 sps:$4 sm:$0xff]  }
 0x695   :  { %5435 = vmatpush1.bf16.msra.mxu1 %v14098_v33  ;;  %v14170_v33 = vld [vmem:[%s16106_s8 + $0x8] ss:$12 sps:$4 sm:$0xff]  }
 0x696   :  { %5436 = vmatprep.subr.bf16.mxu1 %v14103_v22  ;;  %v14171_v22 = vld [vmem:[%s16106_s8 + $0x20] ss:$12 sps:$4 sm:$0xff]  }
 0x699   :  { %5437 = vmatpush1.bf16.msra.mxu1 %v14101_v25  ;;  %v17637_v25 = vld [vmem:[#allocation3_spill] sm:$0xff] }
 0x69a   :  { %5438 = vmatprep.subr.bf16.mxu1 %v14106_v26  ;;  %v14172_v26 = vld [vmem:[%s16106_s8 + $0x38] ss:$12 sps:$4 sm:$0xff]  }
 0x69d   :  { %5439 = vmatpush1.bf16.msra.mxu1 %v14104_v30  ;;  %v14173_v30 = vld [vmem:[%s16106_s8 + $0x50] ss:$12 sps:$4 sm:$0xff]  }
 0x69e   :  { %5440 = vmatprep.subr.bf16.mxu1 %v14109_v61  ;;  %v17638_v61 = vld [vmem:[#allocation2_spill] sm:$0xff] }
 0x6a1   :  { %5441 = vmatpush1.bf16.msra.mxu1 %v14107_v50  ;;  %v14174_v50 = vld [vmem:[%s16106_s8 + $0x68] ss:$12 sps:$4 sm:$0xff]  }
 0x6a2   :  { %5463 = vmatprep.subr.bf16.mxu1 %v14112_v23  ;;  %v14175_v23 = vld [vmem:[%s16106_s8 + $0x80] ss:$12 sps:$4 sm:$0xff]  }
 0x6a4   :  { %5443 = vmatmul.mubr.bf16.vlgmr.msra.gmra.mrb[0].mxu1 %v16027_v47  ;;  %v14119_v47 = vld [vmem:[%s15551_s22 + $0x930] ss:$8 sps:$4 sm:$0xff]  }
 0x6a5   :  { %5452 = vmatprep.mubr.bf16.mxu1 %v15568_v4  ;;  %5464 = vmatpush1.bf16.msra.mxu1 %v14110_v34  ;;  %v14176_v34 = vld [vmem:[%s16106_s8 + $0x98] ss:$12 sps:$4 sm:$0xff]  }
 0x6a6   :  { %5465 = vmatprep.subr.bf16.mxu1 %v14115_v5  ;;  %v14177_v5 = vld [vmem:[%s16106_s8 + $0xb0] ss:$12 sps:$4 sm:$0xff]  }
 0x6a9   :  { %5466 = vmatpush1.bf16.msra.mxu1 %v14113_v11  ;;  %v14180_v11 = vld [vmem:[%s16147_s12 + $0x4] ss:$8 sps:$4 sm:$0xff]  }
 0x6aa   :  { %5467 = vmatprep.subr.bf16.mxu1 %v14118_v43  ;;  %v14178_v43 = vld [vmem:[%s16147_s12] ss:$8 sps:$4 sm:$0xff]  }
 0x6ac   :  { %11752 = vmatmul.mubr.msk.bf16.gmra.mrb[4].mxu1 %vm15575_vm12, %v15568_v4  ;;  %v14130_v4 = vld [vmem:[%s15551_s22 + $0x964] ss:$8 sps:$4 sm:$0xff]   ;;  %s14729_s22 = smov 14  }
 0x6ad   :  { %5468 = vmatpush1.bf16.msra.mxu1 %v14116_v56  ;;  %11753 = vmatprep.mubr.msk.bf16.mxu1 %vm269_vm3, %v3092_v1  ;;  %v14183_v56 = vld [vmem:[%s16147_s12 + $0x14] ss:$8 sps:$4 sm:$0xff]   ;;  %v14186_v1 = vld [vmem:[%s16147_s12 + $0x24] ss:$8 sps:$4 sm:$0xff]   ;;  %s16260_s25 = sld [smem:[%s17588_s0 + %s14729_s22]]   ;;  %s14745_s22 = smov 29  }
 0x6ae   :  { %5469 = vmatprep.subr.bf16.mxu1 %v14121_v14  ;;  %v14181_v14 = vld [vmem:[%s16147_s12 + $0x10] ss:$8 sps:$4 sm:$0xff]  }
 0x6b1   :  { %5470 = vmatpush1.bf16.msra.mxu1 %v14119_v47  ;;  %v14184_v47 = vld [vmem:[%s16147_s12 + $0x20] ss:$8 sps:$4 sm:$0xff]  }
 0x6b2   :  { %5471 = vmatprep.subr.bf16.mxu1 %v14124_v8  ;;  %v14189_v8 = vld [vmem:[%s16147_s12 + $0x34] ss:$8 sps:$4 sm:$0xff]  }
 0x6b5   :  { %5472 = vmatpush1.bf16.msra.mxu1 %v14122_v37  ;;  %v14187_v37 = vld [vmem:[%s16147_s12 + $0x30] ss:$8 sps:$4 sm:$0xff]  }
 0x6b6   :  { %5473 = vmatprep.subr.bf16.mxu1 %v14127_v51  ;;  %v14192_v51 = vld [vmem:[%s16147_s12 + $0x44] ss:$8 sps:$4 sm:$0xff]  }
 0x6b9   :  { %5474 = vmatpush1.bf16.msra.mxu1 %v14125_v21  ;;  %v14190_v21 = vld [vmem:[%s16147_s12 + $0x40] ss:$8 sps:$4 sm:$0xff]  }
 0x6ba   :  { %5475 = vmatprep.subr.bf16.mxu1 %v14130_v4  ;;  %v14195_v4 = vld [vmem:[%s16147_s12 + $0x54] ss:$8 sps:$4 sm:$0xff]  }
 0x6bd   :  { %5476 = vmatpush1.bf16.msra.mxu1 %v14128_v60  ;;  %v14193_v60 = vld [vmem:[%s16147_s12 + $0x50] ss:$8 sps:$4 sm:$0xff]  }
 0x6be   :  { %5477 = vmatprep.subr.bf16.mxu1 %v14133_v36  ;;  %v14198_v36 = vld [vmem:[%s16147_s12 + $0x64] ss:$8 sps:$4 sm:$0xff]  }
 0x6c1   :  { %5478 = vmatpush1.bf16.msra.mxu1 %v14131_v53  ;;  %v14196_v53 = vld [vmem:[%s16147_s12 + $0x60] ss:$8 sps:$4 sm:$0xff]  }
 0x6c2   :  { %5479 = vmatprep.subr.bf16.mxu1 %v14136_v52  ;;  %v14201_v52 = vld [vmem:[%s16147_s12 + $0x74] ss:$8 sps:$4 sm:$0xff]  }
 0x6c5   :  { %5480 = vmatpush1.bf16.msra.mxu1 %v14134_v24  ;;  %v14199_v24 = vld [vmem:[%s16147_s12 + $0x70] ss:$8 sps:$4 sm:$0xff]   ;;  %s14742_s12 = smov 25  }
 0x6c6   :  { %5481 = vmatprep.subr.bf16.mxu1 %v14139_v62  ;;  %v7463_v62 = vld [vmem:[%s11050_s16] sm:$0xff]  ;;  %s11074_s15 = sld [smem:[%s17588_s0 + %s14742_s12]]  }
 0x6c9   :  { %5482 = vmatpush1.bf16.msra.mxu1 %v14137_v38  ;;  %v7464_v38 = vld [vmem:[%s11050_s16 + $0x8] sm:$0xff] }
 0x6ca   :  { %5483 = vmatprep.subr.bf16.mxu1 %v14142_v35  ;;  %v7467_v35 = vpack.c.bf16 %v7464_v38, %v7463_v62 }
 0x6cd   :  { %5484 = vmatpush1.bf16.msra.mxu1 %v14140_v57  ;;  %v7465_v57 = vld [vmem:[%s11050_s16 + $0x10] sm:$0xff] }
 0x6ce   :  { %5485 = vmatprep.subr.bf16.mxu1 %v14145_v46  ;;  %v7466_v46 = vld [vmem:[%s11050_s16 + $0x18] sm:$0xff]  ;;  %s14743_s16 = smov 24  }
 0x6cf   :  { %s11073_s19 = sld [smem:[%s17588_s0 + %s14743_s16]]  }
 0x6d1   :  { %5486 = vmatpush1.bf16.msra.mxu1 %v14143_v12  ;;  %v7468_v12 = vpack.c.bf16 %v7466_v46, %v7465_v57  ;;  %v14258_v57 = vld [vmem:[%s16243_s21 + $0xa4] ss:$8 sps:$4 sm:$0xff]  }
 0x6d2   :  { %7361 = vmatprep.subr.bf16.mxu1 %v14148_v32  ;;  %v16245_v32 = vpop.permute.xlu1 %5654 }
 0x6d4   :  { %5496 = vmatmul.mubr.bf16.vlgmr.msra.gmra.mrb[0].mxu1 %v16077_v9  ;;  %v14155_v9 = vld [vmem:[%s16106_s8 + $0x48] ss:$12 sps:$4 sm:$0xff]   ;;  %s14741_s8 = smov 23  }
 0x6d5   :  { %7362 = vmatpush1.bf16.msra.mxu1 %v14146_v39  ;;  %5505 = vmatprep.mubr.bf16.mxu1 %v14721_v27  ;;  %v16249_v39 = vpack.c.bf16 %v16245_v32, %v16245_v32  ;;  %s11072_s11 = sld [smem:[%s17588_s0 + %s14741_s8]]  }
 0x6d6   :  { %7363 = vmatprep.subr.bf16.mxu1 %v14151_v28  ;;  %v14202_v28 = vld [vmem:[%s16243_s21] ss:$8 sps:$4 sm:$0xff]  }
 0x6d7   :  { %11929 = vmatprep.mubr.msk.bf16.mxu0 %vm15575_vm12, %v16249_v39 }
 0x6d9   :  { %7364 = vmatpush1.bf16.msra.mxu1 %v14149_v29  ;;  %v14204_v29 = vld [vmem:[%s16243_s21 + $0x4] ss:$8 sps:$4 sm:$0xff]  }
 0x6da   :  { %7365 = vmatprep.subr.bf16.mxu1 %v14154_v13  ;;  %v14207_v13 = vld [vmem:[%s16243_s21 + $0x14] ss:$8 sps:$4 sm:$0xff]   ;;  %6730 = vmatprep.subr.bf16.mxu0 %v14204_v29  ;;  %v14256_v29 = vld [vmem:[%s16243_s21 + $0xa0] ss:$8 sps:$4 sm:$0xff]  }
 0x6db   :  { %6731 = vmatpush1.bf16.msra.mxu0 %v14202_v28 }
 0x6dc   :  { %5506 = vmatmul.mubr.bf16.gmra.mrb[4].mxu1 %v14721_v27  ;;  %6732 = vmatprep.subr.bf16.mxu0 %v14207_v13 }
 0x6dd   :  { %7366 = vmatpush1.bf16.msra.mxu1 %v14152_v6  ;;  %7393 = vmatprep.mubr.bf16.mxu1 %v17600_v44  ;;  %v14205_v6 = vld [vmem:[%s16243_s21 + $0x10] ss:$8 sps:$4 sm:$0xff]  }
 0x6de   :  { %7367 = vmatprep.subr.bf16.mxu1 %v14157_v3  ;;  %v14208_v3 = vld [vmem:[%s16243_s21 + $0x20] ss:$8 sps:$4 sm:$0xff]  }
 0x6df   :  { %6733 = vmatpush1.bf16.msra.mxu0 %v14205_v6 }
 0x6e0   :  { %6734 = vmatprep.subr.bf16.mxu0 %v14210_v18 }
 0x6e1   :  { %7368 = vmatpush1.bf16.msra.mxu1 %v14155_v9  ;;  %v14216_v9 = vld [vmem:[%s16243_s21 + $0x34] ss:$8 sps:$4 sm:$0xff]  }
 0x6e2   :  { %7369 = vmatprep.subr.bf16.mxu1 %v14160_v19  ;;  %v14211_v19 = vld [vmem:[%s16260_s25] ss:$8 sps:$4 sm:$0xff]  }
 0x6e3   :  { %6735 = vmatpush1.bf16.msra.mxu0 %v14208_v3  ;;  %v14261_v3 = vld [vmem:[%s16260_s25 + $0x84] ss:$8 sps:$4 sm:$0xff]  }
 0x6e4   :  { %6736 = vmatprep.subr.bf16.mxu0 %v14216_v9 }
 0x6e5   :  { %7370 = vmatpush1.bf16.msra.mxu1 %v14158_v54  ;;  %v14213_v54 = vld [vmem:[%s16260_s25 + $0x4] ss:$8 sps:$4 sm:$0xff]  }
 0x6e6   :  { %7371 = vmatprep.subr.bf16.mxu1 %v14163_v7  ;;  %v14214_v7 = vld [vmem:[%s16243_s21 + $0x30] ss:$8 sps:$4 sm:$0xff]  }
 0x6e7   :  { %6737 = vmatpush1.bf16.msra.mxu0 %v14214_v7  ;;  %v14264_v7 = vld [vmem:[%s16243_s21 + $0xb4] ss:$8 sps:$4 sm:$0xff]  }
 0x6e9   :  { %7372 = vmatpush1.bf16.msra.mxu1 %v14161_v20  ;;  %v14219_v20 = vld [vmem:[%s16260_s25 + $0x14] ss:$8 sps:$4 sm:$0xff]  }
 0x6ea   :  { %7373 = vmatprep.subr.bf16.mxu1 %v14166_v10  ;;  %v14222_v10 = vld [vmem:[%s16243_s21 + $0x44] ss:$8 sps:$4 sm:$0xff]  }
 0x6eb   :  { %6738 = vmatprep.subr.bf16.mxu0 %v14222_v10 }
 0x6ed   :  { %7374 = vmatpush1.bf16.msra.mxu1 %v14164_v16  ;;  %v14217_v16 = vld [vmem:[%s16260_s25 + $0x10] ss:$8 sps:$4 sm:$0xff]  }
 0x6ee   :  { %7375 = vmatprep.subr.bf16.mxu1 %v14169_v15  ;;  %v14225_v15 = vld [vmem:[%s16260_s25 + $0x24] ss:$8 sps:$4 sm:$0xff]  }
 0x6f1   :  { %7376 = vmatpush1.bf16.msra.mxu1 %v14167_v63  ;;  %v14220_v63 = vld [vmem:[%s16243_s21 + $0x40] ss:$8 sps:$4 sm:$0xff]  }
 0x6f2   :  { %12416 = vmatprep.subr.bf16.mxu1 %v14170_v33  ;;  %6739 = vmatpush1.bf16.msra.mxu0 %v14220_v63 }
 0x6f4   :  { %7394 = vmatmul.mubr.bf16.vlgmr.msra.gmra.mrb[8].mxu1 %v17637_v25 }
 0x6f5   :  { %12417 = vmatpush3.bf16.msra.mxu1 %v14170_v33  ;;  %7403 = vmatprep.mubr.bf16.mxu1 %v17600_v44  ;;  %v14223_v33 = vld [vmem:[%s16260_s25 + $0x20] ss:$8 sps:$4 sm:$0xff]  }
 0x6f6   :  { %12418 = vmatprep.subr.bf16.mxu1 %v14171_v22 }
 0x6f9   :  { %12419 = vmatpush3.bf16.msra.mxu1 %v14171_v22  ;;  %v14228_v22 = vld [vmem:[%s16243_s21 + $0x54] ss:$8 sps:$4 sm:$0xff]  }
 0x6fa   :  { %12420 = vmatprep.subr.bf16.mxu1 %v14172_v26  ;;  %6740 = vmatprep.subr.bf16.mxu0 %v14228_v22  ;;  %v14267_v22 = vld [vmem:[%s16260_s25 + $0x94] ss:$8 sps:$4 sm:$0xff]  }
 0x6fc   :  { %7404 = vmatmul.mubr.bf16.gmra.mrb[12].mxu1 %v17638_v61 }
 0x6fd   :  { %12421 = vmatpush3.bf16.msra.mxu1 %v14172_v26  ;;  %12432 = vmatprep.mubr.bf16.mxu1 %v17637_v25  ;;  %v14226_v25 = vld [vmem:[%s16243_s21 + $0x50] ss:$8 sps:$4 sm:$0xff]   ;;  %v14231_v26 = vld [vmem:[%s16260_s25 + $0x34] ss:$8 sps:$4 sm:$0xff]  }
 0x6fe   :  { %12422 = vmatprep.subr.bf16.mxu1 %v14173_v30  ;;  %6741 = vmatpush1.bf16.msra.mxu0 %v14226_v25 }
 0x701   :  { %12423 = vmatpush3.bf16.msra.mxu1 %v14173_v30  ;;  %v14229_v30 = vld [vmem:[%s16260_s25 + $0x30] ss:$8 sps:$4 sm:$0xff]  }
 0x702   :  { %12424 = vmatprep.subr.bf16.mxu1 %v14174_v50 }
 0x705   :  { %12425 = vmatpush3.bf16.msra.mxu1 %v14174_v50  ;;  %v14232_v50 = vld [vmem:[%s16243_s21 + $0x60] ss:$8 sps:$4 sm:$0xff]  }
 0x706   :  { %12426 = vmatprep.subr.bf16.mxu1 %v14175_v23 }
 0x709   :  { %12427 = vmatpush3.bf16.msra.mxu1 %v14175_v23  ;;  %v14237_v23 = vld [vmem:[%s16260_s25 + $0x44] ss:$8 sps:$4 sm:$0xff]  }
 0x70a   :  { %12428 = vmatprep.subr.bf16.mxu1 %v14176_v34 }
 0x70d   :  { %12429 = vmatpush3.bf16.msra.mxu1 %v14176_v34  ;;  %v14235_v34 = vld [vmem:[%s16260_s25 + $0x40] ss:$8 sps:$4 sm:$0xff]  }
 0x70e   :  { %12430 = vmatprep.subr.bf16.mxu1 %v14177_v5 }
 0x711   :  { %12431 = vmatpush3.bf16.msra.mxu1 %v14177_v5  ;;  %v14240_v5 = vld [vmem:[%s16243_s21 + $0x74] ss:$8 sps:$4 sm:$0xff]  }
 0x712   :  { %7577 = vmatprep.subr.bf16.mxu1 %v14180_v11  ;;  %v14238_v11 = vld [vmem:[%s16243_s21 + $0x70] ss:$8 sps:$4 sm:$0xff]  }
 0x714   :  { %12433 = vmatmul.mubr.bf16.vlgmr.msra.gmra.mrb[16].mxu1 %v17638_v61  ;;  %v14234_v61 = vld [vmem:[%s16243_s21 + $0x64] ss:$8 sps:$4 sm:$0xff]  }
 0x715   :  { %7578 = vmatpush1.bf16.msra.mxu1 %v14178_v43  ;;  %7609 = vmatprep.mubr.bf16.mxu1 %v17600_v44  ;;  %v11413_v43 = vld [vmem:[%s15589_s26 + $0x2] sm:$0x3] }
 0x716   :  { %7579 = vmatprep.subr.bf16.mxu1 %v14183_v56  ;;  %6742 = vmatprep.subr.bf16.mxu0 %v14234_v61  ;;  %v14243_v56 = vld [vmem:[%s16260_s25 + $0x54] ss:$8 sps:$4 sm:$0xff]   ;;  %v14270_v61 = vld [vmem:[%s16243_s21 + $0xc4] ss:$8 sps:$4 sm:$0xff]  }
 0x717   :  { %6743 = vmatpush1.bf16.msra.mxu0 %v14232_v50 }
 0x718   :  { %6744 = vmatprep.subr.bf16.mxu0 %v14240_v5 }
 0x719   :  { %7580 = vmatpush1.bf16.msra.mxu1 %v14181_v14  ;;  %v14241_v14 = vld [vmem:[%s16260_s25 + $0x50] ss:$8 sps:$4 sm:$0xff]  }
 0x71a   :  { %7581 = vmatprep.subr.bf16.mxu1 %v14186_v1  ;;  %v14246_v1 = vld [vmem:[%s16243_s21 + $0x84] ss:$8 sps:$4 sm:$0xff]  }
 0x71b   :  { %6745 = vmatpush1.bf16.msra.mxu0 %v14238_v11  ;;  %v14268_v11 = vld [vmem:[%s16243_s21 + $0xc0] ss:$8 sps:$4 sm:$0xff]  }
 0x71c   :  { %6746 = vmatprep.subr.bf16.mxu0 %v14246_v1  ;;  %v14273_v1 = vld [vmem:[%s16260_s25 + $0xa4] ss:$8 sps:$4 sm:$0xff]  }
 0x71d   :  { %7582 = vmatpush1.bf16.msra.mxu1 %v14184_v47  ;;  %v14244_v47 = vld [vmem:[%s16243_s21 + $0x80] ss:$8 sps:$4 sm:$0xff]  }
 0x71e   :  { %7583 = vmatprep.subr.bf16.mxu1 %v14189_v8  ;;  %v3413_v8 = vrot.slane %v11413_v43, %v14806_v40 }
 0x71f   :  { %6747 = vmatpush1.bf16.msra.mxu0 %v14244_v47 }
 0x721   :  { %7584 = vmatpush1.bf16.msra.mxu1 %v14187_v37  ;;  %v14249_v37 = vld [vmem:[%s16260_s25 + $0x64] ss:$8 sps:$4 sm:$0xff]  }
 0x722   :  { %7585 = vmatprep.subr.bf16.mxu1 %v14192_v51  ;;  %v3417_v51 = vrot.slane %v11413_v43, %v14809_v41 }
 0x725   :  { %7586 = vmatpush1.bf16.msra.mxu1 %v14190_v21  ;;  %v14247_v21 = vld [vmem:[%s16260_s25 + $0x60] ss:$8 sps:$4 sm:$0xff]  }
 0x726   :  { %7587 = vmatprep.subr.bf16.mxu1 %v14195_v4  ;;  %v14252_v4 = vld [vmem:[%s16243_s21 + $0x94] ss:$8 sps:$4 sm:$0xff]  }
 0x727   :  { %6748 = vmatprep.subr.bf16.mxu0 %v14252_v4  ;;  %v14276_v4 = vld [vmem:[%s16243_s21 + $0xd4] ss:$8 sps:$4 sm:$0xff]  }
 0x729   :  { %7588 = vmatpush1.bf16.msra.mxu1 %v14193_v60  ;;  %v14250_v60 = vld [vmem:[%s16243_s21 + $0x90] ss:$8 sps:$4 sm:$0xff]  }
 0x72a   :  { %7589 = vmatprep.subr.bf16.mxu1 %v14198_v36  ;;  %6749 = vmatpush1.bf16.msra.mxu0 %v14250_v60 }
 0x72b   :  { %6750 = vmatprep.subr.bf16.mxu0 %v14258_v57 }
 0x72d   :  { %7590 = vmatpush1.bf16.msra.mxu1 %v14196_v53 }
 0x72e   :  { %7591 = vmatprep.subr.bf16.mxu1 %v14201_v52  ;;  %6751 = vmatpush1.bf16.msra.mxu0 %v14256_v29  ;;  %v14283_v29 = vld [vmem:[%s16243_s21 + $0xf0] ss:$8 sps:$4 sm:$0xff]  }
 0x72f   :  { %6752 = vmatprep.subr.bf16.mxu0 %v14264_v7  ;;  %v14291_v7 = vld [vmem:[%s16243_s21 + $0x114] ss:$8 sps:$4 sm:$0xff]  }
 0x731   :  { %7592 = vmatpush1.bf16.msra.mxu1 %v14199_v24  ;;  %v14255_v24 = vld [vmem:[%s16260_s25 + $0x74] ss:$8 sps:$4 sm:$0xff]  }
 0x732   :  { %7852 = vmatprep.subr.bf16.mxu1 %v14213_v54  ;;  %v14259_v54 = vld [vmem:[%s16260_s25 + $0x80] ss:$8 sps:$4 sm:$0xff]  }
 0x734   :  { %7610 = vmatmul.mubr.bf16.vlgmr.msra.gmra.mrb[20].mxu1 %v7467_v35  ;;  %v14253_v35 = vld [vmem:[%s16260_s25 + $0x70] ss:$8 sps:$4 sm:$0xff]  }
 0x735   :  { %7619 = vmatprep.mubr.bf16.mxu1 %v17600_v44  ;;  %7853 = vmatpush1.bf16.msra.mxu1 %v14211_v19 }
 0x736   :  { %7854 = vmatprep.subr.bf16.mxu1 %v14219_v20 }
 0x739   :  { %7855 = vmatpush1.bf16.msra.mxu1 %v14217_v16  ;;  %v14262_v16 = vld [vmem:[%s16243_s21 + $0xb0] ss:$8 sps:$4 sm:$0xff]  }
 0x73a   :  { %7856 = vmatprep.subr.bf16.mxu1 %v14225_v15  ;;  %6753 = vmatpush1.bf16.msra.mxu0 %v14262_v16 }
 0x73b   :  { %6754 = vmatprep.subr.bf16.mxu0 %v14270_v61 }
 0x73c   :  { %7620 = vmatmul.mubr.bf16.gmra.mrb[24].mxu1 %v7468_v12 }
 0x73d   :  { %7857 = vmatpush1.bf16.msra.mxu1 %v14223_v33 }
 0x73e   :  { %7858 = vmatprep.subr.bf16.mxu1 %v14231_v26  ;;  %6755 = vmatpush1.bf16.msra.mxu0 %v14268_v11 }
 0x73f   :  { %6756 = vmatprep.subr.bf16.mxu0 %v14276_v4 }
 0x741   :  { %7859 = vmatpush1.bf16.msra.mxu1 %v14229_v30  ;;  %v14265_v30 = vld [vmem:[%s16260_s25 + $0x90] ss:$8 sps:$4 sm:$0xff]  }
 0x742   :  { %7860 = vmatprep.subr.bf16.mxu1 %v14237_v23 }
 0x745   :  { %7861 = vmatpush1.bf16.msra.mxu1 %v14235_v34 }
 0x746   :  { %7862 = vmatprep.subr.bf16.mxu1 %v14243_v56 }
 0x749   :  { %7863 = vmatpush1.bf16.msra.mxu1 %v14241_v14  ;;  %v14271_v14 = vld [vmem:[%s16260_s25 + $0xa0] ss:$8 sps:$4 sm:$0xff]  }
 0x74a   :  { %7864 = vmatprep.subr.bf16.mxu1 %v14249_v37 }
 0x74d   :  { %7865 = vmatpush1.bf16.msra.mxu1 %v14247_v21  ;;  %v14274_v21 = vld [vmem:[%s16243_s21 + $0xd0] ss:$8 sps:$4 sm:$0xff]  }
 0x74e   :  { %7866 = vmatprep.subr.bf16.mxu1 %v14255_v24  ;;  %6757 = vmatpush1.bf16.msra.mxu0 %v14274_v21  ;;  %v14300_v21 = vld [vmem:[%s16243_s21 + $0x144] ss:$8 sps:$4 sm:$0xff]  }
 0x751   :  { %7867 = vmatpush1.bf16.msra.mxu1 %v14253_v35  ;;  %v14280_v35 = vld [vmem:[%s16243_s21 + $0xe0] ss:$8 sps:$4 sm:$0xff]  }
 0x752   :  { %7868 = vmatprep.subr.bf16.mxu1 %v14261_v3 }
 0x755   :  { %7869 = vmatpush1.bf16.msra.mxu1 %v14259_v54  ;;  %v14286_v54 = vld [vmem:[%s16243_s21 + $0x100] ss:$8 sps:$4 sm:$0xff]  }
 0x756   :  { %7870 = vmatprep.subr.bf16.mxu1 %v14267_v22 }
 0x759   :  { %7871 = vmatpush1.bf16.msra.mxu1 %v14265_v30  ;;  %v14297_v30 = vld [vmem:[%s16243_s21 + $0x134] ss:$8 sps:$4 sm:$0xff]  }
 0x75a   :  { %7872 = vmatprep.subr.bf16.mxu1 %v14273_v1 }
 0x75d   :  { %7873 = vmatpush1.bf16.msra.mxu1 %v14271_v14 }
 0x7a7   :  { %v5497_v36 = vpop.f32.mrb[0].mxu1 }
 0x7a8   :  { %v12880_v53 = vadd.f32 %v5497_v36, %v3413_v8  ;;  %v5499_v52 = vpop.f32.mrb[1].mxu1  ;;  %v14279_v36 = vld [vmem:[%s16260_s25 + $0xb4] ss:$8 sps:$4 sm:$0xff]  }
 0x7a9   :  { %v12881_v62 = vadd.f32 %v5499_v52, %v3417_v51  ;;  %v5501_v38 = vpop.f32.mrb[2].mxu1  ;;  %v14282_v52 = vld [vmem:[%s16243_s21 + $0xe4] ss:$8 sps:$4 sm:$0xff]   ;;  %7874 = vmatprep.subr.bf16.mxu1 %v14279_v36 }
 0x7aa   :  { %v5516_v46 = vmax.f32 %v12880_v53, 0.0  ;;  %v12882_v12 = vadd.f32 %v5501_v38, %v3413_v8  ;;  %v5503_v28 = vpop.f32.mrb[3].mxu1  ;;  %6758 = vmatprep.subr.bf16.mxu0 %v14282_v52  ;;  %v14298_v52 = vld [vmem:[%s16243_s21 + $0x140] ss:$8 sps:$4 sm:$0xff]  }
 0x7ab   :  { %v5517_v13 = vmax.f32 %v12881_v62, 0.0  ;;  %v12883_v6 = vadd.f32 %v5503_v28, %v3417_v51  ;;  %v14277_v62 = vld [vmem:[%s16260_s25 + $0xb0] ss:$8 sps:$4 sm:$0xff]   ;;  %6759 = vmatpush1.bf16.msra.mxu0 %v14280_v35  ;;  %s17525_s25 = sld [smem:[%s17588_s0 + %s14745_s22]]  }
 0x7ac   :  { %v5518_v18 = vmax.f32 %v12882_v12, 0.0  ;;  %v16307_v20 = vadd.f32 %v5516_v46, %v15722_v55  ;;  %7875 = vmatpush1.bf16.msra.mxu1 %v14277_v62 }
 0x7ad   :  { %v16302_v9 = vadd.f32 %v5517_v13, %v15739_v17  ;;  %v5519_v19 = vmax.f32 %v12883_v6, 0.0  ;;  %v14288_v13 = vld [vmem:[%s16243_s21 + $0x104] ss:$8 sps:$4 sm:$0xff]  }
 0x7ae   :  { %v16310_v10 = vadd.f32 %v5518_v18, %v15724_v48 }
 0x7af   :  { %v16314_v15 = vadd.f32 %v5519_v19, %v15741_v58  ;;  %v5507_v63 = vpop.f32.mrb[4].mxu1  ;;  %v5541_v17 = vsel %vm269_vm3, %v16302_v9, 0.0 }
 0x7b0   :  { %v5532_v55 = vadd.f32 %v16310_v10, %v16307_v20  ;;  %v12884_v33 = vadd.f32 %v5507_v63, %v3413_v8  ;;  %v5509_v48 = vpop.f32.mrb[5].mxu1 }
 0x7b1   :  { %v5542_v25 = vsel %vm269_vm3, %v16314_v15, 0.0  ;;  %v12885_v58 = vadd.f32 %v5509_v48, %v3417_v51  ;;  %v5511_v26 = vpop.f32.mrb[6].mxu1 }
 0x7b2   :  { %v5543_v50 = vadd.f32 %v5542_v25, %v5541_v17  ;;  %v5520_v23 = vmax.f32 %v12884_v33, 0.0  ;;  %v12886_v34 = vadd.f32 %v5511_v26, %v3413_v8  ;;  %v5513_v5 = vpop.f32.mrb[7].mxu1  ;;  %v14289_v17 = vld [vmem:[%s16243_s21 + $0x110] ss:$8 sps:$4 sm:$0xff]  }
 0x7b3   :  { %v5521_v43 = vmax.f32 %v12885_v58, 0.0  ;;  %v12887_v56 = vadd.f32 %v5513_v5, %v3417_v51  ;;  %v14292_v58 = vld [vmem:[%s16243_s21 + $0x120] ss:$8 sps:$4 sm:$0xff]  }
 0x7b4   :  { %v5528_v47 = vadd.f32 %v5520_v23, %v15733_v42  ;;  %v5522_v37 = vmax.f32 %v12886_v34, 0.0 }
 0x7b5   :  { %v16332_v8 = vadd.f32 %v5521_v43, %v15744_v31  ;;  %v5523_v60 = vmax.f32 %v12887_v56, 0.0 }
 0x7b6   :  { %v5533_v51 = vadd.f32 %v5532_v55, %v5528_v47  ;;  %v5530_v53 = vadd.f32 %v5522_v37, %v15747_v0  ;;  %v14285_v0 = vld [vmem:[%s16243_s21 + $0xf4] ss:$8 sps:$4 sm:$0xff]   ;;  %v14294_v55 = vld [vmem:[%s16243_s21 + $0x124] ss:$8 sps:$4 sm:$0xff]  }
 0x7b7   :  { %v5544_v42 = vsel %vm269_vm3, %v16332_v8, 0.0  ;;  %v5531_v24 = vadd.f32 %v5523_v60, %v15749_v2  ;;  %6760 = vmatprep.subr.bf16.mxu0 %v14285_v0 }
 0x7b8   :  { %v5545_v31 = vadd.f32 %v5544_v42, %v5543_v50  ;;  %v5534_v38 = vadd.f32 %v5533_v51, %v5530_v53  ;;  %6761 = vmatpush1.bf16.msra.mxu0 %v14283_v29 }
 0x7b9   :  { %v5546_v57 = vsel %vm269_vm3, %v5531_v24, 0.0  ;;  %6783 = vmatprep.subr.bf16.mxu0 %v14288_v13  ;;  %v14301_v13 = vld [vmem:[%s16243_s21 + $0x150] ss:$8 sps:$4 sm:$0xff]  }
 0x7ba   :  { %v5535_v46 = vrot.slane %v5534_v38, 4  ;;  %v5547_v12 = vadd.f32 %v5546_v57, %v5545_v31 }
 0x7bb   :  { %6763 = vmatmul.mubr.bf16.vlgmr.msra.gmra.mrb[8].mxu0 %v14721_v27 }
 0x7bc   :  { %v5536_v28 = vadd.f32 %v5535_v46, %v5534_v38  ;;  %v5548_v2 = vrot.slane %v5547_v12, 4  ;;  %6784 = vmatpush1.bf16.msra.mxu0 %v14286_v54  ;;  %v14303_v38 = vld [vmem:[%s16243_s21 + $0x154] ss:$8 sps:$4 sm:$0xff]  }
 0x7bd   :  { %6785 = vmatprep.subr.bf16.mxu0 %v14291_v7 }
 0x7be   :  { %v5537_v6 = vrot.slane %v5536_v28, 2  ;;  %v5549_v18 = vadd.f32 %v5548_v2, %v5547_v12 }
 0x7c0   :  { %v5538_v3 = vadd.f32 %v5537_v6, %v5536_v28  ;;  %v5550_v19 = vrot.slane %v5549_v18, 2  ;;  %6786 = vmatpush1.bf16.msra.mxu0 %v14289_v17  ;;  %v14304_v17 = vld [vmem:[%s16243_s21 + $0x160] ss:$8 sps:$4 sm:$0xff]  }
 0x7c1   :  { %6787 = vmatprep.subr.bf16.mxu0 %v14294_v55  ;;  %v14309_v55 = vld [vmem:[%s16243_s21 + $0x174] ss:$8 sps:$4 sm:$0xff]  }
 0x7c2   :  { %v5539_v16 = vrot.slane %v5538_v3, 1  ;;  %v5551_v63 = vadd.f32 %v5550_v19, %v5549_v18  ;;  %v14306_v18 = vld [vmem:[%s16243_s21 + $0x164] ss:$8 sps:$4 sm:$0xff]  }
 0x7c4   :  { %v5540_v33 = vadd.f32 %v5539_v16, %v5538_v3  ;;  %v5552_v48 = vrot.slane %v5551_v63, 1  ;;  %6788 = vmatpush1.bf16.msra.mxu0 %v14292_v58  ;;  %v14307_v58 = vld [vmem:[%s16243_s21 + $0x170] ss:$8 sps:$4 sm:$0xff]  }
 0x7c5   :  { %6789 = vmatprep.subr.bf16.mxu0 %v14297_v30  ;;  %v14312_v30 = vld [vmem:[%s16243_s21 + $0x184] ss:$8 sps:$4 sm:$0xff]  }
 0x7c6   :  { %v5554_v22 = vmul.f32 0.03125, %v5540_v33  ;;  %v5553_v25 = vadd.f32 %v5552_v48, %v5551_v63 }
 0x7c7   :  { %v16352_v26 = vpop.f32.mrb[8].mxu1 }
 0x7c8   :  { %v16356_v61 = vsub.f32 %v16307_v20, %v5554_v22  ;;  %v16359_v50 = vsub.f32 %v16310_v10, %v5554_v22  ;;  %v16361_v23 = vsub.f32 %v5528_v47, %v5554_v22  ;;  %v16363_v34 = vsub.f32 %v5530_v53, %v5554_v22  ;;  %v16365_v5 = vpop.f32.mrb[9].mxu1  ;;  %v14295_v10 = vld [vmem:[%s16243_s21 + $0x130] ss:$8 sps:$4 sm:$0xff]  }
 0x7c9   :  { %v5555_v11 = vmul.f32 0.03125, %v5553_v25  ;;  %v16367_v43 = vpop.f32.mrb[10].mxu1  ;;  %6790 = vmatpush1.bf16.msra.mxu0 %v14295_v10 }
 0x7ca   :  { %v5564_v56 = vmul.f32 %v16356_v61, %v16356_v61  ;;  %v5566_v20 = vmul.f32 %v16359_v50, %v16359_v50  ;;  %v16373_v14 = vpop.f32.mrb[11].mxu1  ;;  %v5568_v4 = vmul.f32 %v16361_v23, %v16361_v23  ;;  %6791 = vmatprep.subr.bf16.mxu0 %v14300_v21  ;;  %v14310_v21 = vld [vmem:[%s16243_s21 + $0x180] ss:$8 sps:$4 sm:$0xff]  }
 0x7cb   :  { %v16377_v1 = vsub.f32 %v16302_v9, %v5555_v11  ;;  %v16380_v47 = vsub.f32 %v16314_v15, %v5555_v11  ;;  %v16383_v37 = vsub.f32 %v16332_v8, %v5555_v11  ;;  %v16388_v36 = vsub.f32 %v5531_v24, %v5555_v11 }
 0x7cc   :  { %v5572_v60 = vadd.f32 %v5566_v20, %v5564_v56  ;;  %v5570_v8 = vmul.f32 %v16363_v34, %v16363_v34 }
 0x7cd   :  { %v5565_v51 = vmul.f32 %v16377_v1, %v16377_v1  ;;  %v5567_v9 = vmul.f32 %v16380_v47, %v16380_v47  ;;  %v5569_v15 = vmul.f32 %v16383_v37, %v16383_v37  ;;  %v5571_v42 = vmul.f32 %v16388_v36, %v16388_v36  ;;  %6792 = vmatpush1.bf16.msra.mxu0 %v14298_v52  ;;  %v11755_v52 = vld [vmem:[%s15702_s4 + $0x2] sm:$0x3] }
 0x7ce   :  { %v5573_v53 = vadd.f32 %v5572_v60, %v5568_v4  ;;  %6793 = vmatprep.subr.bf16.mxu0 %v14303_v38  ;;  %v14315_v4 = vld [vmem:[%s16243_s21 + $0x194] ss:$8 sps:$4 sm:$0xff]  }
 0x7cf   :  { %v5581_v24 = vsel %vm269_vm3, %v5565_v51, 0.0  ;;  %v5582_v62 = vsel %vm269_vm3, %v5567_v9, 0.0  ;;  %v16403_v31 = vpop.f32.mrb[12].mxu1  ;;  %v5584_v46 = vsel %vm269_vm3, %v5569_v15, 0.0  ;;  %v5586_v6 = vsel %vm269_vm3, %v5571_v42, 0.0 }
 0x7d0   :  { %v5574_v35 = vadd.f32 %v5573_v53, %v5570_v8  ;;  %v5583_v57 = vadd.f32 %v5582_v62, %v5581_v24  ;;  %v16406_v0 = vpop.f32.mrb[13].mxu1  ;;  %v11754_v51 = vld [vmem:[%s15696_s30 + $0x2] sm:$0x3]  ;;  %v14313_v15 = vld [vmem:[%s16243_s21 + $0x190] ss:$8 sps:$4 sm:$0xff]  }
 0x7d1   :  { %v16409_v12 = vpop.f32.mrb[14].mxu1  ;;  %6794 = vmatpush1.bf16.msra.mxu0 %v14301_v13  ;;  %v14318_v8 = vld [vmem:[%s16243_s21 + $0x1a4] ss:$8 sps:$4 sm:$0xff]   ;;  %v5602_v53 = vrot.slane %v11754_v51, %v14806_v40  ;;  %v14316_v62 = vld [vmem:[%s16243_s21 + $0x1a0] ss:$8 sps:$4 sm:$0xff]  }
 0x7d2   :  { %v5575_v28 = vrot.slane %v5574_v35, 4  ;;  %v5585_v2 = vadd.f32 %v5584_v46, %v5583_v57  ;;  %v16411_v29 = vpop.f32.mrb[15].mxu1  ;;  %6795 = vmatprep.subr.bf16.mxu0 %v14306_v18  ;;  %v5606_v57 = vrot.slane %v11754_v51, %v14809_v41  ;;  %v5635_v46 = vrot.slane %v11755_v52, %v14806_v40  ;;  %v14330_v51 = vld [vmem:[%s16243_s21 + $0x1e4] ss:$8 sps:$4 sm:$0xff]  }
 0x7d3   :  { %v5609_v13 = vmul.f32 %v5602_v53, %v16356_v61  ;;  %v5613_v18 = vmul.f32 %v5602_v53, %v16361_v23 }
 0x7d4   :  { %v5576_v3 = vadd.f32 %v5575_v28, %v5574_v35  ;;  %v5587_v19 = vadd.f32 %v5586_v6, %v5585_v2  ;;  %v14321_v35 = vld [vmem:[%s16243_s21 + $0x1b4] ss:$8 sps:$4 sm:$0xff]   ;;  %v5615_v2 = vmul.f32 %v5602_v53, %v16363_v34  ;;  %v5611_v6 = vmul.f32 %v5602_v53, %v16359_v50 }
 0x7d5   :  { %6796 = vmatpush1.bf16.msra.mxu0 %v14304_v17  ;;  %v14324_v17 = vld [vmem:[%s16243_s21 + $0x1c4] ss:$8 sps:$4 sm:$0xff]   ;;  %v5610_v34 = vmul.f32 %v5606_v57, %v16377_v1  ;;  %v5616_v61 = vmul.f32 %v5606_v57, %v16388_v36  ;;  %v14327_v36 = vld [vmem:[%s16243_s21 + $0x1d4] ss:$8 sps:$4 sm:$0xff]  }
 0x7d6   :  { %v5577_v54 = vrot.slane %v5576_v3, 2  ;;  %v5588_v7 = vrot.slane %v5587_v19, 4  ;;  %6797 = vmatprep.subr.bf16.mxu0 %v14309_v55  ;;  %v5639_v55 = vrot.slane %v11755_v52, %v14809_v41  ;;  %v14333_v52 = vld [vmem:[%s16243_s21 + $0x1f4] ss:$8 sps:$4 sm:$0xff]  }
 0x7d8   :  { %v5578_v16 = vadd.f32 %v5577_v54, %v5576_v3  ;;  %v5589_v63 = vadd.f32 %v5588_v7, %v5587_v19  ;;  %v14319_v19 = vld [vmem:[%s16243_s21 + $0x1b0] ss:$8 sps:$4 sm:$0xff]  }
 0x7d9   :  { %6798 = vmatpush1.bf16.msra.mxu0 %v14307_v58 }
 0x7da   :  { %v5579_v33 = vrot.slane %v5578_v16, 1  ;;  %v5590_v48 = vrot.slane %v5589_v63, 2  ;;  %6799 = vmatprep.subr.bf16.mxu0 %v14312_v30 }
 0x7dc   :  { %v5580_v22 = vadd.f32 %v5579_v33, %v5578_v16  ;;  %v5591_v25 = vadd.f32 %v5590_v48, %v5589_v63  ;;  %v5612_v33 = vmul.f32 %v5606_v57, %v16380_v47 }
 0x7dd   :  { %6800 = vmatpush1.bf16.msra.mxu0 %v14310_v21  ;;  %v14325_v21 = vld [vmem:[%s16243_s21 + $0x1d0] ss:$8 sps:$4 sm:$0xff]  }
 0x7de   :  { %v5594_v11 = vmul.f32 0.03125, %v5580_v22  ;;  %v5592_v56 = vrot.slane %v5591_v25, 1  ;;  %6801 = vmatprep.subr.bf16.mxu0 %v14315_v4  ;;  %v5614_v22 = vmul.f32 %v5606_v57, %v16383_v37  ;;  %v7485_v57 = vld [vmem:[%s11062_s1] sm:$0x3]  ;;  %s11075_s1 = sld [smem:[%s17588_s0 + %s14746_s27]]  }
 0x7e0   :  { %v5617_v20 = vadd.f32 1e-05, %v5594_v11  ;;  %v5593_v10 = vadd.f32 %v5592_v56, %v5591_v25  ;;  %v14322_v25 = vld [vmem:[%s16243_s21 + $0x1c0] ss:$8 sps:$4 sm:$0xff]  }
 0x7e1   :  { %6802 = vmatpush1.bf16.msra.mxu0 %v14313_v15 }
 0x7e2   :  { %14572 = vrsqrt.f32 %v5617_v20  ;;  %v5595_v60 = vmul.f32 0.03125, %v5593_v10  ;;  %6803 = vmatprep.subr.bf16.mxu0 %v14318_v8  ;;  %v14328_v8 = vld [vmem:[%s16243_s21 + $0x1e0] ss:$8 sps:$4 sm:$0xff]  }
 0x7e4   :  { %v5618_v9 = vadd.f32 1e-05, %v5595_v60 }
 0x7e5   :  { %6804 = vmatpush1.bf16.msra.mxu0 %v14316_v62  ;;  %v14331_v62 = vld [vmem:[%s16243_s21 + $0x1f0] ss:$8 sps:$4 sm:$0xff]  }
 0x7e6   :  { %14574 = vrsqrt.f32 %v5618_v9  ;;  %6805 = vmatprep.subr.bf16.mxu0 %v14321_v35  ;;  %v14336_v35 = vld [vmem:[%s16243_s21 + $0x204] ss:$8 sps:$4 sm:$0xff]  }
 0x7e7   :  { %v16427_v42 = vpop.f32.mrb[16].mxu1 }
 0x7e8   :  { %v16429_v24 = vpop.f32.mrb[17].mxu1 }
 0x7e9   :  { %v16432_v38 = vpop.f32.mrb[18].mxu1  ;;  %6806 = vmatpush1.bf16.msra.mxu0 %v14319_v19 }
 0x7ea   :  { %v16437_v28 = vpop.f32.mrb[19].mxu1  ;;  %6807 = vmatprep.subr.bf16.mxu0 %v14324_v17 }
 0x7ec   :  { %v14573_v3 = vpop.eup %14572 }
 0x7ed   :  { %v5627_v54 = vmul.f32 %v14573_v3, %v5615_v2  ;;  %v5621_v7 = vmul.f32 %v14573_v3, %v5609_v13  ;;  %v5623_v16 = vmul.f32 %v14573_v3, %v5611_v6  ;;  %v5625_v63 = vmul.f32 %v14573_v3, %v5613_v18  ;;  %6808 = vmatpush1.bf16.msra.mxu0 %v14322_v25 }
 0x7ee   :  { %6809 = vmatprep.subr.bf16.mxu0 %v14327_v36  ;;  %v7494_v2 = vrot.slane %v7485_v57, %v14809_v41 }
 0x7ef   :  { %v16448_v50 = vadd.f32 %v5635_v46, %v5621_v7  ;;  %v16450_v23 = vadd.f32 %v5635_v46, %v5623_v16  ;;  %v16463_v37 = vadd.f32 %v5635_v46, %v5625_v63  ;;  %v16476_v15 = vadd.f32 %v5635_v46, %v5627_v54 }
 0x7f0   :  { %v14575_v48 = vpop.eup %14574  ;;  %v7490_v46 = vrot.slane %v7485_v57, %v14806_v40 }
 0x7f1   :  { %v5628_v58 = vmul.f32 %v14575_v48, %v5616_v61  ;;  %v13190_v30 = vpack.i.bf16 %v16448_v50, %v16450_v23  ;;  %v5622_v1 = vmul.f32 %v14575_v48, %v5610_v34  ;;  %v5624_v11 = vmul.f32 %v14575_v48, %v5612_v33  ;;  %6810 = vmatpush1.bf16.msra.mxu0 %v14325_v21 }
 0x7f2   :  { %v5626_v56 = vmul.f32 %v14575_v48, %v5614_v22  ;;  %6811 = vmatprep.subr.bf16.mxu0 %v14330_v51 }
 0x7f3   :  { %13191 = vrot.lane.b32.xlu0 %v13190_v30, %s14717_s18  ;;  %v16459_v47 = vadd.f32 %v5639_v55, %v5622_v1  ;;  %v16461_v20 = vadd.f32 %v5639_v55, %v5624_v11  ;;  %v16468_v4 = vadd.f32 %v5639_v55, %v5628_v58 }
 0x7f4   :  { %v16465_v10 = vadd.f32 %v5639_v55, %v5626_v56 }
 0x7f5   :  { %v13195_v60 = vpack.i.bf16 %v16461_v20, %v16459_v47  ;;  %v13205_v53 = vpack.i.bf16 %v16468_v4, %v16476_v15  ;;  %6812 = vmatpush1.bf16.msra.mxu0 %v14328_v8 }
 0x7f6   :  { %v13200_v9 = vpack.i.bf16 %v16465_v10, %v16463_v37  ;;  %6813 = vmatprep.subr.bf16.mxu0 %v14333_v52 }
 0x7f7   :  { %13196 = vrot.lane.b32.xlu1 %v13195_v60, %s14717_s18 }
 0x7f8   :  { %13201 = vrot.lane.b32.xlu0 %v13200_v9, %s14717_s18 }
 0x7f9   :  { %6814 = vmatpush1.bf16.msra.mxu0 %v14331_v62 }
 0x7fa   :  { %6836 = vmatprep.subr.bf16.mxu0 %v14336_v35 }
 0x7fb   :  { %13206 = vrot.lane.b32.xlu1 %v13205_v53, %s14717_s18 }
 0x807   :  { %v7611_v13 = vpop.f32.mrb[20].mxu1 }
 0x808   :  { %v16491_v6 = vadd.f32 %v7611_v13, %v7490_v46  ;;  %v7613_v18 = vpop.f32.mrb[21].mxu1 }
 0x809   :  { %v16493_v3 = vadd.f32 %v7613_v18, %v7494_v2  ;;  %v7615_v19 = vpop.f32.mrb[22].mxu1 }
 0x80a   :  { %v7630_v54 = vsub.f32 0.0, %v16491_v6  ;;  %v16496_v7 = vadd.f32 %v7615_v19, %v7490_v46  ;;  %v7617_v16 = vpop.f32.mrb[23].mxu1 }
 0x80b   :  { %v7631_v63 = vsub.f32 0.0, %v16493_v3  ;;  %v7618_v17 = vadd.f32 %v7617_v16, %v7494_v2 }
 0x80c   :  { %v7638_v55 = vmul.f32 1.442695, %v7630_v54  ;;  %v7632_v34 = vsub.f32 0.0, %v16496_v7 }
 0x80d   :  { %v7640_v61 = vmul.f32 1.442695, %v7631_v63  ;;  %v7633_v33 = vsub.f32 0.0, %v7618_v17 }
 0x80e   :  { %14576 = vpow2.f32 %v7638_v55  ;;  %v7642_v48 = vmul.f32 1.442695, %v7632_v34 }
 0x80f   :  { %14578 = vpow2.f32 %v7640_v61  ;;  %v7644_v22 = vmul.f32 1.442695, %v7633_v33  ;;  %v7621_v25 = vpop.f32.mrb[24].mxu1 }
 0x810   :  { %14580 = vpow2.f32 %v7642_v48  ;;  %v7622_v58 = vadd.f32 %v7621_v25, %v7490_v46  ;;  %v7623_v30 = vpop.f32.mrb[25].mxu1 }
 0x811   :  { %14582 = vpow2.f32 %v7644_v22  ;;  %v7624_v1 = vadd.f32 %v7623_v30, %v7494_v2  ;;  %v7625_v11 = vpop.f32.mrb[26].mxu1 }
 0x812   :  { %v7634_v36 = vsub.f32 0.0, %v7622_v58  ;;  %v7626_v56 = vadd.f32 %v7625_v11, %v7490_v46  ;;  %v7627_v21 = vpop.f32.mrb[27].mxu1 }
 0x813   :  { %v7635_v60 = vsub.f32 0.0, %v7624_v1  ;;  %v7628_v51 = vadd.f32 %v7627_v21, %v7494_v2 }
 0x814   :  { %v7646_v9 = vmul.f32 1.442695, %v7634_v36  ;;  %v7636_v8 = vsub.f32 0.0, %v7626_v56 }
 0x815   :  { %v7648_v53 = vmul.f32 1.442695, %v7635_v60  ;;  %v7637_v52 = vsub.f32 0.0, %v7628_v51 }
 0x816   :  { %14584 = vpow2.f32 %v7646_v9  ;;  %v7650_v62 = vmul.f32 1.442695, %v7636_v8 }
 0x817   :  { %14586 = vpow2.f32 %v7648_v53  ;;  %v7652_v35 = vmul.f32 1.442695, %v7637_v52 }
 0x818   :  { %v14577_v57 = vpop.eup %14576  ;;  %14588 = vpow2.f32 %v7650_v62 }
 0x819   :  { %v14579_v13 = vpop.eup %14578  ;;  %v7654_v18 = vadd.f32 1.0, %v14577_v57  ;;  %14590 = vpow2.f32 %v7652_v35 }
 0x81a   :  { %v14581_v19 = vpop.eup %14580  ;;  %v7655_v54 = vadd.f32 1.0, %v14579_v13 }
 0x81b   :  { %v14583_v16 = vpop.eup %14582  ;;  %14592 = vrcp.f32 %v7654_v18  ;;  %v7656_v46 = vadd.f32 1.0, %v14581_v19 }
 0x81c   :  { %14594 = vrcp.f32 %v7655_v54  ;;  %v7657_v2 = vadd.f32 1.0, %v14583_v16 }
 0x81d   :  { %14596 = vrcp.f32 %v7656_v46 }
 0x81e   :  { %14598 = vrcp.f32 %v7657_v2 }
 0x820   :  { %v14585_v63 = vpop.eup %14584 }
 0x821   :  { %v14587_v55 = vpop.eup %14586  ;;  %v7658_v34 = vadd.f32 1.0, %v14585_v63 }
 0x822   :  { %v14589_v61 = vpop.eup %14588  ;;  %v7659_v33 = vadd.f32 1.0, %v14587_v55  ;;  %v14339_v55 = vld [vmem:[%s16243_s21 + $0x214] ss:$8 sps:$4 sm:$0xff]  }
 0x823   :  { %v14591_v48 = vpop.eup %14590  ;;  %14600 = vrcp.f32 %v7658_v34  ;;  %v7660_v22 = vadd.f32 1.0, %v14589_v61 }
 0x824   :  { %14602 = vrcp.f32 %v7659_v33  ;;  %v7661_v25 = vadd.f32 1.0, %v14591_v48  ;;  %v16518_v33 = vpack.c.bf16 %v16463_v37, %v16450_v23  ;;  %v14337_v48 = vld [vmem:[%s16243_s21 + $0x210] ss:$8 sps:$4 sm:$0xff]  }
 0x825   :  { %v14593_v30 = vpop.eup %14592  ;;  %14604 = vrcp.f32 %v7660_v22  ;;  %v14342_v22 = vld [vmem:[%s16243_s21 + $0x224] ss:$8 sps:$4 sm:$0xff]  }
 0x826   :  { %v14595_v11 = vpop.eup %14594  ;;  %v7678_v36 = vmul.f32 %v14593_v30, %v16491_v6  ;;  %14606 = vrcp.f32 %v7661_v25 }
 0x827   :  { %v14597_v21 = vpop.eup %14596  ;;  %v7679_v60 = vmul.f32 %v14595_v11, %v16493_v3  ;;  %v14340_v11 = vld [vmem:[%s16243_s21 + $0x220] ss:$8 sps:$4 sm:$0xff]  }
 0x828   :  { %v14599_v9 = vpop.eup %14598  ;;  %v7680_v8 = vmul.f32 %v14597_v21, %v16496_v7  ;;  %v14345_v21 = vld [vmem:[%s16243_s21 + $0x234] ss:$8 sps:$4 sm:$0xff]  }
 0x829   :  { %v7681_v53 = vmul.f32 %v14599_v9, %v7618_v17  ;;  %v14348_v9 = vld [vmem:[%s16243_s21 + $0x244] ss:$8 sps:$4 sm:$0xff]  }
 0x82a   :  { %v7686_v52 = vpack.c.bf16 %v7680_v8, %v7678_v36  ;;  %v14346_v8 = vld [vmem:[%s16243_s21 + $0x240] ss:$8 sps:$4 sm:$0xff]  }
 0x82b   :  { %v7687_v62 = vpack.c.bf16 %v7681_v53, %v7679_v60  ;;  %v14343_v60 = vld [vmem:[%s16243_s21 + $0x230] ss:$8 sps:$4 sm:$0xff]   ;;  %v14351_v53 = vld [vmem:[%s16243_s21 + $0x254] ss:$8 sps:$4 sm:$0xff]  }
 0x82d   :  { %v14601_v35 = vpop.eup %14600  ;;  %12009 = vmatprep.mubr.msk.bf16.mxu1 %vm269_vm3, %v7687_v62  ;;  %v14354_v62 = vld [vmem:[%s16243_s21 + $0x264] ss:$8 sps:$4 sm:$0xff]  }
 0x82e   :  { %v14603_v57 = vpop.eup %14602  ;;  %v7682_v13 = vmul.f32 %v14601_v35, %v7622_v58  ;;  %7885 = vmatmul.mubr.bf16.vlgmr.msra.gmra.mrb[28].mxu1 %v7686_v52  ;;  %v14349_v52 = vld [vmem:[%s16243_s21 + $0x250] ss:$8 sps:$4 sm:$0xff]   ;;  %v14352_v35 = vld [vmem:[%s16243_s21 + $0x260] ss:$8 sps:$4 sm:$0xff]  }
 0x82f   :  { %v14605_v18 = vpop.eup %14604  ;;  %v7683_v19 = vmul.f32 %v14603_v57, %v7624_v1  ;;  %v5697_v1 = vpack.c.bf16 %v16448_v50, %v17632_v49  ;;  %v14357_v57 = vld [vmem:[%s16243_s21 + $0x274] ss:$8 sps:$4 sm:$0xff]  }
 0x830   :  { %v14607_v54 = vpop.eup %14606  ;;  %v7684_v6 = vmul.f32 %v14605_v18, %v7626_v56  ;;  %v14360_v18 = vld [vmem:[%s16243_s21 + $0x284] ss:$8 sps:$4 sm:$0xff]  }
 0x831   :  { %v7685_v16 = vmul.f32 %v14607_v54, %v7628_v51  ;;  %v14334_v51 = vld [vmem:[%s16243_s21 + $0x200] ss:$8 sps:$4 sm:$0xff]   ;;  %v14363_v54 = vld [vmem:[%s16243_s21 + $0x294] ss:$8 sps:$4 sm:$0xff]  }
 0x832   :  { %v7688_v3 = vpack.c.bf16 %v7684_v6, %v7682_v13  ;;  %v14355_v13 = vld [vmem:[%s16243_s21 + $0x270] ss:$8 sps:$4 sm:$0xff]  }
 0x833   :  { %v7689_v46 = vpack.c.bf16 %v7685_v16, %v7683_v19  ;;  %v14358_v19 = vld [vmem:[%s16243_s21 + $0x280] ss:$8 sps:$4 sm:$0xff]   ;;  %v14361_v6 = vld [vmem:[%s16243_s21 + $0x290] ss:$8 sps:$4 sm:$0xff]   ;;  %v14366_v16 = vld [vmem:[%s16243_s21 + $0x2a4] ss:$8 sps:$4 sm:$0xff]  }
 0x835   :  { %12010 = vmatprep.mubr.msk.bf16.mxu1 %vm269_vm3, %v7689_v46  ;;  %v14369_v46 = vld [vmem:[%s16243_s21 + $0x2b4] ss:$8 sps:$4 sm:$0xff]  }
 0x836   :  { %7895 = vmatmul.mubr.bf16.gmra.mrb[32].mxu1 %v7688_v3  ;;  %v14364_v3 = vld [vmem:[%s16243_s21 + $0x2a0] ss:$8 sps:$4 sm:$0xff]  }
 0x865   :  { %v13192_v7 = vpop.permute.xlu0 %13191 }
 0x866   :  { %v13194_v17 = vunpack.i.h.bf16 %v13192_v7  ;;  %v13193_v2 = vunpack.i.l.bf16 %v13192_v7  ;;  %v14367_v7 = vld [vmem:[%s16243_s21 + $0x2b0] ss:$8 sps:$4 sm:$0xff]  }
 0x868   :  { %v5691_v58 = vsel %vm269_vm3, %v16459_v47, %v13193_v2 }
 0x869   :  { %v16507_v63 = vpack.c.bf16 %v5691_v58, %v13194_v17  ;;  %v13197_v56 = vpop.permute.xlu1 %13196  ;;  %v14375_v58 = vld [vmem:[%s16243_s21 + $0x2d4] ss:$8 sps:$4 sm:$0xff]  }
 0x86a   :  { %v13199_v34 = vunpack.i.h.bf16 %v13197_v56  ;;  %v13198_v61 = vunpack.i.l.bf16 %v13197_v56  ;;  %v14378_v56 = vld [vmem:[%s16243_s21 + $0x2e4] ss:$8 sps:$4 sm:$0xff]  }
 0x86b   :  { %11933 = vmatprep.mubr.msk.bf16.mxu0 %vm15026_vm7, %v16507_v63 }
 0x86c   :  { %6773 = vmatmul.mubr.bf16.gmra.mrb[12].mxu0 %v5697_v1  ;;  %v5664_v25 = vsel %vm269_vm3, %v13194_v17, %v13198_v61  ;;  %v5665_v30 = vsel %vm269_vm3, %v13193_v2, %v13199_v34  ;;  %v14372_v17 = vld [vmem:[%s16243_s21 + $0x2c4] ss:$8 sps:$4 sm:$0xff]   ;;  %v14370_v2 = vld [vmem:[%s16243_s21 + $0x2c0] ss:$8 sps:$4 sm:$0xff]   ;;  %v14381_v34 = vld [vmem:[%s16243_s21 + $0x2f4] ss:$8 sps:$4 sm:$0xff]   ;;  %v13202_v61 = vpop.permute.xlu0 %13201 }
 0x86d   :  { %6815 = vmatprep.mubr.bf16.mxu0 %v5697_v1  ;;  %v5699_v36 = vpack.c.bf16 %v5665_v30, %v5664_v25  ;;  %v14373_v1 = vld [vmem:[%s16243_s21 + $0x2d0] ss:$8 sps:$4 sm:$0xff]   ;;  %v13204_v30 = vunpack.i.h.bf16 %v13202_v61 }
 0x86e   :  { %v14379_v25 = vld [vmem:[%s16243_s21 + $0x2f0] ss:$8 sps:$4 sm:$0xff]  }
 0x874   :  { %6816 = vmatmul.mubr.bf16.vlgmr.msra.gmra.mrb[8].mxu0 %v16249_v39 }
 0x875   :  { %6837 = vmatpush1.bf16.msra.mxu0 %v14334_v51  ;;  %6825 = vmatprep.mubr.bf16.mxu0 %v16518_v33  ;;  %v13207_v51 = vpop.permute.xlu1 %13206 }
 0x876   :  { %6838 = vmatprep.subr.bf16.mxu0 %v14339_v55  ;;  %v14376_v55 = vld [vmem:[%s16243_s21 + $0x2e0] ss:$8 sps:$4 sm:$0xff]  }
 0x879   :  { %6839 = vmatpush1.bf16.msra.mxu0 %v14337_v48  ;;  %v13209_v48 = vunpack.i.h.bf16 %v13207_v51 }
 0x87a   :  { %6840 = vmatprep.subr.bf16.mxu0 %v14342_v22  ;;  %v13208_v22 = vunpack.i.l.bf16 %v13207_v51  ;;  %v14414_v51 = vld [vmem:[%s16243_s21 + $0x3a4] ss:$8 sps:$4 sm:$0xff]  }
 0x87c   :  { %6826 = vmatmul.mubr.bf16.gmra.mrb[12].mxu0 %v5699_v36 }
 0x87d   :  { %6841 = vmatpush1.bf16.msra.mxu0 %v14340_v11  ;;  %6868 = vmatprep.mubr.bf16.mxu0 %v5699_v36  ;;  %v13203_v11 = vunpack.i.l.bf16 %v13202_v61  ;;  %v14384_v36 = vld [vmem:[%s16243_s21 + $0x304] ss:$8 sps:$4 sm:$0xff]   ;;  %v14415_v61 = vld [vmem:[%s16243_s21 + $0x3b0] ss:$8 sps:$4 sm:$0xff]  }
 0x87e   :  { %6842 = vmatprep.subr.bf16.mxu0 %v14345_v21  ;;  %v5684_v21 = vsel %vm269_vm3, %v13208_v22, %v13209_v48  ;;  %v14420_v48 = vld [vmem:[%s16243_s21 + $0x3c4] ss:$8 sps:$4 sm:$0xff]  }
 0x881   :  { %6843 = vmatpush1.bf16.msra.mxu0 %v14343_v60  ;;  %v14382_v60 = vld [vmem:[%s16243_s21 + $0x300] ss:$8 sps:$4 sm:$0xff]  }
 0x882   :  { %6844 = vmatprep.subr.bf16.mxu0 %v14348_v9  ;;  %v5683_v9 = vsel %vm269_vm3, %v13203_v11, %v13204_v30  ;;  %v14421_v30 = vld [vmem:[%s16243_s21 + $0x3d0] ss:$8 sps:$4 sm:$0xff]  }
 0x885   :  { %6845 = vmatpush1.bf16.msra.mxu0 %v14346_v8  ;;  %v14387_v8 = vld [vmem:[%s16243_s21 + $0x314] ss:$8 sps:$4 sm:$0xff]  }
 0x886   :  { %6846 = vmatprep.subr.bf16.mxu0 %v14351_v53  ;;  %v16558_v53 = vpack.c.bf16 %v5684_v21, %v5683_v9  ;;  %v14429_v21 = vld [vmem:[%s16243_s21 + $0x3f4] ss:$8 sps:$4 sm:$0xff]   ;;  %v14432_v9 = vld [vmem:[%s16243_s21 + $0x404] ss:$8 sps:$4 sm:$0xff]  }
 0x889   :  { %6847 = vmatpush1.bf16.msra.mxu0 %v14349_v52  ;;  %v14385_v52 = vld [vmem:[%s16243_s21 + $0x310] ss:$8 sps:$4 sm:$0xff]  }
 0x88a   :  { %6848 = vmatprep.subr.bf16.mxu0 %v14354_v62  ;;  %v14390_v62 = vld [vmem:[%s16243_s21 + $0x324] ss:$8 sps:$4 sm:$0xff]  }
 0x88d   :  { %6849 = vmatpush1.bf16.msra.mxu0 %v14352_v35  ;;  %v5693_v35 = vsel %vm269_vm3, %v16465_v10, %v13208_v22  ;;  %v14418_v22 = vld [vmem:[%s16243_s21 + $0x3c0] ss:$8 sps:$4 sm:$0xff]  }
 0x88e   :  { %6850 = vmatprep.subr.bf16.mxu0 %v14357_v57  ;;  %v5692_v57 = vsel %vm269_vm3, %v16461_v20, %v13203_v11  ;;  %v14426_v11 = vld [vmem:[%s16243_s21 + $0x3e4] ss:$8 sps:$4 sm:$0xff]  }
 0x891   :  { %6851 = vmatpush1.bf16.msra.mxu0 %v14355_v13  ;;  %v14393_v13 = vld [vmem:[%s16243_s21 + $0x334] ss:$8 sps:$4 sm:$0xff]  }
 0x892   :  { %6852 = vmatprep.subr.bf16.mxu0 %v14360_v18  ;;  %v14391_v18 = vld [vmem:[%s16243_s21 + $0x330] ss:$8 sps:$4 sm:$0xff]  }
 0x895   :  { %6853 = vmatpush1.bf16.msra.mxu0 %v14358_v19  ;;  %v14396_v19 = vld [vmem:[%s16243_s21 + $0x344] ss:$8 sps:$4 sm:$0xff]  }
 0x896   :  { %6854 = vmatprep.subr.bf16.mxu0 %v14363_v54  ;;  %v14394_v54 = vld [vmem:[%s16243_s21 + $0x340] ss:$8 sps:$4 sm:$0xff]  }
 0x899   :  { %6855 = vmatpush1.bf16.msra.mxu0 %v14361_v6  ;;  %v14399_v6 = vld [vmem:[%s16243_s21 + $0x354] ss:$8 sps:$4 sm:$0xff]  }
 0x89a   :  { %6856 = vmatprep.subr.bf16.mxu0 %v14366_v16  ;;  %v14397_v16 = vld [vmem:[%s16243_s21 + $0x350] ss:$8 sps:$4 sm:$0xff]  }
 0x89d   :  { %6857 = vmatpush1.bf16.msra.mxu0 %v14364_v3  ;;  %v14402_v3 = vld [vmem:[%s16243_s21 + $0x364] ss:$8 sps:$4 sm:$0xff]  }
 0x89e   :  { %6858 = vmatprep.subr.bf16.mxu0 %v14369_v46  ;;  %v14400_v46 = vld [vmem:[%s16243_s21 + $0x360] ss:$8 sps:$4 sm:$0xff]  }
 0x8a1   :  { %6859 = vmatpush1.bf16.msra.mxu0 %v14367_v7  ;;  %v14405_v7 = vld [vmem:[%s16243_s21 + $0x374] ss:$8 sps:$4 sm:$0xff]  }
 0x8a2   :  { %6860 = vmatprep.subr.bf16.mxu0 %v14372_v17  ;;  %v14403_v17 = vld [vmem:[%s16243_s21 + $0x370] ss:$8 sps:$4 sm:$0xff]  }
 0x8a5   :  { %6861 = vmatpush1.bf16.msra.mxu0 %v14370_v2  ;;  %v14408_v2 = vld [vmem:[%s16243_s21 + $0x384] ss:$8 sps:$4 sm:$0xff]  }
 0x8a6   :  { %6862 = vmatprep.subr.bf16.mxu0 %v14375_v58  ;;  %v14406_v58 = vld [vmem:[%s16243_s21 + $0x380] ss:$8 sps:$4 sm:$0xff]  }
 0x8a9   :  { %6863 = vmatpush1.bf16.msra.mxu0 %v14373_v1  ;;  %v14411_v1 = vld [vmem:[%s16243_s21 + $0x394] ss:$8 sps:$4 sm:$0xff]  }
 0x8aa   :  { %6864 = vmatprep.subr.bf16.mxu0 %v14378_v56  ;;  %v14409_v56 = vld [vmem:[%s16243_s21 + $0x390] ss:$8 sps:$4 sm:$0xff]  }
 0x8ad   :  { %6865 = vmatpush1.bf16.msra.mxu0 %v14376_v55  ;;  %v14412_v55 = vld [vmem:[%s16243_s21 + $0x3a0] ss:$8 sps:$4 sm:$0xff]  }
 0x8ae   :  { %6866 = vmatprep.subr.bf16.mxu0 %v14381_v34  ;;  %v14417_v34 = vld [vmem:[%s16243_s21 + $0x3b4] ss:$8 sps:$4 sm:$0xff]  }
 0x8b1   :  { %6867 = vmatpush1.bf16.msra.mxu0 %v14379_v25  ;;  %v14423_v25 = vld [vmem:[%s16243_s21 + $0x3d4] ss:$8 sps:$4 sm:$0xff]  }
 0x8b2   :  { %6889 = vmatprep.subr.bf16.mxu0 %v14384_v36  ;;  %v14424_v36 = vld [vmem:[%s16243_s21 + $0x3e0] ss:$8 sps:$4 sm:$0xff]  }
 0x8b4   :  { %11937 = vmatmul.mubr.msk.bf16.vlgmr.msra.gmra.mrb[8].mxu0 %vm15026_vm7, %v16507_v63  ;;  %v5701_v63 = vpack.c.bf16 %v5693_v35, %v5692_v57  ;;  %v14433_v57 = vld [vmem:[%s16243_s21 + $0x410] ss:$8 sps:$4 sm:$0xff]  }
 0x8b5   :  { %6878 = vmatprep.mubr.bf16.mxu0 %v16558_v53  ;;  %6890 = vmatpush1.bf16.msra.mxu0 %v14382_v60  ;;  %v14427_v60 = vld [vmem:[%s16243_s21 + $0x3f0] ss:$8 sps:$4 sm:$0xff]  }
 0x8b6   :  { %6891 = vmatprep.subr.bf16.mxu0 %v14387_v8  ;;  %v5694_v8 = vsel %vm269_vm3, %v16468_v4, %v16245_v32 }
 0x8b7   :  { %v11940_v35 = vpack.c.bf16 %v16245_v32, %v5694_v8  ;;  %v5703_v32 = vpack.c.bf16 %v17632_v49, %v16476_v15 }
 0x8b9   :  { %6892 = vmatpush1.bf16.msra.mxu0 %v14385_v52  ;;  %v14430_v52 = vld [vmem:[%s16243_s21 + $0x400] ss:$8 sps:$4 sm:$0xff]  }
 0x8ba   :  { %6893 = vmatprep.subr.bf16.mxu0 %v14390_v62  ;;  %v14435_v62 = vld [vmem:[%s16243_s21 + $0x414] ss:$8 sps:$4 sm:$0xff]  }
 0x8bc   :  { %6879 = vmatmul.mubr.bf16.gmra.mrb[12].mxu0 %v5701_v63 }
 0x8bd   :  { %6894 = vmatpush1.bf16.msra.mxu0 %v14388_v45  ;;  %6921 = vmatprep.mubr.bf16.mxu0 %v5701_v63  ;;  %v14438_v45 = vld [vmem:[%s16243_s21 + $0x424] ss:$8 sps:$4 sm:$0xff]   ;;  %v14436_v63 = vld [vmem:[%s16243_s21 + $0x420] ss:$8 sps:$4 sm:$0xff]  }
 0x8be   :  { %6895 = vmatprep.subr.bf16.mxu0 %v14393_v13  ;;  %v14441_v13 = vld [vmem:[%s16243_s21 + $0x434] ss:$8 sps:$4 sm:$0xff]  }
 0x8c1   :  { %6896 = vmatpush1.bf16.msra.mxu0 %v14391_v18  ;;  %v7714_v18 = vld [vmem:[%s11064_s6] sm:$0x3]  ;;  %s11077_s6 = sld [smem:[%s17588_s0 + %s14747_s2]]  }
 0x8c2   :  { %6897 = vmatprep.subr.bf16.mxu0 %v14396_v19  ;;  %v7719_v19 = vrot.slane %v7714_v18, %v14806_v40 }
 0x8c5   :  { %6898 = vmatpush1.bf16.msra.mxu0 %v14394_v54  ;;  %v7723_v54 = vrot.slane %v7714_v18, %v14809_v41 }
 0x8c6   :  { %6899 = vmatprep.subr.bf16.mxu0 %v14399_v6  ;;  %v14442_v6 = vld [vmem:[%s16243_s21 + $0x440] ss:$8 sps:$4 sm:$0xff]  }
 0x8c9   :  { %6900 = vmatpush1.bf16.msra.mxu0 %v14397_v16 }
 0x8ca   :  { %6901 = vmatprep.subr.bf16.mxu0 %v14402_v3 }
 0x8cd   :  { %6902 = vmatpush1.bf16.msra.mxu0 %v14400_v46 }
 0x8ce   :  { %6903 = vmatprep.subr.bf16.mxu0 %v14405_v7  ;;  %v14447_v7 = vld [vmem:[%s16243_s21 + $0x454] ss:$8 sps:$4 sm:$0xff]  }
 0x8d1   :  { %6904 = vmatpush1.bf16.msra.mxu0 %v14403_v17 }
 0x8d2   :  { %6905 = vmatprep.subr.bf16.mxu0 %v14408_v2 }
 0x8d5   :  { %6906 = vmatpush1.bf16.msra.mxu0 %v14406_v58 }
 0x8d6   :  { %6907 = vmatprep.subr.bf16.mxu0 %v14411_v1 }
 0x8d9   :  { %6908 = vmatpush1.bf16.msra.mxu0 %v14409_v56 }
 0x8da   :  { %6909 = vmatprep.subr.bf16.mxu0 %v14414_v51 }
 0x8dd   :  { %6910 = vmatpush1.bf16.msra.mxu0 %v14412_v55  ;;  %v14445_v55 = vld [vmem:[%s16243_s21 + $0x450] ss:$8 sps:$4 sm:$0xff]  }
 0x8de   :  { %6911 = vmatprep.subr.bf16.mxu0 %v14417_v34 }
 0x8e1   :  { %6912 = vmatpush1.bf16.msra.mxu0 %v14415_v61 }
 0x8e2   :  { %6913 = vmatprep.subr.bf16.mxu0 %v14420_v48 }
 0x8e5   :  { %6914 = vmatpush1.bf16.msra.mxu0 %v14418_v22  ;;  %v14450_v22 = vld [vmem:[%s16243_s21 + $0x464] ss:$8 sps:$4 sm:$0xff]  }
 0x8e6   :  { %6915 = vmatprep.subr.bf16.mxu0 %v14423_v25 }
 0x8e9   :  { %6916 = vmatpush1.bf16.msra.mxu0 %v14421_v30 }
 0x8ea   :  { %6917 = vmatprep.subr.bf16.mxu0 %v14426_v11 }
 0x8ed   :  { %6918 = vmatpush1.bf16.msra.mxu0 %v14424_v36 }
 0x8ee   :  { %6919 = vmatprep.subr.bf16.mxu0 %v14429_v21 }
 0x8f1   :  { %6920 = vmatpush1.bf16.msra.mxu0 %v14427_v60  ;;  %v14448_v60 = vld [vmem:[%s16243_s21 + $0x460] ss:$8 sps:$4 sm:$0xff]  }
 0x8f2   :  { %6942 = vmatprep.subr.bf16.mxu0 %v14432_v9 }
 0x8f4   :  { %6922 = vmatmul.mubr.bf16.vlgmr.msra.gmra.mrb[8].mxu0 %v16518_v33  ;;  %v14444_v33 = vld [vmem:[%s16243_s21 + $0x444] ss:$8 sps:$4 sm:$0xff]  }
 0x8f5   :  { %11941 = vmatprep.mubr.msk.bf16.mxu0 %vm16062_vm13, %v11940_v35  ;;  %6943 = vmatpush1.bf16.msra.mxu0 %v14430_v52  ;;  %v14453_v52 = vld [vmem:[%s16243_s21 + $0x474] ss:$8 sps:$4 sm:$0xff]  }
 0x8f6   :  { %6944 = vmatprep.subr.bf16.mxu0 %v14435_v62 }
 0x8f9   :  { %6945 = vmatpush1.bf16.msra.mxu0 %v14433_v57 }
 0x8fa   :  { %6946 = vmatprep.subr.bf16.mxu0 %v14438_v45 }
 0x8fc   :  { %6932 = vmatmul.mubr.bf16.gmra.mrb[12].mxu0 %v5703_v32 }
 0x8fd   :  { %6947 = vmatpush1.bf16.msra.mxu0 %v14436_v63  ;;  %6974 = vmatprep.mubr.bf16.mxu0 %v5703_v32 }
 0x8fe   :  { %6948 = vmatprep.subr.bf16.mxu0 %v14441_v13  ;;  %v14451_v13 = vld [vmem:[%s16243_s21 + $0x470] ss:$8 sps:$4 sm:$0xff]  }
 0x901   :  { %6949 = vmatpush1.bf16.msra.mxu0 %v14439_v59  ;;  %v7886_v16 = vpop.f32.mrb[28].mxu1 }
 0x902   :  { %6950 = vmatprep.subr.bf16.mxu0 %v14444_v33  ;;  %v16621_v3 = vadd.f32 %v7886_v16, %v7719_v19  ;;  %v7888_v46 = vpop.f32.mrb[29].mxu1 }
 0x903   :  { %v16624_v17 = vadd.f32 %v7888_v46, %v7723_v54  ;;  %v7890_v2 = vpop.f32.mrb[30].mxu1 }
 0x904   :  { %v7905_v58 = vsub.f32 0.0, %v16621_v3  ;;  %v16627_v1 = vadd.f32 %v7890_v2, %v7719_v19  ;;  %v7892_v56 = vpop.f32.mrb[31].mxu1 }
 0x905   :  { %6951 = vmatpush1.bf16.msra.mxu0 %v14442_v6  ;;  %v7906_v51 = vsub.f32 0.0, %v16624_v17  ;;  %v16631_v34 = vadd.f32 %v7892_v56, %v7723_v54  ;;  %v14456_v6 = vld [vmem:[%s16243_s21 + $0x484] ss:$8 sps:$4 sm:$0xff]  }
 0x906   :  { %v7913_v61 = vmul.f32 1.442695, %v7905_v58  ;;  %6952 = vmatprep.subr.bf16.mxu0 %v14447_v7  ;;  %v7907_v48 = vsub.f32 0.0, %v16627_v1  ;;  %v14454_v7 = vld [vmem:[%s16243_s21 + $0x480] ss:$8 sps:$4 sm:$0xff]  }
 0x907   :  { %v7915_v25 = vmul.f32 1.442695, %v7906_v51  ;;  %v7908_v30 = vsub.f32 0.0, %v16631_v34 }
 0x908   :  { %14608 = vpow2.f32 %v7913_v61  ;;  %v7917_v11 = vmul.f32 1.442695, %v7907_v48  ;;  %v14457_v48 = vld [vmem:[%s16243_s21 + $0x490] ss:$8 sps:$4 sm:$0xff]  }
 0x909   :  { %6953 = vmatpush1.bf16.msra.mxu0 %v14445_v55  ;;  %v7919_v36 = vmul.f32 1.442695, %v7908_v30  ;;  %v7896_v21 = vpop.f32.mrb[32].mxu1 }
 0x90a   :  { %14610 = vpow2.f32 %v7917_v11  ;;  %v16637_v9 = vadd.f32 %v7896_v21, %v7719_v19  ;;  %v7898_v8 = vpop.f32.mrb[33].mxu1  ;;  %6954 = vmatprep.subr.bf16.mxu0 %v14450_v22  ;;  %v14462_v22 = vld [vmem:[%s16243_s21 + $0x4a4] ss:$8 sps:$4 sm:$0xff]   ;;  %v14460_v11 = vld [vmem:[%s16243_s21 + $0x4a0] ss:$8 sps:$4 sm:$0xff]  }
 0x90b   :  { %14612 = vpow2.f32 %v7915_v25  ;;  %v16640_v62 = vadd.f32 %v7898_v8, %v7723_v54  ;;  %v7900_v35 = vpop.f32.mrb[34].mxu1 }
 0x90c   :  { %v7909_v57 = vsub.f32 0.0, %v16637_v9  ;;  %v16643_v45 = vadd.f32 %v7900_v35, %v7719_v19  ;;  %v7902_v63 = vpop.f32.mrb[35].mxu1  ;;  %14614 = vpow2.f32 %v7919_v36 }
 0x90d   :  { %v7910_v32 = vsub.f32 0.0, %v16640_v62  ;;  %6955 = vmatpush1.bf16.msra.mxu0 %v14448_v60  ;;  %v16647_v18 = vadd.f32 %v7902_v63, %v7723_v54  ;;  %v14459_v54 = vld [vmem:[%s16243_s21 + $0x494] ss:$8 sps:$4 sm:$0xff]  }
 0x90e   :  { %v7921_v59 = vmul.f32 1.442695, %v7909_v57  ;;  %v7911_v33 = vsub.f32 0.0, %v16643_v45  ;;  %6956 = vmatprep.subr.bf16.mxu0 %v14453_v52  ;;  %v14465_v60 = vld [vmem:[%s16243_s21 + $0x4b4] ss:$8 sps:$4 sm:$0xff]  }
 0x90f   :  { %v7923_v16 = vmul.f32 1.442695, %v7910_v32  ;;  %v7912_v46 = vsub.f32 0.0, %v16647_v18 }
 0x910   :  { %14616 = vpow2.f32 %v7921_v59  ;;  %v7925_v19 = vmul.f32 1.442695, %v7911_v33  ;;  %v14468_v59 = vld [vmem:[%s16243_s21 + $0x4c4] ss:$8 sps:$4 sm:$0xff]  }
 0x911   :  { %14618 = vpow2.f32 %v7923_v16  ;;  %6957 = vmatpush1.bf16.msra.mxu0 %v14451_v13  ;;  %v7927_v2 = vmul.f32 1.442695, %v7912_v46  ;;  %v14463_v13 = vld [vmem:[%s16243_s21 + $0x4b0] ss:$8 sps:$4 sm:$0xff]  }
 0x912   :  { %v14609_v58 = vpop.eup %14608  ;;  %14620 = vpow2.f32 %v7925_v19  ;;  %6958 = vmatprep.subr.bf16.mxu0 %v14456_v6  ;;  %v14466_v19 = vld [vmem:[%s16243_s21 + $0x4c0] ss:$8 sps:$4 sm:$0xff]  }
 0x913   :  { %v7929_v56 = vadd.f32 1.0, %v14609_v58  ;;  %14622 = vpow2.f32 %v7927_v2  ;;  %v14471_v2 = vld [vmem:[%s16243_s21 + $0x4d4] ss:$8 sps:$4 sm:$0xff]  }
 0x914   :  { %v14611_v51 = vpop.eup %14610 }
 0x915   :  { %v14613_v55 = vpop.eup %14612  ;;  %14624 = vrcp.f32 %v7929_v56  ;;  %v7931_v61 = vadd.f32 1.0, %v14611_v51  ;;  %6959 = vmatpush1.bf16.msra.mxu0 %v14454_v7 }
 0x916   :  { %6960 = vmatprep.subr.bf16.mxu0 %v14459_v54  ;;  %v14615_v25 = vpop.eup %14614  ;;  %v7930_v30 = vadd.f32 1.0, %v14613_v55  ;;  %v14474_v54 = vld [vmem:[%s16243_s21 + $0x4e4] ss:$8 sps:$4 sm:$0xff]  }
 0x917   :  { %14626 = vrcp.f32 %v7931_v61  ;;  %v7932_v21 = vadd.f32 1.0, %v14615_v25  ;;  %v14472_v61 = vld [vmem:[%s16243_s21 + $0x4e0] ss:$8 sps:$4 sm:$0xff]   ;;  %v14477_v25 = vld [vmem:[%s16243_s21 + $0x4f4] ss:$8 sps:$4 sm:$0xff]  }
 0x918   :  { %14628 = vrcp.f32 %v7930_v30 }
 0x919   :  { %6961 = vmatpush1.bf16.msra.mxu0 %v14457_v48 }
 0x91a   :  { %v14617_v36 = vpop.eup %14616  ;;  %6962 = vmatprep.subr.bf16.mxu0 %v14462_v22 }
 0x91b   :  { %v14619_v8 = vpop.eup %14618  ;;  %v7933_v52 = vadd.f32 1.0, %v14617_v36  ;;  %v14480_v36 = vld [vmem:[%s16243_s21 + $0x504] ss:$8 sps:$4 sm:$0xff]  }
 0x91c   :  { %v14621_v35 = vpop.eup %14620  ;;  %v7934_v63 = vadd.f32 1.0, %v14619_v8  ;;  %v14484_v8 = vld [vmem:[%s16243_s21 + $0x520] ss:$8 sps:$4 sm:$0xff]  }
 0x91d   :  { %v14623_v57 = vpop.eup %14622  ;;  %14630 = vrcp.f32 %v7933_v52  ;;  %v7935_v32 = vadd.f32 1.0, %v14621_v35  ;;  %6963 = vmatpush1.bf16.msra.mxu0 %v14460_v11  ;;  %v14489_v52 = vld [vmem:[%s16243_s21 + $0x534] ss:$8 sps:$4 sm:$0xff]   ;;  %v14487_v35 = vld [vmem:[%s16243_s21 + $0x530] ss:$8 sps:$4 sm:$0xff]  }
 0x91e   :  { %14632 = vrcp.f32 %v7932_v21  ;;  %6964 = vmatprep.subr.bf16.mxu0 %v14465_v60  ;;  %v7936_v6 = vadd.f32 1.0, %v14623_v57  ;;  %v14478_v21 = vld [vmem:[%s16243_s21 + $0x500] ss:$8 sps:$4 sm:$0xff]   ;;  %v14486_v60 = vld [vmem:[%s16243_s21 + $0x524] ss:$8 sps:$4 sm:$0xff]  }
 0x91f   :  { %v14625_v33 = vpop.eup %14624  ;;  %14634 = vrcp.f32 %v7935_v32 }
 0x920   :  { %v16661_v16 = vmul.f32 %v14625_v33, %v16621_v3  ;;  %14636 = vrcp.f32 %v7934_v63  ;;  %v14469_v3 = vld [vmem:[%s16243_s21 + $0x4d0] ss:$8 sps:$4 sm:$0xff]  }
 0x921   :  { %v14627_v46 = vpop.eup %14626  ;;  %6965 = vmatpush1.bf16.msra.mxu0 %v14463_v13  ;;  %14638 = vrcp.f32 %v7936_v6  ;;  %v17639_v63 = vld [vmem:[#allocation4_spill] sm:$0xff] }
 0x922   :  { %v16665_v7 = vmul.f32 %v14627_v46, %v16627_v1  ;;  %6966 = vmatprep.subr.bf16.mxu0 %v14468_v59  ;;  %7997 = vrot.lane.b32.xlu0 %v16661_v16, %s14717_s18  ;;  %v14629_v58 = vpop.eup %14628  ;;  %v17599_v32 = vsub.s32 2, %v17639_v63 }
 0x923   :  { %v16679_v48 = vmul.f32 %v14629_v58, %v16624_v17  ;;  %v14475_v17 = vld [vmem:[%s16243_s21 + $0x4f0] ss:$8 sps:$4 sm:$0xff]  }
 0x924   :  { %8001 = vrot.lane.b32.xlu1 %v16665_v7, %s14717_s18 }
 0x925   :  { %6967 = vmatpush1.bf16.msra.mxu0 %v14466_v19 }
 0x926   :  { %6968 = vmatprep.subr.bf16.mxu0 %v14471_v2 }
 0x927   :  { %v14631_v56 = vpop.eup %14630 }
 0x928   :  { %v14633_v1 = vpop.eup %14632  ;;  %v16675_v51 = vmul.f32 %v14631_v56, %v16637_v9 }
 0x929   :  { %v14635_v55 = vpop.eup %14634  ;;  %6969 = vmatpush1.bf16.msra.mxu0 %v14469_v3  ;;  %v16688_v9 = vmul.f32 %v14633_v1, %v16631_v34 }
 0x92a   :  { %v16682_v22 = vmul.f32 %v14635_v55, %v16643_v45  ;;  %8005 = vrot.lane.b32.xlu0 %v16675_v51, %s14717_s18  ;;  %6970 = vmatprep.subr.bf16.mxu0 %v14474_v54  ;;  %v14637_v30 = vpop.eup %14636 }
 0x92b   :  { %v14639_v11 = vpop.eup %14638  ;;  %v16694_v45 = vmul.f32 %v14637_v30, %v16640_v62  ;;  %v14483_v62 = vld [vmem:[%s16243_s21 + $0x514] ss:$8 sps:$4 sm:$0xff]  }
 0x92c   :  { %8009 = vrot.lane.b32.xlu1 %v16682_v22, %s14717_s18  ;;  %v16700_v34 = vmul.f32 %v14639_v11, %v16647_v18  ;;  %v14481_v18 = vld [vmem:[%s16243_s21 + $0x510] ss:$8 sps:$4 sm:$0xff]  }
 0x92d   :  { %6971 = vmatpush1.bf16.msra.mxu0 %v14472_v61 }
 0x92e   :  { %7999 = vrot.lane.b32.xlu0 %v16679_v48, %s14717_s18  ;;  %6972 = vmatprep.subr.bf16.mxu0 %v14477_v25 }
 0x930   :  { %8003 = vrot.lane.b32.xlu1 %v16688_v9, %s14717_s18 }
 0x931   :  { %6973 = vmatpush1.bf16.msra.mxu0 %v14475_v17 }
 0x932   :  { %8007 = vrot.lane.b32.xlu0 %v16694_v45, %s14717_s18  ;;  %6995 = vmatprep.subr.bf16.mxu0 %v14480_v36 }
 0x934   :  { %6975 = vmatmul.mubr.bf16.vlgmr.msra.gmra.mrb[8].mxu0 %v16558_v53  ;;  %8011 = vrot.lane.b32.xlu1 %v16700_v34, %s14717_s18  ;;  %v5704_v53 = vpack.c.bf16 %v17632_v49, %v16468_v4  ;;  %s14732_s18 = smov 11  }
 0x935   :  { %6996 = vmatpush1.bf16.msra.mxu0 %v14478_v21  ;;  %6984 = vmatprep.mubr.bf16.mxu0 %v14721_v27  ;;  %s11060_s9 = sld [smem:[%s17588_s0 + %s14732_s18]]   ;;  %v14492_v21 = vld [vmem:[%s16769_s13 + $0x48] sm:$0xff]   ;;  %s14748_s18 = smov 30  }
 0x936   :  { %6997 = vmatprep.subr.bf16.mxu0 %v14483_v62  ;;  %v14493_v62 = vld [vmem:[%s16769_s13 + $0x8] sm:$0xff]  }
 0x939   :  { %6998 = vmatpush1.bf16.msra.mxu0 %v14481_v18  ;;  %v14494_v18 = vld [vmem:[%s16769_s13 + $0x50] sm:$0xff]  }
 0x93a   :  { %6999 = vmatprep.subr.bf16.mxu0 %v14486_v60  ;;  %v14495_v60 = vld [vmem:[%s16769_s13 + $0x10] sm:$0xff]  }
 0x93b   :  { %v16735_v59 = vld [vmem:[%s11060_s9] sm:$0x7]  ;;  %s11079_s9 = sld [smem:[%s17588_s0 + %s14748_s18]]  }
 0x93c   :  { %6985 = vmatmul.mubr.bf16.gmra.mrb[12].mxu0 %v16249_v39  ;;  %v7229_v33 = vrot.slane %v16735_v59, %v17599_v32 }
 0x93d   :  { %7000 = vmatpush1.bf16.msra.mxu0 %v14484_v8  ;;  %7027 = vmatprep.mubr.bf16.mxu0 %v17600_v44  ;;  %v14496_v8 = vld [vmem:[%s16769_s13 + $0x58] sm:$0xff]  }
 0x93e   :  { %7001 = vmatprep.subr.bf16.mxu0 %v14489_v52  ;;  %v7449_v19 = vadd.f32 %v16429_v24, %v7229_v33  ;;  %v7452_v2 = vadd.f32 %v16437_v28, %v7229_v33  ;;  %v7457_v61 = vadd.f32 %v16427_v42, %v7229_v33  ;;  %v7460_v25 = vadd.f32 %v16432_v38, %v7229_v33  ;;  %v14490_v42 = vld [vmem:[%s16769_s13 + $0x40] sm:$0xff]   ;;  %v14497_v52 = vld [vmem:[%s16769_s13 + $0x18] sm:$0xff]   ;;  %v14500_v33 = vld [vmem:[%s16769_s13 + $0x68] sm:$0xff]  }
 0x93f   :  { %v14491_v38 = vld [vmem:[%s16769_s13] sm:$0xff]   ;;  %12146 = vmatprep.subr.bf16.mxu1 %v14490_v42 }
 0x940   :  { %12147 = vmatpush3.bf16.msra.mxu1 %v14491_v38 }
 0x941   :  { %7002 = vmatpush1.bf16.msra.mxu0 %v14487_v35  ;;  %12148 = vmatprep.subr.bf16.mxu1 %v14492_v21  ;;  %v14498_v35 = vld [vmem:[%s16769_s13 + $0x60] sm:$0xff]  }
 0x942   :  { %12552 = vmatprep.subr.bf16.mxu0 %v17632_v49 }
 0x944   :  { %11942 = vmatmul.mubr.msk.bf16.vlgmr.msra.gmra.mrb[8].mxu0 %vm269_vm3, %v5704_v53  ;;  %12149 = vmatpush3.bf16.msra.mxu1 %v14493_v62  ;;  %v14499_v53 = vld [vmem:[%s16769_s13 + $0x20] sm:$0xff]  }
 0x945   :  { %7037 = vmatprep.mubr.bf16.mxu0 %v17600_v44  ;;  %12150 = vmatprep.subr.bf16.mxu1 %v14494_v18 }
 0x948   :  { %12151 = vmatpush3.bf16.msra.mxu1 %v14495_v60 }
 0x949   :  { %12152 = vmatprep.subr.bf16.mxu1 %v14496_v8 }
 0x94c   :  { %7038 = vmatmul.mubr.bf16.gmra.mrb[12].mxu0 %v14721_v27  ;;  %12153 = vmatpush3.bf16.msra.mxu1 %v14497_v52 }
 0x94d   :  { %12154 = vmatprep.subr.bf16.mxu1 %v14498_v35  ;;  %v16805_v35 = vld [vmem:[%s16795_s17 + $0x8] sm:$0xff]   ;;  %12560 = vmatprep.mubr.msk.bf16.mxu0 %vm14735_vm14, %v17632_v49 }
 0x950   :  { %12155 = vmatpush3.bf16.msra.mxu1 %v14499_v53 }
 0x951   :  { %12156 = vmatprep.subr.bf16.mxu1 %v14500_v33 }
 0x994   :  { %v16728_v39 = vpop.permute.xlu0 %7997 }
 0x996   :  { %v16730_v57 = vpop.permute.xlu1 %8001 }
 0x99c   :  { %v16733_v13 = vpop.permute.xlu0 %8005 }
 0x99e   :  { %v16740_v27 = vpop.permute.xlu1 %8009 }
 0x9a0   :  { %v8000_v6 = vpop.permute.xlu0 %7999 }
 0x9a1   :  { %v8013_v46 = vsel %vm269_vm3, %v16728_v39, %v8000_v6  ;;  %v14501_v6 = vld [vmem:[%s16769_s13 + $0x28] sm:$0xff]  }
 0x9a2   :  { %v8004_v3 = vpop.permute.xlu1 %8003  ;;  %v16748_v54 = vadd.f32 %v8013_v46, %v7449_v19  ;;  %v14502_v46 = vld [vmem:[%s16769_s13 + $0x70] sm:$0xff]   ;;  %12157 = vmatpush3.bf16.msra.mxu1 %v14501_v6 }
 0x9a3   :  { %v8014_v58 = vsel %vm269_vm3, %v16730_v57, %v8004_v3  ;;  %v14503_v19 = vld [vmem:[%s16769_s13 + $0x30] sm:$0xff]   ;;  %12158 = vmatprep.subr.bf16.mxu1 %v14502_v46  ;;  %v14505_v3 = vld [vmem:[%s16769_s13 + $0x38] sm:$0xff]  }
 0x9a4   :  { %v16750_v56 = vadd.f32 %v8014_v58, %v7452_v2  ;;  %v8008_v1 = vpop.permute.xlu0 %8007  ;;  %v14504_v2 = vld [vmem:[%s16769_s13 + $0x78] sm:$0xff]   ;;  %v16788_v58 = vld [vmem:[%s16769_s13 + $0x80] sm:$0xff]  }
 0x9a5   :  { %v8015_v55 = vsel %vm269_vm3, %v16733_v13, %v8008_v1  ;;  %v11756_v1 = vld [vmem:[%s15589_s26 + $0x4] sm:$0x3]  ;;  %s14736_s26 = smov 16  }
 0x9a6   :  { %v8012_v30 = vpop.permute.xlu1 %8011  ;;  %v16760_v11 = vadd.f32 %v8015_v55, %v7457_v61  ;;  %12159 = vmatpush3.bf16.msra.mxu1 %v14503_v19  ;;  %v5880_v55 = vrot.slane %v11756_v1, %v14806_v40  ;;  %v5884_v61 = vrot.slane %v11756_v1, %v14809_v41  ;;  %v16816_v1 = vld [vmem:[%s16795_s17 + $0x10] sm:$0xff]   ;;  %s11065_s21 = sld [smem:[%s17588_s0 + %s14736_s26]]  }
 0x9a7   :  { %v8016_v28 = vsel %vm269_vm3, %v16740_v27, %v8012_v30  ;;  %12160 = vmatprep.subr.bf16.mxu1 %v14504_v2  ;;  %v16800_v30 = vld [vmem:[%s16795_s17] sm:$0xff]  }
 0x9a8   :  { %v16762_v17 = vadd.f32 %v8016_v28, %v7460_v25  ;;  %12553 = vmatpush3.bf16.msra.mxu0 %v16800_v30 }
 0x9a9   :  { %12554 = vmatprep.subr.bf16.mxu0 %v17632_v49 }
 0x9aa   :  { %12161 = vmatpush3.bf16.msra.mxu1 %v14505_v3 }
 0x9ab   :  { %12436 = vmatprep.subr.bf16.mxu1 %v16788_v58 }
 0x9ac   :  { %12555 = vmatpush3.bf16.msra.mxu0 %v16805_v35 }
 0x9ad   :  { %12556 = vmatprep.subr.bf16.mxu0 %v17632_v49 }
 0x9b0   :  { %12557 = vmatpush3.bf16.msra.mxu0 %v16816_v1 }
 0x9b1   :  { %12558 = vmatprep.subr.bf16.mxu0 %v17632_v49 }
 0xa17   :  { %v7029_v25 = vpop.f32.mrb[8].mxu0 }
 0xa18   :  { %v12888_v28 = vadd.f32 %v7029_v25, %v5880_v55  ;;  %v7031_v42 = vpop.f32.mrb[9].mxu0 }
 0xa19   :  { %v12889_v38 = vadd.f32 %v7031_v42, %v5884_v61  ;;  %v7033_v21 = vpop.f32.mrb[10].mxu0 }
 0xa1a   :  { %v7048_v62 = vmax.f32 %v12888_v28, 0.0  ;;  %v12890_v18 = vadd.f32 %v7033_v21, %v5880_v55  ;;  %v7035_v60 = vpop.f32.mrb[11].mxu0 }
 0xa1b   :  { %v7049_v8 = vmax.f32 %v12889_v38, 0.0  ;;  %v12891_v52 = vadd.f32 %v7035_v60, %v5884_v61 }
 0xa1c   :  { %v7050_v53 = vmax.f32 %v12890_v18, 0.0  ;;  %v7056_v46 = vadd.f32 %v7048_v62, %v16448_v50 }
 0xa1d   :  { %v7057_v33 = vadd.f32 %v7049_v8, %v16459_v47  ;;  %v7051_v6 = vmax.f32 %v12891_v52, 0.0  ;;  %v16823_v52 = vld [vmem:[%s16795_s17 + $0x18] sm:$0xff]  }
 0xa1e   :  { %v7058_v19 = vadd.f32 %v7050_v53, %v16450_v23  ;;  %17640 = vst [vmem:[#allocation3_spill] sm:$0xff] %v16823_v52  ;;  %12559 = vmatpush3.bf16.msra.mxu0 %v16823_v52 }
 0xa1f   :  { %v7059_v2 = vadd.f32 %v7051_v6, %v16461_v20  ;;  %v7039_v3 = vpop.f32.mrb[12].mxu0  ;;  %v7073_v42 = vsel %vm269_vm3, %v7057_v33, 0.0  ;;  %12576 = vmatprep.subr.bf16.mxu0 %v17632_v49 }
 0xa20   :  { %v7064_v47 = vadd.f32 %v7058_v19, %v7056_v46  ;;  %v12892_v25 = vadd.f32 %v7039_v3, %v5880_v55  ;;  %v7041_v28 = vpop.f32.mrb[13].mxu0 }
 0xa21   :  { %v7074_v50 = vsel %vm269_vm3, %v7059_v2, 0.0  ;;  %v12893_v23 = vadd.f32 %v7041_v28, %v5884_v61  ;;  %v7043_v38 = vpop.f32.mrb[14].mxu0 }
 0xa22   :  { %v7075_v21 = vadd.f32 %v7074_v50, %v7073_v42  ;;  %v7052_v62 = vmax.f32 %v12892_v25, 0.0  ;;  %v12894_v18 = vadd.f32 %v7043_v38, %v5880_v55  ;;  %v7045_v60 = vpop.f32.mrb[15].mxu0 }
 0xa23   :  { %v7053_v20 = vmax.f32 %v12893_v23, 0.0  ;;  %v12895_v8 = vadd.f32 %v7045_v60, %v5884_v61 }
 0xa24   :  { %v7060_v53 = vadd.f32 %v7052_v62, %v16463_v37  ;;  %v7054_v6 = vmax.f32 %v12894_v18, 0.0 }
 0xa25   :  { %v7061_v3 = vadd.f32 %v7053_v20, %v16465_v10  ;;  %v7055_v32 = vmax.f32 %v12895_v8, 0.0 }
 0xa26   :  { %v7065_v28 = vadd.f32 %v7064_v47, %v7060_v53  ;;  %v7062_v42 = vadd.f32 %v7054_v6, %v16476_v15 }
 0xa27   :  { %v7076_v55 = vsel %vm269_vm3, %v7061_v3, 0.0  ;;  %v7063_v25 = vadd.f32 %v7055_v32, %v16468_v4 }
 0xa28   :  { %v7077_v61 = vadd.f32 %v7076_v55, %v7075_v21  ;;  %v7066_v50 = vadd.f32 %v7065_v28, %v7062_v42 }
 0xa29   :  { %v7078_v23 = vsel %vm269_vm3, %v7063_v25, 0.0 }
 0xa2a   :  { %v7067_v37 = vrot.slane %v7066_v50, 4  ;;  %v7079_v38 = vadd.f32 %v7078_v23, %v7077_v61 }
 0xa2c   :  { %v7068_v62 = vadd.f32 %v7067_v37, %v7066_v50  ;;  %v7080_v10 = vrot.slane %v7079_v38, 4 }
 0xa2e   :  { %v7069_v18 = vrot.slane %v7068_v62, 2  ;;  %v7081_v60 = vadd.f32 %v7080_v10, %v7079_v38 }
 0xa30   :  { %v7070_v20 = vadd.f32 %v7069_v18, %v7068_v62  ;;  %v7082_v47 = vrot.slane %v7081_v60, 2 }
 0xa32   :  { %v7071_v8 = vrot.slane %v7070_v20, 1  ;;  %v7083_v15 = vadd.f32 %v7082_v47, %v7081_v60 }
 0xa34   :  { %v7072_v6 = vadd.f32 %v7071_v8, %v7070_v20  ;;  %v7084_v44 = vrot.slane %v7083_v15, 1 }
 0xa36   :  { %v7086_v36 = vmul.f32 0.03125, %v7072_v6  ;;  %v7085_v24 = vadd.f32 %v7084_v44, %v7083_v15 }
 0xa38   :  { %v7088_v63 = vsub.f32 %v7056_v46, %v7086_v36  ;;  %v7090_v4 = vsub.f32 %v7058_v19, %v7086_v36  ;;  %v7092_v32 = vsub.f32 %v7060_v53, %v7086_v36  ;;  %v7094_v21 = vsub.f32 %v7062_v42, %v7086_v36 }
 0xa39   :  { %v7087_v28 = vmul.f32 0.03125, %v7085_v24 }
 0xa3a   :  { %v7096_v55 = vmul.f32 %v7088_v63, %v7088_v63  ;;  %v7098_v52 = vmul.f32 %v7090_v4, %v7090_v4  ;;  %v7100_v61 = vmul.f32 %v7092_v32, %v7092_v32  ;;  %v7102_v46 = vmul.f32 %v7094_v21, %v7094_v21 }
 0xa3b   :  { %v16833_v50 = vsub.f32 %v7057_v33, %v7087_v28  ;;  %v16835_v37 = vsub.f32 %v7059_v2, %v7087_v28  ;;  %v16837_v38 = vsub.f32 %v7061_v3, %v7087_v28  ;;  %v16839_v62 = vsub.f32 %v7063_v25, %v7087_v28 }
 0xa3c   :  { %v7104_v23 = vadd.f32 %v7098_v52, %v7096_v55 }
 0xa3d   :  { %v7097_v44 = vmul.f32 %v16833_v50, %v16833_v50  ;;  %v7099_v24 = vmul.f32 %v16835_v37, %v16835_v37  ;;  %v7101_v36 = vmul.f32 %v16837_v38, %v16837_v38  ;;  %v7103_v2 = vmul.f32 %v16839_v62, %v16839_v62 }
 0xa3e   :  { %v7105_v19 = vadd.f32 %v7104_v23, %v7100_v61 }
 0xa3f   :  { %v7113_v33 = vsel %vm269_vm3, %v7097_v44, 0.0  ;;  %v7114_v53 = vsel %vm269_vm3, %v7099_v24, 0.0  ;;  %v7116_v25 = vsel %vm269_vm3, %v7101_v36, 0.0  ;;  %v7118_v60 = vsel %vm269_vm3, %v7103_v2, 0.0 }
 0xa40   :  { %v7106_v52 = vadd.f32 %v7105_v19, %v7102_v46  ;;  %v7115_v3 = vadd.f32 %v7114_v53, %v7113_v33  ;;  %v11943_v33 = vld [vmem:[%s15696_s30 + $0x4] sm:$0x3]  ;;  %s14737_s30 = smov 18  }
 0xa41   :  { %v7134_v2 = vrot.slane %v11943_v33, %v14806_v40  ;;  %v11944_v53 = vld [vmem:[%s15702_s4 + $0x4] sm:$0x3]  ;;  %s11067_s23 = sld [smem:[%s17588_s0 + %s14737_s30]]  }
 0xa42   :  { %v7107_v42 = vrot.slane %v7106_v52, 4  ;;  %v7117_v10 = vadd.f32 %v7116_v25, %v7115_v3  ;;  %v7221_v3 = vrot.slane %v16735_v59, %v14806_v40  ;;  %v7225_v25 = vrot.slane %v16735_v59, %v14809_v41  ;;  %s11076_s4 = sld [smem:[%s17588_s0 + %s14744_s20]]  }
 0xa44   :  { %v7108_v18 = vadd.f32 %v7107_v42, %v7106_v52  ;;  %v7119_v20 = vadd.f32 %v7118_v60, %v7117_v10  ;;  %v7961_v42 = vld [vmem:[%s11065_s21] sm:$0x3]  ;;  %v7167_v10 = vrot.slane %v11944_v53, %v14806_v40  ;;  %v7143_v60 = vmul.f32 %v7134_v2, %v7090_v4 }
 0xa45   :  { %v7406_v59 = vadd.f32 %v16403_v31, %v7221_v3  ;;  %v7171_v4 = vrot.slane %v11944_v53, %v14809_v41 }
 0xa46   :  { %v7109_v47 = vrot.slane %v7108_v18, 2  ;;  %v7120_v8 = vrot.slane %v7119_v20, 4 }
 0xa48   :  { %v7110_v15 = vadd.f32 %v7109_v47, %v7108_v18  ;;  %v7121_v6 = vadd.f32 %v7120_v8, %v7119_v20  ;;  %v7141_v18 = vmul.f32 %v7134_v2, %v7088_v63  ;;  %v7147_v20 = vmul.f32 %v7134_v2, %v7094_v21 }
 0xa49   :  { %v7145_v47 = vmul.f32 %v7134_v2, %v7092_v32  ;;  %v7410_v63 = vadd.f32 %v16409_v12, %v7221_v3  ;;  %v7970_v32 = vrot.slane %v7961_v42, %v14809_v41 }
 0xa4a   :  { %v7111_v28 = vrot.slane %v7110_v15, 1  ;;  %v7122_v55 = vrot.slane %v7121_v6, 2 }
 0xa4c   :  { %v7112_v61 = vadd.f32 %v7111_v28, %v7110_v15  ;;  %v7123_v23 = vadd.f32 %v7122_v55, %v7121_v6  ;;  %v7396_v15 = vadd.f32 %v16352_v26, %v7221_v3  ;;  %v7400_v6 = vadd.f32 %v16367_v43, %v7221_v3 }
 0xa4d   :  { %v7138_v28 = vrot.slane %v11943_v33, %v14809_v41  ;;  %v7966_v55 = vrot.slane %v7961_v42, %v14806_v40 }
 0xa4e   :  { %v7126_v44 = vmul.f32 0.03125, %v7112_v61  ;;  %v7124_v46 = vrot.slane %v7123_v23, 1 }
 0xa4f   :  { %v7142_v33 = vmul.f32 %v7138_v28, %v16833_v50 }
 0xa50   :  { %v7149_v19 = vadd.f32 1e-05, %v7126_v44  ;;  %v7125_v24 = vadd.f32 %v7124_v46, %v7123_v23 }
 0xa52   :  { %14640 = vrsqrt.f32 %v7149_v19  ;;  %v7127_v36 = vmul.f32 0.03125, %v7125_v24  ;;  %v7146_v24 = vmul.f32 %v7138_v28, %v16837_v38 }
 0xa54   :  { %v7150_v52 = vadd.f32 1e-05, %v7127_v36  ;;  %v7148_v36 = vmul.f32 %v7138_v28, %v16839_v62 }
 0xa56   :  { %14642 = vrsqrt.f32 %v7150_v52  ;;  %v7144_v52 = vmul.f32 %v7138_v28, %v16835_v37 }
 0xa5c   :  { %v14641_v8 = vpop.eup %14640 }
 0xa5d   :  { %v7153_v61 = vmul.f32 %v14641_v8, %v7141_v18  ;;  %v7155_v23 = vmul.f32 %v14641_v8, %v7143_v60  ;;  %v7159_v44 = vmul.f32 %v14641_v8, %v7147_v20  ;;  %v7157_v46 = vmul.f32 %v14641_v8, %v7145_v47 }
 0xa5f   :  { %v7180_v21 = vadd.f32 %v7167_v10, %v7159_v44  ;;  %v7174_v26 = vadd.f32 %v7167_v10, %v7153_v61  ;;  %v7176_v19 = vadd.f32 %v7167_v10, %v7155_v23  ;;  %v7178_v43 = vadd.f32 %v7167_v10, %v7157_v46 }
 0xa60   :  { %v14643_v2 = vpop.eup %14642 }
 0xa61   :  { %v7973_v31 = vmul.f32 %v7966_v55, %v7174_v26  ;;  %v7975_v18 = vmul.f32 %v7966_v55, %v7176_v19  ;;  %v7977_v12 = vmul.f32 %v7966_v55, %v7178_v43  ;;  %v7979_v3 = vmul.f32 %v7966_v55, %v7180_v21 }
 0xa62   :  { %v7160_v53 = vmul.f32 %v14643_v2, %v7148_v36  ;;  %v7154_v60 = vmul.f32 %v14643_v2, %v7142_v33  ;;  %v7156_v42 = vmul.f32 %v14643_v2, %v7144_v52  ;;  %v7158_v20 = vmul.f32 %v14643_v2, %v7146_v24  ;;  %v14511_v36 = vld [vmem:[%s16769_s13 + $0xa8] sm:$0xff]   ;;  %v14513_v33 = vld [vmem:[%s16769_s13 + $0xb8] sm:$0xff]  }
 0xa63   :  { %v7981_v47 = vadd.f32 %v7973_v31, %v16661_v16  ;;  %v7983_v10 = vadd.f32 %v7975_v18, %v16665_v7  ;;  %v7985_v38 = vadd.f32 %v7977_v12, %v16675_v51  ;;  %v7987_v62 = vadd.f32 %v7979_v3, %v16682_v22  ;;  %v12011_v3 = vld [vmem:[%s11067_s23] ss:$0 sm:$0xff] }
 0xa64   :  { %v7181_v50 = vadd.f32 %v7171_v4, %v7160_v53  ;;  %v7175_v8 = vadd.f32 %v7171_v4, %v7154_v60  ;;  %v7177_v37 = vadd.f32 %v7171_v4, %v7156_v42  ;;  %v7179_v28 = vadd.f32 %v7171_v4, %v7158_v20 }
 0xa65   :  { %v8029_v61 = vadd.f32 %v7981_v47, %v7396_v15  ;;  %v8032_v23 = vadd.f32 %v7983_v10, %v7400_v6  ;;  %v8035_v44 = vadd.f32 %v7985_v38, %v7406_v59  ;;  %v8038_v55 = vadd.f32 %v7987_v62, %v7410_v63 }
 0xa66   :  { %v7980_v46 = vmul.f32 %v7970_v32, %v7181_v50  ;;  %v7974_v21 = vmul.f32 %v7970_v32, %v7175_v8  ;;  %v7976_v26 = vmul.f32 %v7970_v32, %v7177_v37  ;;  %v7978_v19 = vmul.f32 %v7970_v32, %v7179_v28 }
 0xa67   :  { %v8041_v43 = vpack.c.bf16 %v8032_v23, %v8029_v61  ;;  %v8044_v16 = vpack.c.bf16 %v8038_v55, %v8035_v44  ;;  %v7398_v15 = vadd.f32 %v16365_v5, %v7225_v25  ;;  %v7402_v6 = vadd.f32 %v16373_v14, %v7225_v25 }
 0xa68   :  { %v7982_v7 = vadd.f32 %v7974_v21, %v16679_v48  ;;  %v7984_v51 = vadd.f32 %v7976_v26, %v16688_v9  ;;  %v7986_v22 = vadd.f32 %v7978_v19, %v16694_v45  ;;  %v7988_v24 = vadd.f32 %v7980_v46, %v16700_v34 }
 0xa69   :  { %v7408_v59 = vadd.f32 %v16406_v0, %v7225_v25  ;;  %v7412_v63 = vadd.f32 %v16411_v29, %v7225_v25  ;;  %v14507_v25 = vld [vmem:[%s16769_s13 + $0x88] sm:$0xff]  }
 0xa6a   :  { %v8025_v4 = vsel %vm269_vm3, %v7982_v7, %v16728_v39  ;;  %v8026_v48 = vsel %vm269_vm3, %v7984_v51, %v16730_v57  ;;  %v8027_v9 = vsel %vm269_vm3, %v7986_v22, %v16733_v13  ;;  %v8028_v45 = vsel %vm269_vm3, %v7988_v24, %v16740_v27  ;;  %v14508_v39 = vld [vmem:[%s16769_s13 + $0x90] sm:$0xff]   ;;  %v14509_v57 = vld [vmem:[%s16769_s13 + $0x98] sm:$0xff]   ;;  %v14510_v27 = vld [vmem:[%s16769_s13 + $0xa0] sm:$0xff]  }
 0xa6b   :  { %v8030_v5 = vadd.f32 %v8025_v4, %v7398_v15  ;;  %v8033_v14 = vadd.f32 %v8026_v48, %v7402_v6  ;;  %v8036_v34 = vadd.f32 %v8027_v9, %v7408_v59  ;;  %v8039_v0 = vadd.f32 %v8028_v45, %v7412_v63 }
 0xa6c   :  { %v17641_v13 = vpack.c.bf16 %v16750_v56, %v16748_v54  ;;  %v17642_v54 = vpack.c.bf16 %v16762_v17, %v16760_v11  ;;  %v17643_v56 = vld [vmem:[#allocation3_spill] sm:$0xff]  ;;  %v17644_v11 = vmov 0  }
 0xa6d   :  { %v8042_v32 = vpack.c.bf16 %v8033_v14, %v8030_v5  ;;  %v8045_v29 = vpack.c.bf16 %v8039_v0, %v8036_v34 }
 0xa6f   :  { %8278 = vmatprep.mubr.bf16.mxu1 %v8042_v32 }
 0xa70   :  { %8279 = vmatmul.mubr.bf16.vlgmr.msra.gmra.mrb[36].mxu1 %v8041_v43 }
 0xa71   :  { %12437 = vmatpush3.bf16.msra.mxu1 %v16788_v58  ;;  %8286 = vmatprep.mubr.bf16.mxu1 %v8045_v29  ;;  %v14512_v58 = vld [vmem:[%s16769_s13 + $0xb0] sm:$0xff]   ;;  %s17582_s13 = sld [smem:[%s17588_s0 + %s14749_s10]]  }
 0xa72   :  { %12438 = vmatprep.subr.bf16.mxu1 %v14507_v25 }
 0xa75   :  { %12439 = vmatpush3.bf16.msra.mxu1 %v14507_v25 }
 0xa76   :  { %12440 = vmatprep.subr.bf16.mxu1 %v14508_v39 }
 0xa78   :  { %8287 = vmatmul.mubr.bf16.gmra.mrb[40].mxu1 %v8044_v16 }
 0xa79   :  { %12441 = vmatpush3.bf16.msra.mxu1 %v14508_v39  ;;  %12452 = vmatprep.mubr.bf16.mxu1 %v17641_v13 }
 0xa7a   :  { %12442 = vmatprep.subr.bf16.mxu1 %v14509_v57 }
 0xa7d   :  { %12443 = vmatpush3.bf16.msra.mxu1 %v14509_v57 }
 0xa7e   :  { %12444 = vmatprep.subr.bf16.mxu1 %v14510_v27 }
 0xa81   :  { %12445 = vmatpush3.bf16.msra.mxu1 %v14510_v27 }
 0xa82   :  { %12446 = vmatprep.subr.bf16.mxu1 %v14511_v36 }
 0xa85   :  { %12447 = vmatpush3.bf16.msra.mxu1 %v14511_v36 }
 0xa86   :  { %12448 = vmatprep.subr.bf16.mxu1 %v14512_v58 }
 0xa89   :  { %12449 = vmatpush3.bf16.msra.mxu1 %v14512_v58 }
 0xa8a   :  { %12450 = vmatprep.subr.bf16.mxu1 %v14513_v33 }
 0xa8d   :  { %12451 = vmatpush3.bf16.msra.mxu1 %v14513_v33 }
 0xa8e   :  { %12456 = vmatprep.subr.bf16.mxu1 %v17632_v49 }
 0xa90   :  { %12453 = vmatmul.mubr.bf16.vlgmr.msra.gmra.mrb[44].mxu1 %v17642_v54 }
 0xa91   :  { %12457 = vmatpush3.bf16.msra.mxu1 %v16800_v30  ;;  %12464 = vmatprep.mubr.msk.bf16.mxu1 %vm14735_vm14, %v17632_v49 }
 0xa92   :  { %12458 = vmatprep.subr.bf16.mxu1 %v17632_v49 }
 0xa95   :  { %12459 = vmatpush3.bf16.msra.mxu1 %v16805_v35 }
 0xa96   :  { %12460 = vmatprep.subr.bf16.mxu1 %v17632_v49 }
 0xa99   :  { %12461 = vmatpush3.bf16.msra.mxu1 %v16816_v1 }
 0xa9a   :  { %12462 = vmatprep.subr.bf16.mxu1 %v17632_v49 }
 0xa9d   :  { %12463 = vmatpush3.bf16.msra.mxu1 %v17643_v56 }
 0xa9e   :  { %12468 = vmatprep.subr.bf16.mxu1 %v17632_v49 }
 0xaa0   :  { %12465 = vmatmul.mubr.bf16.vlgmr.msra.gmra.mrb[48].mxu1 %v17644_v11 }
 0xaa1   :  { %12469 = vmatpush3.bf16.msra.mxu1 %v16800_v30  ;;  %12476 = vmatprep.mubr.msk.bf16.mxu1 %vm14735_vm14, %v17632_v49 }
 0xaa2   :  { %12470 = vmatprep.subr.bf16.mxu1 %v17632_v49 }
 0xaa5   :  { %12471 = vmatpush3.bf16.msra.mxu1 %v16805_v35 }
 0xaa6   :  { %12472 = vmatprep.subr.bf16.mxu1 %v17632_v49 }
 0xaa9   :  { %12473 = vmatpush3.bf16.msra.mxu1 %v16816_v1 }
 0xaaa   :  { %12474 = vmatprep.subr.bf16.mxu1 %v17632_v49 }
 0xaad   :  { %12475 = vmatpush3.bf16.msra.mxu1 %v17643_v56 }
 0xaae   :  { %12480 = vmatprep.subr.bf16.mxu1 %v17632_v49 }
 0xb43   :  { %v12162_v17 = vpop.f32.mrb[36].mxu1 }
 0xb44   :  { %v12163_v52 = vpop.f32.mrb[37].mxu1 }
 0xb45   :  { %v12164_v2 = vadd.f32 %v12163_v52, %v12162_v17  ;;  %v12165_v31 = vpop.f32.mrb[38].mxu1 }
 0xb46   :  { %v12166_v18 = vpop.f32.mrb[39].mxu1 }
 0xb47   :  { %v12167_v12 = vadd.f32 %v12166_v18, %v12165_v31  ;;  %v8281_v8 = vadd.f32 %v12164_v2, %v12011_v3 }
 0xb49   :  { %v8284_v53 = vadd.f32 %v12167_v12, %v12011_v3 }
 0xb4b   :  { %v12168_v60 = vpop.f32.mrb[40].mxu1 }
 0xb4c   :  { %v12169_v42 = vpop.f32.mrb[41].mxu1 }
 0xb4d   :  { %v12170_v20 = vadd.f32 %v12169_v42, %v12168_v60  ;;  %v12171_v47 = vpop.f32.mrb[42].mxu1 }
 0xb4e   :  { %v12172_v10 = vpop.f32.mrb[43].mxu1 }
 0xb4f   :  { %v12173_v38 = vadd.f32 %v12172_v10, %v12171_v47  ;;  %v8289_v62 = vadd.f32 %v12170_v20, %v12011_v3 }
 0xb51   :  { %v8292_v61 = vadd.f32 %v12173_v38, %v12011_v3 }
 0xb63   :  { %v12454_v50 = vpop.f32.mrb[44].mxu1 }
 0xb64   :  { %v8338_v37 = vadd.f32 %v12454_v50, %v8289_v62  ;;  %v8329_v28 = vpop.f32.mrb[45].mxu1 }
 0xb65   :  { %v8330_v23 = vadd.f32 %v8329_v28, %v8281_v8  ;;  %v12455_v44 = vpop.f32.mrb[46].mxu1 }
 0xb66   :  { %v8358_v55 = vrot.slane %v8338_v37, 6  ;;  %v8360_v46 = vrot.slane %v8338_v37, 2  ;;  %v8341_v21 = vadd.f32 %v12455_v44, %v8292_v61  ;;  %v8332_v26 = vpop.f32.mrb[47].mxu1 }
 0xb67   :  { %v8368_v19 = vrot.slane %v8330_v23, 6  ;;  %v8370_v43 = vrot.slane %v8330_v23, 2  ;;  %v8333_v16 = vadd.f32 %v8332_v26, %v8284_v53 }
 0xb68   :  { %v8375_v7 = vsel %vm307_vm2, %v8358_v55, %v8360_v46  ;;  %v8353_v51 = vrot.slane %v8341_v21, 6  ;;  %v8355_v22 = vrot.slane %v8341_v21, 2 }
 0xb69   :  { %v8381_v24 = vsel %vm307_vm2, %v8368_v19, %v8370_v43  ;;  %v8363_v15 = vrot.slane %v8333_v16, 6  ;;  %v8365_v6 = vrot.slane %v8333_v16, 2  ;;  %v8376_v59 = vsel %vm203_vm0, %v8375_v7, %v8358_v55 }
 0xb6a   :  { %v8372_v63 = vsel %vm307_vm2, %v8353_v51, %v8355_v22  ;;  %v8377_v4 = vsel %vm235_vm1, %v8376_v59, %v8360_v46  ;;  %v8382_v48 = vsel %vm203_vm0, %v8381_v24, %v8368_v19 }
 0xb6b   :  { %v8378_v9 = vsel %vm307_vm2, %v8363_v15, %v8365_v6  ;;  %v8373_v45 = vsel %vm203_vm0, %v8372_v63, %v8353_v51  ;;  %v16944_v5 = vsel %vm8384_vm15, %v8333_v16, %v8377_v4  ;;  %v8383_v14 = vsel %vm235_vm1, %v8382_v48, %v8370_v43 }
 0xb6c   :  { %v8374_v34 = vsel %vm235_vm1, %v8373_v45, %v8355_v22  ;;  %v8379_v0 = vsel %vm203_vm0, %v8378_v9, %v8363_v15  ;;  %v16950_v32 = vsel %vm8384_vm15, %v8341_v21, %v8383_v14 }
 0xb6d   :  { %v16953_v29 = vsel %vm8384_vm15, %v8330_v23, %v8374_v34  ;;  %v8380_v25 = vsel %vm235_vm1, %v8379_v0, %v8365_v6 }
 0xb6e   :  { %v16957_v39 = vsel %vm8384_vm15, %v8338_v37, %v8380_v25 }
 0xb73   :  { %v8450_v57 = vpop.f32.mrb[48].mxu1 }
 0xb74   :  { %v8456_v13 = vadd.f32 %v8450_v57, %v16953_v29  ;;  %v12466_v27 = vpop.f32.mrb[49].mxu1 }
 0xb75   :  { %v8453_v36 = vpop.f32.mrb[50].mxu1 }
 0xb76   :  { %14644 = vtanh.f32 %v8456_v13  ;;  %v12467_v58 = vpop.f32.mrb[51].mxu1 }
 0xb80   :  { %v16960_v33 = vpop.eup %14644 }
 0xb81   :  { %v8458_v54 = vpack.c.bf16 %v16960_v33, %v16960_v33 }
 0xb83   :  { %12477 = vmatmul.mubr.msk.bf16.vlgmr.msra.gmra.mrb[52].mxu1 %vm269_vm3, %v8458_v54 }
 0xb84   :  { %12481 = vmatpush3.bf16.msra.mxu1 %v16800_v30  ;;  %12488 = vmatprep.mubr.msk.bf16.mxu1 %vm14735_vm14, %v17632_v49 }
 0xb85   :  { %12482 = vmatprep.subr.bf16.mxu1 %v17632_v49 }
 0xb88   :  { %12483 = vmatpush3.bf16.msra.mxu1 %v16805_v35 }
 0xb89   :  { %12484 = vmatprep.subr.bf16.mxu1 %v17632_v49 }
 0xb8c   :  { %12485 = vmatpush3.bf16.msra.mxu1 %v16816_v1 }
 0xb8d   :  { %12486 = vmatprep.subr.bf16.mxu1 %v17632_v49 }
 0xb90   :  { %12487 = vmatpush3.bf16.msra.mxu1 %v17643_v56 }
 0xb91   :  { %12492 = vmatprep.subr.bf16.mxu1 %v17632_v49 }
 0xc56   :  { %v8496_v17 = vpop.f32.mrb[52].mxu1 }
 0xc57   :  { %v8503_v52 = vrot.slane %v8496_v17, 6  ;;  %v12478_v2 = vpop.f32.mrb[53].mxu1 }
 0xc58   :  { %v8499_v31 = vpop.f32.mrb[54].mxu1 }
 0xc59   :  { %v8505_v18 = vadd.f32 %v8503_v52, %v16953_v29  ;;  %v12479_v12 = vpop.f32.mrb[55].mxu1 }
 0xc5b   :  { %14646 = vtanh.f32 %v8505_v18 }
 0xc65   :  { %v14647_v3 = vpop.eup %14646 }
 0xc66   :  { %v8507_v53 = vpack.c.bf16 %v14647_v3, %v14647_v3  ;;  %v9206_v8 = vsel %vm307_vm2, %v16960_v33, %v14647_v3  ;;  %v9261_v22 = vrot.slane %v14647_v3, 6 }
 0xc68   :  { %v8509_v60 = vrot.slane %v8507_v53, 1 }
 0xc6a   :  { %12489 = vmatmul.mubr.msk.bf16.vlgmr.msra.gmra.mrb[56].mxu1 %vm269_vm3, %v8509_v60 }
 0xc6b   :  { %12493 = vmatpush3.bf16.msra.mxu1 %v16800_v30  ;;  %12500 = vmatprep.mubr.msk.bf16.mxu1 %vm14735_vm14, %v17632_v49 }
 0xc6c   :  { %12494 = vmatprep.subr.bf16.mxu1 %v17632_v49 }
 0xc6f   :  { %12495 = vmatpush3.bf16.msra.mxu1 %v16805_v35 }
 0xc70   :  { %12496 = vmatprep.subr.bf16.mxu1 %v17632_v49 }
 0xc73   :  { %12497 = vmatpush3.bf16.msra.mxu1 %v16816_v1 }
 0xc74   :  { %12498 = vmatprep.subr.bf16.mxu1 %v17632_v49 }
 0xc77   :  { %12499 = vmatpush3.bf16.msra.mxu1 %v17643_v56 }
 0xc78   :  { %12504 = vmatprep.subr.bf16.mxu1 %v17632_v49 }
 0xd3d   :  { %v8547_v42 = vpop.f32.mrb[56].mxu1 }
 0xd3e   :  { %v8554_v20 = vrot.slane %v8547_v42, 4  ;;  %v12490_v47 = vpop.f32.mrb[57].mxu1 }
 0xd3f   :  { %v8550_v10 = vpop.f32.mrb[58].mxu1 }
 0xd40   :  { %v8556_v38 = vadd.f32 %v8554_v20, %v16953_v29  ;;  %v12491_v62 = vpop.f32.mrb[59].mxu1 }
 0xd42   :  { %14648 = vtanh.f32 %v8556_v38 }
 0xd4c   :  { %v14649_v50 = vpop.eup %14648 }
 0xd4d   :  { %v8558_v37 = vpack.c.bf16 %v14649_v50, %v14649_v50  ;;  %v9207_v28 = vsel %vm203_vm0, %v9206_v8, %v14649_v50  ;;  %v9258_v51 = vrot.slane %v14649_v50, 2 }
 0xd4f   :  { %v8560_v61 = vrot.slane %v8558_v37, 2 }
 0xd51   :  { %12501 = vmatmul.mubr.msk.bf16.vlgmr.msra.gmra.mrb[60].mxu1 %vm269_vm3, %v8560_v61 }
 0xd52   :  { %12505 = vmatpush3.bf16.msra.mxu1 %v16800_v30  ;;  %12512 = vmatprep.mubr.msk.bf16.mxu1 %vm14735_vm14, %v17632_v49 }
 0xd53   :  { %12506 = vmatprep.subr.bf16.mxu1 %v17632_v49 }
 0xd56   :  { %12507 = vmatpush3.bf16.msra.mxu1 %v16805_v35 }
 0xd57   :  { %12508 = vmatprep.subr.bf16.mxu1 %v17632_v49 }
 0xd5a   :  { %12509 = vmatpush3.bf16.msra.mxu1 %v16816_v1 }
 0xd5b   :  { %12510 = vmatprep.subr.bf16.mxu1 %v17632_v49 }
 0xd5e   :  { %12511 = vmatpush3.bf16.msra.mxu1 %v17643_v56 }
 0xd5f   :  { %12516 = vmatprep.subr.bf16.mxu1 %v17632_v49 }
 0xe24   :  { %v8598_v23 = vpop.f32.mrb[60].mxu1 }
 0xe25   :  { %v8605_v44 = vrot.slane %v8598_v23, 2  ;;  %v12502_v55 = vpop.f32.mrb[61].mxu1 }
 0xe26   :  { %v8601_v46 = vpop.f32.mrb[62].mxu1 }
 0xe27   :  { %v8607_v21 = vadd.f32 %v8605_v44, %v16953_v29  ;;  %v12503_v26 = vpop.f32.mrb[63].mxu1 }
 0xe29   :  { %14650 = vtanh.f32 %v8607_v21 }
 0xe33   :  { %v14651_v19 = vpop.eup %14650 }
 0xe34   :  { %v8609_v43 = vpack.c.bf16 %v14651_v19, %v14651_v19  ;;  %v17004_v16 = vsel %vm235_vm1, %v9207_v28, %v14651_v19  ;;  %v9255_v7 = vrot.slane %v14651_v19, 6 }
 0xe36   :  { %v8611_v24 = vrot.slane %v8609_v43, 3  ;;  %v9275_v15 = vsel %vm307_vm2, %v9255_v7, %v9258_v51 }
 0xe37   :  { %v17008_v6 = vsel %vm203_vm0, %v9275_v15, %v9261_v22 }
 0xe38   :  { %12513 = vmatmul.mubr.msk.bf16.vlgmr.msra.gmra.mrb[64].mxu1 %vm269_vm3, %v8611_v24 }
 0xe39   :  { %12517 = vmatpush3.bf16.msra.mxu1 %v16800_v30  ;;  %12524 = vmatprep.mubr.msk.bf16.mxu1 %vm14735_vm14, %v17632_v49 }
 0xe3a   :  { %12518 = vmatprep.subr.bf16.mxu1 %v17632_v49 }
 0xe3d   :  { %12519 = vmatpush3.bf16.msra.mxu1 %v16805_v35 }
 0xe3e   :  { %12520 = vmatprep.subr.bf16.mxu1 %v17632_v49 }
 0xe41   :  { %12521 = vmatpush3.bf16.msra.mxu1 %v16816_v1 }
 0xe42   :  { %12522 = vmatprep.subr.bf16.mxu1 %v17632_v49 }
 0xe45   :  { %12523 = vmatpush3.bf16.msra.mxu1 %v17643_v56 }
 0xe46   :  { %12528 = vmatprep.subr.bf16.mxu1 %v17632_v49 }
 0xf0b   :  { %v8649_v59 = vpop.f32.mrb[64].mxu1 }
 0xf0c   :  { %v8655_v63 = vadd.f32 %v8649_v59, %v16944_v5  ;;  %v12514_v4 = vpop.f32.mrb[65].mxu1 }
 0xf0d   :  { %v8652_v48 = vpop.f32.mrb[66].mxu1 }
 0xf0e   :  { %14652 = vtanh.f32 %v8655_v63  ;;  %v12515_v9 = vpop.f32.mrb[67].mxu1 }
 0xf18   :  { %v17022_v45 = vpop.eup %14652 }
 0xf19   :  { %v8657_v14 = vpack.c.bf16 %v17022_v45, %v17022_v45 }
 0xf1b   :  { %12525 = vmatmul.mubr.msk.bf16.vlgmr.msra.gmra.mrb[68].mxu1 %vm269_vm3, %v8657_v14 }
 0xf1c   :  { %12529 = vmatpush3.bf16.msra.mxu1 %v16800_v30  ;;  %12536 = vmatprep.mubr.msk.bf16.mxu1 %vm14735_vm14, %v17632_v49 }
 0xf1d   :  { %12530 = vmatprep.subr.bf16.mxu1 %v17632_v49 }
 0xf20   :  { %12531 = vmatpush3.bf16.msra.mxu1 %v16805_v35 }
 0xf21   :  { %12532 = vmatprep.subr.bf16.mxu1 %v17632_v49 }
 0xf24   :  { %12533 = vmatpush3.bf16.msra.mxu1 %v16816_v1 }
 0xf25   :  { %12534 = vmatprep.subr.bf16.mxu1 %v17632_v49 }
 0xf28   :  { %12535 = vmatpush3.bf16.msra.mxu1 %v17643_v56 }
 0xf29   :  { %12540 = vmatprep.subr.bf16.mxu1 %v17632_v49 }
 0xfee   :  { %v8695_v34 = vpop.f32.mrb[68].mxu1 }
 0xfef   :  { %v8702_v0 = vrot.slane %v8695_v34, 6  ;;  %v12526_v29 = vpop.f32.mrb[69].mxu1 }
 0xff0   :  { %v8698_v25 = vpop.f32.mrb[70].mxu1 }
 0xff1   :  { %v8704_v57 = vadd.f32 %v8702_v0, %v16944_v5  ;;  %v12527_v13 = vpop.f32.mrb[71].mxu1 }
 0xff3   :  { %14654 = vtanh.f32 %v8704_v57 }
 0xffd   :  { %v14655_v27 = vpop.eup %14654 }
 0xffe   :  { %v8706_v36 = vpack.c.bf16 %v14655_v27, %v14655_v27  ;;  %v9209_v3 = vsel %vm307_vm2, %v17022_v45, %v14655_v27  ;;  %v9249_v44 = vrot.slane %v14655_v27, 6 }
0x1000   :  { %v8708_v58 = vrot.slane %v8706_v36, 1 }
0x1002   :  { %12537 = vmatmul.mubr.msk.bf16.vlgmr.msra.gmra.mrb[72].mxu1 %vm269_vm3, %v8708_v58 }
0x1003   :  { %12541 = vmatpush3.bf16.msra.mxu1 %v16800_v30  ;;  %12548 = vmatprep.mubr.msk.bf16.mxu1 %vm14735_vm14, %v17632_v49 }
0x1004   :  { %12542 = vmatprep.subr.bf16.mxu1 %v17632_v49 }
0x1007   :  { %12543 = vmatpush3.bf16.msra.mxu1 %v16805_v35 }
0x1008   :  { %12544 = vmatprep.subr.bf16.mxu1 %v17632_v49 }
0x100b   :  { %12545 = vmatpush3.bf16.msra.mxu1 %v16816_v1 }
0x100c   :  { %12546 = vmatprep.subr.bf16.mxu1 %v17632_v49 }
0x100f   :  { %12547 = vmatpush3.bf16.msra.mxu1 %v17643_v56 }
0x1010   :  { %12564 = vmatprep.subr.bf16.mxu1 %v17632_v49 }
0x10d5   :  { %v8746_v54 = vpop.f32.mrb[72].mxu1 }
0x10d6   :  { %v8753_v17 = vrot.slane %v8746_v54, 4  ;;  %v12538_v52 = vpop.f32.mrb[73].mxu1 }
0x10d7   :  { %v8749_v2 = vpop.f32.mrb[74].mxu1  ;;  %v14708_v52 = vld [vmem:[%s16795_s17] sm:$0xff]  }
0x10d8   :  { %v8755_v31 = vadd.f32 %v8753_v17, %v16944_v5  ;;  %v12539_v18 = vpop.f32.mrb[75].mxu1 }
0x10da   :  { %14656 = vtanh.f32 %v8755_v31 }
0x10e4   :  { %v14657_v12 = vpop.eup %14656 }
0x10e5   :  { %v8757_v53 = vpack.c.bf16 %v14657_v12, %v14657_v12  ;;  %v9210_v60 = vsel %vm203_vm0, %v9209_v3, %v14657_v12  ;;  %v9246_v23 = vrot.slane %v14657_v12, 2 }
0x10e7   :  { %v8759_v42 = vrot.slane %v8757_v53, 2 }
0x10e9   :  { %12549 = vmatmul.mubr.msk.bf16.vlgmr.msra.gmra.mrb[76].mxu1 %vm269_vm3, %v8759_v42 }
0x10ea   :  { %12565 = vmatpush3.bf16.msra.mxu1 %v16800_v30  ;;  %12572 = vmatprep.mubr.msk.bf16.mxu1 %vm14735_vm14, %v17632_v49 }
0x10eb   :  { %12566 = vmatprep.subr.bf16.mxu1 %v17632_v49 }
0x10ee   :  { %12567 = vmatpush3.bf16.msra.mxu1 %v16805_v35 }
0x10ef   :  { %12568 = vmatprep.subr.bf16.mxu1 %v17632_v49 }
0x10f2   :  { %12569 = vmatpush3.bf16.msra.mxu1 %v16816_v1 }
0x10f3   :  { %12570 = vmatprep.subr.bf16.mxu1 %v17632_v49 }
0x10f6   :  { %12571 = vmatpush3.bf16.msra.mxu1 %v17643_v56 }
0x10f7   :  { %12588 = vmatprep.subr.bf16.mxu1 %v17632_v49 }
0x11bc   :  { %v8797_v20 = vpop.f32.mrb[76].mxu1 }
0x11bd   :  { %v8804_v47 = vrot.slane %v8797_v20, 2  ;;  %v12550_v10 = vpop.f32.mrb[77].mxu1 }
0x11be   :  { %v8800_v38 = vpop.f32.mrb[78].mxu1 }
0x11bf   :  { %v8806_v62 = vadd.f32 %v8804_v47, %v16944_v5  ;;  %v12551_v50 = vpop.f32.mrb[79].mxu1 }
0x11c1   :  { %14658 = vtanh.f32 %v8806_v62 }
0x11cb   :  { %v14659_v8 = vpop.eup %14658 }
0x11cc   :  { %v8808_v37 = vpack.c.bf16 %v14659_v8, %v14659_v8  ;;  %v17066_v28 = vsel %vm235_vm1, %v9210_v60, %v14659_v8  ;;  %v9243_v61 = vrot.slane %v14659_v8, 6 }
0x11ce   :  { %v8810_v55 = vrot.slane %v8808_v37, 3  ;;  %v9272_v46 = vsel %vm307_vm2, %v9243_v61, %v9246_v23  ;;  %v14709_v61 = vld [vmem:[%s16795_s17 + $0x8] sm:$0xff]   ;;  %v14710_v23 = vld [vmem:[%s16795_s17 + $0x10] sm:$0xff]  }
0x11cf   :  { %v17070_v21 = vsel %vm203_vm0, %v9272_v46, %v9249_v44  ;;  %v14711_v44 = vld [vmem:[%s16795_s17 + $0x18] sm:$0xff]  }
0x11d0   :  { %12561 = vmatmul.mubr.msk.bf16.vlgmr.msra.gmra.mrb[16].mxu0 %vm269_vm3, %v8810_v55 }
0x11d1   :  { %12577 = vmatpush3.bf16.msra.mxu0 %v16800_v30  ;;  %12584 = vmatprep.mubr.msk.bf16.mxu0 %vm14735_vm14, %v17632_v49 }
0x11d2   :  { %12578 = vmatprep.subr.bf16.mxu0 %v17632_v49 }
0x11d5   :  { %12579 = vmatpush3.bf16.msra.mxu0 %v16805_v35 }
0x11d6   :  { %12580 = vmatprep.subr.bf16.mxu0 %v17632_v49 }
0x11d9   :  { %12581 = vmatpush3.bf16.msra.mxu0 %v16816_v1 }
0x11da   :  { %12582 = vmatprep.subr.bf16.mxu0 %v17632_v49 }
0x11dd   :  { %12583 = vmatpush3.bf16.msra.mxu0 %v17643_v56 }
0x11de   :  { %12600 = vmatprep.subr.bf16.mxu0 %v17632_v49 }
0x12a3   :  { %v8848_v5 = vpop.f32.mrb[16].mxu0 }
0x12a4   :  { %v8854_v26 = vadd.f32 %v8848_v5, %v16957_v39  ;;  %v12562_v19 = vpop.f32.mrb[17].mxu0 }
0x12a5   :  { %v8851_v43 = vpop.f32.mrb[18].mxu0 }
0x12a6   :  { %14660 = vtanh.f32 %v8854_v26  ;;  %v12563_v7 = vpop.f32.mrb[19].mxu0 }
0x12b0   :  { %v17084_v51 = vpop.eup %14660 }
0x12b1   :  { %v8856_v22 = vpack.c.bf16 %v17084_v51, %v17084_v51  ;;  %v9240_v62 = vrot.slane %v17084_v51, 2 }
0x12b3   :  { %12573 = vmatmul.mubr.msk.bf16.vlgmr.msra.gmra.mrb[80].mxu1 %vm269_vm3, %v8856_v22 }
0x12b4   :  { %12589 = vmatpush3.bf16.msra.mxu1 %v16800_v30  ;;  %12596 = vmatprep.mubr.msk.bf16.mxu1 %vm14735_vm14, %v17632_v49 }
0x12b5   :  { %12590 = vmatprep.subr.bf16.mxu1 %v17632_v49 }
0x12b8   :  { %12591 = vmatpush3.bf16.msra.mxu1 %v16805_v35 }
0x12b9   :  { %12592 = vmatprep.subr.bf16.mxu1 %v17632_v49 }
0x12bc   :  { %12593 = vmatpush3.bf16.msra.mxu1 %v16816_v1 }
0x12bd   :  { %12594 = vmatprep.subr.bf16.mxu1 %v17632_v49 }
0x12c0   :  { %12595 = vmatpush3.bf16.msra.mxu1 %v17643_v56 }
0x12c1   :  { %12612 = vmatprep.subr.bf16.mxu1 %v17632_v49 }
0x1386   :  { %v8894_v24 = vpop.f32.mrb[80].mxu1 }
0x1387   :  { %v8901_v15 = vrot.slane %v8894_v24, 6  ;;  %v12574_v59 = vpop.f32.mrb[81].mxu1 }
0x1388   :  { %v8897_v63 = vpop.f32.mrb[82].mxu1 }
0x1389   :  { %v8903_v4 = vadd.f32 %v8901_v15, %v16957_v39  ;;  %v12575_v48 = vpop.f32.mrb[83].mxu1 }
0x138b   :  { %14662 = vtanh.f32 %v8903_v4 }
0x1395   :  { %v14663_v9 = vpop.eup %14662 }
0x1396   :  { %v8905_v14 = vpack.c.bf16 %v14663_v9, %v14663_v9  ;;  %v9212_v36 = vsel %vm307_vm2, %v17084_v51, %v14663_v9  ;;  %v9237_v10 = vrot.slane %v14663_v9, 6 }
0x1398   :  { %v8907_v34 = vrot.slane %v8905_v14, 1 }
0x139a   :  { %12585 = vmatmul.mubr.msk.bf16.vlgmr.msra.gmra.mrb[20].mxu0 %vm269_vm3, %v8907_v34 }
0x139b   :  { %12601 = vmatpush3.bf16.msra.mxu0 %v16800_v30  ;;  %12608 = vmatprep.mubr.msk.bf16.mxu0 %vm14735_vm14, %v17632_v49 }
0x139c   :  { %12602 = vmatprep.subr.bf16.mxu0 %v17632_v49 }
0x139f   :  { %12603 = vmatpush3.bf16.msra.mxu0 %v16805_v35 }
0x13a0   :  { %12604 = vmatprep.subr.bf16.mxu0 %v17632_v49 }
0x13a3   :  { %12605 = vmatpush3.bf16.msra.mxu0 %v16816_v1 }
0x13a4   :  { %12606 = vmatprep.subr.bf16.mxu0 %v17632_v49 }
0x13a7   :  { %12607 = vmatpush3.bf16.msra.mxu0 %v17643_v56 }
0x13a8   :  { %12624 = vmatprep.subr.bf16.mxu0 %v17632_v49 }
0x146d   :  { %v8945_v0 = vpop.f32.mrb[20].mxu0 }
0x146e   :  { %v8952_v30 = vrot.slane %v8945_v0, 4  ;;  %v12586_v29 = vpop.f32.mrb[21].mxu0 }
0x146f   :  { %v8948_v25 = vpop.f32.mrb[22].mxu0 }
0x1470   :  { %v8954_v57 = vadd.f32 %v8952_v30, %v16957_v39  ;;  %v12587_v13 = vpop.f32.mrb[23].mxu0 }
0x1472   :  { %14664 = vtanh.f32 %v8954_v57 }
0x147c   :  { %v14665_v27 = vpop.eup %14664 }
0x147d   :  { %v8956_v58 = vpack.c.bf16 %v14665_v27, %v14665_v27  ;;  %v9213_v54 = vsel %vm203_vm0, %v9212_v36, %v14665_v27  ;;  %v14518_v36 = vld [vmem:[%s11069_s28] sm:$0xff]  }
0x147f   :  { %v8958_v17 = vrot.slane %v8956_v58, 2  ;;  %v14519_v58 = vld [vmem:[%s11069_s28 + $0x8] sm:$0xff]  }
0x1481   :  { %12597 = vmatmul.mubr.msk.bf16.vlgmr.msra.gmra.mrb[84].mxu1 %vm269_vm3, %v8958_v17  ;;  %v17188_v17 = vld [vmem:[%s11071_s3] sm:$0xff]  }
0x1482   :  { %12613 = vmatpush3.bf16.msra.mxu1 %v14708_v52  ;;  %12620 = vmatprep.mubr.msk.bf16.mxu1 %vm14735_vm14, %v17632_v49 }
0x1483   :  { %12614 = vmatprep.subr.bf16.mxu1 %v17632_v49 }
0x1486   :  { %12615 = vmatpush3.bf16.msra.mxu1 %v16805_v35  ;;  %v9252_v35 = vrot.slane %v17022_v45, 2 }
0x1487   :  { %12616 = vmatprep.subr.bf16.mxu1 %v17632_v49 }
0x148a   :  { %12617 = vmatpush3.bf16.msra.mxu1 %v16816_v1  ;;  %v9274_v1 = vsel %vm235_vm1, %v17070_v21, %v9252_v35 }
0x148b   :  { %12618 = vmatprep.subr.bf16.mxu1 %v17632_v49 }
0x148e   :  { %12619 = vmatpush3.bf16.msra.mxu1 %v17643_v56  ;;  %v9234_v56 = vrot.slane %v14665_v27, 2 }
0x148f   :  { %12636 = vmatprep.subr.bf16.mxu1 %v17632_v49 }
0x1554   :  { %v8996_v2 = vpop.f32.mrb[84].mxu1 }
0x1555   :  { %v9003_v31 = vrot.slane %v8996_v2, 2  ;;  %v12598_v18 = vpop.f32.mrb[85].mxu1  ;;  %v14522_v2 = vld [vmem:[%s11069_s28 + $0x18] sm:$0xff]  }
0x1556   :  { %v8999_v12 = vpop.f32.mrb[86].mxu1  ;;  %v17199_v18 = vld [vmem:[%s11071_s3 + $0x18] sm:$0xff]  }
0x1557   :  { %v9005_v3 = vadd.f32 %v9003_v31, %v16957_v39  ;;  %v12599_v53 = vpop.f32.mrb[87].mxu1  ;;  %v17195_v31 = vld [vmem:[%s11071_s3 + $0x10] sm:$0xff]  }
0x1559   :  { %14666 = vtanh.f32 %v9005_v3 }
0x1563   :  { %v14667_v60 = vpop.eup %14666 }
0x1564   :  { %v9007_v42 = vpack.c.bf16 %v14667_v60, %v14667_v60  ;;  %v9231_v20 = vrot.slane %v14667_v60, 6  ;;  %v9214_v47 = vsel %vm235_vm1, %v9213_v54, %v14667_v60  ;;  %v14520_v54 = vld [vmem:[%s11069_s28 + $0x10] sm:$0xff]  }
0x1565   :  { %v17132_v38 = vsel %vm8384_vm15, %v9214_v47, %v9274_v1 }
0x1566   :  { %v9009_v39 = vrot.slane %v9007_v42, 3  ;;  %v9269_v45 = vsel %vm307_vm2, %v9231_v20, %v9234_v56  ;;  %v9264_v42 = vrot.slane %v16960_v33, 2 }
0x1567   :  { %v9270_v50 = vsel %vm203_vm0, %v9269_v45, %v9237_v10 }
0x1568   :  { %12609 = vmatmul.mubr.msk.bf16.vlgmr.msra.gmra.mrb[24].mxu0 %vm269_vm3, %v9009_v39  ;;  %v9271_v8 = vsel %vm235_vm1, %v9270_v50, %v9240_v62  ;;  %v9277_v39 = vsel %vm235_vm1, %v17008_v6, %v9264_v42 }
0x1569   :  { %12625 = vmatpush3.bf16.msra.mxu0 %v14708_v52  ;;  %12632 = vmatprep.mubr.msk.bf16.mxu0 %vm14735_vm14, %v17632_v49  ;;  %v17143_v37 = vsel %vm8384_vm15, %v17066_v28, %v9271_v8 }
0x156a   :  { %12626 = vmatprep.subr.bf16.mxu0 %v17632_v49 }
0x156d   :  { %12627 = vmatpush3.bf16.msra.mxu0 %v14709_v61 }
0x156e   :  { %12628 = vmatprep.subr.bf16.mxu0 %v17632_v49 }
0x1571   :  { %12629 = vmatpush3.bf16.msra.mxu0 %v14710_v23 }
0x1572   :  { %12630 = vmatprep.subr.bf16.mxu0 %v17632_v49 }
0x1575   :  { %12631 = vmatpush3.bf16.msra.mxu0 %v14711_v44 }
0x1576   :  { %12648 = vmatprep.subr.bf16.mxu0 %v14518_v36 }
0x163b   :  { %v9047_v55 = vpop.f32.mrb[24].mxu0 }
0x163c   :  { %v9053_v46 = vadd.f32 %v9047_v55, %v16950_v32  ;;  %v12610_v21 = vpop.f32.mrb[25].mxu0  ;;  %v12055_v55 = vld [vmem:[%s11070_s7] ss:$0 sm:$0xff] }
0x163d   :  { %v9050_v5 = vpop.f32.mrb[26].mxu0 }
0x163e   :  { %14668 = vtanh.f32 %v9053_v46  ;;  %v12611_v28 = vpop.f32.mrb[27].mxu0 }
0x1648   :  { %v17152_v26 = vpop.eup %14668 }
0x1649   :  { %v9055_v19 = vpack.c.bf16 %v17152_v26, %v17152_v26  ;;  %v9228_v50 = vrot.slane %v17152_v26, 2 }
0x164b   :  { %12621 = vmatmul.mubr.msk.bf16.vlgmr.msra.gmra.mrb[88].mxu1 %vm269_vm3, %v9055_v19 }
0x164c   :  { %12637 = vmatpush3.bf16.msra.mxu1 %v14708_v52  ;;  %12644 = vmatprep.mubr.msk.bf16.mxu1 %vm14735_vm14, %v17632_v49  ;;  %v17191_v52 = vld [vmem:[%s11071_s3 + $0x8] sm:$0xff]  }
0x164d   :  { %12638 = vmatprep.subr.bf16.mxu1 %v17632_v49 }
0x1650   :  { %12639 = vmatpush3.bf16.msra.mxu1 %v14709_v61 }
0x1651   :  { %12640 = vmatprep.subr.bf16.mxu1 %v17632_v49 }
0x1654   :  { %12641 = vmatpush3.bf16.msra.mxu1 %v14710_v23 }
0x1655   :  { %12642 = vmatprep.subr.bf16.mxu1 %v17632_v49 }
0x1658   :  { %12643 = vmatpush3.bf16.msra.mxu1 %v14711_v44 }
0x1659   :  { %12660 = vmatprep.subr.bf16.mxu1 %v17632_v49 }
0x171e   :  { %v9093_v43 = vpop.f32.mrb[88].mxu1 }
0x171f   :  { %v9100_v7 = vrot.slane %v9093_v43, 6  ;;  %v12622_v51 = vpop.f32.mrb[89].mxu1 }
0x1720   :  { %v9096_v22 = vpop.f32.mrb[90].mxu1 }
0x1721   :  { %v9102_v24 = vadd.f32 %v9100_v7, %v16950_v32  ;;  %v12623_v15 = vpop.f32.mrb[91].mxu1 }
0x1723   :  { %14670 = vtanh.f32 %v9102_v24 }
0x172d   :  { %v17164_v59 = vpop.eup %14670 }
0x172e   :  { %v9104_v63 = vpack.c.bf16 %v17164_v59, %v17164_v59  ;;  %v9215_v25 = vsel %vm307_vm2, %v17152_v26, %v17164_v59  ;;  %v9225_v62 = vrot.slane %v17164_v59, 6 }
0x1730   :  { %v9106_v4 = vrot.slane %v9104_v63, 1 }
0x1732   :  { %12633 = vmatmul.mubr.msk.bf16.vlgmr.msra.gmra.mrb[28].mxu0 %vm269_vm3, %v9106_v4 }
0x1733   :  { %12649 = vmatpush3.bf16.msra.mxu0 %v14518_v36 }
0x1734   :  { %12650 = vmatprep.subr.bf16.mxu0 %v14519_v58 }
0x1737   :  { %12651 = vmatpush3.bf16.msra.mxu0 %v14519_v58 }
0x1738   :  { %12652 = vmatprep.subr.bf16.mxu0 %v14520_v54 }
0x173b   :  { %12653 = vmatpush3.bf16.msra.mxu0 %v14520_v54 }
0x173c   :  { %12654 = vmatprep.subr.bf16.mxu0 %v14522_v2 }
0x173f   :  { %12655 = vmatpush3.bf16.msra.mxu0 %v14522_v2 }
0x1740   :  { %12672 = vmatprep.subr.bf16.mxu0 %v17632_v49 }
0x1805   :  { %v9144_v48 = vpop.f32.mrb[28].mxu0 }
0x1806   :  { %v9151_v9 = vrot.slane %v9144_v48, 4  ;;  %v12634_v14 = vpop.f32.mrb[29].mxu0 }
0x1807   :  { %v9147_v34 = vpop.f32.mrb[30].mxu0 }
0x1808   :  { %v9153_v0 = vadd.f32 %v9151_v9, %v16950_v32  ;;  %v12635_v30 = vpop.f32.mrb[31].mxu0 }
0x180a   :  { %14672 = vtanh.f32 %v9153_v0 }
0x1814   :  { %v17170_v29 = vpop.eup %14672 }
0x1815   :  { %v9155_v57 = vpack.c.bf16 %v17170_v29, %v17170_v29  ;;  %v9216_v13 = vsel %vm203_vm0, %v9215_v25, %v17170_v29  ;;  %v9222_v47 = vrot.slane %v17170_v29, 2 }
0x1817   :  { %v9157_v27 = vrot.slane %v9155_v57, 2 }
0x1819   :  { %12645 = vmatmul.mubr.msk.bf16.vlgmr.msra.gmra.mrb[92].mxu1 %vm269_vm3, %v9157_v27 }
0x181a   :  { %12668 = vmatprep.mubr.msk.bf16.mxu1 %vm14735_vm14, %v17632_v49  ;;  %12661 = vmatpush3.bf16.msra.mxu1 %v17188_v17 }
0x181b   :  { %12662 = vmatprep.subr.bf16.mxu1 %v17632_v49 }
0x181e   :  { %12663 = vmatpush3.bf16.msra.mxu1 %v17191_v52 }
0x181f   :  { %12664 = vmatprep.subr.bf16.mxu1 %v17632_v49 }
0x1822   :  { %12665 = vmatpush3.bf16.msra.mxu1 %v17195_v31 }
0x1823   :  { %12666 = vmatprep.subr.bf16.mxu1 %v17632_v49 }
0x1826   :  { %12667 = vmatpush3.bf16.msra.mxu1 %v17199_v18 }
0x1827   :  { %12684 = vmatprep.subr.bf16.mxu1 %v17632_v49 }
0x1829   :  { %12669 = vmatmul.mubr.bf16.vlgmr.msra.gmra.mrb[96].mxu1 %v17644_v11 }
0x182a   :  { %12685 = vmatpush3.bf16.msra.mxu1 %v17188_v17  ;;  %12692 = vmatprep.mubr.msk.bf16.mxu1 %vm14735_vm14, %v17632_v49 }
0x182b   :  { %12686 = vmatprep.subr.bf16.mxu1 %v17632_v49 }
0x182e   :  { %12687 = vmatpush3.bf16.msra.mxu1 %v17191_v52 }
0x182f   :  { %12688 = vmatprep.subr.bf16.mxu1 %v17632_v49 }
0x1832   :  { %12689 = vmatpush3.bf16.msra.mxu1 %v17195_v31 }
0x1833   :  { %12690 = vmatprep.subr.bf16.mxu1 %v17632_v49 }
0x1836   :  { %12691 = vmatpush3.bf16.msra.mxu1 %v17199_v18 }
0x1837   :  { %12708 = vmatprep.subr.bf16.mxu1 %v17632_v49 }
0x18ec   :  { %v9195_v12 = vpop.f32.mrb[92].mxu1 }
0x18ed   :  { %v9202_v3 = vrot.slane %v9195_v12, 2  ;;  %v12646_v53 = vpop.f32.mrb[93].mxu1 }
0x18ee   :  { %v9198_v35 = vpop.f32.mrb[94].mxu1 }
0x18ef   :  { %v9204_v60 = vadd.f32 %v9202_v3, %v16950_v32  ;;  %v12647_v1 = vpop.f32.mrb[95].mxu1 }
0x18f1   :  { %14674 = vtanh.f32 %v9204_v60 }
0x18fb   :  { %v14675_v20 = vpop.eup %14674 }
0x18fc   :  { %v9219_v56 = vrot.slane %v14675_v20, 6  ;;  %v9217_v10 = vsel %vm235_vm1, %v9216_v13, %v14675_v20 }
0x18fd   :  { %v9281_v45 = vsel %vm8384_vm15, %v9217_v10, %v9277_v39 }
0x18fe   :  { %v9266_v32 = vsel %vm307_vm2, %v9219_v56, %v9222_v47  ;;  %v9283_v8 = vpack.c.bf16 %v9281_v45, %v17132_v38 }
0x18ff   :  { %v9267_v33 = vsel %vm203_vm0, %v9266_v32, %v9225_v62 }
0x1900   :  { %v9268_v61 = vsel %vm235_vm1, %v9267_v33, %v9228_v50 }
0x1901   :  { %v9278_v23 = vsel %vm8384_vm15, %v17004_v16, %v9268_v61  ;;  %v9480_v16 = vpop.f32.mrb[96].mxu1 }
0x1902   :  { %v9282_v44 = vpack.c.bf16 %v17143_v37, %v9278_v23  ;;  %v12670_v6 = vpop.f32.mrb[97].mxu1 }
0x1903   :  { %v9483_v38 = vpop.f32.mrb[98].mxu1 }
0x1904   :  { %12656 = vmatprep.mubr.msk.bf16.mxu0 %vm269_vm3, %v9282_v44  ;;  %v12671_v37 = vpop.f32.mrb[99].mxu1 }
0x1905   :  { %12657 = vmatmul.mubr.msk.bf16.vlgmr.msra.gmra.mrb[32].mxu0 %vm269_vm3, %v9283_v8 }
0x1906   :  { %12673 = vmatpush3.bf16.msra.mxu0 %v17188_v17  ;;  %12680 = vmatprep.mubr.msk.bf16.mxu0 %vm14735_vm14, %v17632_v49 }
0x1907   :  { %12674 = vmatprep.subr.bf16.mxu0 %v17632_v49 }
0x190a   :  { %12675 = vmatpush3.bf16.msra.mxu0 %v17191_v52 }
0x190b   :  { %12676 = vmatprep.subr.bf16.mxu0 %v17632_v49 }
0x190e   :  { %12677 = vmatpush3.bf16.msra.mxu0 %v17195_v31 }
0x190f   :  { %12678 = vmatprep.subr.bf16.mxu0 %v17632_v49 }
0x1912   :  { %12679 = vmatpush3.bf16.msra.mxu0 %v17199_v18 }
0x1913   :  { %12696 = vmatprep.subr.bf16.mxu0 %v17632_v49 }
0x19d8   :  { %v12658_v46 = vpop.f32.mrb[32].mxu0 }
0x19d9   :  { %v9372_v21 = vadd.f32 %v12658_v46, %v12055_v55  ;;  %v9363_v5 = vpop.f32.mrb[33].mxu0 }
0x19da   :  { %v9364_v28 = vadd.f32 %v12055_v55, %v9363_v5  ;;  %v12659_v26 = vpop.f32.mrb[34].mxu0 }
0x19db   :  { %v9392_v19 = vrot.slane %v9372_v21, 6  ;;  %v9394_v43 = vrot.slane %v9372_v21, 2  ;;  %v9375_v7 = vadd.f32 %v12659_v26, %v12055_v55  ;;  %v9366_v51 = vpop.f32.mrb[35].mxu0 }
0x19dc   :  { %v9402_v22 = vrot.slane %v9364_v28, 6  ;;  %v9404_v24 = vrot.slane %v9364_v28, 2  ;;  %v9367_v15 = vadd.f32 %v12055_v55, %v9366_v51 }
0x19dd   :  { %v9409_v59 = vsel %vm307_vm2, %v9392_v19, %v9394_v43  ;;  %v9387_v63 = vrot.slane %v9375_v7, 6  ;;  %v9389_v4 = vrot.slane %v9375_v7, 2 }
0x19de   :  { %v9415_v48 = vsel %vm307_vm2, %v9402_v22, %v9404_v24  ;;  %v9397_v9 = vrot.slane %v9367_v15, 6  ;;  %v9399_v14 = vrot.slane %v9367_v15, 2  ;;  %v9410_v34 = vsel %vm203_vm0, %v9409_v59, %v9392_v19 }
0x19df   :  { %v9406_v0 = vsel %vm307_vm2, %v9387_v63, %v9389_v4  ;;  %v9411_v30 = vsel %vm235_vm1, %v9410_v34, %v9394_v43  ;;  %v9416_v29 = vsel %vm203_vm0, %v9415_v48, %v9402_v22 }
0x19e0   :  { %v9412_v25 = vsel %vm307_vm2, %v9397_v9, %v9399_v14  ;;  %v9407_v57 = vsel %vm203_vm0, %v9406_v0, %v9387_v63  ;;  %v17256_v13 = vsel %vm8384_vm15, %v9367_v15, %v9411_v30  ;;  %v9417_v27 = vsel %vm235_vm1, %v9416_v29, %v9404_v24 }
0x19e1   :  { %v9408_v36 = vsel %vm235_vm1, %v9407_v57, %v9389_v4  ;;  %v9413_v58 = vsel %vm203_vm0, %v9412_v25, %v9397_v9  ;;  %v17262_v54 = vsel %vm8384_vm15, %v9375_v7, %v9417_v27 }
0x19e2   :  { %v17265_v2 = vsel %vm8384_vm15, %v9364_v28, %v9408_v36  ;;  %v9414_v12 = vsel %vm235_vm1, %v9413_v58, %v9399_v14 }
0x19e3   :  { %v9486_v3 = vadd.f32 %v9480_v16, %v17265_v2  ;;  %v17270_v53 = vsel %vm8384_vm15, %v9372_v21, %v9414_v12 }
0x19e5   :  { %14676 = vtanh.f32 %v9486_v3 }
0x19ef   :  { %v17272_v35 = vpop.eup %14676 }
0x19f0   :  { %v9488_v60 = vpack.c.bf16 %v17272_v35, %v17272_v35 }
0x19f2   :  { %12681 = vmatmul.mubr.msk.bf16.vlgmr.msra.gmra.mrb[36].mxu0 %vm269_vm3, %v9488_v60 }
0x19f3   :  { %12697 = vmatpush3.bf16.msra.mxu0 %v17188_v17  ;;  %12704 = vmatprep.mubr.msk.bf16.mxu0 %vm14735_vm14, %v17632_v49 }
0x19f4   :  { %12698 = vmatprep.subr.bf16.mxu0 %v17632_v49 }
0x19f7   :  { %12699 = vmatpush3.bf16.msra.mxu0 %v17191_v52 }
0x19f8   :  { %12700 = vmatprep.subr.bf16.mxu0 %v17632_v49 }
0x19fb   :  { %12701 = vmatpush3.bf16.msra.mxu0 %v17195_v31 }
0x19fc   :  { %12702 = vmatprep.subr.bf16.mxu0 %v17632_v49 }
0x19ff   :  { %12703 = vmatpush3.bf16.msra.mxu0 %v17199_v18 }
0x1a00   :  { %12720 = vmatprep.subr.bf16.mxu0 %v17632_v49 }
0x1ac5   :  { %v9526_v1 = vpop.f32.mrb[36].mxu0 }
0x1ac6   :  { %v9533_v42 = vrot.slane %v9526_v1, 6  ;;  %v12682_v20 = vpop.f32.mrb[37].mxu0 }
0x1ac7   :  { %v9529_v56 = vpop.f32.mrb[38].mxu0 }
0x1ac8   :  { %v9535_v47 = vadd.f32 %v9533_v42, %v17265_v2  ;;  %v12683_v10 = vpop.f32.mrb[39].mxu0 }
0x1aca   :  { %14678 = vtanh.f32 %v9535_v47 }
0x1ad4   :  { %v14679_v39 = vpop.eup %14678 }
0x1ad5   :  { %v9537_v62 = vpack.c.bf16 %v14679_v39, %v14679_v39  ;;  %v10236_v16 = vsel %vm307_vm2, %v17272_v35, %v14679_v39  ;;  %v10291_v24 = vrot.slane %v14679_v39, 6 }
0x1ad7   :  { %v9539_v45 = vrot.slane %v9537_v62, 1 }
0x1ad9   :  { %12693 = vmatmul.mubr.msk.bf16.vlgmr.msra.gmra.mrb[100].mxu1 %vm269_vm3, %v9539_v45 }
0x1ada   :  { %12709 = vmatpush3.bf16.msra.mxu1 %v17188_v17  ;;  %12716 = vmatprep.mubr.msk.bf16.mxu1 %vm14735_vm14, %v17632_v49 }
0x1adb   :  { %12710 = vmatprep.subr.bf16.mxu1 %v17632_v49 }
0x1ade   :  { %12711 = vmatpush3.bf16.msra.mxu1 %v17191_v52 }
0x1adf   :  { %12712 = vmatprep.subr.bf16.mxu1 %v17632_v49 }
0x1ae2   :  { %12713 = vmatpush3.bf16.msra.mxu1 %v17195_v31 }
0x1ae3   :  { %12714 = vmatprep.subr.bf16.mxu1 %v17632_v49 }
0x1ae6   :  { %12715 = vmatpush3.bf16.msra.mxu1 %v17199_v18 }
0x1ae7   :  { %12732 = vmatprep.subr.bf16.mxu1 %v17632_v49 }
0x1bac   :  { %v9577_v50 = vpop.f32.mrb[100].mxu1 }
0x1bad   :  { %v9584_v32 = vrot.slane %v9577_v50, 4  ;;  %v12694_v8 = vpop.f32.mrb[101].mxu1 }
0x1bae   :  { %v9580_v33 = vpop.f32.mrb[102].mxu1 }
0x1baf   :  { %v9586_v61 = vadd.f32 %v9584_v32, %v17265_v2  ;;  %v12695_v23 = vpop.f32.mrb[103].mxu1 }
0x1bb1   :  { %14680 = vtanh.f32 %v9586_v61 }
0x1bbb   :  { %v14681_v44 = vpop.eup %14680 }
0x1bbc   :  { %v9588_v6 = vpack.c.bf16 %v14681_v44, %v14681_v44  ;;  %v10237_v38 = vsel %vm203_vm0, %v10236_v16, %v14681_v44  ;;  %v10288_v22 = vrot.slane %v14681_v44, 2 }
0x1bbe   :  { %v9590_v37 = vrot.slane %v9588_v6, 2 }
0x1bc0   :  { %12705 = vmatmul.mubr.msk.bf16.vlgmr.msra.gmra.mrb[40].mxu0 %vm269_vm3, %v9590_v37 }
0x1bc1   :  { %12721 = vmatpush3.bf16.msra.mxu0 %v17188_v17  ;;  %12728 = vmatprep.mubr.msk.bf16.mxu0 %vm14735_vm14, %v17632_v49 }
0x1bc2   :  { %12722 = vmatprep.subr.bf16.mxu0 %v17632_v49 }
0x1bc5   :  { %12723 = vmatpush3.bf16.msra.mxu0 %v17191_v52 }
0x1bc6   :  { %12724 = vmatprep.subr.bf16.mxu0 %v17632_v49 }
0x1bc9   :  { %12725 = vmatpush3.bf16.msra.mxu0 %v17195_v31 }
0x1bca   :  { %12726 = vmatprep.subr.bf16.mxu0 %v17632_v49 }
0x1bcd   :  { %12727 = vmatpush3.bf16.msra.mxu0 %v17199_v18 }
0x1bce   :  { %12744 = vmatprep.subr.bf16.mxu0 %v17632_v49 }
0x1c93   :  { %v9628_v55 = vpop.f32.mrb[40].mxu0 }
0x1c94   :  { %v9635_v46 = vrot.slane %v9628_v55, 2  ;;  %v12706_v21 = vpop.f32.mrb[41].mxu0 }
0x1c95   :  { %v9631_v5 = vpop.f32.mrb[42].mxu0 }
0x1c96   :  { %v9637_v28 = vadd.f32 %v9635_v46, %v17265_v2  ;;  %v12707_v26 = vpop.f32.mrb[43].mxu0 }
0x1c98   :  { %14682 = vtanh.f32 %v9637_v28 }
0x1ca2   :  { %v14683_v19 = vpop.eup %14682 }
0x1ca3   :  { %v9639_v43 = vpack.c.bf16 %v14683_v19, %v14683_v19  ;;  %v17316_v7 = vsel %vm235_vm1, %v10237_v38, %v14683_v19  ;;  %v10285_v51 = vrot.slane %v14683_v19, 6 }
0x1ca5   :  { %v9641_v15 = vrot.slane %v9639_v43, 3  ;;  %v10305_v59 = vsel %vm307_vm2, %v10285_v51, %v10288_v22 }
0x1ca6   :  { %v17320_v63 = vsel %vm203_vm0, %v10305_v59, %v10291_v24 }
0x1ca7   :  { %12717 = vmatmul.mubr.msk.bf16.vlgmr.msra.gmra.mrb[104].mxu1 %vm269_vm3, %v9641_v15 }
0x1ca8   :  { %12733 = vmatpush3.bf16.msra.mxu1 %v17188_v17  ;;  %12740 = vmatprep.mubr.msk.bf16.mxu1 %vm14735_vm14, %v17632_v49 }
0x1ca9   :  { %12734 = vmatprep.subr.bf16.mxu1 %v17632_v49 }
0x1cac   :  { %12735 = vmatpush3.bf16.msra.mxu1 %v17191_v52 }
0x1cad   :  { %12736 = vmatprep.subr.bf16.mxu1 %v17632_v49 }
0x1cb0   :  { %12737 = vmatpush3.bf16.msra.mxu1 %v17195_v31 }
0x1cb1   :  { %12738 = vmatprep.subr.bf16.mxu1 %v17632_v49 }
0x1cb4   :  { %12739 = vmatpush3.bf16.msra.mxu1 %v17199_v18 }
0x1cb5   :  { %12756 = vmatprep.subr.bf16.mxu1 %v17632_v49 }
0x1d7a   :  { %v9679_v4 = vpop.f32.mrb[104].mxu1 }
0x1d7b   :  { %v9685_v48 = vadd.f32 %v9679_v4, %v17256_v13  ;;  %v12718_v9 = vpop.f32.mrb[105].mxu1 }
0x1d7c   :  { %v9682_v14 = vpop.f32.mrb[106].mxu1 }
0x1d7d   :  { %14684 = vtanh.f32 %v9685_v48  ;;  %v12719_v34 = vpop.f32.mrb[107].mxu1 }
0x1d87   :  { %v17334_v0 = vpop.eup %14684 }
0x1d88   :  { %v9687_v30 = vpack.c.bf16 %v17334_v0, %v17334_v0 }
0x1d8a   :  { %12729 = vmatmul.mubr.msk.bf16.vlgmr.msra.gmra.mrb[44].mxu0 %vm269_vm3, %v9687_v30 }
0x1d8b   :  { %12745 = vmatpush3.bf16.msra.mxu0 %v17188_v17  ;;  %12752 = vmatprep.mubr.msk.bf16.mxu0 %vm14735_vm14, %v17632_v49 }
0x1d8c   :  { %12746 = vmatprep.subr.bf16.mxu0 %v17632_v49 }
0x1d8f   :  { %12747 = vmatpush3.bf16.msra.mxu0 %v17191_v52 }
0x1d90   :  { %12748 = vmatprep.subr.bf16.mxu0 %v17632_v49 }
0x1d93   :  { %12749 = vmatpush3.bf16.msra.mxu0 %v17195_v31 }
0x1d94   :  { %12750 = vmatprep.subr.bf16.mxu0 %v17632_v49 }
0x1d97   :  { %12751 = vmatpush3.bf16.msra.mxu0 %v17199_v18 }
0x1d98   :  { %12768 = vmatprep.subr.bf16.mxu0 %v17632_v49 }
0x1e5d   :  { %v9725_v29 = vpop.f32.mrb[44].mxu0 }
0x1e5e   :  { %v9732_v25 = vrot.slane %v9725_v29, 6  ;;  %v12730_v57 = vpop.f32.mrb[45].mxu0 }
0x1e5f   :  { %v9728_v27 = vpop.f32.mrb[46].mxu0 }
0x1e60   :  { %v9734_v36 = vadd.f32 %v9732_v25, %v17256_v13  ;;  %v12731_v58 = vpop.f32.mrb[47].mxu0 }
0x1e62   :  { %14686 = vtanh.f32 %v9734_v36 }
0x1e6c   :  { %v14687_v2 = vpop.eup %14686 }
0x1e6d   :  { %v9736_v12 = vpack.c.bf16 %v14687_v2, %v14687_v2  ;;  %v10239_v39 = vsel %vm307_vm2, %v17334_v0, %v14687_v2  ;;  %v10279_v46 = vrot.slane %v14687_v2, 6 }
0x1e6f   :  { %v9738_v3 = vrot.slane %v9736_v12, 1 }
0x1e71   :  { %12741 = vmatmul.mubr.msk.bf16.vlgmr.msra.gmra.mrb[108].mxu1 %vm269_vm3, %v9738_v3 }
0x1e72   :  { %12757 = vmatpush3.bf16.msra.mxu1 %v17188_v17  ;;  %12764 = vmatprep.mubr.msk.bf16.mxu1 %vm14735_vm14, %v17632_v49 }
0x1e73   :  { %12758 = vmatprep.subr.bf16.mxu1 %v17632_v49 }
0x1e76   :  { %12759 = vmatpush3.bf16.msra.mxu1 %v17191_v52 }
0x1e77   :  { %12760 = vmatprep.subr.bf16.mxu1 %v17632_v49 }
0x1e7a   :  { %12761 = vmatpush3.bf16.msra.mxu1 %v17195_v31 }
0x1e7b   :  { %12762 = vmatprep.subr.bf16.mxu1 %v17632_v49 }
0x1e7e   :  { %12763 = vmatpush3.bf16.msra.mxu1 %v17199_v18 }
0x1e7f   :  { %12780 = vmatprep.subr.bf16.mxu1 %v17632_v49 }
0x1f44   :  { %v9776_v60 = vpop.f32.mrb[108].mxu1 }
0x1f45   :  { %v9783_v1 = vrot.slane %v9776_v60, 4  ;;  %v12742_v42 = vpop.f32.mrb[109].mxu1 }
0x1f46   :  { %v9779_v20 = vpop.f32.mrb[110].mxu1 }
0x1f47   :  { %v9785_v56 = vadd.f32 %v9783_v1, %v17256_v13  ;;  %v12743_v47 = vpop.f32.mrb[111].mxu1 }
0x1f49   :  { %14688 = vtanh.f32 %v9785_v56 }
0x1f53   :  { %v14689_v10 = vpop.eup %14688 }
0x1f54   :  { %v9787_v62 = vpack.c.bf16 %v14689_v10, %v14689_v10  ;;  %v10240_v45 = vsel %vm203_vm0, %v10239_v39, %v14689_v10  ;;  %v10276_v55 = vrot.slane %v14689_v10, 2 }
0x1f56   :  { %v9789_v50 = vrot.slane %v9787_v62, 2 }
0x1f58   :  { %12753 = vmatmul.mubr.msk.bf16.vlgmr.msra.gmra.mrb[48].mxu0 %vm269_vm3, %v9789_v50 }
0x1f59   :  { %12769 = vmatpush3.bf16.msra.mxu0 %v17188_v17  ;;  %12776 = vmatprep.mubr.msk.bf16.mxu0 %vm14735_vm14, %v17632_v49 }
0x1f5a   :  { %12770 = vmatprep.subr.bf16.mxu0 %v17632_v49 }
0x1f5d   :  { %12771 = vmatpush3.bf16.msra.mxu0 %v17191_v52 }
0x1f5e   :  { %12772 = vmatprep.subr.bf16.mxu0 %v17632_v49 }
0x1f61   :  { %12773 = vmatpush3.bf16.msra.mxu0 %v17195_v31 }
0x1f62   :  { %12774 = vmatprep.subr.bf16.mxu0 %v17632_v49 }
0x1f65   :  { %12775 = vmatpush3.bf16.msra.mxu0 %v17199_v18 }
0x1f66   :  { %12792 = vmatprep.subr.bf16.mxu0 %v17632_v49 }
0x202b   :  { %v9827_v32 = vpop.f32.mrb[48].mxu0 }
0x202c   :  { %v9834_v8 = vrot.slane %v9827_v32, 2  ;;  %v12754_v33 = vpop.f32.mrb[49].mxu0 }
0x202d   :  { %v9830_v61 = vpop.f32.mrb[50].mxu0 }
0x202e   :  { %v9836_v23 = vadd.f32 %v9834_v8, %v17256_v13  ;;  %v12755_v44 = vpop.f32.mrb[51].mxu0 }
0x2030   :  { %14690 = vtanh.f32 %v9836_v23 }
0x203a   :  { %v14691_v16 = vpop.eup %14690 }
0x203b   :  { %v9838_v6 = vpack.c.bf16 %v14691_v16, %v14691_v16  ;;  %v17378_v38 = vsel %vm235_vm1, %v10240_v45, %v14691_v16  ;;  %v10273_v37 = vrot.slane %v14691_v16, 6  ;;  %v10282_v45 = vrot.slane %v17334_v0, 2 }
0x203d   :  { %v9840_v21 = vrot.slane %v9838_v6, 3  ;;  %v10302_v5 = vsel %vm307_vm2, %v10273_v37, %v10276_v55 }
0x203e   :  { %v17382_v28 = vsel %vm203_vm0, %v10302_v5, %v10279_v46 }
0x203f   :  { %12765 = vmatmul.mubr.msk.bf16.vlgmr.msra.gmra.mrb[112].mxu1 %vm269_vm3, %v9840_v21  ;;  %v10304_v32 = vsel %vm235_vm1, %v17382_v28, %v10282_v45 }
0x2040   :  { %12781 = vmatpush3.bf16.msra.mxu1 %v17188_v17  ;;  %12788 = vmatprep.mubr.msk.bf16.mxu1 %vm14735_vm14, %v17632_v49 }
0x2041   :  { %12782 = vmatprep.subr.bf16.mxu1 %v17632_v49 }
0x2044   :  { %12783 = vmatpush3.bf16.msra.mxu1 %v17191_v52 }
0x2045   :  { %12784 = vmatprep.subr.bf16.mxu1 %v17632_v49 }
0x2048   :  { %12785 = vmatpush3.bf16.msra.mxu1 %v17195_v31 }
0x2049   :  { %12786 = vmatprep.subr.bf16.mxu1 %v17632_v49 }
0x204c   :  { %12787 = vmatpush3.bf16.msra.mxu1 %v17199_v18 }
0x204d   :  { %12804 = vmatprep.subr.bf16.mxu1 %v17632_v49 }
0x2112   :  { %v9878_v13 = vpop.f32.mrb[112].mxu1 }
0x2113   :  { %v9884_v26 = vadd.f32 %v9878_v13, %v17270_v53  ;;  %v12766_v19 = vpop.f32.mrb[113].mxu1 }
0x2114   :  { %v9881_v43 = vpop.f32.mrb[114].mxu1 }
0x2115   :  { %14692 = vtanh.f32 %v9884_v26  ;;  %v12767_v51 = vpop.f32.mrb[115].mxu1 }
0x211f   :  { %v17396_v22 = vpop.eup %14692 }
0x2120   :  { %v9886_v24 = vpack.c.bf16 %v17396_v22, %v17396_v22 }
0x2122   :  { %12777 = vmatmul.mubr.msk.bf16.vlgmr.msra.gmra.mrb[52].mxu0 %vm269_vm3, %v9886_v24 }
0x2123   :  { %12793 = vmatpush3.bf16.msra.mxu0 %v17188_v17  ;;  %12800 = vmatprep.mubr.msk.bf16.mxu0 %vm14735_vm14, %v17632_v49 }
0x2124   :  { %12794 = vmatprep.subr.bf16.mxu0 %v17632_v49 }
0x2127   :  { %12795 = vmatpush3.bf16.msra.mxu0 %v17191_v52 }
0x2128   :  { %12796 = vmatprep.subr.bf16.mxu0 %v17632_v49 }
0x212b   :  { %12797 = vmatpush3.bf16.msra.mxu0 %v17195_v31 }
0x212c   :  { %12798 = vmatprep.subr.bf16.mxu0 %v17632_v49 }
0x212f   :  { %12799 = vmatpush3.bf16.msra.mxu0 %v17199_v18 }
0x2130   :  { %12816 = vmatprep.subr.bf16.mxu0 %v17632_v49 }
0x21f5   :  { %v9924_v15 = vpop.f32.mrb[52].mxu0 }
0x21f6   :  { %v9931_v59 = vrot.slane %v9924_v15, 6  ;;  %v12778_v4 = vpop.f32.mrb[53].mxu0 }
0x21f7   :  { %v9927_v48 = vpop.f32.mrb[54].mxu0 }
0x21f8   :  { %v9933_v9 = vadd.f32 %v9931_v59, %v17270_v53  ;;  %v12779_v14 = vpop.f32.mrb[55].mxu0 }
0x21fa   :  { %14694 = vtanh.f32 %v9933_v9 }
0x2204   :  { %v14695_v34 = vpop.eup %14694 }
0x2205   :  { %v9935_v30 = vpack.c.bf16 %v14695_v34, %v14695_v34  ;;  %v10242_v3 = vsel %vm307_vm2, %v17396_v22, %v14695_v34  ;;  %v10267_v44 = vrot.slane %v14695_v34, 6 }
0x2207   :  { %v9937_v29 = vrot.slane %v9935_v30, 1 }
0x2209   :  { %12789 = vmatmul.mubr.msk.bf16.vlgmr.msra.gmra.mrb[116].mxu1 %vm269_vm3, %v9937_v29 }
0x220a   :  { %12805 = vmatpush3.bf16.msra.mxu1 %v17188_v17  ;;  %12812 = vmatprep.mubr.msk.bf16.mxu1 %vm14735_vm14, %v17632_v49 }
0x220b   :  { %12806 = vmatprep.subr.bf16.mxu1 %v17632_v49 }
0x220e   :  { %12807 = vmatpush3.bf16.msra.mxu1 %v17191_v52 }
0x220f   :  { %12808 = vmatprep.subr.bf16.mxu1 %v17632_v49 }
0x2212   :  { %12809 = vmatpush3.bf16.msra.mxu1 %v17195_v31 }
0x2213   :  { %12810 = vmatprep.subr.bf16.mxu1 %v17632_v49 }
0x2216   :  { %12811 = vmatpush3.bf16.msra.mxu1 %v17199_v18 }
0x2217   :  { %12828 = vmatprep.subr.bf16.mxu1 %v17632_v49 }
0x22dc   :  { %v9975_v25 = vpop.f32.mrb[116].mxu1 }
0x22dd   :  { %v9982_v57 = vrot.slane %v9975_v25, 4  ;;  %v12790_v27 = vpop.f32.mrb[117].mxu1 }
0x22de   :  { %v9978_v36 = vpop.f32.mrb[118].mxu1  ;;  %v14526_v27 = vld [vmem:[%s11072_s11] sm:$0xff]  }
0x22df   :  { %v9984_v58 = vadd.f32 %v9982_v57, %v17270_v53  ;;  %v12791_v2 = vpop.f32.mrb[119].mxu1  ;;  %v14527_v36 = vld [vmem:[%s11072_s11 + $0x8] sm:$0xff]  }
0x22e0   :  { %v14529_v2 = vld [vmem:[%s11072_s11 + $0x18] sm:$0xff]  }
0x22e1   :  { %14696 = vtanh.f32 %v9984_v58  ;;  %v14528_v58 = vld [vmem:[%s11072_s11 + $0x10] sm:$0xff]  }
0x22eb   :  { %v14697_v12 = vpop.eup %14696 }
0x22ec   :  { %v9986_v60 = vpack.c.bf16 %v14697_v12, %v14697_v12  ;;  %v10243_v1 = vsel %vm203_vm0, %v10242_v3, %v14697_v12  ;;  %v10264_v61 = vrot.slane %v14697_v12, 2 }
0x22ee   :  { %v9988_v42 = vrot.slane %v9986_v60, 2 }
0x22f0   :  { %12801 = vmatmul.mubr.msk.bf16.vlgmr.msra.gmra.mrb[56].mxu0 %vm269_vm3, %v9988_v42 }
0x22f1   :  { %12817 = vmatpush3.bf16.msra.mxu0 %v17188_v17  ;;  %12824 = vmatprep.mubr.msk.bf16.mxu0 %vm14735_vm14, %v17632_v49 }
0x22f2   :  { %12818 = vmatprep.subr.bf16.mxu0 %v17632_v49 }
0x22f5   :  { %12819 = vmatpush3.bf16.msra.mxu0 %v17191_v52 }
0x22f6   :  { %12820 = vmatprep.subr.bf16.mxu0 %v17632_v49 }
0x22f9   :  { %12821 = vmatpush3.bf16.msra.mxu0 %v17195_v31 }
0x22fa   :  { %12822 = vmatprep.subr.bf16.mxu0 %v17632_v49 }
0x22fd   :  { %12823 = vmatpush3.bf16.msra.mxu0 %v17199_v18 }
0x22fe   :  { %12840 = vmatprep.subr.bf16.mxu0 %v17632_v49 }
0x23c3   :  { %v10026_v20 = vpop.f32.mrb[56].mxu0 }
0x23c4   :  { %v10033_v56 = vrot.slane %v10026_v20, 2  ;;  %v12802_v47 = vpop.f32.mrb[57].mxu0 }
0x23c5   :  { %v10029_v10 = vpop.f32.mrb[58].mxu0 }
0x23c6   :  { %v10035_v39 = vadd.f32 %v10033_v56, %v17270_v53  ;;  %v12803_v62 = vpop.f32.mrb[59].mxu0  ;;  %v10270_v53 = vrot.slane %v17396_v22, 2  ;;  %v10294_v56 = vrot.slane %v17272_v35, 2 }
0x23c8   :  { %14698 = vtanh.f32 %v10035_v39  ;;  %v10307_v45 = vsel %vm235_vm1, %v17320_v63, %v10294_v56  ;;  %v14530_v63 = vld [vmem:[%s11074_s15] sm:$0xff]   ;;  %v14542_v56 = vld [vmem:[%s17525_s25 + $0x8] sm:$0xff]  }
0x23d2   :  { %v14699_v50 = vpop.eup %14698 }
0x23d3   :  { %v10037_v8 = vpack.c.bf16 %v14699_v50, %v14699_v50  ;;  %v10261_v33 = vrot.slane %v14699_v50, 6  ;;  %v10244_v23 = vsel %vm235_vm1, %v10243_v1, %v14699_v50 }
0x23d4   :  { %v17444_v16 = vsel %vm8384_vm15, %v10244_v23, %v10304_v32 }
0x23d5   :  { %v10039_v6 = vrot.slane %v10037_v8, 3  ;;  %v10299_v37 = vsel %vm307_vm2, %v10261_v33, %v10264_v61 }
0x23d6   :  { %v10300_v0 = vsel %vm203_vm0, %v10299_v37, %v10267_v44 }
0x23d7   :  { %12813 = vmatmul.mubr.msk.bf16.vlgmr.msra.gmra.mrb[120].mxu1 %vm269_vm3, %v10039_v6  ;;  %v10301_v55 = vsel %vm235_vm1, %v10300_v0, %v10270_v53 }
0x23d8   :  { %12829 = vmatpush3.bf16.msra.mxu1 %v17188_v17  ;;  %12836 = vmatprep.mubr.msk.bf16.mxu1 %vm14735_vm14, %v17632_v49  ;;  %v17456_v46 = vsel %vm8384_vm15, %v17378_v38, %v10301_v55 }
0x23d9   :  { %12830 = vmatprep.subr.bf16.mxu1 %v17632_v49 }
0x23dc   :  { %12831 = vmatpush3.bf16.msra.mxu1 %v17191_v52 }
0x23dd   :  { %12832 = vmatprep.subr.bf16.mxu1 %v17632_v49 }
0x23e0   :  { %12833 = vmatpush3.bf16.msra.mxu1 %v17195_v31 }
0x23e1   :  { %12834 = vmatprep.subr.bf16.mxu1 %v17632_v49 }
0x23e4   :  { %12835 = vmatpush3.bf16.msra.mxu1 %v17199_v18 }
0x23e5   :  { %12852 = vmatprep.subr.bf16.mxu1 %v14526_v27 }
0x24aa   :  { %v10077_v21 = vpop.f32.mrb[120].mxu1 }
0x24ab   :  { %v10083_v5 = vadd.f32 %v10077_v21, %v17262_v54  ;;  %v12814_v28 = vpop.f32.mrb[121].mxu1 }
0x24ac   :  { %v10080_v13 = vpop.f32.mrb[122].mxu1 }
0x24ad   :  { %14700 = vtanh.f32 %v10083_v5  ;;  %v12815_v38 = vpop.f32.mrb[123].mxu1 }
0x24b7   :  { %v17465_v26 = vpop.eup %14700 }
0x24b8   :  { %v10085_v19 = vpack.c.bf16 %v17465_v26, %v17465_v26  ;;  %v10258_v8 = vrot.slane %v17465_v26, 2 }
0x24ba   :  { %12825 = vmatmul.mubr.msk.bf16.vlgmr.msra.gmra.mrb[60].mxu0 %vm269_vm3, %v10085_v19 }
0x24bb   :  { %12841 = vmatpush3.bf16.msra.mxu0 %v17188_v17  ;;  %12848 = vmatprep.mubr.msk.bf16.mxu0 %vm14735_vm14, %v17632_v49 }
0x24bc   :  { %12842 = vmatprep.subr.bf16.mxu0 %v17632_v49 }
0x24bf   :  { %12843 = vmatpush3.bf16.msra.mxu0 %v17191_v52 }
0x24c0   :  { %12844 = vmatprep.subr.bf16.mxu0 %v17632_v49 }
0x24c3   :  { %12845 = vmatpush3.bf16.msra.mxu0 %v17195_v31 }
0x24c4   :  { %12846 = vmatprep.subr.bf16.mxu0 %v17632_v49 }
0x24c7   :  { %12847 = vmatpush3.bf16.msra.mxu0 %v17199_v18 }
0x24c8   :  { %12864 = vmatprep.subr.bf16.mxu0 %v14530_v63 }
0x258d   :  { %v10123_v43 = vpop.f32.mrb[60].mxu0 }
0x258e   :  { %v10130_v51 = vrot.slane %v10123_v43, 6  ;;  %v12826_v22 = vpop.f32.mrb[61].mxu0 }
0x258f   :  { %v10126_v24 = vpop.f32.mrb[62].mxu0  ;;  %v10499_v22 = vld [vmem:[%s11076_s4 + $0x8] sm:$0xff] }
0x2590   :  { %v10132_v17 = vadd.f32 %v10130_v51, %v17262_v54  ;;  %v12827_v15 = vpop.f32.mrb[63].mxu0  ;;  %v10498_v51 = vld [vmem:[%s11076_s4] sm:$0xff] }
0x2591   :  { %v12094_v24 = vcombine.high %v10498_v51, %v10498_v51  ;;  %v12096_v15 = vcombine.high %v10499_v22, %v10499_v22 }
0x2592   :  { %14702 = vtanh.f32 %v10132_v17  ;;  %v12093_v17 = vcombine.low %v10498_v51, %v10498_v51 }
0x259c   :  { %v14703_v59 = vpop.eup %14702 }
0x259d   :  { %v10134_v4 = vpack.c.bf16 %v14703_v59, %v14703_v59  ;;  %v10245_v30 = vsel %vm307_vm2, %v17465_v26, %v14703_v59  ;;  %v10255_v50 = vrot.slane %v14703_v59, 6  ;;  %v12095_v59 = vcombine.low %v10499_v22, %v10499_v22 }
0x259f   :  { %v10136_v48 = vrot.slane %v10134_v4, 1  ;;  %v10540_v4 = vsel %vm203_vm0, %v12093_v17, 0 }
0x25a1   :  { %12837 = vmatmul.mubr.msk.bf16.vlgmr.msra.gmra.mrb[124].mxu1 %vm269_vm3, %v10136_v48  ;;  %v10546_v48 = vsel %vm203_vm0, %v12095_v59, 0 }
0x25a2   :  { %12853 = vmatpush3.bf16.msra.mxu1 %v14526_v27 }
0x25a3   :  { %12854 = vmatprep.subr.bf16.mxu1 %v14527_v36 }
0x25a6   :  { %12855 = vmatpush3.bf16.msra.mxu1 %v14527_v36 }
0x25a7   :  { %12856 = vmatprep.subr.bf16.mxu1 %v14528_v58 }
0x25aa   :  { %12857 = vmatpush3.bf16.msra.mxu1 %v14528_v58 }
0x25ab   :  { %12858 = vmatprep.subr.bf16.mxu1 %v14529_v2 }
0x25ae   :  { %12859 = vmatpush3.bf16.msra.mxu1 %v14529_v2 }
0x25af   :  { %12097 = vmatprep.subr.msk.bf16.mxu1 %vm203_vm0, %v12094_v24 }
0x2674   :  { %v10174_v52 = vpop.f32.mrb[124].mxu1 }
0x2675   :  { %v10181_v9 = vrot.slane %v10174_v52, 4  ;;  %v12838_v31 = vpop.f32.mrb[125].mxu1  ;;  %v14536_v52 = vld [vmem:[%s17525_s25 + $0x40] sm:$0xff]  }
0x2676   :  { %v10177_v14 = vpop.f32.mrb[126].mxu1  ;;  %v12088_v31 = vld [vmem:[%s11075_s1] ss:$0 sm:$0xff] }
0x2677   :  { %v10183_v49 = vadd.f32 %v10181_v9, %v17262_v54  ;;  %v12839_v18 = vpop.f32.mrb[127].mxu1  ;;  %v14537_v9 = vld [vmem:[%s17525_s25 + $0xc0] sm:$0xff]  }
0x2679   :  { %14704 = vtanh.f32 %v10183_v49 }
0x2683   :  { %v14705_v34 = vpop.eup %14704 }
0x2684   :  { %v10185_v29 = vpack.c.bf16 %v14705_v34, %v14705_v34  ;;  %v10246_v25 = vsel %vm203_vm0, %v10245_v30, %v14705_v34  ;;  %v10252_v39 = vrot.slane %v14705_v34, 2 }
0x2686   :  { %v10187_v57 = vrot.slane %v10185_v29, 2 }
0x2688   :  { %12849 = vmatmul.mubr.msk.bf16.vlgmr.msra.gmra.mrb[64].mxu0 %vm269_vm3, %v10187_v57 }
0x2689   :  { %12865 = vmatpush3.bf16.msra.mxu0 %v14530_v63  ;;  %v14558_v63 = vld [vmem:[%s17525_s25 + $0x28] sm:$0xff]  }
0x275b   :  { %v10225_v12 = vpop.f32.mrb[64].mxu0 }
0x275c   :  { %v10232_v3 = vrot.slane %v10225_v12, 2  ;;  %v12850_v60 = vpop.f32.mrb[65].mxu0 }
0x275d   :  { %v10228_v1 = vpop.f32.mrb[66].mxu0  ;;  %v14538_v60 = vld [vmem:[%s17525_s25] sm:$0xff]  }
0x275e   :  { %v10234_v42 = vadd.f32 %v10232_v3, %v17262_v54  ;;  %v12851_v20 = vpop.f32.mrb[67].mxu0  ;;  %v14539_v1 = vld [vmem:[%s17525_s25 + $0x80] sm:$0xff]  }
0x275f   :  { %v14541_v20 = vld [vmem:[%s17525_s25 + $0xc8] sm:$0xff]  }
0x2760   :  { %14706 = vtanh.f32 %v10234_v42  ;;  %v14540_v42 = vld [vmem:[%s17525_s25 + $0x48] sm:$0xff]  }
0x276a   :  { %v14707_v47 = vpop.eup %14706 }
0x276b   :  { %v10249_v10 = vrot.slane %v14707_v47, 6  ;;  %v10247_v62 = vsel %vm235_vm1, %v10246_v25, %v14707_v47  ;;  %v14543_v47 = vld [vmem:[%s17525_s25 + $0x88] sm:$0xff]  }
0x276c   :  { %v10311_v32 = vsel %vm8384_vm15, %v10247_v62, %v10307_v45  ;;  %v14546_v62 = vld [vmem:[%s17525_s25 + $0x10] sm:$0xff]  }
0x276d   :  { %v10296_v33 = vsel %vm307_vm2, %v10249_v10, %v10252_v39  ;;  %v10313_v54 = vpack.c.bf16 %v10311_v32, %v17444_v16  ;;  %v14531_v16 = vld [vmem:[%s11074_s15 + $0x8] sm:$0xff]   ;;  %v14544_v10 = vld [vmem:[%s17525_s25 + $0x50] sm:$0xff]   ;;  %v14550_v32 = vld [vmem:[%s17525_s25 + $0x18] sm:$0xff]  }
0x276e   :  { %v10297_v61 = vsel %vm203_vm0, %v10296_v33, %v10255_v50  ;;  %12866 = vmatprep.subr.bf16.mxu0 %v14531_v16  ;;  %v14545_v39 = vld [vmem:[%s17525_s25 + $0xd0] sm:$0xff]   ;;  %v14549_v50 = vld [vmem:[%s17525_s25 + $0xd8] sm:$0xff]   ;;  %v14552_v33 = vld [vmem:[%s17525_s25 + $0x60] sm:$0xff]  }
0x276f   :  { %v10298_v35 = vsel %vm235_vm1, %v10297_v61, %v10258_v8  ;;  %12867 = vmatpush3.bf16.msra.mxu0 %v14531_v16  ;;  %v14547_v45 = vld [vmem:[%s17525_s25 + $0x90] sm:$0xff]   ;;  %v14551_v8 = vld [vmem:[%s17525_s25 + $0x98] sm:$0xff]   ;;  %v14554_v61 = vld [vmem:[%s17525_s25 + $0x20] sm:$0xff]  }
0x2770   :  { %v10308_v23 = vsel %vm8384_vm15, %v17316_v7, %v10298_v35  ;;  %v12081_v7 = vld [vmem:[%s11073_s19] ss:$0 sm:$0xff]  ;;  %12100 = vmatprep.subr.msk.bf16.mxu0 %vm203_vm0, %v12096_v15  ;;  %vm10532_vm0 = vcmask 64512   ;;  %v14559_v16 = vld [vmem:[%s17525_s25 + $0xa8] sm:$0xff]  }
0x2771   :  { %v10312_v44 = vpack.c.bf16 %v17456_v46, %v10308_v23  ;;  %v14555_v35 = vld [vmem:[%s17525_s25 + $0xa0] sm:$0xff]   ;;  %v14556_v23 = vld [vmem:[%s17525_s25 + $0x68] sm:$0xff]  }
0x2773   :  { %12860 = vmatprep.mubr.msk.bf16.mxu1 %vm269_vm3, %v10312_v44  ;;  %v14557_v44 = vld [vmem:[%s17525_s25 + $0xe8] sm:$0xff]  }
0x2774   :  { %12861 = vmatmul.mubr.msk.bf16.vlgmr.msra.gmra.mrb[128].mxu1 %vm269_vm3, %v10313_v54  ;;  %v14553_v54 = vld [vmem:[%s17525_s25 + $0xe0] sm:$0xff]  }
0x2775   :  { %10583 = vmatprep.mubr.bf16.mxu1 %v17644_v11  ;;  %10552 = vmatpush1.bf16.msra.mxu1 %v10540_v4 }
0x2776   :  { %12360 = vmatprep.subr.bf16.mxu1 %v14536_v52 }
0x2847   :  { %v12862_v6 = vpop.f32.mrb[128].mxu1 }
0x2848   :  { %v10402_v53 = vadd.f32 %v12862_v6, %v12081_v7  ;;  %v10393_v37 = vpop.f32.mrb[129].mxu1  ;;  %v14561_v6 = vld [vmem:[%s17525_s25 + $0xf0] sm:$0xff]  }
0x2849   :  { %v10394_v0 = vadd.f32 %v12081_v7, %v10393_v37  ;;  %v12863_v55 = vpop.f32.mrb[130].mxu1  ;;  %v14563_v37 = vld [vmem:[%s17525_s25 + $0xb0] sm:$0xff]  }
0x284a   :  { %v10405_v46 = vadd.f32 %v12863_v55, %v12081_v7  ;;  %v10396_v21 = vpop.f32.mrb[131].mxu1  ;;  %v10410_v28 = vmax.f32 %v10402_v53, 0.0  ;;  %v14562_v53 = vld [vmem:[%s17525_s25 + $0x30] sm:$0xff]   ;;  %v14565_v55 = vld [vmem:[%s17525_s25 + $0xf8] sm:$0xff]  }
0x284b   :  { %v10397_v5 = vadd.f32 %v12081_v7, %v10396_v21  ;;  %v10408_v38 = vmax.f32 %v10394_v0, 0.0  ;;  %v14560_v7 = vld [vmem:[%s17525_s25 + $0x70] sm:$0xff]   ;;  %v14564_v0 = vld [vmem:[%s17525_s25 + $0x78] sm:$0xff]  }
0x284c   :  { %v10411_v13 = vmax.f32 %v10405_v46, 0.0  ;;  %v14566_v46 = vld [vmem:[%s17525_s25 + $0x38] sm:$0xff]  }
0x284d   :  { %v10409_v26 = vmax.f32 %v10397_v5, 0.0  ;;  %v14567_v21 = vld [vmem:[%s17525_s25 + $0xb8] sm:$0xff]   ;;  %v10500_v5 = vld [vmem:[%s11077_s6] sm:$0xf] }
0x284e   :  { %v10413_v19 = vpack.c.bf16 %v10411_v13, %v10410_v28  ;;  %v17645_v28 = vld [vmem:[#allocation4_spill] sm:$0xff] }
0x284f   :  { %v10412_v43 = vpack.c.bf16 %v10409_v26, %v10408_v38  ;;  %v10516_v13 = vsub.s32 3, %v17645_v28  ;;  %v10505_v38 = vrot.slane %v10500_v5, %v14806_v40  ;;  %v17646_v26 = vsub.s32 2, %v17645_v28 }
0x2851   :  { %12868 = vmatprep.mubr.msk.bf16.mxu0 %vm8384_vm15, %v10412_v43  ;;  %v10509_v43 = vrot.slane %v10500_v5, %v14809_v41  ;;  %v10517_v51 = vrot.slane %v10500_v5, %v10516_v13  ;;  %v12103_v13 = vld [vmem:[%s11079_s9] ss:$0 sm:$0xff] }
0x2852   :  { %12869 = vmatmul.mubr.msk.bf16.vlgmr.msra.gmra.mrb[68].mxu0 %vm8384_vm15, %v10413_v19  ;;  %v10513_v19 = vrot.slane %v10500_v5, %v17646_v26 }
0x2853   :  { %10636 = vmatprep.mubr.bf16.mxu0 %v17644_v11  ;;  %10605 = vmatpush1.bf16.msra.mxu0 %v10546_v48 }
0x2854   :  { %12388 = vmatprep.subr.bf16.mxu0 %v14537_v9 }
0x2925   :  { %v12870_v14 = vpop.f32.mrb[68].mxu0 }
0x2926   :  { %v10486_v49 = vadd.f32 %v12870_v14, %v12088_v31  ;;  %v10477_v18 = vpop.f32.mrb[69].mxu0 }
0x2927   :  { %v10478_v34 = vadd.f32 %v12088_v31, %v10477_v18  ;;  %v12871_v30 = vpop.f32.mrb[70].mxu0 }
0x2928   :  { %v10489_v29 = vadd.f32 %v12871_v30, %v12088_v31  ;;  %v10480_v25 = vpop.f32.mrb[71].mxu0  ;;  %v10494_v27 = vmax.f32 %v10486_v49, 0.0 }
0x2929   :  { %v10481_v57 = vadd.f32 %v12088_v31, %v10480_v25  ;;  %v10492_v58 = vmax.f32 %v10478_v34, 0.0 }
0x292a   :  { %v10495_v36 = vmax.f32 %v10489_v29, 0.0 }
0x292b   :  { %v10493_v2 = vmax.f32 %v10481_v57, 0.0 }
0x292c   :  { %v10497_v12 = vpack.c.bf16 %v10495_v36, %v10494_v27 }
0x292d   :  { %v10496_v3 = vpack.c.bf16 %v10493_v2, %v10492_v58 }
0x292f   :  { %12098 = vmatmul.mubr.msk.bf16.vlgmr.msra.gmra.mrb[132].mxu1 %vm10532_vm0, %v10496_v3  ;;  %12101 = vmatmul.mubr.msk.bf16.vlgmr.msra.gmra.mrb[72].mxu0 %vm10532_vm0, %v10496_v3 }
0x2930   :  { %10593 = vmatprep.mubr.bf16.mxu1 %v17644_v11  ;;  %10646 = vmatprep.mubr.bf16.mxu0 %v17644_v11  ;;  %v14548_v11 = vld [vmem:[%s17525_s25 + $0x58] sm:$0xff]  }
0x2931   :  { %12361 = vmatpush3.bf16.msra.mxu1 %v14538_v60  ;;  %12389 = vmatpush3.bf16.msra.mxu0 %v14539_v1 }
0x2932   :  { %12362 = vmatprep.subr.bf16.mxu1 %v14540_v42  ;;  %12390 = vmatprep.subr.bf16.mxu0 %v14541_v20 }
0x2935   :  { %12363 = vmatpush3.bf16.msra.mxu1 %v14542_v56  ;;  %12391 = vmatpush3.bf16.msra.mxu0 %v14543_v47 }
0x2936   :  { %12364 = vmatprep.subr.bf16.mxu1 %v14544_v10  ;;  %12392 = vmatprep.subr.bf16.mxu0 %v14545_v39 }
0x2937   :  { %12099 = vmatmul.mubr.msk.bf16.gmra.mrb[136].mxu1 %vm10532_vm0, %v10497_v12  ;;  %12102 = vmatmul.mubr.msk.bf16.gmra.mrb[76].mxu0 %vm10532_vm0, %v10497_v12 }
0x2939   :  { %12365 = vmatpush3.bf16.msra.mxu1 %v14546_v62  ;;  %12393 = vmatpush3.bf16.msra.mxu0 %v14547_v45 }
0x293a   :  { %12366 = vmatprep.subr.bf16.mxu1 %v14548_v11  ;;  %12394 = vmatprep.subr.bf16.mxu0 %v14549_v50 }
0x293d   :  { %12367 = vmatpush3.bf16.msra.mxu1 %v14550_v32  ;;  %12395 = vmatpush3.bf16.msra.mxu0 %v14551_v8 }
0x293e   :  { %12368 = vmatprep.subr.bf16.mxu1 %v14552_v33  ;;  %12396 = vmatprep.subr.bf16.mxu0 %v14553_v54 }
0x2941   :  { %12369 = vmatpush3.bf16.msra.mxu1 %v14554_v61  ;;  %12397 = vmatpush3.bf16.msra.mxu0 %v14555_v35 }
0x2942   :  { %12370 = vmatprep.subr.bf16.mxu1 %v14556_v23  ;;  %12398 = vmatprep.subr.bf16.mxu0 %v14557_v44 }
0x2945   :  { %12371 = vmatpush3.bf16.msra.mxu1 %v14558_v63  ;;  %12399 = vmatpush3.bf16.msra.mxu0 %v14559_v16 }
0x2946   :  { %12372 = vmatprep.subr.bf16.mxu1 %v14560_v7  ;;  %12400 = vmatprep.subr.bf16.mxu0 %v14561_v6 }
0x2949   :  { %12373 = vmatpush3.bf16.msra.mxu1 %v14562_v53  ;;  %12401 = vmatpush3.bf16.msra.mxu0 %v14563_v37 }
0x294a   :  { %12374 = vmatprep.subr.bf16.mxu1 %v14564_v0  ;;  %12402 = vmatprep.subr.bf16.mxu0 %v14565_v55 }
0x294d   :  { %12375 = vmatpush3.bf16.msra.mxu1 %v14566_v46  ;;  %12403 = vmatpush3.bf16.msra.mxu0 %v14567_v21 }
0x2a02   :  { %v10585_v22 = vpop.f32.mrb[132].mxu1  ;;  %v10638_v24 = vpop.f32.mrb[72].mxu0 }
0x2a03   :  { %v10586_v17 = vadd.f32 %v10585_v22, %v10505_v38  ;;  %v10639_v15 = vadd.f32 %v10638_v24, %v10513_v19  ;;  %v10587_v59 = vpop.f32.mrb[133].mxu1  ;;  %v10640_v4 = vpop.f32.mrb[73].mxu0 }
0x2a04   :  { %v10588_v48 = vadd.f32 %v10587_v59, %v10509_v43  ;;  %v10641_v52 = vadd.f32 %v10640_v4, %v10517_v51  ;;  %v10589_v9 = vpop.f32.mrb[134].mxu1  ;;  %v10642_v31 = vpop.f32.mrb[74].mxu0 }
0x2a05   :  { %v10590_v14 = vadd.f32 %v10589_v9, %v10505_v38  ;;  %v10643_v49 = vadd.f32 %v10642_v31, %v10513_v19  ;;  %v10591_v18 = vpop.f32.mrb[135].mxu1  ;;  %v10644_v40 = vpop.f32.mrb[75].mxu0  ;;  %v10657_v29 = vmax.f32 %v10586_v17, 0.0  ;;  %v10659_v25 = vmax.f32 %v10639_v15, 0.0 }
0x2a06   :  { %v10592_v34 = vadd.f32 %v10591_v18, %v10509_v43  ;;  %v10645_v30 = vadd.f32 %v10644_v40, %v10517_v51  ;;  %v10658_v27 = vmax.f32 %v10588_v48, 0.0  ;;  %v10660_v36 = vmax.f32 %v10641_v52, 0.0 }
0x2a07   :  { %v10661_v41 = vmax.f32 %v10590_v14, 0.0  ;;  %v10663_v57 = vmax.f32 %v10643_v49, 0.0 }
0x2a08   :  { %v10662_v58 = vmax.f32 %v10592_v34, 0.0  ;;  %v10664_v2 = vmax.f32 %v10645_v30, 0.0 }
0x2a09   :  { %v10673_v12 = vpack.c.bf16 %v10661_v41, %v10657_v29  ;;  %v10675_v3 = vpack.c.bf16 %v10663_v57, %v10659_v25 }
0x2a0a   :  { %v10674_v60 = vpack.c.bf16 %v10662_v58, %v10658_v27  ;;  %v10676_v1 = vpack.c.bf16 %v10664_v2, %v10660_v36  ;;  %v10595_v42 = vpop.f32.mrb[136].mxu1  ;;  %v10648_v20 = vpop.f32.mrb[76].mxu0 }
0x2a0b   :  { %v10596_v56 = vadd.f32 %v10595_v42, %v10505_v38  ;;  %v10649_v47 = vadd.f32 %v10648_v20, %v10513_v19  ;;  %v10597_v10 = vpop.f32.mrb[137].mxu1  ;;  %v10650_v39 = vpop.f32.mrb[77].mxu0 }
0x2a0c   :  { %v10598_v62 = vadd.f32 %v10597_v10, %v10509_v43  ;;  %v10651_v45 = vadd.f32 %v10650_v39, %v10517_v51  ;;  %v10599_v11 = vpop.f32.mrb[138].mxu1  ;;  %v10652_v50 = vpop.f32.mrb[78].mxu0  ;;  %10976 = vmatprep.mubr.bf16.mxu1 %v10674_v60  ;;  %11025 = vmatprep.mubr.bf16.mxu0 %v10676_v1 }
0x2a0d   :  { %v10600_v32 = vadd.f32 %v10599_v11, %v10505_v38  ;;  %v10653_v8 = vadd.f32 %v10652_v50, %v10513_v19  ;;  %v10601_v33 = vpop.f32.mrb[139].mxu1  ;;  %v10654_v54 = vpop.f32.mrb[79].mxu0  ;;  %10977 = vmatmul.mubr.bf16.vlgmr.msra.gmra.mrb[140].mxu1 %v10673_v12  ;;  %11026 = vmatmul.mubr.bf16.vlgmr.msra.gmra.mrb[80].mxu0 %v10675_v3  ;;  %v10665_v23 = vmax.f32 %v10596_v56, 0.0  ;;  %v10667_v44 = vmax.f32 %v10649_v47, 0.0 }
0x2a0e   :  { %v10602_v61 = vadd.f32 %v10601_v33, %v10509_v43  ;;  %v10655_v35 = vadd.f32 %v10654_v54, %v10517_v51  ;;  %v10666_v7 = vmax.f32 %v10598_v62, 0.0  ;;  %v10668_v6 = vmax.f32 %v10651_v45, 0.0 }
0x2a0f   :  { %v10669_v63 = vmax.f32 %v10600_v32, 0.0  ;;  %v10671_v16 = vmax.f32 %v10653_v8, 0.0 }
0x2a10   :  { %v10670_v53 = vmax.f32 %v10602_v61, 0.0  ;;  %v10672_v37 = vmax.f32 %v10655_v35, 0.0 }
0x2a11   :  { %v10677_v0 = vpack.c.bf16 %v10669_v63, %v10665_v23  ;;  %v10679_v55 = vpack.c.bf16 %v10671_v16, %v10667_v44 }
0x2a12   :  { %v10678_v46 = vpack.c.bf16 %v10670_v53, %v10666_v7  ;;  %v10680_v21 = vpack.c.bf16 %v10672_v37, %v10668_v6 }
0x2a14   :  { %10984 = vmatprep.mubr.bf16.mxu1 %v10678_v46  ;;  %11033 = vmatprep.mubr.bf16.mxu0 %v10680_v21 }
0x2a15   :  { %10985 = vmatmul.mubr.bf16.gmra.mrb[144].mxu1 %v10677_v0  ;;  %11034 = vmatmul.mubr.bf16.gmra.mrb[84].mxu0 %v10679_v55 }
0x2ae0   :  { %v12376_v5 = vpop.f32.mrb[140].mxu1  ;;  %v12404_v28 = vpop.f32.mrb[80].mxu0 }
0x2ae1   :  { %v12377_v38 = vpop.f32.mrb[141].mxu1  ;;  %v12405_v26 = vpop.f32.mrb[81].mxu0 }
0x2ae2   :  { %v12378_v19 = vadd.f32 %v12377_v38, %v12376_v5  ;;  %v12406_v43 = vadd.f32 %v12405_v26, %v12404_v28  ;;  %v12379_v51 = vpop.f32.mrb[142].mxu1  ;;  %v12407_v22 = vpop.f32.mrb[82].mxu0 }
0x2ae3   :  { %v12380_v24 = vpop.f32.mrb[143].mxu1  ;;  %v12408_v17 = vpop.f32.mrb[83].mxu0 }
0x2ae4   :  { %v10979_v15 = vadd.f32 %v12378_v19, %v12103_v13  ;;  %v12381_v59 = vadd.f32 %v12380_v24, %v12379_v51  ;;  %v12409_v4 = vadd.f32 %v12408_v17, %v12407_v22 }
0x2ae6   :  { %v11028_v48 = vadd.f32 %v12406_v43, %v10979_v15  ;;  %v10982_v52 = vadd.f32 %v12381_v59, %v12103_v13 }
0x2ae8   :  { %11042 = vst [vmem:[%s17582_s13] sm:$0xff] %v11028_v48  ;;  %v11031_v9 = vadd.f32 %v12409_v4, %v10982_v52  ;;  %v12382_v31 = vpop.f32.mrb[144].mxu1  ;;  %v12410_v14 = vpop.f32.mrb[84].mxu0 }
0x2ae9   :  { %v12383_v49 = vpop.f32.mrb[145].mxu1  ;;  %v12411_v18 = vpop.f32.mrb[85].mxu0 }
0x2aea   :  { %11043 = vst [vmem:[%s17582_s13 + $0x8] sm:$0xff] %v11031_v9  ;;  %v12384_v40 = vadd.f32 %v12383_v49, %v12382_v31  ;;  %v12412_v34 = vadd.f32 %v12411_v18, %v12410_v14  ;;  %v12385_v30 = vpop.f32.mrb[146].mxu1  ;;  %v12413_v29 = vpop.f32.mrb[86].mxu0 }
0x2aeb   :  { %v12386_v25 = vpop.f32.mrb[147].mxu1  ;;  %v12414_v41 = vpop.f32.mrb[87].mxu0 }
0x2aec   :  { %v10987_v57 = vadd.f32 %v12384_v40, %v12103_v13  ;;  %v12387_v27 = vadd.f32 %v12386_v25, %v12385_v30  ;;  %v12415_v36 = vadd.f32 %v12414_v41, %v12413_v29 }
0x2aee   :  { %v11036_v58 = vadd.f32 %v12412_v34, %v10987_v57  ;;  %v10990_v2 = vadd.f32 %v12387_v27, %v12103_v13 }
0x2af0   :  { %11044 = vst [vmem:[%s17582_s13 + $0x10] sm:$0xff] %v11036_v58  ;;  %v11039_v12 = vadd.f32 %v12415_v36, %v10990_v2 }
0x2af2   :  { %11045 = vst [vmem:[%s17582_s13 + $0x18] sm:$0xff] %v11039_v12 }

</bundles_post_ra>
